<compile_context>
chip_gen: v7x
topology: tpu7x:2x2x1
jax: 0.10.0
libtpu: 0.0.40
codegen_flags: <defaults>
</compile_context>

<pallas_src>
import functools

import jax
import jax.numpy as jnp
from jax import lax
from jax.experimental import pallas as pl
from jax.experimental.pallas import tpu as pltpu

EPS = 1e-5
MATMUL_DTYPE = jnp.bfloat16   # MXU operand dtype; set to jnp.float32 for exact matching.


def _row_tile(m):
    # Largest row tile (<=1024). If it covers the whole array the (8,128) rule is
    # satisfied trivially; otherwise 1024 is a multiple of 8/16.
    return m if m <= 1024 else 1024


# ---------------------------------------------------------------------------
# Kernel 1: per-channel sum / sum-of-squares (BatchNorm1 statistics)
# ---------------------------------------------------------------------------
def _stats_kernel(x_ref, sum_ref, sq_ref, *, M, TM):
    i = pl.program_id(0)

    @pl.when(i == 0)
    def _():
        sum_ref[...] = jnp.zeros_like(sum_ref)
        sq_ref[...] = jnp.zeros_like(sq_ref)

    x = x_ref[...]
    # Mask the (possibly out-of-bounds) tail rows of the last tile.
    row = i * TM + lax.broadcasted_iota(jnp.int32, (TM, 1), 0)
    x = jnp.where(row < M, x, 0.0)
    sum_ref[...] += jnp.sum(x, axis=0, keepdims=True)
    sq_ref[...] += jnp.sum(x * x, axis=0, keepdims=True)


def channel_stats(x_flat):
    M, C = x_flat.shape
    TM = _row_tile(M)
    sums, sqs = pl.pallas_call(
        functools.partial(_stats_kernel, M=M, TM=TM),
        out_shape=(jax.ShapeDtypeStruct((1, C), jnp.float32),
                   jax.ShapeDtypeStruct((1, C), jnp.float32)),
        grid=(pl.cdiv(M, TM),),
        in_specs=[pl.BlockSpec((TM, C), lambda i: (i, 0))],
        out_specs=(pl.BlockSpec((1, C), lambda i: (0, 0)),
                   pl.BlockSpec((1, C), lambda i: (0, 0))),
        compiler_params=pltpu.CompilerParams(dimension_semantics=("arbitrary",)),
    )(x_flat)
    mean = sums / M
    var = jnp.maximum(sqs / M - mean * mean, 0.0)   # biased variance, clamped >= 0
    return mean, var


# ---------------------------------------------------------------------------
# Kernel 2: fused BN1 -> ReLU -> 1x1 conv (+ BN2 statistics of the result)
# ---------------------------------------------------------------------------
def _bn_relu_conv1x1_stats_kernel(x_ref, scale_ref, shift_ref, w_ref, b_ref,
                                  h_ref, hsum_ref, hsq_ref, *, M, TM):
    i = pl.program_id(0)

    @pl.when(i == 0)
    def _():
        hsum_ref[...] = jnp.zeros_like(hsum_ref)
        hsq_ref[...] = jnp.zeros_like(hsq_ref)

    # BN1 + ReLU in f32 on the VPU; bf16 only at the MXU boundary.
    a = jnp.maximum(x_ref[...] * scale_ref[...] + shift_ref[...], 0.0)
    h = jnp.dot(a.astype(w_ref.dtype), w_ref[...],
                preferred_element_type=jnp.float32) + b_ref[...]
    h_ref[...] = h.astype(h_ref.dtype)

    # Fused BN2 statistics (mask out-of-bounds tail rows of the last tile).
    row = i * TM + lax.broadcasted_iota(jnp.int32, (TM, 1), 0)
    hm = jnp.where(row < M, h, 0.0)
    hsum_ref[...] += jnp.sum(hm, axis=0, keepdims=True)
    hsq_ref[...] += jnp.sum(hm * hm, axis=0, keepdims=True)


def bn_relu_conv1x1_stats(x_flat, scale, shift, w, b):
    M, Cin = x_flat.shape
    Cout = w.shape[1]
    TM = _row_tile(M)
    # NOTE: for very large Cin raise pltpu.CompilerParams(vmem_limit_bytes=...) so
    # the double-buffered (TM, Cin) tiles keep the DMA pipelined (v6e feedback).
    return pl.pallas_call(
        functools.partial(_bn_relu_conv1x1_stats_kernel, M=M, TM=TM),
        out_shape=(jax.ShapeDtypeStruct((M, Cout), MATMUL_DTYPE),
                   jax.ShapeDtypeStruct((1, Cout), jnp.float32),
                   jax.ShapeDtypeStruct((1, Cout), jnp.float32)),
        grid=(pl.cdiv(M, TM),),
        in_specs=[pl.BlockSpec((TM, Cin), lambda i: (i, 0)),
                  pl.BlockSpec((1, Cin), lambda i: (0, 0)),
                  pl.BlockSpec((1, Cin), lambda i: (0, 0)),
                  pl.BlockSpec((Cin, Cout), lambda i: (0, 0)),
                  pl.BlockSpec((1, Cout), lambda i: (0, 0))],
        out_specs=(pl.BlockSpec((TM, Cout), lambda i: (i, 0)),
                   pl.BlockSpec((1, Cout), lambda i: (0, 0)),
                   pl.BlockSpec((1, Cout), lambda i: (0, 0))),
        compiler_params=pltpu.CompilerParams(dimension_semantics=("arbitrary",)),
    )(x_flat, scale, shift, w, b)


# ---------------------------------------------------------------------------
# Kernel 3: fused BN2 -> ReLU -> 3x3 conv (zero padding in-kernel via masked
#           pltpu.roll taps) -> channel concat with x.  One image per grid step.
# ---------------------------------------------------------------------------
def _bn_relu_conv3x3_concat_kernel(x_ref, h_ref, scale_ref, shift_ref,
                                   w_ref, b_ref, yc_ref, xc_ref, o_ref,
                                   *, H, W, Cin, G):
    HW = H * W
    # BN2 + ReLU in f32 (h is stored bf16, upcast on load).
    a = jnp.maximum(h_ref[...].astype(jnp.float32) * scale_ref[...]
                    + shift_ref[...], 0.0)                       # (HW, C4) f32

    yc = yc_ref[...]                                             # (HW, 1) spatial row
    xc = xc_ref[...]                                             # (HW, 1) spatial col

    acc = None
    for ky in (-1, 0, 1):
        for kx in (-1, 0, 1):
            tap = (ky + 1) * 3 + (kx + 1)
            off = ky * W + kx
            # a[y+ky, x+kx] == a_flat[row + off]; fetch via an XLU rotate (no
            # sliced/reshaped VMEM copies), then mask the out-of-image taps.
            src = a if off == 0 else pltpu.roll(a, shift=(-off) % HW, axis=0)
            part = jnp.dot(src.astype(w_ref.dtype), w_ref[tap],
                           preferred_element_type=jnp.float32)   # (HW, G)
            conds = []
            if ky == -1:
                conds.append(yc >= 1)
            if ky == 1:
                conds.append(yc <= H - 2)
            if kx == -1:
                conds.append(xc >= 1)
            if kx == 1:
                conds.append(xc <= W - 2)
            if conds:
                m = conds[0]
                for c in conds[1:]:
                    m = jnp.logical_and(m, c)
                part = part * m.astype(part.dtype)               # zero padding
            acc = part if acc is None else acc + part
    y = acc + b_ref[...]

    # Fused torch.cat((x, y), channel axis): single lane-dense output slab.
    o_ref[:, :Cin] = x_ref[...]
    o_ref[:, Cin:] = y.astype(o_ref.dtype)


def bn_relu_conv3x3_concat(x_flat, h_flat, scale, shift, w, b, N, H, W):
    HW = H * W
    Cin = x_flat.shape[1]
    C4 = h_flat.shape[1]
    G = w.shape[2]
    Cout = Cin + G
    if N > 1:
        assert HW % 16 == 0, "H*W must be sublane-aligned when batching images"
    # Spatial coordinates of each flattened pixel (precomputed; avoids in-kernel div/mod).
    yc = jnp.repeat(jnp.arange(H, dtype=jnp.int32), W).reshape(HW, 1)
    xc = jnp.tile(jnp.arange(W, dtype=jnp.int32), H).reshape(HW, 1)
    # TODO(synk): for large H*W (v7x: 64 MiB VMEM) tile spatially in H-strips with a
    # 1-row halo and grid (N, strips) so both TensorCores stay busy when N is small.
    return pl.pallas_call(
        functools.partial(_bn_relu_conv3x3_concat_kernel, H=H, W=W, Cin=Cin, G=G),
        out_shape=jax.ShapeDtypeStruct((N * HW, Cout), jnp.float32),
        grid=(N,),
        in_specs=[pl.BlockSpec((HW, Cin), lambda n: (n, 0)),
                  pl.BlockSpec((HW, C4), lambda n: (n, 0)),
                  pl.BlockSpec((1, C4), lambda n: (0, 0)),
                  pl.BlockSpec((1, C4), lambda n: (0, 0)),
                  pl.BlockSpec((9, C4, G), lambda n: (0, 0, 0)),
                  pl.BlockSpec((1, G), lambda n: (0, 0)),
                  pl.BlockSpec((HW, 1), lambda n: (0, 0)),
                  pl.BlockSpec((HW, 1), lambda n: (0, 0))],
        out_specs=pl.BlockSpec((HW, Cout), lambda n: (n, 0)),
        compiler_params=pltpu.CompilerParams(dimension_semantics=("parallel",)),
    )(x_flat, h_flat, scale, shift, w, b, yc, xc)


# ---------------------------------------------------------------------------
# DenseBasic forward
# ---------------------------------------------------------------------------
def dense_basic_forward_nhwc(x_nhwc, params):
    """Transpose-free entry point (NHWC in, NHWC out)."""
    g1, be1, w1, b1, g2, be2, w2, b2 = params
    N, H, W, Cin = x_nhwc.shape
    M = N * H * W
    G = w2.shape[2]

    x_flat = x_nhwc.reshape(M, Cin)

    # --- BN1 statistics (training-mode forward: batch stats, biased variance) ---
    mean1, var1 = channel_stats(x_flat)
    scale1 = g1[None, :] * lax.rsqrt(var1 + EPS)
    shift1 = be1[None, :] - mean1 * scale1

    # --- BN1 -> ReLU -> 1x1 conv, BN2 statistics fused into the same pass ---
    h, hsum, hsq = bn_relu_conv1x1_stats(
        x_flat, scale1, shift1, w1.astype(MATMUL_DTYPE), b1[None, :])
    mean2 = hsum / M
    var2 = jnp.maximum(hsq / M - mean2 * mean2, 0.0)
    scale2 = g2[None, :] * lax.rsqrt(var2 + EPS)
    shift2 = be2[None, :] - mean2 * scale2

    # --- BN2 -> ReLU -> 3x3 conv (padding=1 in-kernel) -> concat with x ---
    out_flat = bn_relu_conv3x3_concat(
        x_flat, h, scale2, shift2, w2.astype(MATMUL_DTYPE), b2[None, :], N, H, W)
    return out_flat.reshape(N, H, W, Cin + G)


def dense_basic_forward(x_nchw, params):
    # NCHW wrapper matching the PyTorch interface. Prefer dense_basic_forward_nhwc
    # to skip the two boundary layout shuffles when the caller can supply NHWC.
    x_nhwc = jnp.transpose(x_nchw, (0, 2, 3, 1))
    out_nhwc = dense_basic_forward_nhwc(x_nhwc, params)
    return jnp.transpose(out_nhwc, (0, 3, 1, 2))


# ---------------------------------------------------------------------------
# Pure-JAX f32 reference (same training-mode BN semantics) for verification
# ---------------------------------------------------------------------------
def dense_basic_ref(x_nchw, params):
    g1, be1, w1, b1, g2, be2, w2, b2 = params
    x = jnp.transpose(x_nchw, (0, 2, 3, 1))                       # NHWC

    def bn(v, g, be):
        m = jnp.mean(v, axis=(0, 1, 2))
        va = jnp.mean((v - m) ** 2, axis=(0, 1, 2))
        return (v - m) * lax.rsqrt(va + EPS) * g + be

    h = jnp.maximum(bn(x, g1, be1), 0.0)
    h = jnp.einsum('nhwc,cd->nhwd', h, w1) + b1
    h = jnp.maximum(bn(h, g2, be2), 0.0)
    w2_hwio = w2.reshape(3, 3, w2.shape[1], w2.shape[2])
    y = lax.conv_general_dilated(
        h, w2_hwio, window_strides=(1, 1), padding=((1, 1), (1, 1)),
        dimension_numbers=('NHWC', 'HWIO', 'NHWC')) + b2
    y = jnp.transpose(y, (0, 3, 1, 2))
    return jnp.concatenate([x_nchw, y], axis=1)


def init_params(key, in_channels, growth_rate):
    C4, G = growth_rate * 4, growth_rate
    k = jax.random.split(key, 8)
    g1 = jax.random.uniform(k[0], (in_channels,), jnp.float32, 0.5, 1.5)
    be1 = jax.random.normal(k[1], (in_channels,), jnp.float32) * 0.1
    w1 = jax.random.normal(k[2], (in_channels, C4), jnp.float32) * 0.1   # (Cin, C4)
    b1 = jax.random.normal(k[3], (C4,), jnp.float32) * 0.1
    g2 = jax.random.uniform(k[4], (C4,), jnp.float32, 0.5, 1.5)
    be2 = jax.random.normal(k[5], (C4,), jnp.float32) * 0.1
    w2 = jax.random.normal(k[6], (9, C4, G), jnp.float32) * 0.05         # (ky*3+kx, C4, G)
    b2 = jax.random.normal(k[7], (G,), jnp.float32) * 0.1
    return (g1, be1, w1, b1, g2, be2, w2, b2)


if __name__ == "__main__":
    N, Cin, H, W = 2, 4, 16, 16
    growth_rate = 8

    key = jax.random.PRNGKey(0)
    kx_, kp = jax.random.split(key)
    x = jax.random.normal(kx_, (N, Cin, H, W), jnp.float32)
    params = init_params(kp, Cin, growth_rate)

    out = jax.jit(dense_basic_forward)(x, params)
    out = jax.block_until_ready(out)

    ref = dense_basic_ref(x, params)
    assert out.shape == (N, Cin + growth_rate, H, W), out.shape
    # The first Cin channels are the pass-through copy of x (exact in f32).
    assert jnp.allclose(out[:, :Cin], x), "pass-through channels mismatch"
    # Loose tolerance vs. the pure-f32 reference accounts for bf16 MXU operands.
    max_err = float(jnp.max(jnp.abs(out - ref)))
    assert jnp.allclose(out, ref, rtol=5e-2, atol=5e-2), max_err

    print("KERNEL_OK")
</pallas_src>

<mosaic_0001>
module attributes {stable_mosaic.version = 11 : i64} {
  func.func @_stats_kernel(%arg0: i32, %arg1: memref<512x4xf32, #tpu.memory_space<vmem>>, %arg2: memref<1x4xf32, #tpu.memory_space<vmem>>, %arg3: memref<1x4xf32, #tpu.memory_space<vmem>>) attributes {dimension_semantics = [#tpu.dimension_semantics<arbitrary>], iteration_bounds = array<i64: 1>, scalar_prefetch = 0 : i64, scratch_operands = 0 : i64, tpu.core_type = #tpu.core_type<tc>, window_params = [{transform_indices = @transform_0, window_bounds = array<i64: 512, 4>}, {pipeline_mode = #tpu.pipeline_mode<synchronous>, transform_indices = @transform_1, window_bounds = array<i64: 1, 4>}, {pipeline_mode = #tpu.pipeline_mode<synchronous>, transform_indices = @transform_2, window_bounds = array<i64: 1, 4>}]} {
    %c0_i32 = arith.constant 0 : i32
    %0 = arith.cmpi eq, %arg0, %c0_i32 : i32
    %1 = arith.extui %0 : i1 to i32
    %c0_i32_0 = arith.constant 0 : i32
    %2 = arith.cmpi ne, %1, %c0_i32_0 : i32
    scf.if %2 {
      %cst_13 = arith.constant 0.000000e+00 : f32
      %25 = vector.broadcast %cst_13 : f32 to vector<1x4xf32>
      %c0_14 = arith.constant 0 : index
      %c0_15 = arith.constant 0 : index
      %26 = vector.load %arg2[%c0_14, %c0_15] : memref<1x4xf32, #tpu.memory_space<vmem>>, vector<1x4xf32>
      tpu.vector_store %arg2[%c0_14, %c0_15], %25 {strides = array<i32>} : memref<1x4xf32, #tpu.memory_space<vmem>>, vector<1x4xf32>,
      %cst_16 = arith.constant 0.000000e+00 : f32
      %27 = vector.broadcast %cst_16 : f32 to vector<1x4xf32>
      %c0_17 = arith.constant 0 : index
      %c0_18 = arith.constant 0 : index
      %28 = vector.load %arg3[%c0_17, %c0_18] : memref<1x4xf32, #tpu.memory_space<vmem>>, vector<1x4xf32>
      tpu.vector_store %arg3[%c0_17, %c0_18], %27 {strides = array<i32>} : memref<1x4xf32, #tpu.memory_space<vmem>>, vector<1x4xf32>,
    } else {
    }
    %c0 = arith.constant 0 : index
    %c0_1 = arith.constant 0 : index
    %3 = vector.load %arg1[%c0, %c0_1] : memref<512x4xf32, #tpu.memory_space<vmem>>, vector<512x4xf32>
    %c512_i32 = arith.constant 512 : i32
    %4 = arith.muli %arg0, %c512_i32 : i32
    %5 = tpu.iota {dimensions = array<i32: 0>} : vector<512x1xi32>
    %6 = vector.broadcast %4 : i32 to vector<512x1xi32>
    %7 = arith.addi %6, %5 : vector<512x1xi32>
    %c512_i32_2 = arith.constant 512 : i32
    %8 = vector.broadcast %c512_i32_2 : i32 to vector<512x1xi32>
    %9 = arith.cmpi slt, %7, %8 : vector<512x1xi32>
    %cst = arith.constant 0.000000e+00 : f32
    %10 = vector.shape_cast %9 : vector<512x1xi1> to vector<512x1xi1>
    %11 = vector.broadcast %10 : vector<512x1xi1> to vector<512x4xi1>
    %12 = vector.broadcast %cst : f32 to vector<512x4xf32>
    %13 = arith.select %11, %3, %12 : vector<512x4xi1>, vector<512x4xf32>
    %c0_3 = arith.constant 0 : index
    %c0_4 = arith.constant 0 : index
    %14 = vector.load %arg2[%c0_3, %c0_4] : memref<1x4xf32, #tpu.memory_space<vmem>>, vector<1x4xf32>
    %cst_5 = arith.constant dense<0.000000e+00> : vector<4xf32>
    %15 = vector.multi_reduction <add>, %13, %cst_5 [0] : vector<512x4xf32> to vector<4xf32>
    %16 = vector.shape_cast %15 : vector<4xf32> to vector<1x4xf32>
    %17 = arith.addf %14, %16 : vector<1x4xf32>
    %c0_6 = arith.constant 0 : index
    %c0_7 = arith.constant 0 : index
    %18 = vector.load %arg2[%c0_6, %c0_7] : memref<1x4xf32, #tpu.memory_space<vmem>>, vector<1x4xf32>
    tpu.vector_store %arg2[%c0_6, %c0_7], %17 {strides = array<i32>} : memref<1x4xf32, #tpu.memory_space<vmem>>, vector<1x4xf32>,
    %c0_8 = arith.constant 0 : index
    %c0_9 = arith.constant 0 : index
    %19 = vector.load %arg3[%c0_8, %c0_9] : memref<1x4xf32, #tpu.memory_space<vmem>>, vector<1x4xf32>
    %20 = arith.mulf %13, %13 : vector<512x4xf32>
    %cst_10 = arith.constant dense<0.000000e+00> : vector<4xf32>
    %21 = vector.multi_reduction <add>, %20, %cst_10 [0] : vector<512x4xf32> to vector<4xf32>
    %22 = vector.shape_cast %21 : vector<4xf32> to vector<1x4xf32>
    %23 = arith.addf %19, %22 : vector<1x4xf32>
    %c0_11 = arith.constant 0 : index
    %c0_12 = arith.constant 0 : index
    %24 = vector.load %arg3[%c0_11, %c0_12] : memref<1x4xf32, #tpu.memory_space<vmem>>, vector<1x4xf32>
    tpu.vector_store %arg3[%c0_11, %c0_12], %23 {strides = array<i32>} : memref<1x4xf32, #tpu.memory_space<vmem>>, vector<1x4xf32>,
    return
  }
  func.func @transform_0(%arg0: i32) -> (i32, i32) {
    %c0_i32 = arith.constant 0 : i32
    %c0_i32_0 = arith.constant 0 : i32
    return %arg0, %c0_i32 : i32, i32
  }
  func.func @transform_1(%arg0: i32) -> (i32, i32) {
    %c0_i32 = arith.constant 0 : i32
    %c0_i32_0 = arith.constant 0 : i32
    %c0_i32_1 = arith.constant 0 : i32
    return %c0_i32, %c0_i32_0 : i32, i32
  }
  func.func @transform_2(%arg0: i32) -> (i32, i32) {
    %c0_i32 = arith.constant 0 : i32
    %c0_i32_0 = arith.constant 0 : i32
    %c0_i32_1 = arith.constant 0 : i32
    return %c0_i32, %c0_i32_0 : i32, i32
  }
}

module attributes {stable_mosaic.version = 11 : i64} {
  func.func @_bn_relu_conv1x1_stats_kernel(%arg0: i32, %arg1: memref<512x4xf32, #tpu.memory_space<vmem>>, %arg2: memref<1x4xf32, #tpu.memory_space<vmem>>, %arg3: memref<1x4xf32, #tpu.memory_space<vmem>>, %arg4: memref<4x32xbf16, #tpu.memory_space<vmem>>, %arg5: memref<1x32xf32, #tpu.memory_space<vmem>>, %arg6: memref<512x32xbf16, #tpu.memory_space<vmem>>, %arg7: memref<1x32xf32, #tpu.memory_space<vmem>>, %arg8: memref<1x32xf32, #tpu.memory_space<vmem>>) attributes {dimension_semantics = [#tpu.dimension_semantics<arbitrary>], iteration_bounds = array<i64: 1>, scalar_prefetch = 0 : i64, scratch_operands = 0 : i64, tpu.core_type = #tpu.core_type<tc>, window_params = [{transform_indices = @transform_0, window_bounds = array<i64: 512, 4>}, {pipeline_mode = #tpu.pipeline_mode<synchronous>, transform_indices = @transform_1, window_bounds = array<i64: 1, 4>}, {pipeline_mode = #tpu.pipeline_mode<synchronous>, transform_indices = @transform_2, window_bounds = array<i64: 1, 4>}, {pipeline_mode = #tpu.pipeline_mode<synchronous>, transform_indices = @transform_3, window_bounds = array<i64: 4, 32>}, {pipeline_mode = #tpu.pipeline_mode<synchronous>, transform_indices = @transform_4, window_bounds = array<i64: 1, 32>}, {transform_indices = @transform_5, window_bounds = array<i64: 512, 32>}, {pipeline_mode = #tpu.pipeline_mode<synchronous>, transform_indices = @transform_6, window_bounds = array<i64: 1, 32>}, {pipeline_mode = #tpu.pipeline_mode<synchronous>, transform_indices = @transform_7, window_bounds = array<i64: 1, 32>}]} {
    %c0_i32 = arith.constant 0 : i32
    %0 = arith.cmpi eq, %arg0, %c0_i32 : i32
    %1 = arith.extui %0 : i1 to i32
    %c0_i32_0 = arith.constant 0 : i32
    %2 = arith.cmpi ne, %1, %c0_i32_0 : i32
    scf.if %2 {
      %cst_25 = arith.constant 0.000000e+00 : f32
      %41 = vector.broadcast %cst_25 : f32 to vector<1x32xf32>
      %c0_26 = arith.constant 0 : index
      %c0_27 = arith.constant 0 : index
      %42 = vector.load %arg7[%c0_26, %c0_27] : memref<1x32xf32, #tpu.memory_space<vmem>>, vector<1x32xf32>
      tpu.vector_store %arg7[%c0_26, %c0_27], %41 {strides = array<i32>} : memref<1x32xf32, #tpu.memory_space<vmem>>, vector<1x32xf32>,
      %cst_28 = arith.constant 0.000000e+00 : f32
      %43 = vector.broadcast %cst_28 : f32 to vector<1x32xf32>
      %c0_29 = arith.constant 0 : index
      %c0_30 = arith.constant 0 : index
      %44 = vector.load %arg8[%c0_29, %c0_30] : memref<1x32xf32, #tpu.memory_space<vmem>>, vector<1x32xf32>
      tpu.vector_store %arg8[%c0_29, %c0_30], %43 {strides = array<i32>} : memref<1x32xf32, #tpu.memory_space<vmem>>, vector<1x32xf32>,
    } else {
    }
    %c0 = arith.constant 0 : index
    %c0_1 = arith.constant 0 : index
    %3 = vector.load %arg1[%c0, %c0_1] : memref<512x4xf32, #tpu.memory_space<vmem>>, vector<512x4xf32>
    %c0_2 = arith.constant 0 : index
    %c0_3 = arith.constant 0 : index
    %4 = vector.load %arg2[%c0_2, %c0_3] : memref<1x4xf32, #tpu.memory_space<vmem>>, vector<1x4xf32>
    %5 = vector.broadcast %4 : vector<1x4xf32> to vector<512x4xf32>
    %6 = arith.mulf %3, %5 : vector<512x4xf32>
    %c0_4 = arith.constant 0 : index
    %c0_5 = arith.constant 0 : index
    %7 = vector.load %arg3[%c0_4, %c0_5] : memref<1x4xf32, #tpu.memory_space<vmem>>, vector<1x4xf32>
    %8 = vector.broadcast %7 : vector<1x4xf32> to vector<512x4xf32>
    %9 = arith.addf %6, %8 : vector<512x4xf32>
    %cst = arith.constant 0.000000e+00 : f32
    %10 = vector.broadcast %cst : f32 to vector<512x4xf32>
    %11 = arith.maximumf %9, %10 : vector<512x4xf32>
    %12 = arith.truncf %11 : vector<512x4xf32> to vector<512x4xbf16>
    %c0_6 = arith.constant 0 : index
    %c0_7 = arith.constant 0 : index
    %13 = vector.load %arg4[%c0_6, %c0_7] : memref<4x32xbf16, #tpu.memory_space<vmem>>, vector<4x32xbf16>
    %cst_8 = arith.constant dense<0.000000e+00> : vector<512x32xf32>
    %14 = tpu.matmul %12, %13, %cst_8 {dimension_numbers = #tpu.dot_dimension_numbers<[1], [0], [0], [1], [0, 0, 1, 1], [], []>} : vector<512x4xbf16>, vector<4x32xbf16>, vector<512x32xf32> -> vector<512x32xf32>
    %c0_9 = arith.constant 0 : index
    %c0_10 = arith.constant 0 : index
    %15 = vector.load %arg5[%c0_9, %c0_10] : memref<1x32xf32, #tpu.memory_space<vmem>>, vector<1x32xf32>
    %16 = vector.broadcast %15 : vector<1x32xf32> to vector<512x32xf32>
    %17 = arith.addf %14, %16 : vector<512x32xf32>
    %18 = arith.truncf %17 : vector<512x32xf32> to vector<512x32xbf16>
    %c0_11 = arith.constant 0 : index
    %c0_12 = arith.constant 0 : index
    %19 = vector.load %arg6[%c0_11, %c0_12] : memref<512x32xbf16, #tpu.memory_space<vmem>>, vector<512x32xbf16>
    tpu.vector_store %arg6[%c0_11, %c0_12], %18 {strides = array<i32>} : memref<512x32xbf16, #tpu.memory_space<vmem>>, vector<512x32xbf16>,
    %c512_i32 = arith.constant 512 : i32
    %20 = arith.muli %arg0, %c512_i32 : i32
    %21 = tpu.iota {dimensions = array<i32: 0>} : vector<512x1xi32>
    %22 = vector.broadcast %20 : i32 to vector<512x1xi32>
    %23 = arith.addi %22, %21 : vector<512x1xi32>
    %c512_i32_13 = arith.constant 512 : i32
    %24 = vector.broadcast %c512_i32_13 : i32 to vector<512x1xi32>
    %25 = arith.cmpi slt, %23, %24 : vector<512x1xi32>
    %cst_14 = arith.constant 0.000000e+00 : f32
    %26 = vector.shape_cast %25 : vector<512x1xi1> to vector<512x1xi1>
    %27 = vector.broadcast %26 : vector<512x1xi1> to vector<512x32xi1>
    %28 = vector.broadcast %cst_14 : f32 to vector<512x32xf32>
    %29 = arith.select %27, %17, %28 : vector<512x32xi1>, vector<512x32xf32>
    %c0_15 = arith.constant 0 : index
    %c0_16 = arith.constant 0 : index
    %30 = vector.load %arg7[%c0_15, %c0_16] : memref<1x32xf32, #tpu.memory_space<vmem>>, vector<1x32xf32>
    %cst_17 = arith.constant dense<0.000000e+00> : vector<32xf32>
    %31 = vector.multi_reduction <add>, %29, %cst_17 [0] : vector<512x32xf32> to vector<32xf32>
    %32 = vector.shape_cast %31 : vector<32xf32> to vector<1x32xf32>
    %33 = arith.addf %30, %32 : vector<1x32xf32>
    %c0_18 = arith.constant 0 : index
    %c0_19 = arith.constant 0 : index
    %34 = vector.load %arg7[%c0_18, %c0_19] : memref<1x32xf32, #tpu.memory_space<vmem>>, vector<1x32xf32>
    tpu.vector_store %arg7[%c0_18, %c0_19], %33 {strides = array<i32>} : memref<1x32xf32, #tpu.memory_space<vmem>>, vector<1x32xf32>,
    %c0_20 = arith.constant 0 : index
    %c0_21 = arith.constant 0 : index
    %35 = vector.load %arg8[%c0_20, %c0_21] : memref<1x32xf32, #tpu.memory_space<vmem>>, vector<1x32xf32>
    %36 = arith.mulf %29, %29 : vector<512x32xf32>
    %cst_22 = arith.constant dense<0.000000e+00> : vector<32xf32>
    %37 = vector.multi_reduction <add>, %36, %cst_22 [0] : vector<512x32xf32> to vector<32xf32>
    %38 = vector.shape_cast %37 : vector<32xf32> to vector<1x32xf32>
    %39 = arith.addf %35, %38 : vector<1x32xf32>
    %c0_23 = arith.constant 0 : index
    %c0_24 = arith.constant 0 : index
    %40 = vector.load %arg8[%c0_23, %c0_24] : memref<1x32xf32, #tpu.memory_space<vmem>>, vector<1x32xf32>
    tpu.vector_store %arg8[%c0_23, %c0_24], %39 {strides = array<i32>} : memref<1x32xf32, #tpu.memory_space<vmem>>, vector<1x32xf32>,
    return
  }
  func.func @transform_0(%arg0: i32) -> (i32, i32) {
    %c0_i32 = arith.constant 0 : i32
    %c0_i32_0 = arith.constant 0 : i32
    return %arg0, %c0_i32 : i32, i32
  }
  func.func @transform_1(%arg0: i32) -> (i32, i32) {
    %c0_i32 = arith.constant 0 : i32
    %c0_i32_0 = arith.constant 0 : i32
    %c0_i32_1 = arith.constant 0 : i32
    return %c0_i32, %c0_i32_0 : i32, i32
  }
  func.func @transform_2(%arg0: i32) -> (i32, i32) {
    %c0_i32 = arith.constant 0 : i32
    %c0_i32_0 = arith.constant 0 : i32
    %c0_i32_1 = arith.constant 0 : i32
    return %c0_i32, %c0_i32_0 : i32, i32
  }
  func.func @transform_3(%arg0: i32) -> (i32, i32) {
    %c0_i32 = arith.constant 0 : i32
    %c0_i32_0 = arith.constant 0 : i32
    %c0_i32_1 = arith.constant 0 : i32
    return %c0_i32, %c0_i32_0 : i32, i32
  }
  func.func @transform_4(%arg0: i32) -> (i32, i32) {
    %c0_i32 = arith.constant 0 : i32
    %c0_i32_0 = arith.constant 0 : i32
    %c0_i32_1 = arith.constant 0 : i32
    return %c0_i32, %c0_i32_0 : i32, i32
  }
  func.func @transform_5(%arg0: i32) -> (i32, i32) {
    %c0_i32 = arith.constant 0 : i32
    %c0_i32_0 = arith.constant 0 : i32
    return %arg0, %c0_i32 : i32, i32
  }
  func.func @transform_6(%arg0: i32) -> (i32, i32) {
    %c0_i32 = arith.constant 0 : i32
    %c0_i32_0 = arith.constant 0 : i32
    %c0_i32_1 = arith.constant 0 : i32
    return %c0_i32, %c0_i32_0 : i32, i32
  }
  func.func @transform_7(%arg0: i32) -> (i32, i32) {
    %c0_i32 = arith.constant 0 : i32
    %c0_i32_0 = arith.constant 0 : i32
    %c0_i32_1 = arith.constant 0 : i32
    return %c0_i32, %c0_i32_0 : i32, i32
  }
}

module attributes {stable_mosaic.version = 11 : i64} {
  func.func @_bn_relu_conv3x3_concat_kernel(%arg0: i32, %arg1: memref<256x4xf32, #tpu.memory_space<vmem>>, %arg2: memref<256x32xbf16, #tpu.memory_space<vmem>>, %arg3: memref<1x32xf32, #tpu.memory_space<vmem>>, %arg4: memref<1x32xf32, #tpu.memory_space<vmem>>, %arg5: memref<9x32x8xbf16, #tpu.memory_space<vmem>>, %arg6: memref<1x8xf32, #tpu.memory_space<vmem>>, %arg7: memref<256x1xi32, #tpu.memory_space<vmem>>, %arg8: memref<256x1xi32, #tpu.memory_space<vmem>>, %arg9: memref<256x12xf32, #tpu.memory_space<vmem>>) attributes {dimension_semantics = [#tpu.dimension_semantics<parallel>], iteration_bounds = array<i64: 2>, scalar_prefetch = 0 : i64, scratch_operands = 0 : i64, tpu.core_type = #tpu.core_type<tc>, window_params = [{transform_indices = @transform_0, window_bounds = array<i64: 256, 4>}, {transform_indices = @transform_1, window_bounds = array<i64: 256, 32>}, {pipeline_mode = #tpu.pipeline_mode<synchronous>, transform_indices = @transform_2, window_bounds = array<i64: 1, 32>}, {pipeline_mode = #tpu.pipeline_mode<synchronous>, transform_indices = @transform_3, window_bounds = array<i64: 1, 32>}, {pipeline_mode = #tpu.pipeline_mode<synchronous>, transform_indices = @transform_4, window_bounds = array<i64: 9, 32, 8>}, {pipeline_mode = #tpu.pipeline_mode<synchronous>, transform_indices = @transform_5, window_bounds = array<i64: 1, 8>}, {pipeline_mode = #tpu.pipeline_mode<synchronous>, transform_indices = @transform_6, window_bounds = array<i64: 256, 1>}, {pipeline_mode = #tpu.pipeline_mode<synchronous>, transform_indices = @transform_7, window_bounds = array<i64: 256, 1>}, {transform_indices = @transform_8, window_bounds = array<i64: 256, 12>}]} {
    %c0 = arith.constant 0 : index
    %c0_0 = arith.constant 0 : index
    %0 = vector.load %arg2[%c0, %c0_0] : memref<256x32xbf16, #tpu.memory_space<vmem>>, vector<256x32xbf16>
    %1 = arith.extf %0 : vector<256x32xbf16> to vector<256x32xf32>
    %c0_1 = arith.constant 0 : index
    %c0_2 = arith.constant 0 : index
    %2 = vector.load %arg3[%c0_1, %c0_2] : memref<1x32xf32, #tpu.memory_space<vmem>>, vector<1x32xf32>
    %3 = vector.broadcast %2 : vector<1x32xf32> to vector<256x32xf32>
    %4 = arith.mulf %1, %3 : vector<256x32xf32>
    %c0_3 = arith.constant 0 : index
    %c0_4 = arith.constant 0 : index
    %5 = vector.load %arg4[%c0_3, %c0_4] : memref<1x32xf32, #tpu.memory_space<vmem>>, vector<1x32xf32>
    %6 = vector.broadcast %5 : vector<1x32xf32> to vector<256x32xf32>
    %7 = arith.addf %4, %6 : vector<256x32xf32>
    %cst = arith.constant 0.000000e+00 : f32
    %8 = vector.broadcast %cst : f32 to vector<256x32xf32>
    %9 = arith.maximumf %7, %8 : vector<256x32xf32>
    %c0_5 = arith.constant 0 : index
    %c0_6 = arith.constant 0 : index
    %10 = vector.load %arg7[%c0_5, %c0_6] : memref<256x1xi32, #tpu.memory_space<vmem>>, vector<256x1xi32>
    %c0_7 = arith.constant 0 : index
    %c0_8 = arith.constant 0 : index
    %11 = vector.load %arg8[%c0_7, %c0_8] : memref<256x1xi32, #tpu.memory_space<vmem>>, vector<256x1xi32>
    %c17_i32 = arith.constant 17 : i32
    %12 = tpu.dynamic_rotate %9 by %c17_i32 dim 0 : vector<256x32xf32>, i32 -> vector<256x32xf32>
    %13 = arith.truncf %12 : vector<256x32xf32> to vector<256x32xbf16>
    %c0_9 = arith.constant 0 : index
    %c0_10 = arith.constant 0 : index
    %c0_11 = arith.constant 0 : index
    %14 = vector.load %arg5[%c0_9, %c0_10, %c0_11] : memref<9x32x8xbf16, #tpu.memory_space<vmem>>, vector<1x32x8xbf16>
    %15 = vector.shape_cast %14 : vector<1x32x8xbf16> to vector<32x8xbf16>
    %cst_12 = arith.constant dense<0.000000e+00> : vector<256x8xf32>
    %16 = tpu.matmul %13, %15, %cst_12 {dimension_numbers = #tpu.dot_dimension_numbers<[1], [0], [0], [1], [0, 0, 1, 1], [], []>} : vector<256x32xbf16>, vector<32x8xbf16>, vector<256x8xf32> -> vector<256x8xf32>
    %c1_i32 = arith.constant 1 : i32
    %17 = vector.broadcast %c1_i32 : i32 to vector<256x1xi32>
    %18 = arith.cmpi sge, %10, %17 : vector<256x1xi32>
    %c1_i32_13 = arith.constant 1 : i32
    %19 = vector.broadcast %c1_i32_13 : i32 to vector<256x1xi32>
    %20 = arith.cmpi sge, %11, %19 : vector<256x1xi32>
    %21 = arith.andi %18, %20 : vector<256x1xi1>
    %22 = arith.extui %21 : vector<256x1xi1> to vector<256x1xi32>
    %23 = arith.sitofp %22 : vector<256x1xi32> to vector<256x1xf32>
    %24 = vector.broadcast %23 : vector<256x1xf32> to vector<256x8xf32>
    %25 = arith.mulf %16, %24 : vector<256x8xf32>
    %c16_i32 = arith.constant 16 : i32
    %26 = tpu.dynamic_rotate %9 by %c16_i32 dim 0 : vector<256x32xf32>, i32 -> vector<256x32xf32>
    %27 = arith.truncf %26 : vector<256x32xf32> to vector<256x32xbf16>
    %c1 = arith.constant 1 : index
    %c0_14 = arith.constant 0 : index
    %c0_15 = arith.constant 0 : index
    %28 = vector.load %arg5[%c1, %c0_14, %c0_15] : memref<9x32x8xbf16, #tpu.memory_space<vmem>>, vector<1x32x8xbf16>
    %29 = vector.shape_cast %28 : vector<1x32x8xbf16> to vector<32x8xbf16>
    %cst_16 = arith.constant dense<0.000000e+00> : vector<256x8xf32>
    %30 = tpu.matmul %27, %29, %cst_16 {dimension_numbers = #tpu.dot_dimension_numbers<[1], [0], [0], [1], [0, 0, 1, 1], [], []>} : vector<256x32xbf16>, vector<32x8xbf16>, vector<256x8xf32> -> vector<256x8xf32>
    %c1_i32_17 = arith.constant 1 : i32
    %31 = vector.broadcast %c1_i32_17 : i32 to vector<256x1xi32>
    %32 = arith.cmpi sge, %10, %31 : vector<256x1xi32>
    %33 = arith.extui %32 : vector<256x1xi1> to vector<256x1xi32>
    %34 = arith.sitofp %33 : vector<256x1xi32> to vector<256x1xf32>
    %35 = vector.broadcast %34 : vector<256x1xf32> to vector<256x8xf32>
    %36 = arith.mulf %30, %35 : vector<256x8xf32>
    %37 = arith.addf %25, %36 : vector<256x8xf32>
    %c15_i32 = arith.constant 15 : i32
    %38 = tpu.dynamic_rotate %9 by %c15_i32 dim 0 : vector<256x32xf32>, i32 -> vector<256x32xf32>
    %39 = arith.truncf %38 : vector<256x32xf32> to vector<256x32xbf16>
    %c2 = arith.constant 2 : index
    %c0_18 = arith.constant 0 : index
    %c0_19 = arith.constant 0 : index
    %40 = vector.load %arg5[%c2, %c0_18, %c0_19] : memref<9x32x8xbf16, #tpu.memory_space<vmem>>, vector<1x32x8xbf16>
    %41 = vector.shape_cast %40 : vector<1x32x8xbf16> to vector<32x8xbf16>
    %cst_20 = arith.constant dense<0.000000e+00> : vector<256x8xf32>
    %42 = tpu.matmul %39, %41, %cst_20 {dimension_numbers = #tpu.dot_dimension_numbers<[1], [0], [0], [1], [0, 0, 1, 1], [], []>} : vector<256x32xbf16>, vector<32x8xbf16>, vector<256x8xf32> -> vector<256x8xf32>
    %c1_i32_21 = arith.constant 1 : i32
    %43 = vector.broadcast %c1_i32_21 : i32 to vector<256x1xi32>
    %44 = arith.cmpi sge, %10, %43 : vector<256x1xi32>
    %c14_i32 = arith.constant 14 : i32
    %45 = vector.broadcast %c14_i32 : i32 to vector<256x1xi32>
    %46 = arith.cmpi sle, %11, %45 : vector<256x1xi32>
    %47 = arith.andi %44, %46 : vector<256x1xi1>
    %48 = arith.extui %47 : vector<256x1xi1> to vector<256x1xi32>
    %49 = arith.sitofp %48 : vector<256x1xi32> to vector<256x1xf32>
    %50 = vector.broadcast %49 : vector<256x1xf32> to vector<256x8xf32>
    %51 = arith.mulf %42, %50 : vector<256x8xf32>
    %52 = arith.addf %37, %51 : vector<256x8xf32>
    %c1_i32_22 = arith.constant 1 : i32
    %53 = tpu.dynamic_rotate %9 by %c1_i32_22 dim 0 : vector<256x32xf32>, i32 -> vector<256x32xf32>
    %54 = arith.truncf %53 : vector<256x32xf32> to vector<256x32xbf16>
    %c3 = arith.constant 3 : index
    %c0_23 = arith.constant 0 : index
    %c0_24 = arith.constant 0 : index
    %55 = vector.load %arg5[%c3, %c0_23, %c0_24] : memref<9x32x8xbf16, #tpu.memory_space<vmem>>, vector<1x32x8xbf16>
    %56 = vector.shape_cast %55 : vector<1x32x8xbf16> to vector<32x8xbf16>
    %cst_25 = arith.constant dense<0.000000e+00> : vector<256x8xf32>
    %57 = tpu.matmul %54, %56, %cst_25 {dimension_numbers = #tpu.dot_dimension_numbers<[1], [0], [0], [1], [0, 0, 1, 1], [], []>} : vector<256x32xbf16>, vector<32x8xbf16>, vector<256x8xf32> -> vector<256x8xf32>
    %c1_i32_26 = arith.constant 1 : i32
    %58 = vector.broadcast %c1_i32_26 : i32 to vector<256x1xi32>
    %59 = arith.cmpi sge, %11, %58 : vector<256x1xi32>
    %60 = arith.extui %59 : vector<256x1xi1> to vector<256x1xi32>
    %61 = arith.sitofp %60 : vector<256x1xi32> to vector<256x1xf32>
    %62 = vector.broadcast %61 : vector<256x1xf32> to vector<256x8xf32>
    %63 = arith.mulf %57, %62 : vector<256x8xf32>
    %64 = arith.addf %52, %63 : vector<256x8xf32>
    %65 = arith.truncf %9 : vector<256x32xf32> to vector<256x32xbf16>
    %c4 = arith.constant 4 : index
    %c0_27 = arith.constant 0 : index
    %c0_28 = arith.constant 0 : index
    %66 = vector.load %arg5[%c4, %c0_27, %c0_28] : memref<9x32x8xbf16, #tpu.memory_space<vmem>>, vector<1x32x8xbf16>
    %67 = vector.shape_cast %66 : vector<1x32x8xbf16> to vector<32x8xbf16>
    %cst_29 = arith.constant dense<0.000000e+00> : vector<256x8xf32>
    %68 = tpu.matmul %65, %67, %cst_29 {dimension_numbers = #tpu.dot_dimension_numbers<[1], [0], [0], [1], [0, 0, 1, 1], [], []>} : vector<256x32xbf16>, vector<32x8xbf16>, vector<256x8xf32> -> vector<256x8xf32>
    %69 = arith.addf %64, %68 : vector<256x8xf32>
    %c255_i32 = arith.constant 255 : i32
    %70 = tpu.dynamic_rotate %9 by %c255_i32 dim 0 : vector<256x32xf32>, i32 -> vector<256x32xf32>
    %71 = arith.truncf %70 : vector<256x32xf32> to vector<256x32xbf16>
    %c5 = arith.constant 5 : index
    %c0_30 = arith.constant 0 : index
    %c0_31 = arith.constant 0 : index
    %72 = vector.load %arg5[%c5, %c0_30, %c0_31] : memref<9x32x8xbf16, #tpu.memory_space<vmem>>, vector<1x32x8xbf16>
    %73 = vector.shape_cast %72 : vector<1x32x8xbf16> to vector<32x8xbf16>
    %cst_32 = arith.constant dense<0.000000e+00> : vector<256x8xf32>
    %74 = tpu.matmul %71, %73, %cst_32 {dimension_numbers = #tpu.dot_dimension_numbers<[1], [0], [0], [1], [0, 0, 1, 1], [], []>} : vector<256x32xbf16>, vector<32x8xbf16>, vector<256x8xf32> -> vector<256x8xf32>
    %c14_i32_33 = arith.constant 14 : i32
    %75 = vector.broadcast %c14_i32_33 : i32 to vector<256x1xi32>
    %76 = arith.cmpi sle, %11, %75 : vector<256x1xi32>
    %77 = arith.extui %76 : vector<256x1xi1> to vector<256x1xi32>
    %78 = arith.sitofp %77 : vector<256x1xi32> to vector<256x1xf32>
    %79 = vector.broadcast %78 : vector<256x1xf32> to vector<256x8xf32>
    %80 = arith.mulf %74, %79 : vector<256x8xf32>
    %81 = arith.addf %69, %80 : vector<256x8xf32>
    %c241_i32 = arith.constant 241 : i32
    %82 = tpu.dynamic_rotate %9 by %c241_i32 dim 0 : vector<256x32xf32>, i32 -> vector<256x32xf32>
    %83 = arith.truncf %82 : vector<256x32xf32> to vector<256x32xbf16>
    %c6 = arith.constant 6 : index
    %c0_34 = arith.constant 0 : index
    %c0_35 = arith.constant 0 : index
    %84 = vector.load %arg5[%c6, %c0_34, %c0_35] : memref<9x32x8xbf16, #tpu.memory_space<vmem>>, vector<1x32x8xbf16>
    %85 = vector.shape_cast %84 : vector<1x32x8xbf16> to vector<32x8xbf16>
    %cst_36 = arith.constant dense<0.000000e+00> : vector<256x8xf32>
    %86 = tpu.matmul %83, %85, %cst_36 {dimension_numbers = #tpu.dot_dimension_numbers<[1], [0], [0], [1], [0, 0, 1, 1], [], []>} : vector<256x32xbf16>, vector<32x8xbf16>, vector<256x8xf32> -> vector<256x8xf32>
    %c14_i32_37 = arith.constant 14 : i32
    %87 = vector.broadcast %c14_i32_37 : i32 to vector<256x1xi32>
    %88 = arith.cmpi sle, %10, %87 : vector<256x1xi32>
    %c1_i32_38 = arith.constant 1 : i32
    %89 = vector.broadcast %c1_i32_38 : i32 to vector<256x1xi32>
    %90 = arith.cmpi sge, %11, %89 : vector<256x1xi32>
    %91 = arith.andi %88, %90 : vector<256x1xi1>
    %92 = arith.extui %91 : vector<256x1xi1> to vector<256x1xi32>
    %93 = arith.sitofp %92 : vector<256x1xi32> to vector<256x1xf32>
    %94 = vector.broadcast %93 : vector<256x1xf32> to vector<256x8xf32>
    %95 = arith.mulf %86, %94 : vector<256x8xf32>
    %96 = arith.addf %81, %95 : vector<256x8xf32>
    %c240_i32 = arith.constant 240 : i32
    %97 = tpu.dynamic_rotate %9 by %c240_i32 dim 0 : vector<256x32xf32>, i32 -> vector<256x32xf32>
    %98 = arith.truncf %97 : vector<256x32xf32> to vector<256x32xbf16>
    %c7 = arith.constant 7 : index
    %c0_39 = arith.constant 0 : index
    %c0_40 = arith.constant 0 : index
    %99 = vector.load %arg5[%c7, %c0_39, %c0_40] : memref<9x32x8xbf16, #tpu.memory_space<vmem>>, vector<1x32x8xbf16>
    %100 = vector.shape_cast %99 : vector<1x32x8xbf16> to vector<32x8xbf16>
    %cst_41 = arith.constant dense<0.000000e+00> : vector<256x8xf32>
    %101 = tpu.matmul %98, %100, %cst_41 {dimension_numbers = #tpu.dot_dimension_numbers<[1], [0], [0], [1], [0, 0, 1, 1], [], []>} : vector<256x32xbf16>, vector<32x8xbf16>, vector<256x8xf32> -> vector<256x8xf32>
    %c14_i32_42 = arith.constant 14 : i32
    %102 = vector.broadcast %c14_i32_42 : i32 to vector<256x1xi32>
    %103 = arith.cmpi sle, %10, %102 : vector<256x1xi32>
    %104 = arith.extui %103 : vector<256x1xi1> to vector<256x1xi32>
    %105 = arith.sitofp %104 : vector<256x1xi32> to vector<256x1xf32>
    %106 = vector.broadcast %105 : vector<256x1xf32> to vector<256x8xf32>
    %107 = arith.mulf %101, %106 : vector<256x8xf32>
    %108 = arith.addf %96, %107 : vector<256x8xf32>
    %c239_i32 = arith.constant 239 : i32
    %109 = tpu.dynamic_rotate %9 by %c239_i32 dim 0 : vector<256x32xf32>, i32 -> vector<256x32xf32>
    %110 = arith.truncf %109 : vector<256x32xf32> to vector<256x32xbf16>
    %c8 = arith.constant 8 : index
    %c0_43 = arith.constant 0 : index
    %c0_44 = arith.constant 0 : index
    %111 = vector.load %arg5[%c8, %c0_43, %c0_44] : memref<9x32x8xbf16, #tpu.memory_space<vmem>>, vector<1x32x8xbf16>
    %112 = vector.shape_cast %111 : vector<1x32x8xbf16> to vector<32x8xbf16>
    %cst_45 = arith.constant dense<0.000000e+00> : vector<256x8xf32>
    %113 = tpu.matmul %110, %112, %cst_45 {dimension_numbers = #tpu.dot_dimension_numbers<[1], [0], [0], [1], [0, 0, 1, 1], [], []>} : vector<256x32xbf16>, vector<32x8xbf16>, vector<256x8xf32> -> vector<256x8xf32>
    %c14_i32_46 = arith.constant 14 : i32
    %114 = vector.broadcast %c14_i32_46 : i32 to vector<256x1xi32>
    %115 = arith.cmpi sle, %10, %114 : vector<256x1xi32>
    %c14_i32_47 = arith.constant 14 : i32
    %116 = vector.broadcast %c14_i32_47 : i32 to vector<256x1xi32>
    %117 = arith.cmpi sle, %11, %116 : vector<256x1xi32>
    %118 = arith.andi %115, %117 : vector<256x1xi1>
    %119 = arith.extui %118 : vector<256x1xi1> to vector<256x1xi32>
    %120 = arith.sitofp %119 : vector<256x1xi32> to vector<256x1xf32>
    %121 = vector.broadcast %120 : vector<256x1xf32> to vector<256x8xf32>
    %122 = arith.mulf %113, %121 : vector<256x8xf32>
    %123 = arith.addf %108, %122 : vector<256x8xf32>
    %c0_48 = arith.constant 0 : index
    %c0_49 = arith.constant 0 : index
    %124 = vector.load %arg6[%c0_48, %c0_49] : memref<1x8xf32, #tpu.memory_space<vmem>>, vector<1x8xf32>
    %125 = vector.broadcast %124 : vector<1x8xf32> to vector<256x8xf32>
    %126 = arith.addf %123, %125 : vector<256x8xf32>
    %c0_50 = arith.constant 0 : index
    %c0_51 = arith.constant 0 : index
    %127 = vector.load %arg1[%c0_50, %c0_51] : memref<256x4xf32, #tpu.memory_space<vmem>>, vector<256x4xf32>
    %c0_52 = arith.constant 0 : index
    %c0_53 = arith.constant 0 : index
    %128 = vector.load %arg9[%c0_52, %c0_53] : memref<256x12xf32, #tpu.memory_space<vmem>>, vector<256x4xf32>
    tpu.vector_store %arg9[%c0_52, %c0_53], %127 {strides = array<i32>} : memref<256x12xf32, #tpu.memory_space<vmem>>, vector<256x4xf32>,
    %c0_54 = arith.constant 0 : index
    %c4_55 = arith.constant 4 : index
    %129 = vector.load %arg9[%c0_54, %c4_55] : memref<256x12xf32, #tpu.memory_space<vmem>>, vector<256x8xf32>
    tpu.vector_store %arg9[%c0_54, %c4_55], %126 {strides = array<i32>} : memref<256x12xf32, #tpu.memory_space<vmem>>, vector<256x8xf32>,
    return
  }
  func.func @transform_0(%arg0: i32) -> (i32, i32) {
    %c0_i32 = arith.constant 0 : i32
    %c0_i32_0 = arith.constant 0 : i32
    return %arg0, %c0_i32 : i32, i32
  }
  func.func @transform_1(%arg0: i32) -> (i32, i32) {
    %c0_i32 = arith.constant 0 : i32
    %c0_i32_0 = arith.constant 0 : i32
    return %arg0, %c0_i32 : i32, i32
  }
  func.func @transform_2(%arg0: i32) -> (i32, i32) {
    %c0_i32 = arith.constant 0 : i32
    %c0_i32_0 = arith.constant 0 : i32
    %c0_i32_1 = arith.constant 0 : i32
    return %c0_i32, %c0_i32_0 : i32, i32
  }
  func.func @transform_3(%arg0: i32) -> (i32, i32) {
    %c0_i32 = arith.constant 0 : i32
    %c0_i32_0 = arith.constant 0 : i32
    %c0_i32_1 = arith.constant 0 : i32
    return %c0_i32, %c0_i32_0 : i32, i32
  }
  func.func @transform_4(%arg0: i32) -> (i32, i32, i32) {
    %c0_i32 = arith.constant 0 : i32
    %c0_i32_0 = arith.constant 0 : i32
    %c0_i32_1 = arith.constant 0 : i32
    %c0_i32_2 = arith.constant 0 : i32
    return %c0_i32, %c0_i32_0, %c0_i32_1 : i32, i32, i32
  }
  func.func @transform_5(%arg0: i32) -> (i32, i32) {
    %c0_i32 = arith.constant 0 : i32
    %c0_i32_0 = arith.constant 0 : i32
    %c0_i32_1 = arith.constant 0 : i32
    return %c0_i32, %c0_i32_0 : i32, i32
  }
  func.func @transform_6(%arg0: i32) -> (i32, i32) {
    %c0_i32 = arith.constant 0 : i32
    %c0_i32_0 = arith.constant 0 : i32
    %c0_i32_1 = arith.constant 0 : i32
    return %c0_i32, %c0_i32_0 : i32, i32
  }
  func.func @transform_7(%arg0: i32) -> (i32, i32) {
    %c0_i32 = arith.constant 0 : i32
    %c0_i32_0 = arith.constant 0 : i32
    %c0_i32_1 = arith.constant 0 : i32
    return %c0_i32, %c0_i32_0 : i32, i32
  }
  func.func @transform_8(%arg0: i32) -> (i32, i32) {
    %c0_i32 = arith.constant 0 : i32
    %c0_i32_0 = arith.constant 0 : i32
    return %arg0, %c0_i32 : i32, i32
  }
}

</mosaic_0001>

<bundles_post_ra>
// kernel: dense_basic_forward.3
= control target key start
LH: loop header
LB: loop body
LE: loop exit
PB: predicated region body
PF: predicated region fallthrough
CT: control target
= control target key end

     0   :  { %vm14_vm0 = vcmask 24576   ;;  %vm469_vm1 = vcmask 31744   ;;  %v815_v0 = vmov 0.0   ;;  %s1705_s0 = inlined_call_operand.vmem [shape: f32[512,4], index: 0, kind: input, shape index: {}]   ;;  %s1706_s1 = inlined_call_operand.vmem [shape: f32[1,4], index: 1, kind: output, shape index: {0}]   ;;  %s1707_s2 = inlined_call_operand.vmem [shape: f32[1,4], index: 2, kind: output, shape index: {1}]  }
   0x1   :  { %15 = vst.msk [vmem:[%s1706_s1] sm:$0x1] %vm14_vm0, %v815_v0  ;;  %16 = vst.msk [vmem:[%s1707_s2] sm:$0x1] %vm14_vm0, %v815_v0  ;;  %v842_v1 = vld [vmem:[%s1705_s0] sm:$0xff]  ;;  %v847_v2 = vld [vmem:[%s1705_s0 + $0x8] sm:$0xff] }
   0x2   :  { %v852_v3 = vld [vmem:[%s1705_s0 + $0x10] sm:$0xff]  ;;  %v470_v4 = vsel %vm469_vm1, %v842_v1, 0.0  ;;  %v471_v5 = vsel %vm469_vm1, %v847_v2, 0.0  ;;  %v863_v7 = vld [vmem:[%s1705_s0 + $0x18] sm:$0xff]  ;;  %v870_v10 = vld [vmem:[%s1705_s0 + $0x20] sm:$0xff] }
   0x3   :  { %v473_v6 = vsel %vm469_vm1, %v852_v3, 0.0  ;;  %v472_v8 = vadd.f32 %v471_v5, %v470_v4  ;;  %v475_v9 = vsel %vm469_vm1, %v863_v7, 0.0  ;;  %v477_v12 = vsel %vm469_vm1, %v870_v10, 0.0  ;;  %v877_v13 = vld [vmem:[%s1705_s0 + $0x28] sm:$0xff]  ;;  %v884_v16 = vld [vmem:[%s1705_s0 + $0x30] sm:$0xff]  ;;  %v889_v18 = vld [vmem:[%s1705_s0 + $0x38] sm:$0xff] }
   0x4   :  { %v479_v15 = vsel %vm469_vm1, %v877_v13, 0.0  ;;  %v894_v19 = vld [vmem:[%s1705_s0 + $0x40] sm:$0xff]  ;;  %v481_v20 = vsel %vm469_vm1, %v884_v16, 0.0  ;;  %v901_v21 = vld [vmem:[%s1705_s0 + $0x48] sm:$0xff]  ;;  %v906_v22 = vld [vmem:[%s1705_s0 + $0x50] sm:$0xff]  ;;  %v483_v25 = vsel %vm469_vm1, %v889_v18, 0.0 }
   0x5   :  { %v474_v11 = vadd.f32 %v473_v6, %v472_v8  ;;  %v911_v23 = vld [vmem:[%s1705_s0 + $0x58] sm:$0xff]  ;;  %v485_v26 = vsel %vm469_vm1, %v894_v19, 0.0  ;;  %v920_v27 = vld [vmem:[%s1705_s0 + $0x108] sm:$0xff]  ;;  %v925_v28 = vld [vmem:[%s1705_s0 + $0x110] sm:$0xff]  ;;  %v487_v30 = vsel %vm469_vm1, %v901_v21, 0.0  ;;  %v489_v31 = vsel %vm469_vm1, %v906_v22, 0.0 }
   0x6   :  { %v930_v29 = vld [vmem:[%s1705_s0 + $0x118] sm:$0xff]  ;;  %v938_v32 = vsel %vm469_vm1, %v911_v23, 0.0  ;;  %v943_v33 = vld [vmem:[%s1705_s0 + $0x120] sm:$0xff]  ;;  %v948_v34 = vld [vmem:[%s1705_s0 + $0x128] sm:$0xff]  ;;  %v957_v37 = vsel %vm469_vm1, %v920_v27, 0.0  ;;  %v961_v38 = vsel %vm469_vm1, %v925_v28, 0.0 }
   0x7   :  { %v476_v14 = vadd.f32 %v475_v9, %v474_v11  ;;  %v953_v35 = vld [vmem:[%s1705_s0 + $0x130] sm:$0xff]  ;;  %1726 = vst [vmem:[#allocation2_spill] sm:$0xff] %v957_v37  ;;  %1727 = vst [vmem:[#allocation3_spill] sm:$0xff] %v961_v38  ;;  %v965_v39 = vsel %vm469_vm1, %v930_v29, 0.0  ;;  %v970_v40 = vld [vmem:[%s1705_s0 + $0x138] sm:$0xff]  ;;  %v984_v43 = vsel %vm469_vm1, %v943_v33, 0.0  ;;  %v609_v37 = vmul.f32 %v852_v3, %v852_v3 }
   0x8   :  { %1728 = vst [vmem:[#allocation4_spill] sm:$0xff] %v965_v39  ;;  %v975_v41 = vld [vmem:[%s1705_s0 + $0x140] sm:$0xff]  ;;  %v980_v42 = vld [vmem:[%s1705_s0 + $0x148] sm:$0xff]  ;;  %1729 = vst [vmem:[#allocation5_spill] sm:$0xff] %v984_v43  ;;  %v988_v44 = vsel %vm469_vm1, %v948_v34, 0.0  ;;  %v992_v45 = vsel %vm469_vm1, %v953_v35, 0.0 }
   0x9   :  { %v478_v17 = vadd.f32 %v477_v12, %v476_v14  ;;  %1730 = vst [vmem:[#allocation6_spill] sm:$0xff] %v988_v44  ;;  %1731 = vst [vmem:[#allocation7_spill] sm:$0xff] %v992_v45  ;;  %v997_v46 = vld [vmem:[%s1705_s0 + $0x150] sm:$0xff]  ;;  %v1002_v47 = vld [vmem:[%s1705_s0 + $0x158] sm:$0xff]  ;;  %v1011_v50 = vsel %vm469_vm1, %v970_v40, 0.0  ;;  %v1015_v51 = vsel %vm469_vm1, %v975_v41, 0.0 }
   0xa   :  { %v1007_v48 = vld [vmem:[%s1705_s0 + $0x160] sm:$0xff]  ;;  %1732 = vst [vmem:[#allocation8_spill] sm:$0xff] %v1011_v50  ;;  %1733 = vst [vmem:[#allocation9_spill] sm:$0xff] %v1015_v51  ;;  %v1019_v52 = vsel %vm469_vm1, %v980_v42, 0.0  ;;  %v1024_v53 = vld [vmem:[%s1705_s0 + $0x168] sm:$0xff]  ;;  %v1038_v56 = vsel %vm469_vm1, %v997_v46, 0.0 }
   0xb   :  { %v480_v24 = vadd.f32 %v479_v15, %v478_v17  ;;  %1734 = vst [vmem:[#allocation10_spill] sm:$0xff] %v1019_v52  ;;  %v1029_v54 = vld [vmem:[%s1705_s0 + $0x170] sm:$0xff]  ;;  %v1034_v55 = vld [vmem:[%s1705_s0 + $0x178] sm:$0xff]  ;;  %1735 = vst [vmem:[#allocation11_spill] sm:$0xff] %v1038_v56  ;;  %v1042_v57 = vsel %vm469_vm1, %v1002_v47, 0.0  ;;  %v1046_v58 = vsel %vm469_vm1, %v1007_v48, 0.0 }
   0xc   :  { %1736 = vst [vmem:[#allocation12_spill] sm:$0xff] %v1042_v57  ;;  %1737 = vst [vmem:[#allocation13_spill] sm:$0xff] %v1046_v58  ;;  %v1051_v59 = vld [vmem:[%s1705_s0 + $0x180] sm:$0xff]  ;;  %v1056_v60 = vld [vmem:[%s1705_s0 + $0x188] sm:$0xff]  ;;  %v1065_v63 = vsel %vm469_vm1, %v1024_v53, 0.0  ;;  %v1069_v0 = vsel %vm469_vm1, %v1029_v54, 0.0 }
   0xd   :  { %v482_v36 = vadd.f32 %v481_v20, %v480_v24  ;;  %v1061_v61 = vld [vmem:[%s1705_s0 + $0x190] sm:$0xff]  ;;  %1738 = vst [vmem:[#allocation14_spill] sm:$0xff] %v1065_v63  ;;  %1739 = vst [vmem:[#allocation15_spill] sm:$0xff] %v1069_v0  ;;  %v1073_v4 = vsel %vm469_vm1, %v1034_v55, 0.0  ;;  %v1078_v5 = vld [vmem:[%s1705_s0 + $0x198] sm:$0xff]  ;;  %v1092_v9 = vsel %vm469_vm1, %v1051_v59, 0.0 }
   0xe   :  { %1740 = vst [vmem:[#allocation16_spill] sm:$0xff] %v1073_v4  ;;  %v1083_v6 = vld [vmem:[%s1705_s0 + $0x1a0] sm:$0xff]  ;;  %v1088_v8 = vld [vmem:[%s1705_s0 + $0x1a8] sm:$0xff]  ;;  %1741 = vst [vmem:[#allocation17_spill] sm:$0xff] %v1092_v9  ;;  %v1096_v11 = vsel %vm469_vm1, %v1056_v60, 0.0  ;;  %v1100_v12 = vsel %vm469_vm1, %v1061_v61, 0.0 }
   0xf   :  { %v484_v49 = vadd.f32 %v483_v25, %v482_v36  ;;  %1742 = vst [vmem:[#allocation18_spill] sm:$0xff] %v1096_v11  ;;  %1743 = vst [vmem:[#allocation19_spill] sm:$0xff] %v1100_v12  ;;  %v1105_v14 = vld [vmem:[%s1705_s0 + $0x60] sm:$0xff]  ;;  %v1110_v15 = vld [vmem:[%s1705_s0 + $0x1b0] sm:$0xff]  ;;  %v1124_v25 = vsel %vm469_vm1, %v1078_v5, 0.0  ;;  %v1132_v36 = vsel %vm469_vm1, %v1088_v8, 0.0 }
  0x10   :  { %v1115_v17 = vld [vmem:[%s1705_s0 + $0x1b8] sm:$0xff]  ;;  %v1120_v20 = vld [vmem:[%s1705_s0 + $0x1c0] sm:$0xff]  ;;  %1744 = vst [vmem:[#allocation20_spill] sm:$0xff] %v1124_v25  ;;  %1746 = vst [vmem:[#allocation22_spill] sm:$0xff] %v1132_v36 }
  0x11   :  { %v486_v62 = vadd.f32 %v485_v26, %v484_v49  ;;  %v1128_v26 = vsel %vm469_vm1, %v1083_v6, 0.0  ;;  %v1137_v49 = vld [vmem:[%s1705_s0 + $0x1c8] sm:$0xff]  ;;  %v1155_v36 = vsel %vm469_vm1, %v1115_v17, 0.0  ;;  %v1159_v25 = vsel %vm469_vm1, %v1120_v20, 0.0  ;;  %v1164_v12 = vld [vmem:[%s1705_s0 + $0x1e0] sm:$0xff]  ;;  %v1191_v0 = vld [vmem:[%s1705_s0 + $0x1f8] sm:$0xff] }
  0x12   :  { %1745 = vst [vmem:[#allocation21_spill] sm:$0xff] %v1128_v26  ;;  %v1151_v26 = vsel %vm469_vm1, %v1110_v15, 0.0  ;;  %1748 = vst [vmem:[#allocation24_spill] sm:$0xff] %v1155_v36  ;;  %v1169_v11 = vld [vmem:[%s1705_s0 + $0x1e8] sm:$0xff]  ;;  %v1178_v9 = vsel %vm469_vm1, %v1137_v49, 0.0  ;;  %v1213_v58 = vsel %vm469_vm1, %v1191_v0, 0.0 }
  0x13   :  { %v488_v24 = vadd.f32 %v487_v30, %v486_v62  ;;  %v1142_v30 = vld [vmem:[%s1705_s0 + $0x1d0] sm:$0xff]  ;;  %v1147_v62 = vld [vmem:[%s1705_s0 + $0x1d8] sm:$0xff]  ;;  %1747 = vst [vmem:[#allocation23_spill] sm:$0xff] %v1151_v26  ;;  %1749 = vst [vmem:[#allocation25_spill] sm:$0xff] %v1159_v25 }
  0x14   :  { %v1174_v26 = vld [vmem:[%s1705_s0 + $0x1f0] sm:$0xff]  ;;  %1751 = vst [vmem:[#allocation27_spill] sm:$0xff] %v1178_v9  ;;  %v1182_v25 = vsel %vm469_vm1, %v1142_v30, 0.0  ;;  %v1186_v4 = vsel %vm469_vm1, %v1147_v62, 0.0  ;;  %1754 = vst [vmem:[#allocation30_spill] sm:$0xff] %v1191_v0  ;;  %v1201_v9 = vsel %vm469_vm1, %v1169_v11, 0.0 }
  0x15   :  { %1750 = vst [vmem:[#allocation26_spill] sm:$0xff] %v1174_v26  ;;  %v490_v36 = vadd.f32 %v489_v31, %v488_v24  ;;  %1752 = vst [vmem:[#allocation28_spill] sm:$0xff] %v1182_v25  ;;  %v493_v31 = vsel %vm469_vm1, %v1105_v14, 0.0  ;;  %v1197_v24 = vsel %vm469_vm1, %v1164_v12, 0.0  ;;  %v1205_v25 = vsel %vm469_vm1, %v1174_v26, 0.0  ;;  %v1242_v56 = vld [vmem:[%s1705_s0 + $0x90] sm:$0xff] }
  0x16   :  { %1753 = vst [vmem:[#allocation29_spill] sm:$0xff] %v1186_v4  ;;  %1755 = vst [vmem:[#allocation31_spill] sm:$0xff] %v1197_v24  ;;  %v30_v4 = vld [vmem:[%s1705_s0 + $0x68] sm:$0xff]  ;;  %v1247_v52 = vld [vmem:[%s1705_s0 + $0x98] sm:$0xff] }
  0x17   :  { %1756 = vst [vmem:[#allocation32_spill] sm:$0xff] %v1201_v9  ;;  %1757 = vst [vmem:[#allocation33_spill] sm:$0xff] %v1205_v25  ;;  %v492_v63 = vadd.f32 %v938_v32, %v490_v36  ;;  %v495_v24 = vsel %vm469_vm1, %v30_v4, 0.0  ;;  %v31_v9 = vld [vmem:[%s1705_s0 + $0x70] sm:$0xff]  ;;  %v1222_v25 = vld [vmem:[%s1705_s0 + $0x78] sm:$0xff]  ;;  %v507_v39 = vsel %vm469_vm1, %v1247_v52, 0.0 }
  0x18   :  { %1758 = vst [vmem:[#allocation34_spill] sm:$0xff] %v1213_v58  ;;  %1759 = vst [vmem:[#allocation35_spill] sm:$0xff] %v1222_v25  ;;  %v1227_v32 = vld [vmem:[%s1705_s0 + $0x80] sm:$0xff]  ;;  %v1232_v36 = vld [vmem:[%s1705_s0 + $0x88] sm:$0xff]  ;;  %v497_v58 = vsel %vm469_vm1, %v31_v9, 0.0 }
  0x19   :  { %v494_v57 = vadd.f32 %v493_v31, %v492_v63  ;;  %1760 = vst [vmem:[#allocation36_spill] sm:$0xff] %v1227_v32  ;;  %1761 = vst [vmem:[#allocation37_spill] sm:$0xff] %v1232_v36  ;;  %v607_v63 = vmul.f32 %v842_v1, %v842_v1  ;;  %v608_v31 = vmul.f32 %v847_v2, %v847_v2  ;;  %v1252_v51 = vld [vmem:[%s1705_s0 + $0xa0] sm:$0xff]  ;;  %v499_v1 = vsel %vm469_vm1, %v1222_v25, 0.0  ;;  %v1263_v44 = vld [vmem:[%s1705_s0 + $0xa8] sm:$0xff] }
  0x1a   :  { %1762 = vst [vmem:[#allocation38_spill] sm:$0xff] %v1242_v56  ;;  %1763 = vst [vmem:[#allocation39_spill] sm:$0xff] %v1247_v52  ;;  %v501_v2 = vsel %vm469_vm1, %v1227_v32, 0.0  ;;  %v503_v45 = vsel %vm469_vm1, %v1232_v36, 0.0  ;;  %v1268_v43 = vld [vmem:[%s1705_s0 + $0xb0] sm:$0xff]  ;;  %v509_v38 = vsel %vm469_vm1, %v1252_v51, 0.0  ;;  %v610_v25 = vmul.f32 %v863_v7, %v863_v7 }
  0x1b   :  { %1764 = vst [vmem:[#allocation40_spill] sm:$0xff] %v1252_v51  ;;  %v496_v50 = vadd.f32 %v495_v24, %v494_v57  ;;  %1765 = vst [vmem:[#allocation41_spill] sm:$0xff] %v1263_v44  ;;  %v1273_v57 = vld [vmem:[%s1705_s0 + $0xb8] sm:$0xff]  ;;  %v505_v24 = vsel %vm469_vm1, %v1242_v56, 0.0  ;;  %v1286_v36 = vld [vmem:[%s1705_s0 + $0xc0] sm:$0xff]  ;;  %v511_v51 = vsel %vm469_vm1, %v1263_v44, 0.0 }
  0x1c   :  { %1766 = vst [vmem:[#allocation42_spill] sm:$0xff] %v1268_v43  ;;  %1767 = vst [vmem:[#allocation43_spill] sm:$0xff] %v1273_v57  ;;  %v1291_v32 = vld [vmem:[%s1705_s0 + $0xc8] sm:$0xff]  ;;  %v1296_v52 = vld [vmem:[%s1705_s0 + $0xd0] sm:$0xff]  ;;  %v1302_v3 = vsel %vm469_vm1, %v1268_v43, 0.0 }
  0x1d   :  { %1768 = vst [vmem:[#allocation44_spill] sm:$0xff] %v1286_v36  ;;  %1769 = vst [vmem:[#allocation45_spill] sm:$0xff] %v1291_v32  ;;  %v498_v56 = vadd.f32 %v497_v58, %v496_v50  ;;  %v1309_v0 = vld [vmem:[%s1705_s0 + $0xd8] sm:$0xff]  ;;  %v1314_v26 = vld [vmem:[%s1705_s0 + $0xe0] sm:$0xff]  ;;  %v1318_v50 = vsel %vm469_vm1, %v1273_v57, 0.0  ;;  %v1322_v58 = vsel %vm469_vm1, %v1286_v36, 0.0 }
  0x1e   :  { %1770 = vst [vmem:[#allocation46_spill] sm:$0xff] %v1296_v52  ;;  %1771 = vst [vmem:[#allocation47_spill] sm:$0xff] %v1309_v0  ;;  %v1326_v7 = vsel %vm469_vm1, %v1291_v32, 0.0  ;;  %v1330_v43 = vsel %vm469_vm1, %v1296_v52, 0.0  ;;  %v1335_v44 = vld [vmem:[%s1705_s0 + $0xe8] sm:$0xff]  ;;  %v1340_v57 = vld [vmem:[%s1705_s0 + $0xf0] sm:$0xff]  ;;  %v611_v52 = vmul.f32 %v870_v10, %v870_v10  ;;  %v615_v10 = vmul.f32 %v894_v19, %v894_v19 }
  0x1f   :  { %1772 = vst [vmem:[#allocation48_spill] sm:$0xff] %v1314_v26  ;;  %1773 = vst [vmem:[#allocation49_spill] sm:$0xff] %v1322_v58  ;;  %v500_v36 = vadd.f32 %v499_v1, %v498_v56  ;;  %v1344_v58 = vsel %vm469_vm1, %v1309_v0, 0.0  ;;  %v1348_v32 = vsel %vm469_vm1, %v1314_v26, 0.0  ;;  %v612_v56 = vmul.f32 %v877_v13, %v877_v13 }
  0x20   :  { %1774 = vst [vmem:[#allocation50_spill] sm:$0xff] %v1326_v7  ;;  %1775 = vst [vmem:[#allocation51_spill] sm:$0xff] %v1330_v43  ;;  %v1354_v43 = vsel %vm469_vm1, %v1335_v44, 0.0  ;;  %v1358_v7 = vsel %vm469_vm1, %v1340_v57, 0.0  ;;  %v613_v1 = vmul.f32 %v884_v16, %v884_v16  ;;  %v614_v26 = vmul.f32 %v889_v18, %v889_v18 }
  0x21   :  { %1776 = vst [vmem:[#allocation52_spill] sm:$0xff] %v1335_v44  ;;  %1777 = vst [vmem:[#allocation53_spill] sm:$0xff] %v1340_v57  ;;  %v502_v0 = vadd.f32 %v501_v2, %v500_v36  ;;  %v616_v44 = vmul.f32 %v901_v21, %v901_v21  ;;  %v617_v57 = vmul.f32 %v906_v22, %v906_v22 }
  0x22   :  { %1778 = vst [vmem:[#allocation54_spill] sm:$0xff] %v1358_v7  ;;  %v618_v7 = vmul.f32 %v911_v23, %v911_v23  ;;  %v619_v13 = vmul.f32 %v1105_v14, %v1105_v14  ;;  %v1376_v16 = vmul.f32 %v30_v4, %v30_v4  ;;  %v1378_v2 = vmul.f32 %v31_v9, %v31_v9 }
  0x23   :  { %v504_v36 = vadd.f32 %v503_v45, %v502_v0  ;;  %v640_v18 = vmul.f32 %v920_v27, %v920_v27  ;;  %v641_v19 = vmul.f32 %v925_v28, %v925_v28  ;;  %v642_v21 = vmul.f32 %v930_v29, %v930_v29 }
  0x24   :  { %v643_v22 = vmul.f32 %v943_v33, %v943_v33  ;;  %v644_v23 = vmul.f32 %v948_v34, %v948_v34  ;;  %v645_v45 = vmul.f32 %v953_v35, %v953_v35  ;;  %v646_v4 = vmul.f32 %v970_v40, %v970_v40 }
  0x25   :  { %v506_v0 = vadd.f32 %v505_v24, %v504_v36  ;;  %v647_v27 = vmul.f32 %v975_v41, %v975_v41  ;;  %v648_v28 = vmul.f32 %v980_v42, %v980_v42  ;;  %v649_v29 = vmul.f32 %v997_v46, %v997_v46 }
  0x26   :  { %v650_v33 = vmul.f32 %v1002_v47, %v1002_v47  ;;  %v671_v34 = vsel %vm469_vm1, %v607_v63, 0.0  ;;  %v672_v35 = vsel %vm469_vm1, %v608_v31, 0.0  ;;  %v651_v40 = vmul.f32 %v1007_v48, %v1007_v48 }
  0x27   :  { %v508_v9 = vadd.f32 %v507_v39, %v506_v0  ;;  %v673_v14 = vadd.f32 %v672_v35, %v671_v34  ;;  %v674_v41 = vsel %vm469_vm1, %v609_v37, 0.0  ;;  %v652_v42 = vmul.f32 %v1024_v53, %v1024_v53  ;;  %v1779_v0 = vld [vmem:[#allocation26_spill] sm:$0xff] }
  0x28   :  { %v653_v46 = vmul.f32 %v1029_v54, %v1029_v54  ;;  %v654_v47 = vmul.f32 %v1034_v55, %v1034_v55  ;;  %v676_v63 = vsel %vm469_vm1, %v610_v25, 0.0  ;;  %v655_v39 = vmul.f32 %v1051_v59, %v1051_v59  ;;  %v1780_v34 = vld [vmem:[#allocation30_spill] sm:$0xff] }
  0x29   :  { %v510_v24 = vadd.f32 %v509_v38, %v508_v9  ;;  %v656_v48 = vmul.f32 %v1056_v60, %v1056_v60  ;;  %v675_v31 = vadd.f32 %v674_v41, %v673_v14  ;;  %v657_v37 = vmul.f32 %v1061_v61, %v1061_v61  ;;  %v1781_v41 = vld [vmem:[#allocation49_spill] sm:$0xff] }
  0x2a   :  { %v658_v53 = vmul.f32 %v1078_v5, %v1078_v5  ;;  %v659_v54 = vmul.f32 %v1083_v6, %v1083_v6  ;;  %v678_v55 = vsel %vm469_vm1, %v611_v52, 0.0  ;;  %v660_v38 = vmul.f32 %v1088_v8, %v1088_v8 }
  0x2b   :  { %v512_v25 = vadd.f32 %v511_v51, %v510_v24  ;;  %v661_v59 = vmul.f32 %v1110_v15, %v1110_v15  ;;  %v677_v60 = vadd.f32 %v676_v63, %v675_v31  ;;  %v662_v36 = vmul.f32 %v1115_v17, %v1115_v17 }
  0x2c   :  { %v663_v61 = vmul.f32 %v1120_v20, %v1120_v20  ;;  %v664_v5 = vmul.f32 %v1137_v49, %v1137_v49  ;;  %v680_v6 = vsel %vm469_vm1, %v612_v56, 0.0  ;;  %v665_v52 = vmul.f32 %v1142_v30, %v1142_v30 }
  0x2d   :  { %v514_v51 = vadd.f32 %v1302_v3, %v512_v25  ;;  %v666_v8 = vmul.f32 %v1147_v62, %v1147_v62  ;;  %v679_v15 = vadd.f32 %v678_v55, %v677_v60  ;;  %v667_v17 = vmul.f32 %v1164_v12, %v1164_v12  ;;  %v1783_v25 = vld [vmem:[#allocation51_spill] sm:$0xff] }
  0x2e   :  { %v668_v20 = vmul.f32 %v1169_v11, %v1169_v11  ;;  %v669_v49 = vmul.f32 %v1779_v0, %v1779_v0  ;;  %v682_v56 = vsel %vm469_vm1, %v613_v1, 0.0  ;;  %v670_v30 = vmul.f32 %v1780_v34, %v1780_v34  ;;  %v1785_v34 = vld [vmem:[#allocation54_spill] sm:$0xff] }
  0x2f   :  { %v516_v3 = vadd.f32 %v1318_v50, %v514_v51  ;;  %v681_v35 = vadd.f32 %v680_v6, %v679_v15  ;;  %v684_v62 = vsel %vm469_vm1, %v614_v26, 0.0  ;;  %v686_v9 = vsel %vm469_vm1, %v615_v10, 0.0 }
  0x30   :  { %v688_v12 = vsel %vm469_vm1, %v616_v44, 0.0  ;;  %v690_v14 = vsel %vm469_vm1, %v617_v57, 0.0  ;;  %v692_v11 = vsel %vm469_vm1, %v618_v7, 0.0  ;;  %v694_v1 = vsel %vm469_vm1, %v619_v13, 0.0  ;;  %v1782_v7 = vld [vmem:[#allocation50_spill] sm:$0xff] }
  0x31   :  { %v518_v63 = vadd.f32 %v1781_v41, %v516_v3  ;;  %v683_v24 = vadd.f32 %v682_v56, %v681_v35  ;;  %v1459_v50 = vsel %vm469_vm1, %v640_v18, 0.0  ;;  %v1462_v31 = vsel %vm469_vm1, %v641_v19, 0.0  ;;  %v1784_v56 = vld [vmem:[#allocation35_spill] sm:$0xff] }
  0x32   :  { %v1465_v26 = vsel %vm469_vm1, %v642_v21, 0.0  ;;  %v1468_v44 = vsel %vm469_vm1, %v643_v22, 0.0  ;;  %v1471_v57 = vsel %vm469_vm1, %v644_v23, 0.0  ;;  %v1475_v13 = vsel %vm469_vm1, %v645_v45, 0.0 }
  0x33   :  { %v520_v10 = vadd.f32 %v1782_v7, %v518_v63  ;;  %v685_v55 = vadd.f32 %v684_v62, %v683_v24  ;;  %v1478_v18 = vsel %vm469_vm1, %v646_v4, 0.0  ;;  %v1481_v19 = vsel %vm469_vm1, %v647_v27, 0.0  ;;  %v1786_v62 = vld [vmem:[#allocation36_spill] sm:$0xff] }
  0x34   :  { %v1484_v21 = vsel %vm469_vm1, %v648_v28, 0.0  ;;  %v1487_v22 = vsel %vm469_vm1, %v649_v29, 0.0  ;;  %v1490_v23 = vsel %vm469_vm1, %v650_v33, 0.0  ;;  %v1494_v45 = vsel %vm469_vm1, %v651_v40, 0.0 }
  0x35   :  { %v522_v60 = vadd.f32 %v1783_v25, %v520_v10  ;;  %v687_v6 = vadd.f32 %v686_v9, %v685_v55  ;;  %v1497_v4 = vsel %vm469_vm1, %v652_v42, 0.0  ;;  %v1500_v27 = vsel %vm469_vm1, %v653_v46, 0.0  ;;  %v1788_v10 = vld [vmem:[#allocation38_spill] sm:$0xff] }
  0x36   :  { %v1503_v28 = vsel %vm469_vm1, %v654_v47, 0.0  ;;  %v1506_v29 = vsel %vm469_vm1, %v655_v39, 0.0  ;;  %v1509_v33 = vsel %vm469_vm1, %v656_v48, 0.0  ;;  %v1513_v40 = vsel %vm469_vm1, %v657_v37, 0.0  ;;  %v1789_v25 = vld [vmem:[#allocation2_spill] sm:$0xff] }
  0x37   :  { %v524_v51 = vadd.f32 %v1344_v58, %v522_v60  ;;  %v689_v15 = vadd.f32 %v688_v12, %v687_v6  ;;  %v1516_v42 = vsel %vm469_vm1, %v658_v53, 0.0  ;;  %v1519_v46 = vsel %vm469_vm1, %v659_v54, 0.0 }
  0x38   :  { %v1522_v47 = vsel %vm469_vm1, %v660_v38, 0.0  ;;  %v1525_v39 = vsel %vm469_vm1, %v661_v59, 0.0  ;;  %v1528_v48 = vsel %vm469_vm1, %v662_v36, 0.0  ;;  %v1532_v37 = vsel %vm469_vm1, %v663_v61, 0.0 }
  0x39   :  { %v526_v58 = vadd.f32 %v1348_v32, %v524_v51  ;;  %v691_v0 = vadd.f32 %v690_v14, %v689_v15  ;;  %v1535_v53 = vsel %vm469_vm1, %v664_v5, 0.0  ;;  %v1538_v54 = vsel %vm469_vm1, %v665_v52, 0.0  ;;  %v1552_v32 = vld [vmem:[%s1705_s0 + $0xf8] sm:$0xff]  ;;  %v1790_v51 = vld [vmem:[#allocation39_spill] sm:$0xff] }
  0x3a   :  { %v1541_v38 = vsel %vm469_vm1, %v666_v8, 0.0  ;;  %v1544_v59 = vsel %vm469_vm1, %v667_v17, 0.0  ;;  %v1547_v36 = vsel %vm469_vm1, %v668_v20, 0.0  ;;  %v1556_v52 = vsel %vm469_vm1, %v669_v49, 0.0 }
  0x3b   :  { %v528_v61 = vadd.f32 %v1354_v43, %v526_v58  ;;  %v693_v5 = vadd.f32 %v692_v11, %v691_v0  ;;  %v1559_v8 = vsel %vm469_vm1, %v670_v30, 0.0  ;;  %v531_v17 = vsel %vm469_vm1, %v1552_v32, 0.0  ;;  %v1570_v43 = vld [vmem:[%s1705_s0 + $0x100] sm:$0xff]  ;;  %v1791_v58 = vld [vmem:[#allocation3_spill] sm:$0xff] }
  0x3c   :  { %v622_v20 = vmul.f32 %v1784_v56, %v1784_v56  ;;  %v696_v3 = vsel %vm469_vm1, %v1376_v16, 0.0  ;;  %v533_v30 = vsel %vm469_vm1, %v1570_v43, 0.0  ;;  %v623_v9 = vmul.f32 %v1786_v62, %v1786_v62  ;;  %v1787_v16 = vld [vmem:[#allocation37_spill] sm:$0xff] }
  0x3d   :  { %v530_v49 = vadd.f32 %v1785_v34, %v528_v61  ;;  %v695_v35 = vadd.f32 %v694_v1, %v693_v5  ;;  %v698_v12 = vsel %vm469_vm1, %v1378_v2, 0.0  ;;  %v624_v41 = vmul.f32 %v1787_v16, %v1787_v16  ;;  %v1792_v5 = vld [vmem:[#allocation40_spill] sm:$0xff]  ;;  %v1795_v62 = vld [vmem:[#allocation5_spill] sm:$0xff] }
  0x3e   :  { %v700_v63 = vsel %vm469_vm1, %v622_v20, 0.0  ;;  %v625_v1 = vmul.f32 %v1788_v10, %v1788_v10  ;;  %v702_v55 = vsel %vm469_vm1, %v623_v9, 0.0  ;;  %v626_v2 = vmul.f32 %v1790_v51, %v1790_v51  ;;  %v1793_v20 = vld [vmem:[#allocation4_spill] sm:$0xff] }
  0x3f   :  { %v532_v14 = vadd.f32 %v531_v17, %v530_v49  ;;  %v697_v11 = vadd.f32 %v696_v3, %v695_v35  ;;  %v704_v15 = vsel %vm469_vm1, %v624_v41, 0.0  ;;  %v627_v17 = vmul.f32 %v1792_v5, %v1792_v5  ;;  %v1794_v49 = vld [vmem:[#allocation41_spill] sm:$0xff]  ;;  %v1797_v41 = vld [vmem:[#allocation6_spill] sm:$0xff] }
  0x40   :  { %v706_v56 = vsel %vm469_vm1, %v625_v1, 0.0  ;;  %v628_v35 = vmul.f32 %v1794_v49, %v1794_v49 }
  0x41   :  { %v534_v24 = vadd.f32 %v533_v30, %v532_v14  ;;  %v699_v7 = vadd.f32 %v698_v12, %v697_v11  ;;  %v708_v30 = vsel %vm469_vm1, %v626_v2, 0.0  ;;  %v1796_v14 = vld [vmem:[#allocation42_spill] sm:$0xff]  ;;  %v710_v16 = vsel %vm469_vm1, %v627_v17, 0.0 }
  0x42   :  { %v629_v11 = vmul.f32 %v1796_v14, %v1796_v14  ;;  %v712_v1 = vsel %vm469_vm1, %v628_v35, 0.0 }
  0x43   :  { %v536_v60 = vadd.f32 %v1789_v25, %v534_v24  ;;  %v701_v6 = vadd.f32 %v700_v63, %v699_v7  ;;  %v1798_v7 = vld [vmem:[#allocation43_spill] sm:$0xff] }
  0x44   :  { %v630_v10 = vmul.f32 %v1798_v7, %v1798_v7  ;;  %v714_v2 = vsel %vm469_vm1, %v629_v11, 0.0 }
  0x45   :  { %v538_v0 = vadd.f32 %v1791_v58, %v536_v60  ;;  %v703_v61 = vadd.f32 %v702_v55, %v701_v6  ;;  %v1799_v55 = vld [vmem:[#allocation7_spill] sm:$0xff]  ;;  %v1800_v6 = vld [vmem:[#allocation44_spill] sm:$0xff] }
  0x46   :  { %v631_v51 = vmul.f32 %v1800_v6, %v1800_v6  ;;  %v716_v17 = vsel %vm469_vm1, %v630_v10, 0.0 }
  0x47   :  { %v540_v3 = vadd.f32 %v1793_v20, %v538_v0  ;;  %v705_v34 = vadd.f32 %v704_v15, %v703_v61  ;;  %v1801_v15 = vld [vmem:[#allocation8_spill] sm:$0xff]  ;;  %v1802_v61 = vld [vmem:[#allocation45_spill] sm:$0xff] }
  0x48   :  { %v632_v5 = vmul.f32 %v1802_v61, %v1802_v61  ;;  %v718_v35 = vsel %vm469_vm1, %v631_v51, 0.0 }
  0x49   :  { %v542_v9 = vadd.f32 %v1795_v62, %v540_v3  ;;  %v707_v12 = vadd.f32 %v706_v56, %v705_v34  ;;  %v1803_v56 = vld [vmem:[#allocation9_spill] sm:$0xff]  ;;  %v1804_v34 = vld [vmem:[#allocation46_spill] sm:$0xff] }
  0x4a   :  { %v633_v49 = vmul.f32 %v1804_v34, %v1804_v34  ;;  %v720_v11 = vsel %vm469_vm1, %v632_v5, 0.0 }
  0x4b   :  { %v544_v63 = vadd.f32 %v1797_v41, %v542_v9  ;;  %v709_v24 = vadd.f32 %v708_v30, %v707_v12  ;;  %v1805_v30 = vld [vmem:[#allocation10_spill] sm:$0xff]  ;;  %v1806_v12 = vld [vmem:[#allocation47_spill] sm:$0xff] }
  0x4c   :  { %v634_v14 = vmul.f32 %v1806_v12, %v1806_v12  ;;  %v722_v10 = vsel %vm469_vm1, %v633_v49, 0.0  ;;  %v1814_v49 = vld [vmem:[#allocation15_spill] sm:$0xff]  ;;  %v1815_v12 = vld [vmem:[#allocation16_spill] sm:$0xff] }
  0x4d   :  { %v546_v25 = vadd.f32 %v1799_v55, %v544_v63  ;;  %v711_v60 = vadd.f32 %v710_v16, %v709_v24  ;;  %v1807_v16 = vld [vmem:[#allocation11_spill] sm:$0xff]  ;;  %v1808_v24 = vld [vmem:[#allocation48_spill] sm:$0xff] }
  0x4e   :  { %v635_v7 = vmul.f32 %v1808_v24, %v1808_v24  ;;  %v724_v51 = vsel %vm469_vm1, %v634_v14, 0.0 }
  0x4f   :  { %v548_v58 = vadd.f32 %v1801_v15, %v546_v25  ;;  %v713_v0 = vadd.f32 %v712_v1, %v711_v60  ;;  %v1809_v1 = vld [vmem:[#allocation12_spill] sm:$0xff] }
  0x50   :  { %v1810_v60 = vld [vmem:[#allocation52_spill] sm:$0xff]  ;;  %v726_v5 = vsel %vm469_vm1, %v635_v7, 0.0  ;;  %v1817_v7 = vld [vmem:[#allocation18_spill] sm:$0xff] }
  0x51   :  { %v550_v20 = vadd.f32 %v1803_v56, %v548_v58  ;;  %v715_v3 = vadd.f32 %v714_v2, %v713_v0  ;;  %v636_v6 = vmul.f32 %v1810_v60, %v1810_v60  ;;  %v1811_v2 = vld [vmem:[#allocation13_spill] sm:$0xff] }
  0x52   :  { %v1812_v0 = vld [vmem:[#allocation53_spill] sm:$0xff] }
  0x53   :  { %v552_v62 = vadd.f32 %v1805_v30, %v550_v20  ;;  %v717_v9 = vadd.f32 %v716_v17, %v715_v3  ;;  %v637_v61 = vmul.f32 %v1812_v0, %v1812_v0  ;;  %v1813_v17 = vld [vmem:[#allocation14_spill] sm:$0xff]  ;;  %v638_v3 = vmul.f32 %v1552_v32, %v1552_v32 }
  0x54   :  { %v728_v34 = vsel %vm469_vm1, %v636_v6, 0.0  ;;  %v1819_v6 = vld [vmem:[#allocation20_spill] sm:$0xff]  ;;  %v1821_v0 = vld [vmem:[#allocation22_spill] sm:$0xff] }
  0x55   :  { %v554_v41 = vadd.f32 %v1807_v16, %v552_v62  ;;  %v719_v63 = vadd.f32 %v718_v35, %v717_v9  ;;  %v639_v62 = vmul.f32 %v1570_v43, %v1570_v43  ;;  %v730_v9 = vsel %vm469_vm1, %v637_v61, 0.0 }
  0x56   :  { %v732_v16 = vsel %vm469_vm1, %v638_v3, 0.0  ;;  %v1823_v3 = vld [vmem:[#allocation24_spill] sm:$0xff] }
  0x57   :  { %v556_v55 = vadd.f32 %v1809_v1, %v554_v41  ;;  %v721_v25 = vadd.f32 %v720_v11, %v719_v63  ;;  %v1816_v41 = vld [vmem:[#allocation17_spill] sm:$0xff]  ;;  %v734_v32 = vsel %vm469_vm1, %v639_v62, 0.0  ;;  %v1825_v62 = vld [vmem:[#allocation27_spill] sm:$0xff] }
  0x59   :  { %v558_v15 = vadd.f32 %v1811_v2, %v556_v55  ;;  %v723_v58 = vadd.f32 %v722_v10, %v721_v25  ;;  %v1818_v55 = vld [vmem:[#allocation19_spill] sm:$0xff]  ;;  %v1820_v2 = vld [vmem:[#allocation21_spill] sm:$0xff] }
  0x5b   :  { %v560_v56 = vadd.f32 %v1813_v17, %v558_v15  ;;  %v725_v20 = vadd.f32 %v724_v51, %v723_v58  ;;  %v1822_v17 = vld [vmem:[#allocation23_spill] sm:$0xff] }
  0x5d   :  { %v562_v35 = vadd.f32 %v1814_v49, %v560_v56  ;;  %v727_v30 = vadd.f32 %v726_v5, %v725_v20 }
  0x5f   :  { %v564_v14 = vadd.f32 %v1815_v12, %v562_v35  ;;  %v729_v11 = vadd.f32 %v728_v34, %v727_v30  ;;  %v1824_v35 = vld [vmem:[#allocation25_spill] sm:$0xff]  ;;  %v1826_v12 = vld [vmem:[#allocation28_spill] sm:$0xff] }
  0x61   :  { %v566_v63 = vadd.f32 %v1816_v41, %v564_v14  ;;  %v731_v24 = vadd.f32 %v730_v9, %v729_v11  ;;  %v1827_v11 = vld [vmem:[#allocation29_spill] sm:$0xff]  ;;  %v1828_v41 = vld [vmem:[#allocation31_spill] sm:$0xff] }
  0x63   :  { %v568_v10 = vadd.f32 %v1817_v7, %v566_v63  ;;  %v733_v1 = vadd.f32 %v732_v16, %v731_v24  ;;  %v1829_v24 = vld [vmem:[#allocation32_spill] sm:$0xff]  ;;  %v1830_v7 = vld [vmem:[#allocation33_spill] sm:$0xff] }
  0x65   :  { %v570_v25 = vadd.f32 %v1818_v55, %v568_v10  ;;  %v735_v60 = vadd.f32 %v734_v32, %v733_v1  ;;  %v1831_v1 = vld [vmem:[#allocation34_spill] sm:$0xff] }
  0x67   :  { %v572_v43 = vadd.f32 %v1819_v6, %v570_v25  ;;  %v737_v51 = vadd.f32 %v1459_v50, %v735_v60 }
  0x69   :  { %v574_v15 = vadd.f32 %v1820_v2, %v572_v43  ;;  %v739_v58 = vadd.f32 %v1462_v31, %v737_v51 }
  0x6b   :  { %v576_v61 = vadd.f32 %v1821_v0, %v574_v15  ;;  %v741_v5 = vadd.f32 %v1465_v26, %v739_v58 }
  0x6d   :  { %v578_v56 = vadd.f32 %v1822_v17, %v576_v61  ;;  %v743_v20 = vadd.f32 %v1468_v44, %v741_v5 }
  0x6f   :  { %v580_v34 = vadd.f32 %v1823_v3, %v578_v56  ;;  %v745_v49 = vadd.f32 %v1471_v57, %v743_v20 }
  0x71   :  { %v582_v30 = vadd.f32 %v1824_v35, %v580_v34  ;;  %v747_v50 = vadd.f32 %v1475_v13, %v745_v49 }
  0x73   :  { %v584_v9 = vadd.f32 %v1825_v62, %v582_v30  ;;  %v749_v31 = vadd.f32 %v1478_v18, %v747_v50 }
  0x75   :  { %v586_v14 = vadd.f32 %v1826_v12, %v584_v9  ;;  %v751_v26 = vadd.f32 %v1481_v19, %v749_v31 }
  0x77   :  { %v588_v16 = vadd.f32 %v1827_v11, %v586_v14  ;;  %v753_v44 = vadd.f32 %v1484_v21, %v751_v26 }
  0x79   :  { %v590_v63 = vadd.f32 %v1828_v41, %v588_v16  ;;  %v755_v57 = vadd.f32 %v1487_v22, %v753_v44 }
  0x7b   :  { %v592_v32 = vadd.f32 %v1829_v24, %v590_v63  ;;  %v757_v13 = vadd.f32 %v1490_v23, %v755_v57 }
  0x7d   :  { %v594_v10 = vadd.f32 %v1830_v7, %v592_v32  ;;  %v759_v18 = vadd.f32 %v1494_v45, %v757_v13  ;;  %v468_v45 = vld [vmem:[%s1706_s1] sm:$0x1] }
  0x7f   :  { %v596_v55 = vadd.f32 %v1831_v1, %v594_v10  ;;  %v761_v19 = vadd.f32 %v1497_v4, %v759_v18 }
  0x81   :  { %v597_v25 = vrot.slane %v596_v55, 4  ;;  %v763_v60 = vadd.f32 %v1500_v27, %v761_v19 }
  0x83   :  { %v598_v21 = vadd.f32 %v597_v25, %v596_v55  ;;  %v765_v6 = vadd.f32 %v1503_v28, %v763_v60 }
  0x85   :  { %v599_v43 = vrot.slane %v598_v21, 2  ;;  %v767_v22 = vadd.f32 %v1506_v29, %v765_v6 }
  0x87   :  { %v600_v51 = vadd.f32 %v599_v43, %v598_v21  ;;  %v769_v23 = vadd.f32 %v1509_v33, %v767_v22 }
  0x89   :  { %v601_v2 = vrot.slane %v600_v51, 1  ;;  %v771_v15 = vadd.f32 %v1513_v40, %v769_v23 }
  0x8b   :  { %v602_v4 = vadd.f32 %v601_v2, %v600_v51  ;;  %v773_v58 = vadd.f32 %v1516_v42, %v771_v15 }
  0x8d   :  { %v603_v27 = vadd.f32 %v602_v4, %v468_v45  ;;  %v775_v0 = vadd.f32 %v1519_v46, %v773_v58 }
  0x8f   :  { %605 = vst.msk [vmem:[%s1706_s1] sm:$0x1] %vm14_vm0, %v603_v27  ;;  %v777_v28 = vadd.f32 %v1522_v47, %v775_v0 }
  0x91   :  { %v779_v29 = vadd.f32 %v1525_v39, %v777_v28 }
  0x93   :  { %v781_v33 = vadd.f32 %v1528_v48, %v779_v29 }
  0x95   :  { %v783_v40 = vadd.f32 %v1532_v37, %v781_v33  ;;  %v606_v37 = vld [vmem:[%s1707_s2] sm:$0x1] }
  0x97   :  { %v785_v61 = vadd.f32 %v1535_v53, %v783_v40 }
  0x99   :  { %v787_v42 = vadd.f32 %v1538_v54, %v785_v61 }
  0x9b   :  { %v789_v5 = vadd.f32 %v1541_v38, %v787_v42 }
  0x9d   :  { %v791_v46 = vadd.f32 %v1544_v59, %v789_v5 }
  0x9f   :  { %v793_v17 = vadd.f32 %v1547_v36, %v791_v46 }
  0xa1   :  { %v795_v56 = vadd.f32 %v1556_v52, %v793_v17 }
  0xa3   :  { %v797_v47 = vadd.f32 %v1559_v8, %v795_v56 }
  0xa5   :  { %v798_v20 = vrot.slane %v797_v47, 4 }
  0xa7   :  { %v799_v39 = vadd.f32 %v798_v20, %v797_v47 }
  0xa9   :  { %v800_v3 = vrot.slane %v799_v39, 2 }
  0xab   :  { %v801_v48 = vadd.f32 %v800_v3, %v799_v39 }
  0xad   :  { %v802_v34 = vrot.slane %v801_v48, 1 }
  0xaf   :  { %v803_v53 = vadd.f32 %v802_v34, %v801_v48 }
  0xb1   :  { %v804_v54 = vadd.f32 %v803_v53, %v606_v37 }
  0xb3   :  { %805 = vst.msk [vmem:[%s1707_s2] sm:$0x1] %vm14_vm0, %v804_v54 }

// kernel: dense_basic_forward.4
= control target key start
LH: loop header
LB: loop body
LE: loop exit
PB: predicated region body
PF: predicated region fallthrough
CT: control target
= control target key end

     0   :  { %vm438_vm0 = vcmask 1041408   ;;  %vm341_vm1 = vcmask 31744   ;;  %vm28_vm2 = vcmask 253952   ;;  %vm987_vm3 = vcmask 257024   ;;  %s3233_s3 = inlined_call_operand.vmem [shape: bf16[4,32], index: 3, kind: input, shape index: {}]   ;;  %s3234_s0 = inlined_call_operand.vmem [shape: f32[512,4], index: 0, kind: input, shape index: {}]   ;;  %s3235_s1 = inlined_call_operand.vmem [shape: f32[1,4], index: 1, kind: input, shape index: {}]   ;;  %s3236_s2 = inlined_call_operand.vmem [shape: f32[1,4], index: 2, kind: input, shape index: {}]   ;;  %s3237_s4 = inlined_call_operand.vmem [shape: f32[1,32], index: 4, kind: input, shape index: {}]   ;;  %s3238_s6 = inlined_call_operand.vmem [shape: f32[1,32], index: 6, kind: output, shape index: {1}]   ;;  %s3239_s7 = inlined_call_operand.vmem [shape: f32[1,32], index: 7, kind: output, shape index: {2}]   ;;  %s3240_s5 = inlined_call_operand.vmem [shape: bf16[512,32], index: 5, kind: output, shape index: {0}]  }
   0x1   :  { %v333_v0 = vld [vmem:[%s3233_s3] sm:$0x3]  ;;  %v32_v2 = vld [vmem:[%s3234_s0 + $0x8] sm:$0xff]  ;;  %v33_v6 = vld [vmem:[%s3234_s0 + $0x10] sm:$0xff]  ;;  %vm1440_vm4 = vcmask 261120  }
   0x2   :  { %v31_v1 = vld [vmem:[%s3234_s0] sm:$0xff]  ;;  %2053 = vmatprep.subr.msk.bf16.mxu0 %vm438_vm0, %v333_v0  ;;  %v440_v3 = vsel %vm438_vm0, %v333_v0, 0  ;;  %2054 = vmatprep.subr.msk.bf16.mxu1 %vm438_vm0, %v333_v0  ;;  %v34_v9 = vld [vmem:[%s3234_s0 + $0x18] sm:$0xff]  ;;  %v36_v12 = vld [vmem:[%s3234_s0 + $0x28] sm:$0xff] }
   0x3   :  { %v2110_v4 = vld [vmem:[%s3235_s1] ss:$0 sm:$0xff]  ;;  %1986 = vmatpush3.bf16.msra.mxu0 %v440_v3  ;;  %2052 = vmatpush3.bf16.msra.mxu1 %v440_v3  ;;  %v37_v16 = vld [vmem:[%s3234_s0 + $0x30] sm:$0xff]  ;;  %v38_v17 = vld [vmem:[%s3234_s0 + $0x38] sm:$0xff] }
   0x4   :  { %v2115_v5 = vld [vmem:[%s3236_s2] ss:$0 sm:$0xff]  ;;  %v102_v7 = vmul.f32 %v2110_v4, %v31_v1  ;;  %v103_v8 = vmul.f32 %v2110_v4, %v32_v2  ;;  %v104_v10 = vmul.f32 %v2110_v4, %v33_v6  ;;  %v105_v13 = vmul.f32 %v2110_v4, %v34_v9  ;;  %v40_v27 = vld [vmem:[%s3234_s0 + $0x48] sm:$0xff]  ;;  %v41_v32 = vld [vmem:[%s3234_s0 + $0x50] sm:$0xff] }
   0x5   :  { %v35_v11 = vld [vmem:[%s3234_s0 + $0x20] sm:$0xff]  ;;  %v107_v15 = vmul.f32 %v2110_v4, %v36_v12  ;;  %v108_v21 = vmul.f32 %v2110_v4, %v37_v16  ;;  %v109_v25 = vmul.f32 %v2110_v4, %v38_v17  ;;  %v42_v37 = vld [vmem:[%s3234_s0 + $0x58] sm:$0xff]  ;;  %v111_v41 = vmul.f32 %v2110_v4, %v40_v27  ;;  %v44_v42 = vld [vmem:[%s3234_s0 + $0x68] sm:$0xff] }
   0x6   :  { %v106_v14 = vmul.f32 %v2110_v4, %v35_v11  ;;  %v173_v18 = vadd.f32 %v2115_v5, %v102_v7  ;;  %v174_v19 = vadd.f32 %v2115_v5, %v103_v8  ;;  %v175_v20 = vadd.f32 %v2115_v5, %v104_v10  ;;  %v39_v26 = vld [vmem:[%s3234_s0 + $0x40] sm:$0xff]  ;;  %v45_v46 = vld [vmem:[%s3234_s0 + $0x70] sm:$0xff]  ;;  %v46_v55 = vld [vmem:[%s3234_s0 + $0x78] sm:$0xff] }
   0x7   :  { %v176_v22 = vadd.f32 %v2115_v5, %v105_v13  ;;  %v178_v24 = vadd.f32 %v2115_v5, %v107_v15  ;;  %v179_v31 = vadd.f32 %v2115_v5, %v108_v21  ;;  %v180_v36 = vadd.f32 %v2115_v5, %v109_v25  ;;  %v43_v38 = vld [vmem:[%s3234_s0 + $0x60] sm:$0xff]  ;;  %v48_v60 = vld [vmem:[%s3234_s0 + $0x88] sm:$0xff]  ;;  %v49_v0 = vld [vmem:[%s3234_s0 + $0x90] sm:$0xff] }
   0x8   :  { %v177_v23 = vadd.f32 %v2115_v5, %v106_v14  ;;  %v237_v28 = vmax.f32 %v173_v18, 0.0  ;;  %v238_v29 = vmax.f32 %v174_v19, 0.0  ;;  %v239_v30 = vmax.f32 %v175_v20, 0.0  ;;  %v47_v56 = vld [vmem:[%s3234_s0 + $0x80] sm:$0xff]  ;;  %v50_v1 = vld [vmem:[%s3234_s0 + $0x98] sm:$0xff]  ;;  %v52_v10 = vld [vmem:[%s3234_s0 + $0xa8] sm:$0xff] }
   0x9   :  { %v240_v33 = vmax.f32 %v176_v22, 0.0  ;;  %v242_v35 = vmax.f32 %v178_v24, 0.0  ;;  %v110_v40 = vmul.f32 %v2110_v4, %v39_v26  ;;  %v112_v45 = vmul.f32 %v2110_v4, %v41_v32  ;;  %v51_v6 = vld [vmem:[%s3234_s0 + $0xa0] sm:$0xff]  ;;  %v53_v15 = vld [vmem:[%s3234_s0 + $0xb0] sm:$0xff]  ;;  %v54_v20 = vld [vmem:[%s3234_s0 + $0xb8] sm:$0xff] }
   0xa   :  { %v241_v34 = vmax.f32 %v177_v23, 0.0  ;;  %v301_v39 = vpack.c.bf16 %v238_v29, %v237_v28  ;;  %v182_v48 = vadd.f32 %v2115_v5, %v111_v41  ;;  %v113_v49 = vmul.f32 %v2110_v4, %v42_v37  ;;  %v55_v25 = vld [vmem:[%s3234_s0 + $0xc0] sm:$0xff]  ;;  %v56_v29 = vld [vmem:[%s3234_s0 + $0xc8] sm:$0xff] }
   0xb   :  { %v302_v43 = vpack.c.bf16 %v240_v33, %v239_v30  ;;  %v181_v47 = vadd.f32 %v2115_v5, %v110_v40  ;;  %v114_v50 = vmul.f32 %v2110_v4, %v43_v38  ;;  %v243_v51 = vmax.f32 %v179_v31, 0.0  ;;  %v57_v33 = vld [vmem:[%s3234_s0 + $0xd0] sm:$0xff] }
   0xc   :  { %v303_v44 = vpack.c.bf16 %v242_v35, %v241_v34  ;;  %1987 = vmatprep.mubr.msk.bf16.mxu0 %vm341_vm1, %v301_v39  ;;  %v244_v52 = vmax.f32 %v180_v36, 0.0  ;;  %v183_v53 = vadd.f32 %v2115_v5, %v112_v45  ;;  %v115_v54 = vmul.f32 %v2110_v4, %v44_v42  ;;  %v58_v42 = vld [vmem:[%s3234_s0 + $0xd8] sm:$0xff] }
   0xd   :  { %1988 = vmatmul.mubr.msk.bf16.vlgmr.msra.gmra.mrb[0].mxu0 %vm341_vm1, %v302_v43  ;;  %v245_v57 = vmax.f32 %v181_v47, 0.0  ;;  %v246_v58 = vmax.f32 %v182_v48, 0.0  ;;  %v116_v59 = vmul.f32 %v2110_v4, %v45_v46  ;;  %v184_v61 = vadd.f32 %v2115_v5, %v113_v49  ;;  %v59_v47 = vld [vmem:[%s3234_s0 + $0xe0] sm:$0xff] }
   0xe   :  { %1991 = vmatprep.mubr.msk.bf16.mxu0 %vm341_vm1, %v303_v44  ;;  %v185_v62 = vadd.f32 %v2115_v5, %v114_v50  ;;  %v186_v63 = vadd.f32 %v2115_v5, %v115_v54  ;;  %v117_v2 = vmul.f32 %v2110_v4, %v46_v55  ;;  %v118_v3 = vmul.f32 %v2110_v4, %v47_v56  ;;  %v63_v54 = vld [vmem:[%s3234_s0 + $0x100] sm:$0xff]  ;;  %v60_v56 = vld [vmem:[%s3234_s0 + $0xe8] sm:$0xff] }
   0xf   :  { %v304_v7 = vpack.c.bf16 %v244_v52, %v243_v51  ;;  %v247_v8 = vmax.f32 %v183_v53, 0.0  ;;  %v119_v9 = vmul.f32 %v2110_v4, %v48_v60  ;;  %v305_v11 = vpack.c.bf16 %v246_v58, %v245_v57  ;;  %v64_v58 = vld [vmem:[%s3234_s0 + $0x108] sm:$0xff] }
  0x10   :  { %v187_v12 = vadd.f32 %v2115_v5, %v116_v59  ;;  %v120_v13 = vmul.f32 %v2110_v4, %v49_v0  ;;  %v121_v14 = vmul.f32 %v2110_v4, %v50_v1  ;;  %v248_v16 = vmax.f32 %v184_v61, 0.0  ;;  %v66_v0 = vld [vmem:[%s3234_s0 + $0x118] sm:$0xff] }
  0x11   :  { %v249_v17 = vmax.f32 %v185_v62, 0.0  ;;  %v250_v18 = vmax.f32 %v186_v63, 0.0  ;;  %v122_v19 = vmul.f32 %v2110_v4, %v51_v6  ;;  %v188_v21 = vadd.f32 %v2115_v5, %v117_v2  ;;  %v65_v63 = vld [vmem:[%s3234_s0 + $0x110] sm:$0xff] }
  0x12   :  { %v189_v22 = vadd.f32 %v2115_v5, %v118_v3  ;;  %v190_v23 = vadd.f32 %v2115_v5, %v119_v9  ;;  %v123_v24 = vmul.f32 %v2110_v4, %v52_v10  ;;  %v191_v26 = vadd.f32 %v2115_v5, %v120_v13  ;;  %v61_v6 = vld [vmem:[%s3234_s0 + $0xf0] sm:$0xff]  ;;  %v68_v13 = vld [vmem:[%s3234_s0 + $0x128] sm:$0xff] }
  0x13   :  { %v192_v27 = vadd.f32 %v2115_v5, %v121_v14  ;;  %v124_v28 = vmul.f32 %v2110_v4, %v53_v15  ;;  %v193_v30 = vadd.f32 %v2115_v5, %v122_v19  ;;  %v125_v32 = vmul.f32 %v2110_v4, %v54_v20 }
  0x14   :  { %v194_v31 = vadd.f32 %v2115_v5, %v123_v24  ;;  %v306_v34 = vpack.c.bf16 %v248_v16, %v247_v8  ;;  %v307_v35 = vpack.c.bf16 %v250_v18, %v249_v17  ;;  %v251_v36 = vmax.f32 %v187_v12, 0.0  ;;  %v67_v8 = vld [vmem:[%s3234_s0 + $0x120] sm:$0xff]  ;;  %v69_v18 = vld [vmem:[%s3234_s0 + $0x130] sm:$0xff] }
  0x15   :  { %1992 = vmatmul.mubr.msk.bf16.gmra.mrb[4].mxu0 %vm341_vm1, %v304_v7  ;;  %v126_v37 = vmul.f32 %v2110_v4, %v55_v25  ;;  %v252_v38 = vmax.f32 %v188_v21, 0.0  ;;  %v253_v39 = vmax.f32 %v189_v22, 0.0  ;;  %v254_v40 = vmax.f32 %v190_v23, 0.0  ;;  %v70_v23 = vld [vmem:[%s3234_s0 + $0x138] sm:$0xff] }
  0x16   :  { %1995 = vmatprep.mubr.msk.bf16.mxu0 %vm341_vm1, %v305_v11  ;;  %v127_v41 = vmul.f32 %v2110_v4, %v56_v29  ;;  %v255_v43 = vmax.f32 %v191_v26, 0.0  ;;  %v256_v44 = vmax.f32 %v192_v27, 0.0  ;;  %v2249_v45 = vadd.f32 %v2115_v5, %v124_v28  ;;  %v71_v28 = vld [vmem:[%s3234_s0 + $0x140] sm:$0xff] }
  0x17   :  { %v128_v46 = vmul.f32 %v2110_v4, %v57_v33  ;;  %v257_v48 = vmax.f32 %v193_v30, 0.0  ;;  %v258_v49 = vmax.f32 %v194_v31, 0.0  ;;  %v2256_v50 = vadd.f32 %v2115_v5, %v125_v32  ;;  %v72_v33 = vld [vmem:[%s3234_s0 + $0x148] sm:$0xff] }
  0x18   :  { %v2259_v51 = vadd.f32 %v2115_v5, %v126_v37  ;;  %v2262_v52 = vadd.f32 %v2115_v5, %v127_v41  ;;  %v129_v53 = vmul.f32 %v2110_v4, %v58_v42  ;;  %v308_v55 = vpack.c.bf16 %v252_v38, %v251_v36  ;;  %v73_v38 = vld [vmem:[%s3234_s0 + $0x150] sm:$0xff] }
  0x19   :  { %v130_v57 = vmul.f32 %v2110_v4, %v59_v47  ;;  %v309_v59 = vpack.c.bf16 %v254_v40, %v253_v39  ;;  %v2276_v60 = vpack.c.bf16 %v256_v44, %v255_v43  ;;  %v259_v61 = vmax.f32 %v2249_v45, 0.0  ;;  %v74_v39 = vld [vmem:[%s3234_s0 + $0x158] sm:$0xff]  ;;  %v75_v44 = vld [vmem:[%s3234_s0 + $0x160] sm:$0xff] }
  0x1a   :  { %v2280_v62 = vadd.f32 %v2115_v5, %v128_v46  ;;  %v2289_v1 = vpack.c.bf16 %v258_v49, %v257_v48  ;;  %v260_v2 = vmax.f32 %v2256_v50, 0.0  ;;  %v261_v3 = vmax.f32 %v2259_v51, 0.0  ;;  %v86_v45 = vld [vmem:[%s3234_s0 + $0x1b8] sm:$0xff] }
  0x1b   :  { %v134_v7 = vmul.f32 %v2110_v4, %v63_v54  ;;  %v262_v9 = vmax.f32 %v2262_v52, 0.0  ;;  %v2302_v10 = vadd.f32 %v2115_v5, %v129_v53  ;;  %v131_v11 = vmul.f32 %v2110_v4, %v60_v56  ;;  %v76_v53 = vld [vmem:[%s3234_s0 + $0x168] sm:$0xff] }
  0x1c   :  { %v135_v12 = vmul.f32 %v2110_v4, %v64_v58  ;;  %v2310_v14 = vadd.f32 %v2115_v5, %v130_v57  ;;  %v136_v16 = vmul.f32 %v2110_v4, %v65_v63  ;;  %v137_v17 = vmul.f32 %v2110_v4, %v66_v0  ;;  %v77_v58 = vld [vmem:[%s3234_s0 + $0x170] sm:$0xff] }
  0x1d   :  { %1996 = vmatmul.mubr.msk.bf16.gmra.mrb[8].mxu0 %vm341_vm1, %v306_v34  ;;  %v205_v15 = vadd.f32 %v2115_v5, %v134_v7  ;;  %v263_v19 = vmax.f32 %v2280_v62, 0.0  ;;  %v132_v20 = vmul.f32 %v2110_v4, %v61_v6  ;;  %v138_v22 = vmul.f32 %v2110_v4, %v67_v8  ;;  %v78_v8 = vld [vmem:[%s3234_s0 + $0x178] sm:$0xff]  ;;  %v83_v62 = vld [vmem:[%s3234_s0 + $0x1a0] sm:$0xff] }
  0x1e   :  { %1999 = vmatprep.mubr.msk.bf16.mxu0 %vm341_vm1, %v307_v35  ;;  %v206_v21 = vadd.f32 %v2115_v5, %v135_v12  ;;  %v207_v25 = vadd.f32 %v2115_v5, %v136_v16  ;;  %v208_v26 = vadd.f32 %v2115_v5, %v137_v17  ;;  %v139_v27 = vmul.f32 %v2110_v4, %v68_v13  ;;  %v79_v16 = vld [vmem:[%s3234_s0 + $0x180] sm:$0xff] }
  0x1f   :  { %v269_v24 = vmax.f32 %v205_v15, 0.0  ;;  %v2332_v29 = vadd.f32 %v2115_v5, %v131_v11  ;;  %v209_v31 = vadd.f32 %v2115_v5, %v138_v22  ;;  %v140_v32 = vmul.f32 %v2110_v4, %v69_v18 }
  0x20   :  { %v270_v30 = vmax.f32 %v206_v21, 0.0  ;;  %v271_v34 = vmax.f32 %v207_v25, 0.0  ;;  %v272_v35 = vmax.f32 %v208_v26, 0.0  ;;  %v210_v36 = vadd.f32 %v2115_v5, %v139_v27  ;;  %v80_v27 = vld [vmem:[%s3234_s0 + $0x188] sm:$0xff] }
  0x21   :  { %v141_v37 = vmul.f32 %v2110_v4, %v70_v23  ;;  %v273_v41 = vmax.f32 %v209_v31, 0.0  ;;  %v211_v42 = vadd.f32 %v2115_v5, %v140_v32  ;;  %v142_v43 = vmul.f32 %v2110_v4, %v71_v28 }
  0x22   :  { %v317_v40 = vpack.c.bf16 %v270_v30, %v269_v24  ;;  %v318_v46 = vpack.c.bf16 %v272_v35, %v271_v34  ;;  %v274_v47 = vmax.f32 %v210_v36, 0.0  ;;  %v143_v49 = vmul.f32 %v2110_v4, %v72_v33  ;;  %v81_v36 = vld [vmem:[%s3234_s0 + $0x190] sm:$0xff] }
  0x23   :  { %v212_v48 = vadd.f32 %v2115_v5, %v141_v37  ;;  %v275_v54 = vmax.f32 %v211_v42, 0.0  ;;  %v144_v56 = vmul.f32 %v2110_v4, %v73_v38  ;;  %v145_v57 = vmul.f32 %v2110_v4, %v74_v39 }
  0x24   :  { %2019 = vmatprep.mubr.msk.bf16.mxu1 %vm341_vm1, %v317_v40  ;;  %v319_v63 = vpack.c.bf16 %v274_v47, %v273_v41  ;;  %v214_v6 = vadd.f32 %v2115_v5, %v143_v49  ;;  %v146_v7 = vmul.f32 %v2110_v4, %v75_v44  ;;  %v147_v15 = vmul.f32 %v2110_v4, %v76_v53  ;;  %v82_v40 = vld [vmem:[%s3234_s0 + $0x198] sm:$0xff]  ;;  %v84_v41 = vld [vmem:[%s3234_s0 + $0x1a8] sm:$0xff]  ;;  %v89_v49 = vld [vmem:[%s3234_s0 + $0x1d0] sm:$0xff] }
  0x25   :  { %2000 = vmatmul.mubr.msk.bf16.gmra.mrb[12].mxu0 %vm341_vm1, %v308_v55  ;;  %v213_v55 = vadd.f32 %v2115_v5, %v142_v43  ;;  %2020 = vmatmul.mubr.msk.bf16.vlgmr.msra.gmra.mrb[0].mxu1 %vm341_vm1, %v318_v46  ;;  %v276_v0 = vmax.f32 %v212_v48, 0.0  ;;  %v215_v12 = vadd.f32 %v2115_v5, %v144_v56  ;;  %v216_v13 = vadd.f32 %v2115_v5, %v145_v57  ;;  %v88_v43 = vld [vmem:[%s3234_s0 + $0x1c8] sm:$0xff]  ;;  %v90_v53 = vld [vmem:[%s3234_s0 + $0x1d8] sm:$0xff] }
  0x26   :  { %2003 = vmatprep.mubr.msk.bf16.mxu0 %vm341_vm1, %v309_v59  ;;  %v62_v59 = vld [vmem:[%s3234_s0 + $0xf8] sm:$0xff]  ;;  %v264_v17 = vmax.f32 %v2302_v10, 0.0  ;;  %2023 = vmatprep.mubr.msk.bf16.mxu1 %vm341_vm1, %v319_v63  ;;  %v278_v18 = vmax.f32 %v214_v6, 0.0  ;;  %v217_v21 = vadd.f32 %v2115_v5, %v146_v7  ;;  %v148_v22 = vmul.f32 %v2110_v4, %v77_v58  ;;  %v91_v58 = vld [vmem:[%s3234_s0 + $0x1e0] sm:$0xff]  ;;  %v92_v7 = vld [vmem:[%s3234_s0 + $0x1e8] sm:$0xff] }
  0x27   :  { %v277_v11 = vmax.f32 %v213_v55, 0.0  ;;  %v265_v23 = vmax.f32 %v2310_v14, 0.0  ;;  %v133_v24 = vmul.f32 %v2110_v4, %v62_v59  ;;  %v218_v25 = vadd.f32 %v2115_v5, %v147_v15  ;;  %v93_v15 = vld [vmem:[%s3234_s0 + $0x1f0] sm:$0xff] }
  0x28   :  { %v149_v26 = vmul.f32 %v2110_v4, %v78_v8  ;;  %v266_v10 = vmax.f32 %v2332_v29, 0.0  ;;  %v2394_v28 = vadd.f32 %v2115_v5, %v132_v20  ;;  %v320_v30 = vpack.c.bf16 %v276_v0, %v275_v54 }
  0x29   :  { %v150_v31 = vmul.f32 %v2110_v4, %v79_v16  ;;  %v321_v14 = vpack.c.bf16 %v278_v18, %v277_v11  ;;  %v279_v32 = vmax.f32 %v215_v12, 0.0  ;;  %v280_v33 = vmax.f32 %v216_v13, 0.0 }
  0x2a   :  { %v2400_v34 = vadd.f32 %v2115_v5, %v148_v22  ;;  %v281_v35 = vmax.f32 %v217_v21, 0.0  ;;  %v282_v29 = vmax.f32 %v218_v25, 0.0  ;;  %v151_v20 = vmul.f32 %v2110_v4, %v80_v27  ;;  %v94_v22 = vld [vmem:[%s3234_s0 + $0x1f8] sm:$0xff] }
  0x2b   :  { %v312_v37 = vpack.c.bf16 %v260_v2, %v259_v61  ;;  %v2421_v38 = vpack.c.bf16 %v264_v17, %v263_v19  ;;  %v2424_v39 = vadd.f32 %v2115_v5, %v149_v26  ;;  %v2432_v50 = vpack.c.bf16 %v266_v10, %v265_v23  ;;  %v87_v2 = vld [vmem:[%s3234_s0 + $0x1c0] sm:$0xff] }
  0x2c   :  { %v2435_v51 = vadd.f32 %v2115_v5, %v133_v24  ;;  %v267_v52 = vmax.f32 %v2394_v28, 0.0  ;;  %v2440_v61 = vadd.f32 %v2115_v5, %v150_v31  ;;  %v152_v19 = vmul.f32 %v2110_v4, %v81_v36  ;;  %v2529_v28 = vld [vmem:[%s3237_s4] ss:$0 sm:$0xff] }
  0x2d   :  { %2004 = vmatmul.mubr.msk.bf16.gmra.mrb[16].mxu0 %vm341_vm1, %v2276_v60  ;;  %v85_v60 = vld [vmem:[%s3234_s0 + $0x1b0] sm:$0xff]  ;;  %2024 = vmatmul.mubr.msk.bf16.gmra.mrb[4].mxu1 %vm341_vm1, %v320_v30  ;;  %v323_v44 = vpack.c.bf16 %v282_v29, %v281_v35  ;;  %v222_v46 = vadd.f32 %v2115_v5, %v151_v20  ;;  %v153_v47 = vmul.f32 %v2110_v4, %v82_v40  ;;  %v284_v54 = vmax.f32 %v2424_v39, 0.0 }
  0x2e   :  { %2007 = vmatprep.mubr.msk.bf16.mxu0 %vm341_vm1, %v2289_v1  ;;  %v313_v1 = vpack.c.bf16 %v262_v9, %v261_v3  ;;  %2027 = vmatprep.mubr.msk.bf16.mxu1 %vm341_vm1, %v321_v14  ;;  %v322_v3 = vpack.c.bf16 %v280_v33, %v279_v32  ;;  %v283_v9 = vmax.f32 %v2400_v34, 0.0  ;;  %v156_v42 = vmul.f32 %v2110_v4, %v85_v60 }
  0x2f   :  { %v157_v48 = vmul.f32 %v2110_v4, %v86_v45  ;;  %v154_v55 = vmul.f32 %v2110_v4, %v83_v62  ;;  %v158_v57 = vmul.f32 %v2110_v4, %v87_v2  ;;  %v285_v59 = vmax.f32 %v2440_v61, 0.0 }
  0x30   :  { %v227_v56 = vadd.f32 %v2115_v5, %v156_v42  ;;  %v155_v63 = vmul.f32 %v2110_v4, %v84_v41  ;;  %v159_v6 = vmul.f32 %v2110_v4, %v88_v43  ;;  %v160_v12 = vmul.f32 %v2110_v4, %v89_v49 }
  0x31   :  { %v228_v0 = vadd.f32 %v2115_v5, %v157_v48  ;;  %v229_v11 = vadd.f32 %v2115_v5, %v158_v57  ;;  %v161_v13 = vmul.f32 %v2110_v4, %v90_v53  ;;  %v286_v16 = vmax.f32 %v222_v46, 0.0 }
  0x32   :  { %v291_v8 = vmax.f32 %v227_v56, 0.0  ;;  %v230_v18 = vadd.f32 %v2115_v5, %v159_v6  ;;  %v162_v21 = vmul.f32 %v2110_v4, %v91_v58  ;;  %v231_v24 = vadd.f32 %v2115_v5, %v160_v12 }
  0x33   :  { %v292_v17 = vmax.f32 %v228_v0, 0.0  ;;  %v293_v23 = vmax.f32 %v229_v11, 0.0  ;;  %v232_v25 = vadd.f32 %v2115_v5, %v161_v13  ;;  %v163_v26 = vmul.f32 %v2110_v4, %v92_v7 }
  0x34   :  { %v294_v10 = vmax.f32 %v230_v18, 0.0  ;;  %v233_v30 = vadd.f32 %v2115_v5, %v162_v21  ;;  %v164_v31 = vmul.f32 %v2110_v4, %v93_v15  ;;  %v295_v14 = vmax.f32 %v231_v24, 0.0 }
  0x35   :  { %2008 = vmatmul.mubr.msk.bf16.gmra.mrb[20].mxu0 %vm341_vm1, %v312_v37  ;;  %2028 = vmatmul.mubr.msk.bf16.gmra.mrb[8].mxu1 %vm341_vm1, %v322_v3  ;;  %v328_v27 = vpack.c.bf16 %v292_v17, %v291_v8  ;;  %v296_v32 = vmax.f32 %v232_v25, 0.0  ;;  %v234_v33 = vadd.f32 %v2115_v5, %v163_v26  ;;  %v165_v34 = vmul.f32 %v2110_v4, %v94_v22 }
  0x36   :  { %2011 = vmatprep.mubr.msk.bf16.mxu0 %vm341_vm1, %v313_v1  ;;  %2031 = vmatprep.mubr.msk.bf16.mxu1 %vm341_vm1, %v323_v44  ;;  %v268_v35 = vmax.f32 %v2435_v51, 0.0  ;;  %v329_v29 = vpack.c.bf16 %v294_v10, %v293_v23  ;;  %v297_v20 = vmax.f32 %v233_v30, 0.0  ;;  %v235_v36 = vadd.f32 %v2115_v5, %v164_v31 }
  0x37   :  { %v223_v60 = vadd.f32 %v2115_v5, %v152_v19  ;;  %v330_v37 = vpack.c.bf16 %v296_v32, %v295_v14  ;;  %v298_v1 = vmax.f32 %v234_v33, 0.0  ;;  %v236_v39 = vadd.f32 %v2115_v5, %v165_v34 }
  0x38   :  { %v324_v40 = vpack.c.bf16 %v284_v54, %v283_v9  ;;  %v224_v45 = vadd.f32 %v2115_v5, %v153_v47  ;;  %v225_v61 = vadd.f32 %v2115_v5, %v154_v55  ;;  %v299_v62 = vmax.f32 %v235_v36, 0.0 }
  0x39   :  { %v325_v4 = vpack.c.bf16 %v286_v16, %v285_v59  ;;  %v226_v51 = vadd.f32 %v2115_v5, %v155_v63  ;;  %v331_v2 = vpack.c.bf16 %v298_v1, %v297_v20  ;;  %v300_v3 = vmax.f32 %v236_v39, 0.0 }
  0x3a   :  { %v287_v9 = vmax.f32 %v223_v60, 0.0  ;;  %v288_v41 = vmax.f32 %v224_v45, 0.0  ;;  %v316_v42 = vpack.c.bf16 %v268_v35, %v267_v52  ;;  %v289_v43 = vmax.f32 %v225_v61, 0.0 }
  0x3b   :  { %v332_v19 = vpack.c.bf16 %v300_v3, %v299_v62  ;;  %v2057_v49 = vmov 0.0  }
  0x3c   :  { %v326_v44 = vpack.c.bf16 %v288_v41, %v287_v9  ;;  %29 = vst.msk [vmem:[%s3238_s6] sm:$0x1] %vm28_vm2, %v2057_v49  ;;  %30 = vst.msk [vmem:[%s3239_s7] sm:$0x1] %vm28_vm2, %v2057_v49 }
  0x3d   :  { %2012 = vmatmul.mubr.msk.bf16.gmra.mrb[24].mxu0 %vm341_vm1, %v2421_v38  ;;  %2032 = vmatmul.mubr.msk.bf16.gmra.mrb[12].mxu1 %vm341_vm1, %v324_v40  ;;  %v290_v38 = vmax.f32 %v226_v51, 0.0 }
  0x3e   :  { %2015 = vmatprep.mubr.msk.bf16.mxu0 %vm341_vm1, %v2432_v50  ;;  %2035 = vmatprep.mubr.msk.bf16.mxu1 %vm341_vm1, %v325_v4 }
  0x3f   :  { %v327_v5 = vpack.c.bf16 %v290_v38, %v289_v43 }
  0x45   :  { %2016 = vmatmul.mubr.msk.bf16.gmra.mrb[28].mxu0 %vm341_vm1, %v316_v42  ;;  %2036 = vmatmul.mubr.msk.bf16.gmra.mrb[16].mxu1 %vm341_vm1, %v326_v44 }
  0x46   :  { %2039 = vmatprep.mubr.msk.bf16.mxu1 %vm341_vm1, %v327_v5 }
  0x4d   :  { %2040 = vmatmul.mubr.msk.bf16.gmra.mrb[20].mxu1 %vm341_vm1, %v328_v27 }
  0x4e   :  { %2043 = vmatprep.mubr.msk.bf16.mxu1 %vm341_vm1, %v329_v29 }
  0x55   :  { %2044 = vmatmul.mubr.msk.bf16.gmra.mrb[24].mxu1 %vm341_vm1, %v330_v37 }
  0x56   :  { %2047 = vmatprep.mubr.msk.bf16.mxu1 %vm341_vm1, %v331_v2 }
  0x5d   :  { %2048 = vmatmul.mubr.msk.bf16.gmra.mrb[28].mxu1 %vm341_vm1, %v332_v19 }
  0xe0   :  { %v1989_v50 = vpop.f32.mrb[0].mxu0 }
  0xe1   :  { %v485_v52 = vadd.f32 %v1989_v50, %v2529_v28  ;;  %v476_v46 = vpop.f32.mrb[1].mxu0 }
  0xe2   :  { %v477_v47 = vadd.f32 %v2529_v28, %v476_v46  ;;  %v1990_v48 = vpop.f32.mrb[2].mxu0 }
  0xe3   :  { %v1890_v53 = vpack.c.bf16 %v485_v52, %v485_v52  ;;  %v488_v54 = vadd.f32 %v1990_v48, %v2529_v28  ;;  %v479_v55 = vpop.f32.mrb[3].mxu0  ;;  %v1580_v59 = vmul.f32 %v485_v52, %v485_v52  ;;  %v1444_v13 = vsel %vm1440_vm4, %v485_v52, 0.0 }
  0xe4   :  { %v1888_v56 = vpack.c.bf16 %v477_v47, %v477_v47  ;;  %v1578_v57 = vmul.f32 %v477_v47, %v477_v47  ;;  %v480_v58 = vadd.f32 %v2529_v28, %v479_v55  ;;  %v1441_v0 = vsel %vm1440_vm4, %v477_v47, 0.0 }
  0xe5   :  { %990 = vst.msk [vmem:[%s3240_s5 + $0x8] sm:$0xf] %vm987_vm3, %v1890_v53  ;;  %v1891_v63 = vpack.c.bf16 %v488_v54, %v488_v54  ;;  %v1581_v11 = vmul.f32 %v488_v54, %v488_v54  ;;  %v1645_v24 = vsel %vm1440_vm4, %v1580_v59, 0.0  ;;  %v1446_v27 = vsel %vm1440_vm4, %v488_v54, 0.0 }
  0xe6   :  { %988 = vst.msk [vmem:[%s3240_s5] sm:$0xf] %vm987_vm3, %v1888_v56  ;;  %v1889_v6 = vpack.c.bf16 %v480_v58, %v480_v58  ;;  %v1442_v7 = vsel %vm1440_vm4, %v480_v58, 0.0  ;;  %v1579_v8 = vmul.f32 %v480_v58, %v480_v58  ;;  %v1642_v15 = vsel %vm1440_vm4, %v1578_v57, 0.0 }
  0xe7   :  { %991 = vst.msk [vmem:[%s3240_s5 + $0xc] sm:$0xf] %vm987_vm3, %v1891_v63  ;;  %v1443_v12 = vadd.f32 %v1442_v7, %v1441_v0  ;;  %v1647_v10 = vsel %vm1440_vm4, %v1581_v11, 0.0 }
  0xe8   :  { %989 = vst.msk [vmem:[%s3240_s5 + $0x4] sm:$0xf] %vm987_vm3, %v1889_v6  ;;  %v1643_v16 = vsel %vm1440_vm4, %v1579_v8, 0.0  ;;  %v1993_v17 = vpop.f32.mrb[4].mxu0 }
  0xe9   :  { %v1445_v18 = vadd.f32 %v1444_v13, %v1443_v12  ;;  %v1644_v21 = vadd.f32 %v1643_v16, %v1642_v15  ;;  %v501_v22 = vadd.f32 %v1993_v17, %v2529_v28  ;;  %v492_v23 = vpop.f32.mrb[5].mxu0 }
  0xea   :  { %v493_v25 = vadd.f32 %v2529_v28, %v492_v23  ;;  %v1994_v26 = vpop.f32.mrb[6].mxu0 }
  0xeb   :  { %v1646_v30 = vadd.f32 %v1645_v24, %v1644_v21  ;;  %v1894_v31 = vpack.c.bf16 %v501_v22, %v501_v22  ;;  %v495_v14 = vpop.f32.mrb[7].mxu0  ;;  %v1447_v33 = vadd.f32 %v1446_v27, %v1445_v18  ;;  %v504_v20 = vadd.f32 %v1994_v26, %v2529_v28 }
  0xec   :  { %v1892_v32 = vpack.c.bf16 %v493_v25, %v493_v25  ;;  %v1448_v34 = vsel %vm1440_vm4, %v493_v25, 0.0  ;;  %v1582_v35 = vmul.f32 %v493_v25, %v493_v25  ;;  %v496_v36 = vadd.f32 %v2529_v28, %v495_v14 }
  0xed   :  { %994 = vst.msk [vmem:[%s3240_s5 + $0x18] sm:$0xf] %vm987_vm3, %v1894_v31  ;;  %v1648_v29 = vadd.f32 %v1647_v10, %v1646_v30  ;;  %v1449_v60 = vadd.f32 %v1448_v34, %v1447_v33  ;;  %v1584_v1 = vmul.f32 %v501_v22, %v501_v22  ;;  %v1895_v40 = vpack.c.bf16 %v504_v20, %v504_v20 }
  0xee   :  { %992 = vst.msk [vmem:[%s3240_s5 + $0x10] sm:$0xf] %vm987_vm3, %v1892_v32  ;;  %v1649_v37 = vsel %vm1440_vm4, %v1582_v35, 0.0  ;;  %v1893_v45 = vpack.c.bf16 %v496_v36, %v496_v36  ;;  %v1450_v61 = vsel %vm1440_vm4, %v496_v36, 0.0  ;;  %v1583_v62 = vmul.f32 %v496_v36, %v496_v36 }
  0xef   :  { %v1650_v39 = vadd.f32 %v1649_v37, %v1648_v29  ;;  %995 = vst.msk [vmem:[%s3240_s5 + $0x1c] sm:$0xf] %vm987_vm3, %v1895_v40  ;;  %v1451_v51 = vadd.f32 %v1450_v61, %v1449_v60  ;;  %v1452_v19 = vsel %vm1440_vm4, %v501_v22, 0.0  ;;  %v1585_v9 = vmul.f32 %v504_v20, %v504_v20 }
  0xf0   :  { %v1997_v4 = vpop.f32.mrb[8].mxu0  ;;  %993 = vst.msk [vmem:[%s3240_s5 + $0x14] sm:$0xf] %vm987_vm3, %v1893_v45  ;;  %v1651_v41 = vsel %vm1440_vm4, %v1583_v62, 0.0  ;;  %v1653_v38 = vsel %vm1440_vm4, %v1584_v1, 0.0  ;;  %v1454_v46 = vsel %vm1440_vm4, %v504_v20, 0.0 }
  0xf1   :  { %v517_v2 = vadd.f32 %v1997_v4, %v2529_v28  ;;  %v508_v3 = vpop.f32.mrb[9].mxu0  ;;  %v1453_v44 = vadd.f32 %v1452_v19, %v1451_v51  ;;  %v1652_v5 = vadd.f32 %v1651_v41, %v1650_v39  ;;  %v1655_v57 = vsel %vm1440_vm4, %v1585_v9, 0.0 }
  0xf2   :  { %v509_v42 = vadd.f32 %v2529_v28, %v508_v3  ;;  %v1998_v43 = vpop.f32.mrb[10].mxu0 }
  0xf3   :  { %v1898_v50 = vpack.c.bf16 %v517_v2, %v517_v2  ;;  %v511_v52 = vpop.f32.mrb[11].mxu0  ;;  %v1654_v53 = vadd.f32 %v1653_v38, %v1652_v5  ;;  %v1455_v54 = vadd.f32 %v1454_v46, %v1453_v44  ;;  %v520_v55 = vadd.f32 %v1998_v43, %v2529_v28 }
  0xf4   :  { %v1896_v47 = vpack.c.bf16 %v509_v42, %v509_v42  ;;  %v1456_v48 = vsel %vm1440_vm4, %v509_v42, 0.0  ;;  %v1586_v49 = vmul.f32 %v509_v42, %v509_v42  ;;  %v512_v56 = vadd.f32 %v2529_v28, %v511_v52 }
  0xf5   :  { %998 = vst.msk [vmem:[%s3240_s5 + $0x28] sm:$0xf] %vm987_vm3, %v1898_v50  ;;  %v1588_v59 = vmul.f32 %v517_v2, %v517_v2  ;;  %v1457_v63 = vadd.f32 %v1456_v48, %v1455_v54  ;;  %v1656_v0 = vadd.f32 %v1655_v57, %v1654_v53  ;;  %v1899_v6 = vpack.c.bf16 %v520_v55, %v520_v55 }
  0xf6   :  { %996 = vst.msk [vmem:[%s3240_s5 + $0x20] sm:$0xf] %vm987_vm3, %v1896_v47  ;;  %v1657_v58 = vsel %vm1440_vm4, %v1586_v49, 0.0  ;;  %v1897_v7 = vpack.c.bf16 %v512_v56, %v512_v56  ;;  %v1458_v8 = vsel %vm1440_vm4, %v512_v56, 0.0  ;;  %v1587_v11 = vmul.f32 %v512_v56, %v512_v56 }
  0xf7   :  { %v1658_v13 = vadd.f32 %v1657_v58, %v1656_v0  ;;  %999 = vst.msk [vmem:[%s3240_s5 + $0x2c] sm:$0xf] %vm987_vm3, %v1899_v6  ;;  %v1459_v15 = vadd.f32 %v1458_v8, %v1457_v63  ;;  %v1460_v18 = vsel %vm1440_vm4, %v517_v2, 0.0  ;;  %v1589_v21 = vmul.f32 %v520_v55, %v520_v55 }
  0xf8   :  { %v2001_v12 = vpop.f32.mrb[12].mxu0  ;;  %997 = vst.msk [vmem:[%s3240_s5 + $0x24] sm:$0xf] %vm987_vm3, %v1897_v7  ;;  %v1659_v22 = vsel %vm1440_vm4, %v1587_v11, 0.0  ;;  %v1661_v25 = vsel %vm1440_vm4, %v1588_v59, 0.0  ;;  %v2021_v31 = vpop.f32.mrb[0].mxu1 }
  0xf9   :  { %v533_v16 = vadd.f32 %v2001_v12, %v2529_v28  ;;  %v524_v17 = vpop.f32.mrb[13].mxu0  ;;  %v1461_v26 = vadd.f32 %v1460_v18, %v1459_v15  ;;  %v1660_v27 = vadd.f32 %v1659_v22, %v1658_v13  ;;  %v1462_v14 = vsel %vm1440_vm4, %v520_v55, 0.0  ;;  %v604_v35 = vpop.f32.mrb[1].mxu1 }
  0xfa   :  { %v525_v23 = vadd.f32 %v2529_v28, %v524_v17  ;;  %v2002_v24 = vpop.f32.mrb[14].mxu0  ;;  %v2631_v37 = vpop.f32.mrb[2].mxu1  ;;  %v1663_v1 = vsel %vm1440_vm4, %v1589_v21, 0.0  ;;  %v2640_v40 = vadd.f32 %v2021_v31, %v2529_v28  ;;  %v2660_v48 = vadd.f32 %v2529_v28, %v604_v35 }
  0xfb   :  { %v1902_v10 = vpack.c.bf16 %v533_v16, %v533_v16  ;;  %v527_v30 = vpop.f32.mrb[15].mxu0  ;;  %v1662_v29 = vadd.f32 %v1661_v25, %v1660_v27  ;;  %v1463_v20 = vadd.f32 %v1462_v14, %v1461_v26  ;;  %v536_v36 = vadd.f32 %v2002_v24, %v2529_v28  ;;  %v2642_v45 = vpop.f32.mrb[3].mxu1 }
  0xfc   :  { %v1900_v32 = vpack.c.bf16 %v525_v23, %v525_v23  ;;  %v1464_v33 = vsel %vm1440_vm4, %v525_v23, 0.0  ;;  %v1590_v34 = vmul.f32 %v525_v23, %v525_v23  ;;  %v528_v60 = vadd.f32 %v2529_v28, %v527_v30 }
  0xfd   :  { %1002 = vst.msk [vmem:[%s3240_s5 + $0x38] sm:$0xf] %vm987_vm3, %v1902_v10  ;;  %v1592_v61 = vmul.f32 %v533_v16, %v533_v16  ;;  %v1465_v62 = vadd.f32 %v1464_v33, %v1463_v20  ;;  %v1664_v4 = vadd.f32 %v1663_v1, %v1662_v29  ;;  %v1903_v51 = vpack.c.bf16 %v536_v36, %v536_v36 }
  0xfe   :  { %1000 = vst.msk [vmem:[%s3240_s5 + $0x30] sm:$0xf] %vm987_vm3, %v1900_v32  ;;  %v1665_v39 = vsel %vm1440_vm4, %v1590_v34, 0.0  ;;  %v1468_v2 = vsel %vm1440_vm4, %v533_v16, 0.0  ;;  %v1901_v3 = vpack.c.bf16 %v528_v60, %v528_v60  ;;  %v1466_v19 = vsel %vm1440_vm4, %v528_v60, 0.0 }
  0xff   :  { %v1591_v9 = vmul.f32 %v528_v60, %v528_v60  ;;  %v1666_v42 = vadd.f32 %v1665_v39, %v1664_v4  ;;  %1003 = vst.msk [vmem:[%s3240_s5 + $0x3c] sm:$0xf] %vm987_vm3, %v1903_v51  ;;  %v1467_v43 = vadd.f32 %v1466_v19, %v1465_v62  ;;  %v1922_v5 = vpack.c.bf16 %v2640_v40, %v2640_v40 }
 0x100   :  { %v2005_v41 = vpop.f32.mrb[16].mxu0  ;;  %v1593_v50 = vmul.f32 %v536_v36, %v536_v36  ;;  %1001 = vst.msk [vmem:[%s3240_s5 + $0x34] sm:$0xf] %vm987_vm3, %v1901_v3  ;;  %v1669_v49 = vsel %vm1440_vm4, %v1592_v61, 0.0  ;;  %v2667_v57 = vpop.f32.mrb[4].mxu1  ;;  %v1470_v58 = vsel %vm1440_vm4, %v536_v36, 0.0  ;;  %v1920_v17 = vpack.c.bf16 %v2660_v48, %v2660_v48 }
 0x101   :  { %v549_v38 = vadd.f32 %v2005_v41, %v2529_v28  ;;  %v540_v44 = vpop.f32.mrb[17].mxu0  ;;  %v1667_v52 = vsel %vm1440_vm4, %v1591_v9, 0.0  ;;  %v1469_v53 = vadd.f32 %v1468_v2, %v1467_v43  ;;  %1022 = vst.msk [vmem:[%s3240_s5 + $0x88] sm:$0xf] %vm987_vm3, %v1922_v5  ;;  %v2671_v6 = vpop.f32.mrb[5].mxu1 }
 0x102   :  { %v541_v46 = vadd.f32 %v2529_v28, %v540_v44  ;;  %v2006_v47 = vpop.f32.mrb[18].mxu0  ;;  %v1668_v54 = vadd.f32 %v1667_v52, %v1666_v42  ;;  %v2679_v13 = vpop.f32.mrb[6].mxu1  ;;  %v1671_v15 = vsel %vm1440_vm4, %v1593_v50, 0.0  ;;  %1020 = vst.msk [vmem:[%s3240_s5 + $0x80] sm:$0xf] %vm987_vm3, %v1920_v17  ;;  %v2731_v50 = vadd.f32 %v2631_v37, %v2529_v28 }
 0x103   :  { %v1906_v55 = vpack.c.bf16 %v549_v38, %v549_v38  ;;  %v543_v56 = vpop.f32.mrb[19].mxu0  ;;  %v1471_v8 = vadd.f32 %v1470_v58, %v1469_v53  ;;  %v552_v11 = vadd.f32 %v2006_v47, %v2529_v28  ;;  %v2689_v18 = vpop.f32.mrb[7].mxu1  ;;  %v1596_v21 = vmul.f32 %v549_v38, %v549_v38 }
 0x104   :  { %v1904_v59 = vpack.c.bf16 %v541_v46, %v541_v46  ;;  %v1472_v63 = vsel %vm1440_vm4, %v541_v46, 0.0  ;;  %v1594_v0 = vmul.f32 %v541_v46, %v541_v46  ;;  %v1670_v7 = vadd.f32 %v1669_v49, %v1668_v54 }
 0x105   :  { %1006 = vst.msk [vmem:[%s3240_s5 + $0x48] sm:$0xf] %vm987_vm3, %v1906_v55  ;;  %v544_v12 = vadd.f32 %v2529_v28, %v543_v56  ;;  %v1473_v22 = vadd.f32 %v1472_v63, %v1471_v8  ;;  %v1907_v24 = vpack.c.bf16 %v552_v11, %v552_v11  ;;  %v1476_v33 = vsel %vm1440_vm4, %v549_v38, 0.0 }
 0x106   :  { %1004 = vst.msk [vmem:[%s3240_s5 + $0x40] sm:$0xf] %vm987_vm3, %v1904_v59  ;;  %v1673_v16 = vsel %vm1440_vm4, %v1594_v0, 0.0  ;;  %v1672_v23 = vadd.f32 %v1671_v15, %v1670_v7  ;;  %v1597_v34 = vmul.f32 %v552_v11, %v552_v11  ;;  %v1677_v36 = vsel %vm1440_vm4, %v1596_v21, 0.0 }
 0x107   :  { %v1905_v25 = vpack.c.bf16 %v544_v12, %v544_v12  ;;  %v1474_v26 = vsel %vm1440_vm4, %v544_v12, 0.0  ;;  %v1595_v27 = vmul.f32 %v544_v12, %v544_v12  ;;  %1007 = vst.msk [vmem:[%s3240_s5 + $0x4c] sm:$0xf] %vm987_vm3, %v1907_v24  ;;  %v1478_v4 = vsel %vm1440_vm4, %v552_v11, 0.0 }
 0x108   :  { %v2009_v10 = vpop.f32.mrb[20].mxu0  ;;  %v1674_v30 = vadd.f32 %v1673_v16, %v1672_v23  ;;  %v1475_v31 = vadd.f32 %v1474_v26, %v1473_v22  ;;  %v2709_v62 = vpop.f32.mrb[8].mxu1  ;;  %v1679_v44 = vsel %vm1440_vm4, %v1597_v34, 0.0  ;;  %v1923_v16 = vpack.c.bf16 %v2731_v50, %v2731_v50 }
 0x109   :  { %v565_v14 = vadd.f32 %v2009_v10, %v2529_v28  ;;  %v556_v32 = vpop.f32.mrb[21].mxu0  ;;  %1005 = vst.msk [vmem:[%s3240_s5 + $0x44] sm:$0xf] %vm987_vm3, %v1905_v25  ;;  %v1675_v35 = vsel %vm1440_vm4, %v1595_v27, 0.0  ;;  %v2713_v19 = vpop.f32.mrb[9].mxu1 }
 0x10a   :  { %v557_v29 = vadd.f32 %v2529_v28, %v556_v32  ;;  %v2010_v20 = vpop.f32.mrb[22].mxu0  ;;  %v1477_v60 = vadd.f32 %v1476_v33, %v1475_v31  ;;  %v1676_v1 = vadd.f32 %v1675_v35, %v1674_v30  ;;  %v2721_v38 = vpop.f32.mrb[10].mxu1  ;;  %1023 = vst.msk [vmem:[%s3240_s5 + $0x8c] sm:$0xf] %vm987_vm3, %v1923_v16 }
 0x10b   :  { %v1910_v39 = vpack.c.bf16 %v565_v14, %v565_v14  ;;  %v559_v61 = vpop.f32.mrb[23].mxu0  ;;  %v568_v42 = vadd.f32 %v2010_v20, %v2529_v28  ;;  %v2733_v52 = vpop.f32.mrb[11].mxu1  ;;  %v1600_v46 = vmul.f32 %v565_v14, %v565_v14  ;;  %v1484_v59 = vsel %vm1440_vm4, %v565_v14, 0.0 }
 0x10c   :  { %v1908_v51 = vpack.c.bf16 %v557_v29, %v557_v29  ;;  %v1480_v2 = vsel %vm1440_vm4, %v557_v29, 0.0  ;;  %v1598_v3 = vmul.f32 %v557_v29, %v557_v29  ;;  %v1678_v9 = vadd.f32 %v1677_v36, %v1676_v1 }
 0x10d   :  { %1010 = vst.msk [vmem:[%s3240_s5 + $0x58] sm:$0xf] %vm987_vm3, %v1910_v39  ;;  %v1479_v41 = vadd.f32 %v1478_v4, %v1477_v60  ;;  %v560_v43 = vadd.f32 %v2529_v28, %v559_v61  ;;  %v1911_v53 = vpack.c.bf16 %v568_v42, %v568_v42  ;;  %v1601_v8 = vmul.f32 %v568_v42, %v568_v42 }
 0x10e   :  { %1008 = vst.msk [vmem:[%s3240_s5 + $0x50] sm:$0xf] %vm987_vm3, %v1908_v51  ;;  %v1681_v5 = vsel %vm1440_vm4, %v1598_v3, 0.0  ;;  %v1680_v49 = vadd.f32 %v1679_v44, %v1678_v9  ;;  %v1685_v17 = vsel %vm1440_vm4, %v1600_v46, 0.0  ;;  %v1486_v26 = vsel %vm1440_vm4, %v568_v42, 0.0 }
 0x10f   :  { %v1481_v47 = vadd.f32 %v1480_v2, %v1479_v41  ;;  %v1909_v54 = vpack.c.bf16 %v560_v43, %v560_v43  ;;  %v1482_v55 = vsel %vm1440_vm4, %v560_v43, 0.0  ;;  %v1599_v56 = vmul.f32 %v560_v43, %v560_v43  ;;  %1011 = vst.msk [vmem:[%s3240_s5 + $0x5c] sm:$0xf] %vm987_vm3, %v1911_v53 }
 0x110   :  { %v2013_v58 = vpop.f32.mrb[24].mxu0  ;;  %v1682_v63 = vadd.f32 %v1681_v5, %v1680_v49  ;;  %v2751_v25 = vpop.f32.mrb[12].mxu1  ;;  %v1687_v29 = vsel %vm1440_vm4, %v1601_v8, 0.0  ;;  %v2792_v53 = vadd.f32 %v2529_v28, %v2642_v45 }
 0x111   :  { %v1483_v37 = vadd.f32 %v1482_v55, %v1481_v47  ;;  %v581_v0 = vadd.f32 %v2013_v58, %v2529_v28  ;;  %v572_v7 = vpop.f32.mrb[25].mxu0  ;;  %1009 = vst.msk [vmem:[%s3240_s5 + $0x54] sm:$0xf] %vm987_vm3, %v1909_v54  ;;  %v1683_v11 = vsel %vm1440_vm4, %v1599_v56, 0.0  ;;  %v2759_v31 = vpop.f32.mrb[13].mxu1 }
 0x112   :  { %v573_v12 = vadd.f32 %v2529_v28, %v572_v7  ;;  %v2014_v15 = vpop.f32.mrb[26].mxu0  ;;  %v1684_v22 = vadd.f32 %v1683_v11, %v1682_v63  ;;  %v2767_v35 = vpop.f32.mrb[14].mxu1 }
 0x113   :  { %v1485_v21 = vadd.f32 %v1484_v59, %v1483_v37  ;;  %v1914_v23 = vpack.c.bf16 %v581_v0, %v581_v0  ;;  %v575_v24 = vpop.f32.mrb[27].mxu0  ;;  %v584_v33 = vadd.f32 %v2014_v15, %v2529_v28  ;;  %v2775_v36 = vpop.f32.mrb[15].mxu1  ;;  %v1604_v60 = vmul.f32 %v581_v0, %v581_v0 }
 0x114   :  { %v1912_v27 = vpack.c.bf16 %v573_v12, %v573_v12  ;;  %v1488_v10 = vsel %vm1440_vm4, %v573_v12, 0.0  ;;  %v1602_v30 = vmul.f32 %v573_v12, %v573_v12  ;;  %v1686_v14 = vadd.f32 %v1685_v17, %v1684_v22 }
 0x115   :  { %1014 = vst.msk [vmem:[%s3240_s5 + $0x68] sm:$0xf] %vm987_vm3, %v1914_v23  ;;  %v1487_v32 = vadd.f32 %v1486_v26, %v1485_v21  ;;  %v576_v34 = vadd.f32 %v2529_v28, %v575_v24  ;;  %v1915_v61 = vpack.c.bf16 %v584_v33, %v584_v33  ;;  %v1492_v9 = vsel %vm1440_vm4, %v581_v0, 0.0 }
 0x116   :  { %1012 = vst.msk [vmem:[%s3240_s5 + $0x60] sm:$0xf] %vm987_vm3, %v1912_v27  ;;  %v1689_v20 = vsel %vm1440_vm4, %v1602_v30, 0.0  ;;  %v1688_v39 = vadd.f32 %v1687_v29, %v1686_v14  ;;  %v1605_v5 = vmul.f32 %v584_v33, %v584_v33  ;;  %v1693_v54 = vsel %vm1440_vm4, %v1604_v60, 0.0 }
 0x117   :  { %v1489_v1 = vadd.f32 %v1488_v10, %v1487_v32  ;;  %v1913_v4 = vpack.c.bf16 %v576_v34, %v576_v34  ;;  %v1490_v51 = vsel %vm1440_vm4, %v576_v34, 0.0  ;;  %v1603_v2 = vmul.f32 %v576_v34, %v576_v34  ;;  %1015 = vst.msk [vmem:[%s3240_s5 + $0x6c] sm:$0xf] %vm987_vm3, %v1915_v61 }
 0x118   :  { %v2017_v3 = vpop.f32.mrb[28].mxu0  ;;  %v1690_v41 = vadd.f32 %v1689_v20, %v1688_v39  ;;  %v2795_v63 = vpop.f32.mrb[16].mxu1  ;;  %v1494_v37 = vsel %vm1440_vm4, %v584_v33, 0.0  ;;  %v1695_v21 = vsel %vm1440_vm4, %v1605_v5, 0.0  ;;  %v1921_v23 = vpack.c.bf16 %v2792_v53, %v2792_v53 }
 0x119   :  { %v1491_v42 = vadd.f32 %v1490_v51, %v1489_v1  ;;  %v597_v43 = vadd.f32 %v2017_v3, %v2529_v28  ;;  %v588_v44 = vpop.f32.mrb[29].mxu0  ;;  %1013 = vst.msk [vmem:[%s3240_s5 + $0x64] sm:$0xf] %vm987_vm3, %v1913_v4  ;;  %v1691_v46 = vsel %vm1440_vm4, %v1603_v2, 0.0  ;;  %v2799_v11 = vpop.f32.mrb[17].mxu1  ;;  %v1610_v30 = vmul.f32 %v2660_v48, %v2660_v48 }
 0x11a   :  { %v589_v47 = vadd.f32 %v2529_v28, %v588_v44  ;;  %v2018_v49 = vpop.f32.mrb[30].mxu0  ;;  %v1692_v56 = vadd.f32 %v1691_v46, %v1690_v41  ;;  %v2807_v17 = vpop.f32.mrb[18].mxu1  ;;  %1021 = vst.msk [vmem:[%s3240_s5 + $0x84] sm:$0xf] %vm987_vm3, %v1921_v23  ;;  %v2833_v1 = vadd.f32 %v2667_v57, %v2529_v28  ;;  %v621_v4 = vadd.f32 %v2529_v28, %v2671_v6 }
 0x11b   :  { %v1493_v55 = vadd.f32 %v1492_v9, %v1491_v42  ;;  %v1918_v58 = vpack.c.bf16 %v597_v43, %v597_v43  ;;  %v591_v59 = vpop.f32.mrb[31].mxu0  ;;  %v600_v15 = vadd.f32 %v2018_v49, %v2529_v28  ;;  %v2817_v24 = vpop.f32.mrb[19].mxu1  ;;  %v1608_v14 = vmul.f32 %v597_v43, %v597_v43 }
 0x11c   :  { %v1916_v0 = vpack.c.bf16 %v589_v47, %v589_v47  ;;  %v1496_v7 = vsel %vm1440_vm4, %v589_v47, 0.0  ;;  %v1606_v8 = vmul.f32 %v589_v47, %v589_v47  ;;  %v1694_v12 = vadd.f32 %v1693_v54, %v1692_v56 }
 0x11d   :  { %1018 = vst.msk [vmem:[%s3240_s5 + $0x78] sm:$0xf] %vm987_vm3, %v1918_v58  ;;  %v1495_v45 = vadd.f32 %v1494_v37, %v1493_v55  ;;  %v592_v16 = vadd.f32 %v2529_v28, %v591_v59  ;;  %v1919_v10 = vpack.c.bf16 %v600_v15, %v600_v15  ;;  %v1500_v29 = vsel %vm1440_vm4, %v597_v43, 0.0 }
 0x11e   :  { %1016 = vst.msk [vmem:[%s3240_s5 + $0x70] sm:$0xf] %vm987_vm3, %v1916_v0  ;;  %v1697_v22 = vsel %vm1440_vm4, %v1606_v8, 0.0  ;;  %v1696_v27 = vadd.f32 %v1695_v21, %v1694_v12  ;;  %v1609_v39 = vmul.f32 %v600_v15, %v600_v15  ;;  %v2844_v51 = vadd.f32 %v2679_v13, %v2529_v28 }
 0x11f   :  { %v1497_v26 = vadd.f32 %v1496_v7, %v1495_v45  ;;  %v1917_v32 = vpack.c.bf16 %v592_v16, %v592_v16  ;;  %v1498_v33 = vsel %vm1440_vm4, %v592_v16, 0.0  ;;  %v1607_v34 = vmul.f32 %v592_v16, %v592_v16  ;;  %1019 = vst.msk [vmem:[%s3240_s5 + $0x7c] sm:$0xf] %vm987_vm3, %v1919_v10 }
 0x120   :  { %v1698_v20 = vadd.f32 %v1697_v22, %v1696_v27  ;;  %v1926_v57 = vpack.c.bf16 %v2833_v1, %v2833_v1  ;;  %v2848_v9 = vpop.f32.mrb[20].mxu1  ;;  %v1701_v41 = vsel %vm1440_vm4, %v1608_v14, 0.0  ;;  %v1502_v42 = vsel %vm1440_vm4, %v600_v15, 0.0 }
 0x121   :  { %v1499_v60 = vadd.f32 %v1498_v33, %v1497_v26  ;;  %1017 = vst.msk [vmem:[%s3240_s5 + $0x74] sm:$0xf] %vm987_vm3, %v1917_v32  ;;  %v1699_v61 = vsel %vm1440_vm4, %v1607_v34, 0.0  ;;  %v1504_v43 = vsel %vm1440_vm4, %v2660_v48, 0.0  ;;  %v1924_v44 = vpack.c.bf16 %v621_v4, %v621_v4  ;;  %v2854_v6 = vpop.f32.mrb[21].mxu1 }
 0x122   :  { %v1700_v3 = vadd.f32 %v1699_v61, %v1698_v20  ;;  %1026 = vst.msk [vmem:[%s3240_s5 + $0x98] sm:$0xf] %vm987_vm3, %v1926_v57  ;;  %v1927_v46 = vpack.c.bf16 %v2844_v51, %v2844_v51  ;;  %v2862_v47 = vpop.f32.mrb[22].mxu1  ;;  %v1703_v49 = vsel %vm1440_vm4, %v1609_v39, 0.0  ;;  %v1705_v54 = vsel %vm1440_vm4, %v1610_v30, 0.0 }
 0x123   :  { %v1501_v2 = vadd.f32 %v1500_v29, %v1499_v60  ;;  %v1611_v48 = vmul.f32 %v2792_v53, %v2792_v53  ;;  %1024 = vst.msk [vmem:[%s3240_s5 + $0x90] sm:$0xf] %vm987_vm3, %v1924_v44  ;;  %v624_v55 = vadd.f32 %v2529_v28, %v2689_v18  ;;  %v2874_v56 = vpop.f32.mrb[23].mxu1  ;;  %v2882_v37 = vadd.f32 %v2709_v62, %v2529_v28 }
 0x124   :  { %v1702_v5 = vadd.f32 %v1701_v41, %v1700_v3  ;;  %1027 = vst.msk [vmem:[%s3240_s5 + $0x9c] sm:$0xf] %vm987_vm3, %v1927_v46  ;;  %v1508_v0 = vsel %vm1440_vm4, %v2640_v40, 0.0  ;;  %v1612_v7 = vmul.f32 %v2640_v40, %v2640_v40  ;;  %v1506_v18 = vsel %vm1440_vm4, %v2792_v53, 0.0 }
 0x125   :  { %v1503_v13 = vadd.f32 %v1502_v42, %v1501_v2  ;;  %v1925_v8 = vpack.c.bf16 %v624_v55, %v624_v55  ;;  %v1613_v45 = vmul.f32 %v2731_v50, %v2731_v50  ;;  %v1930_v16 = vpack.c.bf16 %v2882_v37, %v2882_v37 }
 0x126   :  { %v1704_v59 = vadd.f32 %v1703_v49, %v1702_v5  ;;  %v1707_v62 = vsel %vm1440_vm4, %v1611_v48, 0.0  ;;  %v1614_v21 = vmul.f32 %v621_v4, %v621_v4  ;;  %v637_v40 = vadd.f32 %v2529_v28, %v2713_v19 }
 0x127   :  { %v1505_v58 = vadd.f32 %v1504_v43, %v1503_v13  ;;  %1025 = vst.msk [vmem:[%s3240_s5 + $0x94] sm:$0xf] %vm987_vm3, %v1925_v8  ;;  %v2903_v53 = vadd.f32 %v2721_v38, %v2529_v28  ;;  %1030 = vst.msk [vmem:[%s3240_s5 + $0xa8] sm:$0xf] %vm987_vm3, %v1930_v16  ;;  %v640_v26 = vadd.f32 %v2529_v28, %v2733_v52  ;;  %v1709_v19 = vsel %vm1440_vm4, %v1612_v7, 0.0 }
 0x128   :  { %v1706_v12 = vadd.f32 %v1705_v54, %v1704_v59  ;;  %v2913_v27 = vadd.f32 %v2751_v25, %v2529_v28  ;;  %v2915_v10 = vpop.f32.mrb[24].mxu1  ;;  %v1510_v38 = vsel %vm1440_vm4, %v2731_v50, 0.0  ;;  %v1512_v30 = vsel %vm1440_vm4, %v621_v4, 0.0 }
 0x129   :  { %v1507_v15 = vadd.f32 %v1506_v18, %v1505_v58  ;;  %v1928_v14 = vpack.c.bf16 %v637_v40, %v637_v40  ;;  %v2921_v32 = vpop.f32.mrb[25].mxu1  ;;  %v1931_v52 = vpack.c.bf16 %v2903_v53, %v2903_v53  ;;  %v1711_v25 = vsel %vm1440_vm4, %v1613_v45, 0.0 }
 0x12a   :  { %v1708_v23 = vadd.f32 %v1707_v62, %v1706_v12  ;;  %v2925_v29 = vpop.f32.mrb[26].mxu1  ;;  %v1713_v20 = vsel %vm1440_vm4, %v1614_v21, 0.0  ;;  %v1615_v60 = vmul.f32 %v624_v55, %v624_v55  ;;  %v1929_v50 = vpack.c.bf16 %v640_v26, %v640_v26 }
 0x12b   :  { %v1509_v22 = vadd.f32 %v1508_v0, %v1507_v15  ;;  %1028 = vst.msk [vmem:[%s3240_s5 + $0xa0] sm:$0xf] %vm987_vm3, %v1928_v14  ;;  %v2933_v39 = vpop.f32.mrb[27].mxu1  ;;  %v1616_v61 = vmul.f32 %v2833_v1, %v2833_v1  ;;  %1031 = vst.msk [vmem:[%s3240_s5 + $0xac] sm:$0xf] %vm987_vm3, %v1931_v52  ;;  %v1934_v3 = vpack.c.bf16 %v2913_v27, %v2913_v27  ;;  %v1514_v57 = vsel %vm1440_vm4, %v624_v55, 0.0 }
 0x12c   :  { %v1710_v33 = vadd.f32 %v1709_v19, %v1708_v23  ;;  %1029 = vst.msk [vmem:[%s3240_s5 + $0xa4] sm:$0xf] %vm987_vm3, %v1929_v50  ;;  %v653_v41 = vadd.f32 %v2529_v28, %v2759_v31  ;;  %v1516_v42 = vsel %vm1440_vm4, %v2833_v1, 0.0  ;;  %v2958_v5 = vadd.f32 %v2767_v35, %v2529_v28 }
 0x12d   :  { %v1511_v34 = vadd.f32 %v1510_v38, %v1509_v22  ;;  %1034 = vst.msk [vmem:[%s3240_s5 + $0xb8] sm:$0xf] %vm987_vm3, %v1934_v3  ;;  %v1617_v13 = vmul.f32 %v2844_v51, %v2844_v51  ;;  %v1715_v46 = vsel %vm1440_vm4, %v1615_v60, 0.0  ;;  %v1618_v31 = vmul.f32 %v637_v40, %v637_v40 }
 0x12e   :  { %v1712_v2 = vadd.f32 %v1711_v25, %v1710_v33  ;;  %v1932_v49 = vpack.c.bf16 %v653_v41, %v653_v41  ;;  %v1717_v1 = vsel %vm1440_vm4, %v1616_v61, 0.0  ;;  %v1935_v55 = vpack.c.bf16 %v2958_v5, %v2958_v5 }
 0x12f   :  { %v1513_v4 = vadd.f32 %v1512_v30, %v1511_v34  ;;  %v1518_v35 = vsel %vm1440_vm4, %v2844_v51, 0.0  ;;  %v1520_v59 = vsel %vm1440_vm4, %v637_v40, 0.0  ;;  %v656_v0 = vadd.f32 %v2529_v28, %v2775_v36 }
 0x130   :  { %v1714_v43 = vadd.f32 %v1713_v20, %v1712_v2  ;;  %v2966_v58 = vpop.f32.mrb[28].mxu1  ;;  %1032 = vst.msk [vmem:[%s3240_s5 + $0xb0] sm:$0xf] %vm987_vm3, %v1932_v49  ;;  %v2979_v7 = vadd.f32 %v2795_v63, %v2529_v28  ;;  %1035 = vst.msk [vmem:[%s3240_s5 + $0xbc] sm:$0xf] %vm987_vm3, %v1935_v55  ;;  %v2989_v51 = vadd.f32 %v2529_v28, %v2799_v11  ;;  %v1719_v63 = vsel %vm1440_vm4, %v1617_v13, 0.0 }
 0x131   :  { %v1515_v44 = vadd.f32 %v1514_v57, %v1513_v4  ;;  %v2981_v18 = vpop.f32.mrb[29].mxu1  ;;  %v2993_v36 = vadd.f32 %v2807_v17, %v2529_v28  ;;  %v1721_v15 = vsel %vm1440_vm4, %v1618_v31, 0.0  ;;  %v1619_v16 = vmul.f32 %v640_v26, %v640_v26 }
 0x132   :  { %v1716_v48 = vadd.f32 %v1715_v46, %v1714_v43  ;;  %v2995_v45 = vpop.f32.mrb[30].mxu1  ;;  %v1933_v62 = vpack.c.bf16 %v656_v0, %v656_v0  ;;  %v1938_v11 = vpack.c.bf16 %v2979_v7, %v2979_v7  ;;  %v1620_v23 = vmul.f32 %v2882_v37, %v2882_v37 }
 0x133   :  { %v1517_v54 = vadd.f32 %v1516_v42, %v1515_v44  ;;  %v2999_v21 = vpop.f32.mrb[31].mxu1  ;;  %v1522_v17 = vsel %vm1440_vm4, %v640_v26, 0.0  ;;  %v1936_v19 = vpack.c.bf16 %v2989_v51, %v2989_v51  ;;  %v1621_v30 = vmul.f32 %v2903_v53, %v2903_v53 }
 0x134   :  { %v1718_v8 = vadd.f32 %v1717_v1, %v1716_v48  ;;  %1033 = vst.msk [vmem:[%s3240_s5 + $0xb4] sm:$0xf] %vm987_vm3, %v1933_v62  ;;  %1038 = vst.msk [vmem:[%s3240_s5 + $0xc8] sm:$0xf] %vm987_vm3, %v1938_v11  ;;  %v1939_v26 = vpack.c.bf16 %v2993_v36, %v2993_v36  ;;  %v1524_v33 = vsel %vm1440_vm4, %v2882_v37, 0.0  ;;  %v1723_v34 = vsel %vm1440_vm4, %v1619_v16, 0.0 }
 0x135   :  { %v1519_v12 = vadd.f32 %v1518_v35, %v1517_v54  ;;  %v1622_v52 = vmul.f32 %v653_v41, %v653_v41  ;;  %1036 = vst.msk [vmem:[%s3240_s5 + $0xc0] sm:$0xf] %vm987_vm3, %v1936_v19  ;;  %v672_v25 = vadd.f32 %v2529_v28, %v2817_v24  ;;  %v3035_v37 = vadd.f32 %v2848_v9, %v2529_v28 }
 0x136   :  { %v1720_v22 = vadd.f32 %v1719_v63, %v1718_v8  ;;  %1039 = vst.msk [vmem:[%s3240_s5 + $0xcc] sm:$0xf] %vm987_vm3, %v1939_v26  ;;  %v1725_v50 = vsel %vm1440_vm4, %v1620_v23, 0.0  ;;  %v1526_v61 = vsel %vm1440_vm4, %v2903_v53, 0.0  ;;  %v1528_v4 = vsel %vm1440_vm4, %v653_v41, 0.0 }
 0x137   :  { %v1521_v40 = vadd.f32 %v1520_v59, %v1519_v12  ;;  %v1937_v2 = vpack.c.bf16 %v672_v25, %v672_v25  ;;  %v1727_v24 = vsel %vm1440_vm4, %v1621_v30, 0.0  ;;  %v1942_v42 = vpack.c.bf16 %v3035_v37, %v3035_v37 }
 0x138   :  { %v1722_v38 = vadd.f32 %v1721_v15, %v1720_v22  ;;  %v1729_v43 = vsel %vm1440_vm4, %v1622_v52, 0.0  ;;  %v1623_v44 = vmul.f32 %v656_v0, %v656_v0  ;;  %v685_v9 = vadd.f32 %v2529_v28, %v2854_v6 }
 0x139   :  { %v1523_v14 = vadd.f32 %v1522_v17, %v1521_v40  ;;  %1037 = vst.msk [vmem:[%s3240_s5 + $0xc4] sm:$0xf] %vm987_vm3, %v1937_v2  ;;  %v3053_v53 = vadd.f32 %v2862_v47, %v2529_v28  ;;  %1042 = vst.msk [vmem:[%s3240_s5 + $0xd8] sm:$0xf] %vm987_vm3, %v1942_v42  ;;  %v3061_v46 = vadd.f32 %v2529_v28, %v2874_v56  ;;  %v1530_v47 = vsel %vm1440_vm4, %v656_v0, 0.0 }
 0x13a   :  { %v1724_v60 = vadd.f32 %v1723_v34, %v1722_v38  ;;  %v3065_v31 = vadd.f32 %v2915_v10, %v2529_v28  ;;  %v1624_v6 = vmul.f32 %v2913_v27, %v2913_v27  ;;  %v1940_v49 = vpack.c.bf16 %v685_v9, %v685_v9 }
 0x13b   :  { %v1525_v20 = vadd.f32 %v1524_v33, %v1523_v14  ;;  %v1532_v1 = vsel %vm1440_vm4, %v2913_v27, 0.0  ;;  %v1943_v55 = vpack.c.bf16 %v3053_v53, %v3053_v53  ;;  %v1625_v56 = vmul.f32 %v2958_v5, %v2958_v5 }
 0x13c   :  { %v1726_v3 = vadd.f32 %v1725_v50, %v1724_v60  ;;  %v1731_v10 = vsel %vm1440_vm4, %v1623_v44, 0.0  ;;  %v1626_v35 = vmul.f32 %v2989_v51, %v2989_v51  ;;  %1040 = vst.msk [vmem:[%s3240_s5 + $0xd0] sm:$0xf] %vm987_vm3, %v1940_v49  ;;  %v1941_v27 = vpack.c.bf16 %v3061_v46, %v3061_v46 }
 0x13d   :  { %v1527_v57 = vadd.f32 %v1526_v61, %v1525_v20  ;;  %1043 = vst.msk [vmem:[%s3240_s5 + $0xdc] sm:$0xf] %vm987_vm3, %v1943_v55  ;;  %v1946_v8 = vpack.c.bf16 %v3065_v31, %v3065_v31  ;;  %v1733_v12 = vsel %vm1440_vm4, %v1624_v6, 0.0  ;;  %v1534_v63 = vsel %vm1440_vm4, %v2958_v5, 0.0 }
 0x13e   :  { %v1728_v13 = vadd.f32 %v1727_v24, %v1726_v3  ;;  %v1536_v15 = vsel %vm1440_vm4, %v2989_v51, 0.0  ;;  %1041 = vst.msk [vmem:[%s3240_s5 + $0xd4] sm:$0xf] %vm987_vm3, %v1941_v27  ;;  %v701_v16 = vadd.f32 %v2529_v28, %v2921_v32  ;;  %v3108_v5 = vadd.f32 %v2925_v29, %v2529_v28 }
 0x13f   :  { %v1529_v41 = vadd.f32 %v1528_v4, %v1527_v57  ;;  %1046 = vst.msk [vmem:[%s3240_s5 + $0xe8] sm:$0xf] %vm987_vm3, %v1946_v8  ;;  %v1735_v51 = vsel %vm1440_vm4, %v1625_v56, 0.0  ;;  %v1737_v22 = vsel %vm1440_vm4, %v1626_v35, 0.0  ;;  %v1627_v11 = vmul.f32 %v672_v25, %v672_v25 }
 0x140   :  { %v1730_v54 = vadd.f32 %v1729_v43, %v1728_v13  ;;  %v1944_v23 = vpack.c.bf16 %v701_v16, %v701_v16  ;;  %v1540_v32 = vsel %vm1440_vm4, %v2979_v7, 0.0  ;;  %v1947_v38 = vpack.c.bf16 %v3108_v5, %v3108_v5  ;;  %v2056_v43 = vld [vmem:[%s3237_s4] ss:$0 sm:$0xff] }
 0x141   :  { %v1531_v48 = vadd.f32 %v1530_v47, %v1529_v41  ;;  %v1628_v30 = vmul.f32 %v2979_v7, %v2979_v7  ;;  %v1538_v29 = vsel %vm1440_vm4, %v672_v25, 0.0  ;;  %v704_v14 = vadd.f32 %v2529_v28, %v2933_v39 }
 0x142   :  { %v1732_v0 = vadd.f32 %v1731_v10, %v1730_v54  ;;  %1044 = vst.msk [vmem:[%s3240_s5 + $0xe0] sm:$0xf] %vm987_vm3, %v1944_v23  ;;  %v3127_v26 = vadd.f32 %v2966_v58, %v2529_v28  ;;  %1047 = vst.msk [vmem:[%s3240_s5 + $0xec] sm:$0xf] %vm987_vm3, %v1947_v38  ;;  %v717_v7 = vadd.f32 %v2529_v28, %v2981_v18  ;;  %v1739_v58 = vsel %vm1440_vm4, %v1627_v11, 0.0 }
 0x143   :  { %v1533_v59 = vadd.f32 %v1532_v1, %v1531_v48  ;;  %v3137_v52 = vadd.f32 %v2995_v45, %v2529_v28  ;;  %v1629_v39 = vmul.f32 %v2993_v36, %v2993_v36  ;;  %v1630_v25 = vmul.f32 %v685_v9, %v685_v9 }
 0x144   :  { %v1734_v62 = vadd.f32 %v1733_v12, %v1732_v0  ;;  %v1945_v20 = vpack.c.bf16 %v704_v14, %v704_v14  ;;  %v1950_v61 = vpack.c.bf16 %v3127_v26, %v3127_v26  ;;  %v1741_v4 = vsel %vm1440_vm4, %v1628_v30, 0.0 }
 0x145   :  { %v1535_v40 = vadd.f32 %v1534_v63, %v1533_v59  ;;  %v1542_v18 = vsel %vm1440_vm4, %v2993_v36, 0.0  ;;  %v1544_v28 = vsel %vm1440_vm4, %v685_v9, 0.0  ;;  %v1948_v45 = vpack.c.bf16 %v717_v7, %v717_v7 }
 0x146   :  { %v1736_v19 = vadd.f32 %v1735_v51, %v1734_v62  ;;  %1045 = vst.msk [vmem:[%s3240_s5 + $0xe4] sm:$0xf] %vm987_vm3, %v1945_v20  ;;  %1050 = vst.msk [vmem:[%s3240_s5 + $0xf8] sm:$0xf] %vm987_vm3, %v1950_v61  ;;  %v1951_v3 = vpack.c.bf16 %v3137_v52, %v3137_v52  ;;  %v1743_v36 = vsel %vm1440_vm4, %v1629_v39, 0.0  ;;  %v1745_v57 = vsel %vm1440_vm4, %v1630_v25, 0.0 }
 0x147   :  { %v1537_v17 = vadd.f32 %v1536_v15, %v1535_v40  ;;  %v1631_v42 = vmul.f32 %v3061_v46, %v3061_v46  ;;  %1048 = vst.msk [vmem:[%s3240_s5 + $0xf0] sm:$0xf] %vm987_vm3, %v1948_v45  ;;  %v720_v44 = vadd.f32 %v2056_v43, %v2999_v21  ;;  %v1632_v13 = vmul.f32 %v3035_v37, %v3035_v37 }
 0x148   :  { %v1738_v33 = vadd.f32 %v1737_v22, %v1736_v19  ;;  %1051 = vst.msk [vmem:[%s3240_s5 + $0xfc] sm:$0xf] %vm987_vm3, %v1951_v3  ;;  %v1546_v6 = vsel %vm1440_vm4, %v3061_v46, 0.0  ;;  %v1548_v54 = vsel %vm1440_vm4, %v3035_v37, 0.0  ;;  %v1633_v21 = vmul.f32 %v3053_v53, %v3053_v53 }
 0x149   :  { %v1539_v34 = vadd.f32 %v1538_v29, %v1537_v17  ;;  %v1949_v47 = vpack.c.bf16 %v720_v44, %v720_v44  ;;  %v1747_v48 = vsel %vm1440_vm4, %v1631_v42, 0.0  ;;  %v1634_v55 = vmul.f32 %v701_v16, %v701_v16 }
 0x14a   :  { %v1740_v50 = vadd.f32 %v1739_v58, %v1738_v33  ;;  %v1749_v46 = vsel %vm1440_vm4, %v1632_v13, 0.0  ;;  %v1550_v35 = vsel %vm1440_vm4, %v3053_v53, 0.0  ;;  %v1552_v37 = vsel %vm1440_vm4, %v701_v16, 0.0 }
 0x14b   :  { %v1541_v60 = vadd.f32 %v1540_v32, %v1539_v34  ;;  %1049 = vst.msk [vmem:[%s3240_s5 + $0xf4] sm:$0xf] %vm987_vm3, %v1949_v47  ;;  %v1751_v0 = vsel %vm1440_vm4, %v1633_v21, 0.0  ;;  %v1753_v8 = vsel %vm1440_vm4, %v1634_v55, 0.0  ;;  %v1635_v12 = vmul.f32 %v704_v14, %v704_v14  ;;  %v1439_v47 = vld [vmem:[%s3238_s6] sm:$0x1] }
 0x14c   :  { %v1742_v2 = vadd.f32 %v1741_v4, %v1740_v50  ;;  %v1636_v62 = vmul.f32 %v3065_v31, %v3065_v31  ;;  %v1554_v40 = vsel %vm1440_vm4, %v704_v14, 0.0  ;;  %v1556_v53 = vsel %vm1440_vm4, %v3065_v31, 0.0 }
 0x14d   :  { %v1543_v24 = vadd.f32 %v1542_v18, %v1541_v60  ;;  %v1637_v16 = vmul.f32 %v3108_v5, %v3108_v5  ;;  %v1755_v11 = vsel %vm1440_vm4, %v1635_v12, 0.0  ;;  %v1638_v23 = vmul.f32 %v717_v7, %v717_v7 }
 0x14e   :  { %v1744_v41 = vadd.f32 %v1743_v36, %v1742_v2  ;;  %v1757_v19 = vsel %vm1440_vm4, %v1636_v62, 0.0  ;;  %v1558_v38 = vsel %vm1440_vm4, %v3108_v5, 0.0  ;;  %v1560_v30 = vsel %vm1440_vm4, %v717_v7, 0.0 }
 0x14f   :  { %v1545_v9 = vadd.f32 %v1544_v28, %v1543_v24  ;;  %v1759_v33 = vsel %vm1440_vm4, %v1637_v16, 0.0  ;;  %v1761_v31 = vsel %vm1440_vm4, %v1638_v23, 0.0  ;;  %v1639_v34 = vmul.f32 %v720_v44, %v720_v44 }
 0x150   :  { %v1746_v49 = vadd.f32 %v1745_v57, %v1744_v41  ;;  %v1640_v25 = vmul.f32 %v3127_v26, %v3127_v26  ;;  %v1562_v20 = vsel %vm1440_vm4, %v720_v44, 0.0  ;;  %v1564_v5 = vsel %vm1440_vm4, %v3127_v26, 0.0 }
 0x151   :  { %v1547_v1 = vadd.f32 %v1546_v6, %v1545_v9  ;;  %v1641_v7 = vmul.f32 %v3137_v52, %v3137_v52  ;;  %v1763_v61 = vsel %vm1440_vm4, %v1639_v34, 0.0  ;;  %v1566_v45 = vsel %vm1440_vm4, %v3137_v52, 0.0 }
 0x152   :  { %v1748_v10 = vadd.f32 %v1747_v48, %v1746_v49  ;;  %v1765_v28 = vsel %vm1440_vm4, %v1640_v25, 0.0 }
 0x153   :  { %v1549_v56 = vadd.f32 %v1548_v54, %v1547_v1  ;;  %v1767_v3 = vsel %vm1440_vm4, %v1641_v7, 0.0  ;;  %v1577_v1 = vld [vmem:[%s3239_s7] sm:$0x1] }
 0x154   :  { %v1750_v27 = vadd.f32 %v1749_v46, %v1748_v10 }
 0x155   :  { %v1551_v59 = vadd.f32 %v1550_v35, %v1549_v56 }
 0x156   :  { %v1752_v15 = vadd.f32 %v1751_v0, %v1750_v27 }
 0x157   :  { %v1553_v63 = vadd.f32 %v1552_v37, %v1551_v59 }
 0x158   :  { %v1754_v51 = vadd.f32 %v1753_v8, %v1752_v15 }
 0x159   :  { %v1555_v22 = vadd.f32 %v1554_v40, %v1553_v63 }
 0x15a   :  { %v1756_v17 = vadd.f32 %v1755_v11, %v1754_v51 }
 0x15b   :  { %v1557_v32 = vadd.f32 %v1556_v53, %v1555_v22 }
 0x15c   :  { %v1758_v29 = vadd.f32 %v1757_v19, %v1756_v17 }
 0x15d   :  { %v1559_v14 = vadd.f32 %v1558_v38, %v1557_v32 }
 0x15e   :  { %v1760_v58 = vadd.f32 %v1759_v33, %v1758_v29 }
 0x15f   :  { %v1561_v39 = vadd.f32 %v1560_v30, %v1559_v14 }
 0x160   :  { %v1762_v60 = vadd.f32 %v1761_v31, %v1760_v58 }
 0x161   :  { %v1563_v50 = vadd.f32 %v1562_v20, %v1561_v39 }
 0x162   :  { %v1764_v18 = vadd.f32 %v1763_v61, %v1762_v60 }
 0x163   :  { %v1565_v4 = vadd.f32 %v1564_v5, %v1563_v50 }
 0x164   :  { %v1766_v24 = vadd.f32 %v1765_v28, %v1764_v18 }
 0x165   :  { %v1567_v2 = vadd.f32 %v1566_v45, %v1565_v4 }
 0x166   :  { %v1768_v57 = vadd.f32 %v1767_v3, %v1766_v24 }
 0x167   :  { %v1568_v36 = vrot.slane %v1567_v2, 4 }
 0x168   :  { %v1769_v26 = vrot.slane %v1768_v57, 4 }
 0x169   :  { %v1569_v42 = vadd.f32 %v1568_v36, %v1567_v2 }
 0x16a   :  { %v1770_v44 = vadd.f32 %v1769_v26, %v1768_v57 }
 0x16b   :  { %v1570_v43 = vrot.slane %v1569_v42, 2 }
 0x16c   :  { %v1771_v41 = vrot.slane %v1770_v44, 2 }
 0x16d   :  { %v1571_v9 = vadd.f32 %v1570_v43, %v1569_v42 }
 0x16e   :  { %v1772_v6 = vadd.f32 %v1771_v41, %v1770_v44 }
 0x16f   :  { %v1572_v13 = vrot.slane %v1571_v9, 1 }
 0x170   :  { %v1773_v52 = vrot.slane %v1772_v6, 1 }
 0x171   :  { %v1573_v49 = vadd.f32 %v1572_v13, %v1571_v9 }
 0x172   :  { %v1774_v21 = vadd.f32 %v1773_v52, %v1772_v6 }
 0x173   :  { %v1574_v54 = vadd.f32 %v1573_v49, %v1439_v47 }
 0x174   :  { %v1775_v48 = vadd.f32 %v1774_v21, %v1577_v1 }
 0x175   :  { %1576 = vst.msk [vmem:[%s3238_s6] sm:$0x1] %vm28_vm2, %v1574_v54 }
 0x176   :  { %1776 = vst.msk [vmem:[%s3239_s7] sm:$0x1] %vm28_vm2, %v1775_v48 }

// kernel: dense_basic_forward.5
= control target key start
LH: loop header
LB: loop body
LE: loop exit
PB: predicated region body
PF: predicated region fallthrough
CT: control target
= control target key end

     0   :  { %s7207_s27 = smov 0   ;;  %s11386_s0 = inlined_call_operand.vmem [shape: f32[512,4], index: 0, kind: input, shape index: {}]   ;;  %s11387_s1 = inlined_call_operand.vmem [shape: bf16[512,32], index: 1, kind: input, shape index: {}]   ;;  %s11388_s2 = inlined_call_operand.vmem [shape: f32[1,32], index: 2, kind: input, shape index: {}]   ;;  %s11389_s3 = inlined_call_operand.vmem [shape: f32[1,32], index: 3, kind: input, shape index: {}]   ;;  %s11390_s4 = inlined_call_operand.vmem [shape: bf16[9,32,8], index: 4, kind: input, shape index: {}]   ;;  %s11391_s5 = inlined_call_operand.vmem [shape: f32[1,8], index: 5, kind: input, shape index: {}]   ;;  %s11392_s6 = inlined_call_operand.vmem [shape: s32[256,1], index: 6, kind: input, shape index: {}]   ;;  %s11393_s7 = inlined_call_operand.vmem [shape: s32[256,1], index: 7, kind: input, shape index: {}]   ;;  %s11394_s8 = inlined_call_operand.vmem [shape: f32[512,12], index: 8, kind: output, shape index: {}]  }
   0x1 LB: > { %s5389_s28 = sadd.s32 4294967295, %s7157_s27   ;;  %p5393_p0 = scmp.ge.s32.totalorder %s7157_s27, 1  ;;  %s7157_s27 = sphi %s7207_s27, %s18_s27  }
   0x2   : > { %p274_p1 = scmp.lt.s32.totalorder %s7157_s27, 3 }
   0x4   : > { %p275_p2 = pnand %p5393_p0, %p274_p1 }
   0x6   : > { %278 = sbr.rel (%p275_p2) target bundleno = 749 (0x2ed), region = 52 }
   0xd   : > { %v7218_v0 = vld [vmem:[%s11392_s6 + $0x20] sm:$0xff]  ;;  %v7223_v1 = vld [vmem:[%s11392_s6 + $0x28] sm:$0xff]  ;;  %v7159_v3 = vmov 0   ;;  %s7258_s21 = sshll.u32 %s5389_s28, 5  ;;  %v11419_v8 = vmov 0.0   ;;  %v7276_v11 = vld [vmem:[%s11392_s6 + $0x30] sm:$0xff]  ;;  %v602_v29 = vlaneseq }
   0xe   : > { %11836 = vst [vmem:[#allocation2_spill] sm:$0xff] %v7223_v1  ;;  %v7228_v2 = vld [vmem:[%s11393_s7 + $0x20] sm:$0xff]  ;;  %6446 = vset.pattern.permute.xlu1 %v7159_v3  ;;  %6435 = vset.pattern.permute.xlu0 %v7159_v3  ;;  %v7233_v4 = vld [vmem:[%s11393_s7 + $0x28] sm:$0xff]  ;;  %vm883_vm0 = vcmp.ge.s32.totalorder %v7218_v0, 1  ;;  %vm11403_vm1 = vcmp.ge.s32.totalorder %v7223_v1, 1  ;;  %11841 = vst [vmem:[#allocation7_spill] sm:$0xff] %v7276_v11 }
   0xf   : > { %11837 = vst [vmem:[#allocation3_spill] sm:$0xff] %v7228_v2  ;;  %11838 = vst [vmem:[#allocation4_spill] sm:$0xff] %v7233_v4  ;;  %vm11396_vm2 = vcmp.ge.s32.totalorder %v7228_v2, 1  ;;  %v7241_v5 = vld [vmem:[%s11392_s6] sm:$0xff]  ;;  %vm11395_vm3 = vcmp.ge.s32.totalorder %v7233_v4, 1  ;;  %v7251_v6 = vld [vmem:[%s11392_s6 + $0x8] sm:$0xff] }
  0x10   : > { %vm947_vm4 = vmand %vm883_vm0, %vm11396_vm2  ;;  %v7256_v7 = vld [vmem:[%s11393_s7] sm:$0xff]  ;;  %v7268_v10 = vld [vmem:[%s11393_s7 + $0x8] sm:$0xff]  ;;  %vm879_vm6 = vcmp.ge.s32.totalorder %v7241_v5, 1  ;;  %vm880_vm7 = vcmp.ge.s32.totalorder %v7251_v6, 1  ;;  %p314_p3 = scmp.lt.s32.totalorder %s7258_s21, 63  ;;  %vm11586_vm12 = vcmp.ge.s32.totalorder %v7276_v11, 1 }
  0x11   : > { %11839 = vst [vmem:[#allocation5_spill] sm:$0xff] %v7256_v7  ;;  %vm948_vm5 = vmand %vm11403_vm1, %vm11395_vm3  ;;  %v5424_v9 = vsel %vm947_vm4, 1.0, %v11419_v8  ;;  %vm11400_vm8 = vcmp.ge.s32.totalorder %v7256_v7, 1  ;;  %vm11399_vm9 = vcmp.ge.s32.totalorder %v7268_v10, 1  ;;  %v7287_v13 = vld [vmem:[%s11392_s6 + $0x38] sm:$0xff]  ;;  %v7292_v14 = vld [vmem:[%s11393_s7 + $0x30] sm:$0xff] }
  0x12   : > { %11840 = vst [vmem:[#allocation6_spill] sm:$0xff] %v7268_v10  ;;  %v5425_v12 = vsel %vm948_vm5, 1.0, %v11419_v8  ;;  %vm943_vm10 = vmand %vm879_vm6, %vm11400_vm8  ;;  %v7302_v17 = vld [vmem:[%s11393_s7 + $0x38] sm:$0xff]  ;;  %v7307_v18 = vld [vmem:[%s11392_s6 + $0x10] sm:$0xff]  ;;  %vm11582_vm13 = vcmp.ge.s32.totalorder %v7287_v13, 1  ;;  %vm11398_vm14 = vcmp.ge.s32.totalorder %v7292_v14, 1 }
  0x13   : > { %11842 = vst [vmem:[#allocation8_spill] sm:$0xff] %v7287_v13  ;;  %11843 = vst [vmem:[#allocation9_spill] sm:$0xff] %v7292_v14  ;;  %v6447_v15 = vpack.i.bf16 %v5425_v12, %v5424_v9  ;;  %v5420_v16 = vsel %vm943_vm10, 1.0, %v11419_v8  ;;  %v7317_v20 = vld [vmem:[%s11392_s6 + $0x18] sm:$0xff]  ;;  %v7322_v21 = vld [vmem:[%s11393_s7 + $0x10] sm:$0xff]  ;;  %vm11397_vm15 = vcmp.ge.s32.totalorder %v7302_v17, 1 }
  0x14   : > { %vm944_vm11 = vmand %vm880_vm7, %vm11399_vm9  ;;  %11844 = vst [vmem:[#allocation10_spill] sm:$0xff] %v7302_v17  ;;  %v7332_v23 = vld [vmem:[%s11393_s7 + $0x18] sm:$0xff]  ;;  %vm11409_vm5 = vcmp.ge.s32.totalorder %v7307_v18, 1  ;;  %vm11417_vm10 = vcmp.ge.s32.totalorder %v7317_v20, 1  ;;  %vm11402_vm3 = vcmp.ge.s32.totalorder %v7322_v21, 1  ;;  %v7077_v25 = vld [vmem:[%s11390_s4] sm:$0xff]  }
  0x15   : > { %11845 = vst [vmem:[#allocation11_spill] sm:$0xff] %v7307_v18  ;;  %v5421_v19 = vsel %vm944_vm11, 1.0, %v11419_v8  ;;  %11846 = vst [vmem:[#allocation12_spill] sm:$0xff] %v7317_v20  ;;  %6448 = vperm.xlu1 %6446, %v6447_v15   ;;  %vm11401_vm2 = vcmp.ge.s32.totalorder %v7332_v23, 1  ;;  %v7354_v27 = vld [vmem:[%s11392_s6 + $0x50] sm:$0xff]  ;;  %v7359_v28 = vld [vmem:[%s11392_s6 + $0x58] sm:$0xff]  ;;  %6420 = vmatprep.subr.bf16.mxu1 %v7077_v25 }
  0x16   : > { %11847 = vst [vmem:[#allocation13_spill] sm:$0xff] %v7322_v21  ;;  %v6436_v22 = vpack.i.bf16 %v5421_v19, %v5420_v16  ;;  %vm949_vm4 = vmand %vm11586_vm12, %vm11398_vm14  ;;  %6096 = vmatprep.subr.bf16.mxu0 %v7077_v25  ;;  %v7369_v32 = vld [vmem:[%s11393_s7 + $0x50] sm:$0xff]  ;;  %v7374_v33 = vld [vmem:[%s11393_s7 + $0x58] sm:$0xff]  ;;  %vm11458_vm14 = vcmp.ge.s32.totalorder %v7359_v28, 1  ;;  %s12753_s21 = smov (!%p314_p3, %s7258_s21), 63  ;;  %6422 = vmatpush3.bf16.msra.mxu1 %v7077_v25  ;;  %v7438_v45 = vshrl.u32 %v602_v29, 7 }
  0x17   : > { %11848 = vst [vmem:[#allocation14_spill] sm:$0xff] %v7332_v23  ;;  %vm950_vm11 = vmand %vm11582_vm13, %vm11397_vm15  ;;  %v5426_v24 = vsel %vm949_vm4, 1.0, %v11419_v8  ;;  %vm11408_vm9 = vcmp.ge.s32.totalorder %v7374_v33, 1  ;;  %v7389_v35 = vld [vmem:[%s11392_s6 + $0x40] sm:$0xff]  ;;  %v7394_v36 = vld [vmem:[%s11392_s6 + $0x48] sm:$0xff]  ;;  %6097 = vmatpush3.bf16.msra.mxu0 %v7077_v25  ;;  %s5397_s24 = sshll.u32 %s12753_s21, 2 }
  0x18   : > { %6437 = vperm.xlu0 %6435, %v6436_v22   ;;  %v5427_v26 = vsel %vm950_vm11, 1.0, %v11419_v8  ;;  %vm945_vm15 = vmand %vm11409_vm5, %vm11402_vm3  ;;  %11849 = vst [vmem:[#allocation15_spill] sm:$0xff] %v7369_v32  ;;  %vm11405_vm11 = vcmp.ge.s32.totalorder %v7354_v27, 1  ;;  %v7399_v37 = vld [vmem:[%s11393_s7 + $0x40] sm:$0xff]  ;;  %v7408_v39 = vld [vmem:[%s11393_s7 + $0x48] sm:$0xff]  ;;  %vm11411_vm8 = vcmp.ge.s32.totalorder %v7389_v35, 1  ;;  %s7465_s10 = scalar_lea.vmem %s11387_s1, %s5397_s24 }
  0x19   : > { %v6452_v30 = vpack.i.bf16 %v5427_v26, %v5426_v24  ;;  %vm946_vm4 = vmand %vm11417_vm10, %vm11401_vm2  ;;  %v5422_v31 = vsel %vm945_vm15, 1.0, %v11419_v8  ;;  %11850 = vst [vmem:[#allocation16_spill] sm:$0xff] %v7374_v33  ;;  %vm11404_vm15 = vcmp.ge.s32.totalorder %v7369_v32, 1  ;;  %vm11410_vm2 = vcmp.ge.s32.totalorder %v7394_v36, 1  ;;  %v7078_v41 = vld [vmem:[%s11390_s4 + $0x8] sm:$0xff]   ;;  %v7430_v43 = vld [vmem:[%s11392_s6 + $0x70] sm:$0xff] }
  0x1a   : > { %v5423_v34 = vsel %vm946_vm4, 1.0, %v11419_v8  ;;  %11851 = vst [vmem:[#allocation17_spill] sm:$0xff] %v7399_v37  ;;  %vm953_vm4 = vmand %vm11405_vm11, %vm11404_vm15  ;;  %vm11406_vm3 = vcmp.ge.s32.totalorder %v7399_v37, 1  ;;  %vm11407_vm15 = vcmp.ge.s32.totalorder %v7408_v39, 1  ;;  %v7435_v44 = vld [vmem:[%s11392_s6 + $0x78] sm:$0xff]  ;;  %v7443_v46 = vsel %vm11409_vm5, 1.0, %v11419_v8  ;;  %6421 = vmatprep.subr.bf16.mxu1 %v7078_v41  ;;  %6098 = vmatprep.subr.bf16.mxu0 %v7078_v41 }
  0x1b   : > { %6453 = vperm.xlu1 %6446, %v6452_v30   ;;  %v6441_v38 = vpack.i.bf16 %v5423_v34, %v5422_v31  ;;  %11852 = vst [vmem:[#allocation18_spill] sm:$0xff] %v7408_v39  ;;  %vm954_vm1 = vmand %vm11458_vm14, %vm11408_vm9  ;;  %v5430_v40 = vsel %vm953_vm4, 1.0, %v11419_v8  ;;  %v7453_v49 = vld [vmem:[%s11393_s7 + $0x70] sm:$0xff]  ;;  %v7458_v50 = vld [vmem:[%s11393_s7 + $0x78] sm:$0xff]  ;;  %vm11413_vm4 = vcmp.ge.s32.totalorder %v7430_v43, 1  ;;  %6423 = vmatpush3.bf16.msra.mxu1 %v7078_v41  ;;  %v7531_v16 = vsel %vm11417_vm10, 1.0, %v11419_v8 }
  0x1c   : > { %v5431_v42 = vsel %vm954_vm1, 1.0, %v11419_v8  ;;  %vm951_vm11 = vmand %vm11411_vm8, %vm11406_vm3  ;;  %11853 = vst [vmem:[#allocation19_spill] sm:$0xff] %v7453_v49  ;;  %vm11457_vm3 = vcmp.ge.s32.totalorder %v7435_v44, 1  ;;  %v7473_v52 = vld [vmem:[%s11392_s6 + $0x60] sm:$0xff]  ;;  %v7478_v53 = vld [vmem:[%s11392_s6 + $0x68] sm:$0xff]  ;;  %6099 = vmatpush3.bf16.msra.mxu0 %v7078_v41  ;;  %s5395_s15 = sshll.u32 %s12753_s21, 3 }
  0x1d   : > { %6442 = vperm.xlu0 %6435, %v6441_v38   ;;  %v6462_v47 = vpack.i.bf16 %v5431_v42, %v5430_v40  ;;  %vm952_vm1 = vmand %vm11410_vm2, %vm11407_vm15  ;;  %v5428_v48 = vsel %vm951_vm11, 1.0, %v11419_v8  ;;  %11854 = vst [vmem:[#allocation20_spill] sm:$0xff] %v7458_v50  ;;  %vm11412_vm11 = vcmp.ge.s32.totalorder %v7453_v49, 1  ;;  %vm11416_vm15 = vcmp.ge.s32.totalorder %v7458_v50, 1  ;;  %v7483_v54 = vld [vmem:[%s11393_s7 + $0x60] sm:$0xff]  ;;  %v7492_v56 = vld [vmem:[%s11393_s7 + $0x68] sm:$0xff]  ;;  %s11065_s17 = scalar_lea.vmem %s11386_s0, %s5395_s15  ;;  %s11074_s20 = scalar_lea.vmem %s11394_s8, %s5395_s15 }
  0x1e   : > { %v5429_v51 = vsel %vm952_vm1, 1.0, %v11419_v8  ;;  %11855 = vst [vmem:[#allocation21_spill] sm:$0xff] %v7483_v54  ;;  %vm957_vm1 = vmand %vm11413_vm4, %vm11412_vm11  ;;  %vm11456_vm9 = vcmp.ge.s32.totalorder %v7473_v52, 1  ;;  %vm11418_vm5 = vcmp.ge.s32.totalorder %v7478_v53, 1  ;;  %vm11414_vm2 = vcmp.ge.s32.totalorder %v7483_v54, 1  ;;  %v7498_v57 = vld [vmem:[%s7465_s10 + $0x70] sm:$0xff]  }
  0x1f   : > { %6463 = vperm.xlu1 %6446, %v6462_v47   ;;  %v6457_v55 = vpack.i.bf16 %v5429_v51, %v5428_v48  ;;  %11856 = vst [vmem:[#allocation22_spill] sm:$0xff] %v7492_v56  ;;  %vm958_vm8 = vmand %vm11457_vm3, %vm11416_vm15  ;;  %v5434_v58 = vsel %vm957_vm1, 1.0, %v11419_v8  ;;  %vm11415_vm11 = vcmp.ge.s32.totalorder %v7492_v56, 1  ;;  %v5914_v60 = vunpack.c.h.bf16 %v7498_v57  ;;  %v5933_v61 = vld [vmem:[%s7465_s10 + $0x78] sm:$0xff]   ;;  %v7512_v62 = vld [vmem:[%s11388_s2] ss:$0 sm:$0xff] }
  0x20   : > { %vm604_vm4 = vcmp.lt.s32.totalorder %v7438_v45, 1  ;;  %v5435_v63 = vsel %vm958_vm8, 1.0, %v11419_v8  ;;  %vm955_vm1 = vmand %vm11456_vm9, %vm11414_vm2  ;;  %v5917_v3 = vunpack.c.l.bf16 %v5933_v61  ;;  %v5918_v9 = vunpack.c.h.bf16 %v5933_v61  ;;  %v7523_v12 = vld [vmem:[%s11389_s3] ss:$0 sm:$0xff]  ;;  %v7526_v15 = vld [vmem:[%s7465_s10 + $0x30] sm:$0xff]  }
  0x21   : > { %6458 = vperm.xlu0 %6435, %v6457_v55   ;;  %v6472_v19 = vpack.i.bf16 %v5435_v63, %v5434_v58  ;;  %vm956_vm8 = vmand %vm11418_vm5, %vm11415_vm11  ;;  %v5432_v22 = vsel %vm955_vm1, 1.0, %v11419_v8  ;;  %v432_v24 = vmul.f32 %v5914_v60, %v7512_v62  ;;  %v5925_v26 = vld [vmem:[%s7465_s10 + $0x38] sm:$0xff]   ;;  %vm11732_vm2 = vcmask 261120   ;;  %v7548_v38 = vld [vmem:[%s11390_s4 + $0x10] sm:$0xff]  }
  0x22   : > { %v5433_v29 = vsel %vm956_vm8, 1.0, %v11419_v8  ;;  %v433_v30 = vmul.f32 %v5917_v3, %v7512_v62  ;;  %v434_v31 = vmul.f32 %v5918_v9, %v7512_v62  ;;  %v5882_v34 = vunpack.c.h.bf16 %v7526_v15  ;;  %v7553_v40 = vld [vmem:[%s11392_s6 + $0x90] sm:$0xff]  ;;  %v7559_v51 = vld [vmem:[%s11392_s6 + $0x98] sm:$0xff]  ;;  %6132 = vmatprep.subr.bf16.mxu1 %v7548_v38  ;;  %v7633_v59 = vld [vmem:[%s11393_s7 + $0x88] sm:$0xff] }
  0x23   : > { %6473 = vperm.xlu1 %6446, %v6472_v19   ;;  %v6467_v41 = vpack.i.bf16 %v5433_v29, %v5432_v22  ;;  %v471_v42 = vadd.f32 %v7523_v12, %v432_v24  ;;  %v5885_v47 = vunpack.c.l.bf16 %v5925_v26  ;;  %v5886_v48 = vunpack.c.h.bf16 %v5925_v26  ;;  %v7564_v55 = vld [vmem:[%s11393_s7 + $0x90] sm:$0xff]  ;;  %v7573_v63 = vld [vmem:[%s11393_s7 + $0x98] sm:$0xff]  ;;  %v7584_v22 = vld [vmem:[%s11392_s6 + $0x80] sm:$0xff]  ;;  %11862 = vst [vmem:[#allocation28_spill] sm:$0xff] %v7633_v59 }
  0x24   : > { %11857 = vst [vmem:[#allocation23_spill] sm:$0xff] %v7564_v55  ;;  %v472_v58 = vadd.f32 %v7523_v12, %v433_v30  ;;  %v473_v60 = vadd.f32 %v7523_v12, %v434_v31  ;;  %v416_v61 = vmul.f32 %v5882_v34, %v7512_v62  ;;  %11858 = vst [vmem:[#allocation24_spill] sm:$0xff] %v7573_v63  ;;  %vm11437_vm1 = vcmp.ge.s32.totalorder %v7553_v40, 1  ;;  %v7595_v30 = vld [vmem:[%s11390_s4 + $0x20] sm:$0xff]   ;;  %v7780_v4 = vld [vmem:[%s11393_s7 + $0xd0] sm:$0xff] }
  0x25   : > { %6468 = vperm.xlu0 %6435, %v6467_v41   ;;  %v7576_v3 = vmax.f32 %v471_v42, 0.0  ;;  %v417_v9 = vmul.f32 %v5885_v47, %v7512_v62  ;;  %v418_v19 = vmul.f32 %v5886_v48, %v7512_v62  ;;  %vm11436_vm8 = vcmp.ge.s32.totalorder %v7559_v51, 1  ;;  %6168 = vmatprep.subr.bf16.mxu0 %v7595_v30  ;;  %v5856_v25 = vld [vmem:[%s7465_s10] sm:$0xff]   ;;  %11873 = vst [vmem:[#allocation37_spill] sm:$0xff] %v7780_v4  ;;  %v7794_v14 = vld [vmem:[%s11393_s7 + $0xd8] sm:$0xff]  ;;  %v11969_v0 = vld [vmem:[#allocation11_spill] sm:$0xff] }
  0x26   : > { %v7586_v24 = vmax.f32 %v472_v58, 0.0  ;;  %v7588_v26 = vmax.f32 %v473_v60, 0.0  ;;  %v455_v29 = vadd.f32 %v7523_v12, %v416_v61  ;;  %vm11432_vm11 = vcmp.ge.s32.totalorder %v7564_v55, 1  ;;  %v7617_v60 = vld [vmem:[%s11392_s6 + $0x88] sm:$0xff]  ;;  %v7622_v61 = vld [vmem:[%s11393_s7 + $0x80] sm:$0xff]  ;;  %11876 = vst [vmem:[#allocation38_spill] sm:$0xff] %v7794_v14 }
  0x27   : > { %v456_v34 = vadd.f32 %v7523_v12, %v417_v9  ;;  %v457_v41 = vadd.f32 %v7523_v12, %v418_v19  ;;  %vm11431_vm15 = vcmp.ge.s32.totalorder %v7573_v63, 1  ;;  %vm961_vm10 = vmand %vm11437_vm1, %vm11432_vm11  ;;  %11859 = vst [vmem:[#allocation25_spill] sm:$0xff] %v7622_v61  ;;  %v5926_v55 = vld [vmem:[%s7465_s10 + $0x40] sm:$0xff]   ;;  %vm11452_vm11 = vcmp.ge.s32.totalorder %v7633_v59, 1  ;;  %v7927_v20 = vld [vmem:[%s11393_s7 + $0xf8] sm:$0xff] }
  0x28   : > { %v600_v42 = vrot.slane %v7586_v24, 7  ;;  %v11433_v47 = vrot.slane %v7588_v26, 7  ;;  %v7607_v48 = vmax.f32 %v455_v29, 0.0  ;;  %vm962_vm5 = vmand %vm11436_vm8, %vm11431_vm15  ;;  %v5438_v58 = vsel %vm961_vm10, 1.0, %v11419_v8  ;;  %v7719_v39 = vld [vmem:[%s11393_s7 + $0xa0] sm:$0xff]  ;;  %11892 = vst [vmem:[#allocation51_spill] sm:$0xff] %v7927_v20 }
  0x29   : > { %v7625_v9 = vmax.f32 %v456_v34, 0.0  ;;  %v7627_v19 = vmax.f32 %v457_v41, 0.0  ;;  %v5439_v29 = vsel %vm962_vm5, 1.0, %v11419_v8  ;;  %vm11455_vm10 = vcmp.ge.s32.totalorder %v7584_v22, 1  ;;  %11869 = vst [vmem:[#allocation33_spill] sm:$0xff] %v7719_v39  ;;  %v7809_v21 = vld [vmem:[%s11392_s6 + $0xc0] sm:$0xff] }
  0x2a   : > { %v605_v31 = vsel %vm604_vm4, %v600_v42, %v11433_v47  ;;  %v11863_v34 = vrot.slane %v7576_v3, 7  ;;  %v11438_v8 = vrot.slane %v7607_v48, 7  ;;  %v6482_v63 = vpack.i.bf16 %v5439_v29, %v5438_v58  ;;  %v7676_v29 = vld [vmem:[%s11392_s6 + $0xb8] sm:$0xff]  ;;  %11880 = vst [vmem:[#allocation40_spill] sm:$0xff] %v7809_v21  ;;  %v7932_v18 = vld [vmem:[%s11392_s6 + $0xe0] sm:$0xff] }
  0x2b   : > { %11860 = vst [vmem:[#allocation26_spill] sm:$0xff] %v7625_v9  ;;  %11861 = vst [vmem:[#allocation27_spill] sm:$0xff] %v7627_v19  ;;  %v584_v54 = vrot.slane %v7625_v9, 7  ;;  %v11439_v50 = vrot.slane %v7627_v19, 7  ;;  %vm11454_vm5 = vcmp.ge.s32.totalorder %v7617_v60, 1  ;;  %vm11453_vm15 = vcmp.ge.s32.totalorder %v7622_v61, 1 }
  0x2c   : > { %v606_v41 = vsel %vm604_vm4, %v11863_v34, %v600_v42  ;;  %6483 = vperm.xlu1 %6446, %v6482_v63   ;;  %v5857_v47 = vunpack.c.l.bf16 %v5856_v25  ;;  %v5858_v49 = vunpack.c.h.bf16 %v5856_v25  ;;  %v7657_v42 = vld [vmem:[%s11392_s6 + $0xb0] sm:$0xff]  ;;  %vm959_vm8 = vmand %vm11455_vm10, %vm11453_vm15  ;;  %v5889_v25 = vunpack.c.l.bf16 %v5926_v55  ;;  %11893 = vst [vmem:[#allocation52_spill] sm:$0xff] %v7932_v18 }
  0x2d   : > { %v7647_v56 = vpack.c.bf16 %v605_v31, %v606_v41  ;;  %v621_v31 = vsel %vm604_vm4, %v584_v54, %v11439_v50  ;;  %v622_v63 = vsel %vm604_vm4, %v11438_v8, %v584_v54  ;;  %v5890_v58 = vunpack.c.h.bf16 %v5926_v55  ;;  %vm960_vm1 = vmand %vm11454_vm5, %vm11452_vm11  ;;  %v7690_v55 = vld [vmem:[%s11393_s7 + $0xb0] sm:$0xff] }
  0x2e   : > { %v7678_v34 = vpack.c.bf16 %v621_v31, %v622_v63  ;;  %v11866_v54 = vmov 0.0   ;;  %v403_v8 = vmul.f32 %v5857_v47, %v7512_v62  ;;  %v404_v50 = vmul.f32 %v5858_v49, %v7512_v62  ;;  %11867 = vst [vmem:[#allocation31_spill] sm:$0xff] %v7690_v55  ;;  %v7695_v31 = vld [vmem:[%s11393_s7 + $0xb8] sm:$0xff]  ;;  %v7704_v49 = vld [vmem:[%s11392_s6 + $0xa0] sm:$0xff]  ;;  %v7709_v47 = vld [vmem:[%s11392_s6 + $0xa8] sm:$0xff] }
  0x2f   : > { %11864 = vst [vmem:[#allocation29_spill] sm:$0xff] %v7647_v56  ;;  %6100 = vmatprep.mubr.msk.bf16.mxu0 %vm11732_vm2, %v7647_v56  ;;  %v5436_v41 = vsel %vm959_vm8, 1.0, %v11866_v54  ;;  %11868 = vst [vmem:[#allocation32_spill] sm:$0xff] %v7695_v31  ;;  %v5437_v63 = vsel %vm960_vm1, 1.0, %v11866_v54  ;;  %v419_v56 = vmul.f32 %v5889_v25, %v7512_v62  ;;  %v420_v59 = vmul.f32 %v5890_v58, %v7512_v62 }
  0x30   : > { %11865 = vst [vmem:[#allocation30_spill] sm:$0xff] %v7678_v34  ;;  %vm11462_vm8 = vcmp.ge.s32.totalorder %v7657_v42, 1  ;;  %6116 = vmatprep.mubr.msk.bf16.mxu1 %vm11732_vm2, %v7678_v34  ;;  %v6477_v61 = vpack.i.bf16 %v5437_v63, %v5436_v41  ;;  %v442_v25 = vadd.f32 %v7523_v12, %v403_v8  ;;  %v443_v58 = vadd.f32 %v7523_v12, %v404_v50  ;;  %v7728_v8 = vld [vmem:[%s11393_s7 + $0xa8] sm:$0xff] }
  0x31   : > { %vm11590_vm1 = vcmp.ge.s32.totalorder %v7676_v29, 1  ;;  %v458_v37 = vadd.f32 %v7523_v12, %v419_v56  ;;  %v459_v33 = vadd.f32 %v7523_v12, %v420_v59  ;;  %vm11461_vm11 = vcmp.ge.s32.totalorder %v7690_v55, 1  ;;  %11870 = vst [vmem:[#allocation34_spill] sm:$0xff] %v7728_v8  ;;  %v5919_v63 = vld [vmem:[%s7465_s10 + $0x8] sm:$0xff]  }
  0x32   : > { %vm11493_vm15 = vcmp.ge.s32.totalorder %v7695_v31, 1  ;;  %6478 = vperm.xlu0 %6435, %v6477_v61   ;;  %v7730_v50 = vmax.f32 %v442_v25, 0.0  ;;  %v7732_v41 = vmax.f32 %v443_v58, 0.0  ;;  %vm965_vm5 = vmand %vm11462_vm8, %vm11461_vm11  ;;  %vm11587_vm10 = vcmp.ge.s32.totalorder %v7704_v49, 1  ;;  %v5927_v25 = vld [vmem:[%s7465_s10 + $0x48] sm:$0xff]   ;;  %v7768_v31 = vld [vmem:[%s11392_s6 + $0xd8] sm:$0xff] }
  0x33   : > { %vm11532_vm9 = vcmp.ge.s32.totalorder %v7709_v47, 1  ;;  %v7740_v56 = vmax.f32 %v458_v37, 0.0  ;;  %v7742_v59 = vmax.f32 %v459_v33, 0.0  ;;  %vm966_vm3 = vmand %vm11590_vm1, %vm11493_vm15  ;;  %v5442_v61 = vsel %vm965_vm5, 1.0, %v11866_v54  ;;  %v7763_v33 = vld [vmem:[%s11392_s6 + $0xd0] sm:$0xff] }
  0x34   : > { %vm11492_vm14 = vcmp.ge.s32.totalorder %v7719_v39, 1  ;;  %v570_v58 = vrot.slane %v7730_v50, 7  ;;  %v5443_v37 = vsel %vm966_vm3, 1.0, %v11866_v54  ;;  %vm11491_vm11 = vcmp.ge.s32.totalorder %v7728_v8, 1 }
  0x35   : > { %11871 = vst [vmem:[#allocation35_spill] sm:$0xff] %v7740_v56  ;;  %11872 = vst [vmem:[#allocation36_spill] sm:$0xff] %v7742_v59  ;;  %v586_v34 = vrot.slane %v7740_v56, 7  ;;  %v6492_v32 = vpack.i.bf16 %v5443_v37, %v5442_v61  ;;  %v11874_v2 = vrot.slane %v7732_v41, 7  ;;  %v11875_v55 = vrot.slane %v7588_v26, 7 }
  0x36   : > { %vm963_vm8 = vmand %vm11587_vm10, %vm11492_vm14  ;;  %v5861_v8 = vunpack.c.l.bf16 %v5919_v63  ;;  %v11878_v7 = vrot.slane %v7742_v59, 7  ;;  %v11879_v23 = vrot.slane %v7627_v19, 7  ;;  %v5862_v56 = vunpack.c.h.bf16 %v5919_v63 }
  0x37   : > { %vm964_vm3 = vmand %vm11532_vm9, %vm11491_vm11  ;;  %v5440_v39 = vsel %vm963_vm8, 1.0, %v11866_v54  ;;  %v635_v17 = vsel %vm604_vm4, %v570_v58, %v11874_v2  ;;  %v636_v61 = vsel %vm604_vm4, %v11875_v55, %v570_v58  ;;  %6493 = vperm.xlu1 %6446, %v6492_v32   ;;  %v5893_v32 = vunpack.c.l.bf16 %v5927_v25 }
  0x38   : > { %v5441_v37 = vsel %vm964_vm3, 1.0, %v11866_v54  ;;  %v7796_v10 = vpack.c.bf16 %v635_v17, %v636_v61  ;;  %v619_v2 = vsel %vm604_vm4, %v586_v34, %v11878_v7  ;;  %v620_v55 = vsel %vm604_vm4, %v11879_v23, %v586_v34  ;;  %v7814_v17 = vld [vmem:[%s11392_s6 + $0xc8] sm:$0xff]  ;;  %v7081_v34 = vld [vmem:[%s11390_s4 + $0x18] sm:$0xff]  }
  0x39   : > { %v6487_v58 = vpack.i.bf16 %v5441_v37, %v5440_v39  ;;  %11881 = vst [vmem:[#allocation41_spill] sm:$0xff] %v7814_v17  ;;  %v7082_v7 = vld [vmem:[%s11390_s4 + $0x28] sm:$0xff]   ;;  %v7819_v61 = vpack.c.bf16 %v619_v2, %v620_v55  ;;  %v405_v23 = vmul.f32 %v5861_v8, %v7512_v62  ;;  %v7825_v39 = vld [vmem:[%s11393_s7 + $0xc0] sm:$0xff]  ;;  %v5894_v37 = vunpack.c.h.bf16 %v5927_v25  ;;  %v5920_v55 = vld [vmem:[%s7465_s10 + $0x10] sm:$0xff]  }
  0x3a   : > { %11877 = vst [vmem:[#allocation39_spill] sm:$0xff] %v7796_v10  ;;  %11883 = vst [vmem:[#allocation43_spill] sm:$0xff] %v7825_v39  ;;  %6101 = vmatmul.mubr.msk.bf16.vlgmr.msra.gmra.mrb[0].mxu0 %vm11732_vm2, %v7796_v10  ;;  %vm11495_vm5 = vcmp.ge.s32.totalorder %v7763_v33, 1  ;;  %vm11509_vm8 = vcmp.ge.s32.totalorder %v7768_v31, 1  ;;  %vm11494_vm3 = vcmp.ge.s32.totalorder %v7780_v4, 1  ;;  %v7838_v8 = vld [vmem:[%s11393_s7 + $0xc8] sm:$0xff]  ;;  %v406_v63 = vmul.f32 %v5862_v56, %v7512_v62 }
  0x3b   : > { %11882 = vst [vmem:[#allocation42_spill] sm:$0xff] %v7819_v61  ;;  %6488 = vperm.xlu0 %6435, %v6487_v58   ;;  %11884 = vst [vmem:[#allocation44_spill] sm:$0xff] %v7838_v8  ;;  %6117 = vmatmul.mubr.msk.bf16.vlgmr.msra.gmra.mrb[0].mxu1 %vm11732_vm2, %v7819_v61  ;;  %v444_v25 = vadd.f32 %v7523_v12, %v405_v23  ;;  %v421_v2 = vmul.f32 %v5893_v32, %v7512_v62  ;;  %vm11502_vm11 = vcmp.ge.s32.totalorder %v7794_v14, 1  ;;  %v7855_v58 = vld [vmem:[%s11390_s4 + $0x30] sm:$0xff]   ;;  %v7869_v23 = vld [vmem:[%s11390_s4 + $0x40] sm:$0xff]  }
  0x3c   : > { %6169 = vmatpush3.bf16.msra.mxu0 %v7595_v30  ;;  %vm969_vm14 = vmand %vm11495_vm5, %vm11494_vm3  ;;  %11885 = vst [vmem:[#allocation45_spill] sm:$0xff] %v7855_v58  ;;  %6133 = vmatpush3.bf16.msra.mxu1 %v7548_v38  ;;  %v422_v30 = vmul.f32 %v5894_v37, %v7512_v62  ;;  %vm11531_vm3 = vcmp.ge.s32.totalorder %v7809_v21, 1  ;;  %vm11530_vm5 = vcmp.ge.s32.totalorder %v7814_v17, 1  ;;  %v445_v38 = vadd.f32 %v7523_v12, %v406_v63  ;;  %v5928_v4 = vld [vmem:[%s7465_s10 + $0x50] sm:$0xff]  }
  0x3d   : > { %vm970_vm15 = vmand %vm11509_vm8, %vm11502_vm11  ;;  %v5446_v56 = vsel %vm969_vm14, 1.0, %v11866_v54  ;;  %6170 = vmatprep.subr.bf16.mxu0 %v7082_v7  ;;  %11886 = vst [vmem:[#allocation46_spill] sm:$0xff] %v7869_v23  ;;  %v7872_v32 = vmax.f32 %v444_v25, 0.0  ;;  %v460_v37 = vadd.f32 %v7523_v12, %v421_v2  ;;  %6134 = vmatprep.subr.bf16.mxu1 %v7081_v34  ;;  %vm11529_vm14 = vcmp.ge.s32.totalorder %v7825_v39, 1 }
  0x3e   : > { %v5447_v61 = vsel %vm970_vm15, 1.0, %v11866_v54  ;;  %v461_v10 = vadd.f32 %v7523_v12, %v422_v30  ;;  %vm11528_vm11 = vcmp.ge.s32.totalorder %v7838_v8, 1  ;;  %v7880_v19 = vmax.f32 %v445_v38, 0.0  ;;  %vm967_vm15 = vmand %vm11531_vm3, %vm11529_vm14  ;;  %v7900_v38 = vld [vmem:[%s11392_s6 + $0xf0] sm:$0xff] }
  0x3f   : > { %v6502_v14 = vpack.i.bf16 %v5447_v61, %v5446_v56  ;;  %v572_v9 = vrot.slane %v7872_v32, 7  ;;  %v7884_v25 = vmax.f32 %v460_v37, 0.0  ;;  %vm968_vm8 = vmand %vm11530_vm5, %vm11528_vm11  ;;  %v5444_v2 = vsel %vm967_vm15, 1.0, %v11866_v54 }
  0x40   : > { %6171 = vmatpush3.bf16.msra.mxu0 %v7082_v7  ;;  %v7890_v61 = vmax.f32 %v461_v10, 0.0  ;;  %v5865_v30 = vunpack.c.l.bf16 %v5920_v55  ;;  %v5866_v56 = vunpack.c.h.bf16 %v5920_v55  ;;  %6135 = vmatpush3.bf16.msra.mxu1 %v7081_v34  ;;  %v573_v7 = vrot.slane %v7880_v19, 7  ;;  %v7912_v55 = vld [vmem:[%s11392_s6 + $0xf8] sm:$0xff]  ;;  %v7917_v34 = vld [vmem:[%s11393_s7 + $0xf0] sm:$0xff] }
  0x41   : > { %11887 = vst [vmem:[#allocation47_spill] sm:$0xff] %v7884_v25  ;;  %6503 = vperm.xlu1 %6446, %v6502_v14   ;;  %v11889_v10 = vrot.slane %v7732_v41, 7  ;;  %v588_v37 = vrot.slane %v7884_v25, 7  ;;  %v5445_v63 = vsel %vm968_vm8, 1.0, %v11866_v54  ;;  %11890 = vst [vmem:[#allocation49_spill] sm:$0xff] %v7912_v55  ;;  %6204 = vmatprep.subr.bf16.mxu1 %v7855_v58  ;;  %vm11534_vm8 = vcmp.ge.s32.totalorder %v7900_v38, 1 }
  0x42   : > { %11888 = vst [vmem:[#allocation48_spill] sm:$0xff] %v7890_v61  ;;  %11891 = vst [vmem:[#allocation50_spill] sm:$0xff] %v7917_v34  ;;  %6240 = vmatprep.subr.bf16.mxu0 %v7869_v23  ;;  %v6497_v8 = vpack.i.bf16 %v5445_v63, %v5444_v2  ;;  %v407_v39 = vmul.f32 %v5865_v30, %v7512_v62  ;;  %v408_v25 = vmul.f32 %v5866_v56, %v7512_v62  ;;  %v7943_v56 = vld [vmem:[%s11392_s6 + $0xe8] sm:$0xff] }
  0x43   : > { %v634_v14 = vsel %vm604_vm4, %v11889_v10, %v572_v9  ;;  %v589_v10 = vrot.slane %v7890_v61, 7  ;;  %v633_v58 = vsel %vm604_vm4, %v572_v9, %v573_v7  ;;  %v11894_v61 = vrot.slane %v7742_v59, 7  ;;  %11895 = vst [vmem:[#allocation53_spill] sm:$0xff] %v7943_v56 }
  0x44   : > { %v5897_v2 = vunpack.c.l.bf16 %v5928_v4  ;;  %v5898_v30 = vunpack.c.h.bf16 %v5928_v4  ;;  %v7945_v23 = vpack.c.bf16 %v633_v58, %v634_v14  ;;  %6498 = vperm.xlu0 %6435, %v6497_v8   ;;  %v446_v9 = vadd.f32 %v7523_v12, %v407_v39  ;;  %v7959_v58 = vld [vmem:[%s11393_s7 + $0xe0] sm:$0xff] }
  0x45   : > { %v618_v63 = vsel %vm604_vm4, %v11894_v61, %v588_v37  ;;  %v617_v17 = vsel %vm604_vm4, %v588_v37, %v589_v10  ;;  %v447_v59 = vadd.f32 %v7523_v12, %v408_v25  ;;  %11898 = vst [vmem:[#allocation56_spill] sm:$0xff] %v7959_v58  ;;  %vm910_vm15 = vcmp.ge.s32.totalorder %v7912_v55, 1 }
  0x46   : > { %11896 = vst [vmem:[#allocation54_spill] sm:$0xff] %v7945_v23  ;;  %v7951_v21 = vpack.c.bf16 %v617_v17, %v618_v63  ;;  %v423_v61 = vmul.f32 %v5897_v2, %v7512_v62  ;;  %v424_v4 = vmul.f32 %v5898_v30, %v7512_v62  ;;  %6104 = vmatprep.mubr.msk.bf16.mxu0 %vm11732_vm2, %v7945_v23  ;;  %v7963_v8 = vmax.f32 %v446_v9, 0.0 }
  0x47   : > { %v7965_v39 = vmax.f32 %v447_v59, 0.0  ;;  %vm11533_vm11 = vcmp.ge.s32.totalorder %v7917_v34, 1  ;;  %vm11543_vm14 = vcmp.ge.s32.totalorder %v7927_v20, 1  ;;  %v7981_v59 = vld [vmem:[%s11393_s7 + $0xe8] sm:$0xff]  ;;  %vm907_vm3 = vcmp.ge.s32.totalorder %v7932_v18, 1  ;;  %v5930_v18 = vld [vmem:[%s7465_s10 + $0x60] sm:$0xff]  }
  0x48   : > { %11897 = vst [vmem:[#allocation55_spill] sm:$0xff] %v7951_v21  ;;  %6120 = vmatprep.mubr.msk.bf16.mxu1 %vm11732_vm2, %v7951_v21  ;;  %v462_v17 = vadd.f32 %v7523_v12, %v423_v61  ;;  %v463_v25 = vadd.f32 %v7523_v12, %v424_v4  ;;  %vm973_vm5 = vmand %vm11534_vm8, %vm11533_vm11  ;;  %v574_v14 = vrot.slane %v7963_v8, 7  ;;  %vm908_vm11 = vcmp.ge.s32.totalorder %v7943_v56, 1  ;;  %v5921_v61 = vld [vmem:[%s7465_s10 + $0x18] sm:$0xff]   ;;  %v5922_v56 = vld [vmem:[%s7465_s10 + $0x20] sm:$0xff]  }
  0x49   : > { %11899 = vst [vmem:[#allocation57_spill] sm:$0xff] %v7981_v59  ;;  %v11544_v37 = vrot.slane %v7965_v39, 7  ;;  %vm974_vm9 = vmand %vm910_vm15, %vm11543_vm14  ;;  %v5450_v63 = vsel %vm973_vm5, 1.0, %v11866_v54  ;;  %vm11581_vm8 = vcmp.ge.s32.totalorder %v7959_v58, 1  ;;  %v5929_v4 = vld [vmem:[%s7465_s10 + $0x58] sm:$0xff]   ;;  %vm11580_vm5 = vcmp.ge.s32.totalorder %v7981_v59, 1 }
  0x4a   : > { %v7992_v2 = vmax.f32 %v462_v17, 0.0  ;;  %v7994_v30 = vmax.f32 %v463_v25, 0.0  ;;  %v5451_v9 = vsel %vm974_vm9, 1.0, %v11866_v54  ;;  %v632_v23 = vsel %vm604_vm4, %v573_v7, %v574_v14  ;;  %vm971_vm9 = vmand %vm907_vm3, %vm11581_vm8 }
  0x4b   : > { %v631_v21 = vsel %vm604_vm4, %v574_v14, %v11544_v37  ;;  %v6512_v20 = vpack.i.bf16 %v5451_v9, %v5450_v63  ;;  %vm972_vm14 = vmand %vm908_vm11, %vm11580_vm5  ;;  %v5448_v7 = vsel %vm971_vm9, 1.0, %v11866_v54  ;;  %v5869_v63 = vunpack.c.l.bf16 %v5921_v61 }
  0x4c   : > { %11900 = vst [vmem:[#allocation58_spill] sm:$0xff] %v7992_v2  ;;  %11901 = vst [vmem:[#allocation59_spill] sm:$0xff] %v7994_v30  ;;  %v8011_v17 = vpack.c.bf16 %v631_v21, %v632_v23  ;;  %v590_v25 = vrot.slane %v7992_v2, 7  ;;  %v591_v34 = vrot.slane %v7994_v30, 7  ;;  %v5449_v14 = vsel %vm972_vm14, 1.0, %v11866_v54 }
  0x4d   : > { %6513 = vperm.xlu1 %6446, %v6512_v20   ;;  %v5870_v9 = vunpack.c.h.bf16 %v5921_v61  ;;  %v5901_v21 = vunpack.c.l.bf16 %v5929_v4  ;;  %v6507_v59 = vpack.i.bf16 %v5449_v14, %v5448_v7  ;;  %v5902_v58 = vunpack.c.h.bf16 %v5929_v4 }
  0x4e   : > { %11902 = vst [vmem:[#allocation60_spill] sm:$0xff] %v8011_v17  ;;  %6105 = vmatmul.mubr.msk.bf16.gmra.mrb[4].mxu0 %vm11732_vm2, %v8011_v17  ;;  %v615_v23 = vsel %vm604_vm4, %v590_v25, %v591_v34  ;;  %v616_v37 = vsel %vm604_vm4, %v589_v10, %v590_v25  ;;  %v409_v20 = vmul.f32 %v5869_v63, %v7512_v62  ;;  %v5474_v10 = vsel %vm879_vm6, 1.0, %v11866_v54 }
  0x4f   : > { %v8027_v30 = vpack.c.bf16 %v615_v23, %v616_v37  ;;  %v410_v2 = vmul.f32 %v5870_v9, %v7512_v62  ;;  %v425_v61 = vmul.f32 %v5901_v21, %v7512_v62  ;;  %6508 = vperm.xlu0 %6435, %v6507_v59   ;;  %v426_v17 = vmul.f32 %v5902_v58, %v7512_v62 }
  0x50   : > { %v6522_v55 = vpack.i.bf16 %v7531_v16, %v7443_v46  ;;  %v5475_v37 = vsel %vm880_vm7, 1.0, %v11866_v54  ;;  %v448_v4 = vadd.f32 %v7523_v12, %v409_v20  ;;  %v5873_v16 = vunpack.c.l.bf16 %v5922_v56 }
  0x51   : > { %11903 = vst [vmem:[#allocation61_spill] sm:$0xff] %v8027_v30  ;;  %6121 = vmatmul.mubr.msk.bf16.gmra.mrb[4].mxu1 %vm11732_vm2, %v8027_v30  ;;  %v449_v59 = vadd.f32 %v7523_v12, %v410_v2  ;;  %v464_v58 = vadd.f32 %v7523_v12, %v425_v61  ;;  %v6517_v25 = vpack.i.bf16 %v5475_v37, %v5474_v10  ;;  %v5874_v7 = vunpack.c.h.bf16 %v5922_v56 }
  0x52   : > { %v465_v46 = vadd.f32 %v7523_v12, %v426_v17  ;;  %6523 = vperm.xlu1 %6446, %v6522_v55   ;;  %v5905_v14 = vunpack.c.l.bf16 %v5930_v18  ;;  %v8049_v63 = vmax.f32 %v448_v4, 0.0  ;;  %v5906_v23 = vunpack.c.h.bf16 %v5930_v18 }
  0x53   : > { %v8051_v9 = vmax.f32 %v449_v59, 0.0  ;;  %v8053_v21 = vmax.f32 %v464_v58, 0.0  ;;  %6518 = vperm.xlu0 %6435, %v6517_v25   ;;  %v411_v2 = vmul.f32 %v5873_v16, %v7512_v62  ;;  %v412_v20 = vmul.f32 %v5874_v7, %v7512_v62 }
  0x54   : > { %v8055_v30 = vmax.f32 %v465_v46, 0.0  ;;  %v427_v17 = vmul.f32 %v5905_v14, %v7512_v62  ;;  %v576_v55 = vrot.slane %v8049_v63, 7  ;;  %v428_v10 = vmul.f32 %v5906_v23, %v7512_v62 }
  0x55   : > { %11904 = vst [vmem:[#allocation62_spill] sm:$0xff] %v8053_v21  ;;  %v577_v56 = vrot.slane %v8051_v9, 7  ;;  %v592_v61 = vrot.slane %v8053_v21, 7  ;;  %v450_v18 = vadd.f32 %v7523_v12, %v411_v2  ;;  %v451_v4 = vadd.f32 %v7523_v12, %v412_v20 }
  0x56   : > { %11905 = vst [vmem:[#allocation63_spill] sm:$0xff] %v8055_v30  ;;  %v593_v37 = vrot.slane %v8055_v30, 7  ;;  %v466_v59 = vadd.f32 %v7523_v12, %v427_v17  ;;  %v11906_v25 = vrot.slane %v7965_v39, 7  ;;  %v467_v7 = vadd.f32 %v7523_v12, %v428_v10  ;;  %v5923_v10 = vld [vmem:[%s7465_s10 + $0x28] sm:$0xff]  }
  0x57   : > { %v629_v58 = vsel %vm604_vm4, %v576_v55, %v577_v56  ;;  %v614_v16 = vsel %vm604_vm4, %v591_v34, %v592_v61  ;;  %v8081_v2 = vmax.f32 %v450_v18, 0.0  ;;  %v8083_v20 = vmax.f32 %v451_v4, 0.0 }
  0x58   : > { %v630_v46 = vsel %vm604_vm4, %v11906_v25, %v576_v55  ;;  %v613_v23 = vsel %vm604_vm4, %v592_v61, %v593_v37  ;;  %v8087_v30 = vmax.f32 %v466_v59, 0.0  ;;  %v8089_v55 = vmax.f32 %v467_v7, 0.0  ;;  %v5931_v7 = vld [vmem:[%s7465_s10 + $0x68] sm:$0xff]   ;;  %s7161_s10 = smov 4  }
  0x59   : > { %v8077_v14 = vpack.c.bf16 %v629_v58, %v630_v46  ;;  %11908 = vst [vmem:[#allocation65_spill] sm:$0xff] %v8083_v20  ;;  %v8085_v17 = vpack.c.bf16 %v613_v23, %v614_v16  ;;  %v5480_v34 = vsel %vm11586_vm12, 1.0, %v11866_v54  ;;  %v578_v61 = vrot.slane %v8081_v2, 7 }
  0x5a   : > { %11910 = vst [vmem:[#allocation67_spill] sm:$0xff] %v8087_v30  ;;  %11911 = vst [vmem:[#allocation68_spill] sm:$0xff] %v8089_v55  ;;  %v579_v18 = vrot.slane %v8083_v20, 7  ;;  %v5481_v4 = vsel %vm11582_vm13, 1.0, %v11866_v54  ;;  %v5478_v59 = vsel %vm883_vm0, 1.0, %v11866_v54  ;;  %v594_v58 = vrot.slane %v8087_v30, 7 }
  0x5b   : > { %11907 = vst [vmem:[#allocation64_spill] sm:$0xff] %v8077_v14  ;;  %11909 = vst [vmem:[#allocation66_spill] sm:$0xff] %v8085_v17  ;;  %6108 = vmatprep.mubr.msk.bf16.mxu0 %vm11732_vm2, %v8077_v14  ;;  %6124 = vmatprep.mubr.msk.bf16.mxu1 %vm11732_vm2, %v8085_v17  ;;  %v595_v25 = vrot.slane %v8089_v55, 7  ;;  %v6532_v46 = vpack.i.bf16 %v5481_v4, %v5480_v34  ;;  %vm11912_vm14 = vcmp.ge.s32.totalorder %v7223_v1, 1  ;;  %v5877_v13 = vunpack.c.l.bf16 %v5923_v10 }
  0x5c   : > { %v5479_v16 = vsel %vm11912_vm14, 1.0, %v11866_v54  ;;  %v627_v23 = vsel %vm604_vm4, %v578_v61, %v579_v18  ;;  %v628_v14 = vsel %vm604_vm4, %v577_v56, %v578_v61  ;;  %v612_v34 = vsel %vm604_vm4, %v593_v37, %v594_v58 }
  0x5d   : > { %v6527_v21 = vpack.i.bf16 %v5479_v16, %v5478_v59  ;;  %v8117_v11 = vpack.c.bf16 %v627_v23, %v628_v14  ;;  %v611_v17 = vsel %vm604_vm4, %v594_v58, %v595_v25  ;;  %6533 = vperm.xlu1 %6446, %v6532_v46   ;;  %v5878_v4 = vunpack.c.h.bf16 %v5923_v10 }
  0x5e   : > { %v8123_v55 = vpack.c.bf16 %v611_v17, %v612_v34  ;;  %v413_v30 = vmul.f32 %v5877_v13, %v7512_v62  ;;  %v5909_v1 = vunpack.c.l.bf16 %v5931_v7  ;;  %v5910_v20 = vunpack.c.h.bf16 %v5931_v7 }
  0x5f   : > { %11913 = vst [vmem:[#allocation69_spill] sm:$0xff] %v8117_v11  ;;  %6528 = vperm.xlu0 %6435, %v6527_v21   ;;  %6109 = vmatmul.mubr.msk.bf16.gmra.mrb[8].mxu0 %vm11732_vm2, %v8117_v11  ;;  %v414_v56 = vmul.f32 %v5878_v4, %v7512_v62  ;;  %vm11915_vm9 = vcmp.ge.s32.totalorder %v7354_v27, 1  ;;  %vm11916_vm14 = vcmp.ge.s32.totalorder %v7359_v28, 1  ;;  %vm11917_vm5 = vcmp.ge.s32.totalorder %v7389_v35, 1 }
  0x60   : > { %11914 = vst [vmem:[#allocation70_spill] sm:$0xff] %v8123_v55  ;;  %v5484_v14 = vsel %vm11915_vm9, 1.0, %v11866_v54  ;;  %v5485_v37 = vsel %vm11916_vm14, 1.0, %v11866_v54  ;;  %v5482_v21 = vsel %vm11917_vm5, 1.0, %v11866_v54  ;;  %6125 = vmatmul.mubr.msk.bf16.gmra.mrb[8].mxu1 %vm11732_vm2, %v8123_v55  ;;  %v452_v13 = vadd.f32 %v7523_v12, %v413_v30 }
  0x61   : > { %v429_v17 = vmul.f32 %v5909_v1, %v7512_v62  ;;  %v430_v10 = vmul.f32 %v5910_v20, %v7512_v62  ;;  %v6542_v61 = vpack.i.bf16 %v5485_v37, %v5484_v14  ;;  %v453_v59 = vadd.f32 %v7523_v12, %v414_v56 }
  0x62   : > { %vm11918_vm9 = vcmp.ge.s32.totalorder %v7394_v36, 1  ;;  %v11919_v46 = vunpack.c.l.bf16 %v7526_v15  ;;  %v11920_v7 = vunpack.c.l.bf16 %v7498_v57  ;;  %v8153_v30 = vmax.f32 %v452_v13, 0.0 }
  0x63   : > { %v5483_v58 = vsel %vm11918_vm9, 1.0, %v11866_v54  ;;  %v468_v1 = vadd.f32 %v7523_v12, %v429_v17  ;;  %v469_v20 = vadd.f32 %v7523_v12, %v430_v10  ;;  %6543 = vperm.xlu1 %6446, %v6542_v61   ;;  %v8157_v4 = vmax.f32 %v453_v59, 0.0 }
  0x64   : > { %v415_v16 = vmul.f32 %v11919_v46, %v7512_v62  ;;  %v431_v23 = vmul.f32 %v11920_v7, %v7512_v62  ;;  %v6537_v34 = vpack.i.bf16 %v5483_v58, %v5482_v21  ;;  %vm11921_vm5 = vcmp.ge.s32.totalorder %v7430_v43, 1 }
  0x65   : > { %v5488_v15 = vsel %vm11921_vm5, 1.0, %v11866_v54  ;;  %v580_v57 = vrot.slane %v8153_v30, 7  ;;  %v8165_v62 = vmax.f32 %v468_v1, 0.0  ;;  %v8167_v37 = vmax.f32 %v469_v20, 0.0 }
  0x66   : > { %v454_v56 = vadd.f32 %v7523_v12, %v415_v16  ;;  %v470_v14 = vadd.f32 %v7523_v12, %v431_v23  ;;  %6538 = vperm.xlu0 %6435, %v6537_v34   ;;  %vm11922_vm14 = vcmp.ge.s32.totalorder %v7435_v44, 1  ;;  %v581_v13 = vrot.slane %v8157_v4, 7 }
  0x67   : > { %v5489_v21 = vsel %vm11922_vm14, 1.0, %v11866_v54  ;;  %v626_v61 = vsel %vm604_vm4, %v579_v18, %v580_v57  ;;  %v596_v59 = vrot.slane %v8165_v62, 7  ;;  %v597_v58 = vrot.slane %v8167_v37, 7 }
  0x68   : > { %v8173_v17 = vmax.f32 %v454_v56, 0.0  ;;  %v8175_v12 = vmax.f32 %v470_v14, 0.0  ;;  %v6552_v10 = vpack.i.bf16 %v5489_v21, %v5488_v15  ;;  %vm11923_vm9 = vcmp.ge.s32.totalorder %v7473_v52, 1  ;;  %v8200_v14 = vld [vmem:[%s11393_s7] sm:$0xff] }
  0x69   : > { %v5486_v46 = vsel %vm11923_vm9, 1.0, %v11866_v54  ;;  %v625_v16 = vsel %vm604_vm4, %v580_v57, %v581_v13  ;;  %vm11924_vm5 = vcmp.ge.s32.totalorder %v7478_v53, 1  ;;  %v609_v20 = vsel %vm604_vm4, %v596_v59, %v597_v58  ;;  %11926 = vst [vmem:[#allocation72_spill] sm:$0xff] %v8200_v14 }
  0x6a   : > { %v582_v7 = vrot.slane %v8173_v17, 7  ;;  %v598_v23 = vrot.slane %v8175_v12, 7  ;;  %6553 = vperm.xlu1 %6446, %v6552_v10   ;;  %v5487_v18 = vsel %vm11924_vm5, 1.0, %v11866_v54  ;;  %v8191_v1 = vpack.c.bf16 %v625_v16, %v626_v61 }
  0x6b   : > { %v610_v34 = vsel %vm604_vm4, %v595_v25, %v596_v59  ;;  %v6547_v56 = vpack.i.bf16 %v5487_v18, %v5486_v46  ;;  %vm11655_vm14 = vcmp.le.s32.totalorder %v8200_v14, 14  ;;  %v11928_v57 = vrot.slane %v7607_v48, 7 }
  0x6c   : > { %11925 = vst [vmem:[#allocation71_spill] sm:$0xff] %v8191_v1  ;;  %v8203_v15 = vpack.c.bf16 %v609_v20, %v610_v34  ;;  %v624_v10 = vsel %vm604_vm4, %v581_v13, %v582_v7  ;;  %v11929_v25 = vrot.slane %v7576_v3, 7  ;;  %6112 = vmatprep.mubr.msk.bf16.mxu0 %vm11732_vm2, %v8191_v1  ;;  %v608_v46 = vsel %vm604_vm4, %v597_v58, %v598_v23  ;;  %v8236_v58 = vld [vmem:[%s11393_s7 + $0x20] sm:$0xff] }
  0x6d   : > { %v623_v21 = vsel %vm604_vm4, %v582_v7, %v11928_v57  ;;  %6548 = vperm.xlu0 %6435, %v6547_v56   ;;  %v8223_v16 = vpack.c.bf16 %v7588_v26, %v7586_v24  ;;  %v1761_v13 = vrot.slane %v7730_v50, 1  ;;  %v1762_v18 = vrot.slane %v7732_v41, 1  ;;  %11933 = vst [vmem:[#allocation77_spill] sm:$0xff] %v8236_v58 }
  0x6e   : > { %11927 = vst [vmem:[#allocation73_spill] sm:$0xff] %v8203_v15  ;;  %v607_v61 = vsel %vm604_vm4, %v598_v23, %v11929_v25  ;;  %v8217_v59 = vpack.c.bf16 %v623_v21, %v624_v10  ;;  %6128 = vmatprep.mubr.msk.bf16.mxu1 %vm11732_vm2, %v8203_v15  ;;  %v11583_v20 = vrot.slane %v7586_v24, 1  ;;  %v1792_v34 = vrot.slane %v7588_v26, 1 }
  0x6f   : > { %11931 = vst [vmem:[#allocation75_spill] sm:$0xff] %v8223_v16  ;;  %v8228_v7 = vpack.c.bf16 %v607_v61, %v608_v46  ;;  %vm11611_vm4 = vcmp.le.s32.totalorder %v8236_v58, 14  ;;  %vm1793_vm9 = vcmp.lt.s32.totalorder %v7438_v45, 7  ;;  %vm11934_vm5 = vcmp.ge.s32.totalorder %v7553_v40, 1  ;;  %v8264_v61 = vld [vmem:[%s11393_s7 + $0x8] sm:$0xff]  ;;  %v11975_v58 = vld [vmem:[#allocation2_spill] sm:$0xff] }
  0x70   : > { %11930 = vst [vmem:[#allocation74_spill] sm:$0xff] %v8217_v59  ;;  %6113 = vmatmul.mubr.msk.bf16.gmra.mrb[12].mxu0 %vm11732_vm2, %v8217_v59  ;;  %v5492_v23 = vsel %vm11934_vm5, 1.0, %v11866_v54  ;;  %vm11935_vm8 = vcmp.ge.s32.totalorder %v7559_v51, 1  ;;  %vm11936_vm13 = vcmp.ge.s32.totalorder %v7584_v22, 1  ;;  %v1794_v57 = vsel %vm1793_vm9, %v11583_v20, %v1792_v34  ;;  %11937 = vst [vmem:[#allocation78_spill] sm:$0xff] %v8264_v61 }
  0x71   : > { %11932 = vst [vmem:[#allocation76_spill] sm:$0xff] %v8228_v7  ;;  %v5493_v26 = vsel %vm11935_vm8, 1.0, %v11866_v54  ;;  %v5490_v56 = vsel %vm11936_vm13, 1.0, %v11866_v54  ;;  %6129 = vmatmul.mubr.msk.bf16.gmra.mrb[12].mxu1 %vm11732_vm2, %v8228_v7  ;;  %v1824_v21 = vsel %vm1793_vm9, %v1761_v13, %v1762_v18  ;;  %v1825_v10 = vsel %vm1793_vm9, %v1792_v34, %v1761_v13  ;;  %v8281_v34 = vld [vmem:[%s11393_s7 + $0x28] sm:$0xff] }
  0x72   : > { %v6562_v25 = vpack.i.bf16 %v5493_v26, %v5492_v23  ;;  %vm11617_vm13 = vcmp.le.s32.totalorder %v8264_v61, 14  ;;  %6136 = vmatprep.mubr.msk.bf16.mxu1 %vm11732_vm2, %v8223_v16  ;;  %v8269_v46 = vpack.c.bf16 %v1825_v10, %v1794_v57  ;;  %vm11939_vm8 = vcmp.ge.s32.totalorder %v7617_v60, 1 }
  0x73   : > { %v5491_v20 = vsel %vm11939_vm8, 1.0, %v11866_v54  ;;  %v11940_v7 = vrot.slane %v7872_v32, 1  ;;  %vm11616_vm5 = vcmp.le.s32.totalorder %v8281_v34, 14  ;;  %v8286_v26 = vpack.c.bf16 %v7732_v41, %v7730_v50 }
  0x74   : > { %11938 = vst [vmem:[#allocation79_spill] sm:$0xff] %v8269_v46  ;;  %6563 = vperm.xlu1 %6446, %v6562_v25   ;;  %v6557_v23 = vpack.i.bf16 %v5491_v20, %v5490_v56  ;;  %vm11942_vm8 = vcmp.ge.s32.totalorder %v7657_v42, 1  ;;  %6172 = vmatprep.mubr.msk.bf16.mxu0 %vm11732_vm2, %v8269_v46  ;;  %v5494_v20 = vsel %vm11587_vm10, 1.0, %v11866_v54  ;;  %vm11944_vm12 = vcmp.ge.s32.totalorder %v7709_v47, 1  ;;  %v11950_v46 = vld [vmem:[#allocation41_spill] sm:$0xff] }
  0x75   : > { %v1823_v13 = vsel %vm1793_vm9, %v1762_v18, %v11940_v7  ;;  %11941 = vst [vmem:[#allocation80_spill] sm:$0xff] %v8286_v26  ;;  %v5496_v57 = vsel %vm11942_vm8, 1.0, %v11866_v54  ;;  %v5497_v7 = vsel %vm11590_vm1, 1.0, %v11866_v54  ;;  %v5495_v50 = vsel %vm11944_vm12, 1.0, %v11866_v54 }
  0x76   : > { %v8296_v18 = vpack.c.bf16 %v1823_v13, %v1824_v21  ;;  %v6572_v10 = vpack.i.bf16 %v5497_v7, %v5496_v57  ;;  %6558 = vperm.xlu0 %6435, %v6557_v23   ;;  %v8306_v41 = vpack.c.bf16 %v7880_v19, %v7872_v32  ;;  %v1764_v56 = vrot.slane %v7880_v19, 1  ;;  %v11948_v7 = vld [vmem:[#allocation40_spill] sm:$0xff] }
  0x77   : > { %v1765_v25 = vrot.slane %v7963_v8, 1  ;;  %vm11946_vm8 = vcmp.ge.s32.totalorder %v7763_v33, 1  ;;  %v6567_v13 = vpack.i.bf16 %v5495_v50, %v5494_v20  ;;  %vm11947_vm10 = vcmp.ge.s32.totalorder %v7768_v31, 1 }
  0x78   : > { %11943 = vst [vmem:[#allocation81_spill] sm:$0xff] %v8296_v18  ;;  %11945 = vst [vmem:[#allocation82_spill] sm:$0xff] %v8306_v41  ;;  %v5500_v21 = vsel %vm11946_vm8, 1.0, %v11866_v54  ;;  %v5501_v57 = vsel %vm11947_vm10, 1.0, %v11866_v54  ;;  %vm11949_vm12 = vcmp.ge.s32.totalorder %v11948_v7, 1  ;;  %vm11951_vm1 = vcmp.ge.s32.totalorder %v11950_v46, 1  ;;  %6573 = vperm.xlu1 %6446, %v6572_v10   ;;  %6173 = vmatmul.mubr.msk.bf16.vlgmr.msra.gmra.mrb[16].mxu0 %vm11732_vm2, %v8296_v18 }
  0x79   : > { %v5498_v23 = vsel %vm11949_vm12, 1.0, %v11866_v54  ;;  %v5499_v16 = vsel %vm11951_vm1, 1.0, %v11866_v54  ;;  %v1821_v19 = vsel %vm1793_vm9, %v1764_v56, %v1765_v25  ;;  %v11952_v15 = vrot.slane %v7872_v32, 1  ;;  %vm8345_vm1 = vmand %vm879_vm6, %vm11655_vm14  ;;  %6137 = vmatmul.mubr.msk.bf16.vlgmr.msra.gmra.mrb[16].mxu1 %vm11732_vm2, %v8286_v26 }
  0x7a   : > { %v6582_v50 = vpack.i.bf16 %v5501_v57, %v5500_v21  ;;  %v8330_v55 = vpack.c.bf16 %v7965_v39, %v7963_v8  ;;  %v1766_v10 = vrot.slane %v7965_v39, 1  ;;  %v1767_v1 = vrot.slane %v8049_v63, 1  ;;  %v11958_v39 = vld [vmem:[#allocation46_spill] sm:$0xff]  ;;  %vm8368_vm6 = vmand %vm880_vm7, %vm11617_vm13  ;;  %6568 = vperm.xlu0 %6435, %v6567_v13   ;;  %6140 = vmatprep.mubr.msk.bf16.mxu1 %vm11732_vm2, %v8306_v41 }
  0x7b   : > { %v1822_v20 = vsel %vm1793_vm9, %v11952_v15, %v1764_v56  ;;  %vm11955_vm10 = vcmp.ge.s32.totalorder %v7900_v38, 1  ;;  %v7085_v15 = vld [vmem:[%s11390_s4 + $0x38] sm:$0xff]   ;;  %6241 = vmatpush3.bf16.msra.mxu0 %v11958_v39  ;;  %v6577_v56 = vpack.i.bf16 %v5499_v16, %v5498_v23  ;;  %v5505_v57 = vsel %vm910_vm15, 1.0, %v11866_v54  ;;  %v7086_v16 = vld [vmem:[%s11390_s4 + $0x48] sm:$0xff]   ;;  %vm8402_vm8 = vmand %vm883_vm0, %vm11611_vm4 }
  0x7c   : > { %11953 = vst [vmem:[#allocation40_spill] sm:$0xff] %v8330_v55  ;;  %v8334_v59 = vpack.c.bf16 %v1821_v19, %v1822_v20  ;;  %v5504_v32 = vsel %vm11955_vm10, 1.0, %v11866_v54  ;;  %v5502_v19 = vsel %vm907_vm3, 1.0, %v11866_v54  ;;  %v5503_v18 = vsel %vm908_vm11, 1.0, %v11866_v54  ;;  %v11964_v23 = vld [vmem:[#allocation45_spill] sm:$0xff]  ;;  %6583 = vperm.xlu1 %6446, %v6582_v50   ;;  %6242 = vmatprep.subr.bf16.mxu0 %v7086_v16 }
  0x7d   : > { %6205 = vmatpush3.bf16.msra.mxu1 %v11964_v23  ;;  %v1819_v39 = vsel %vm1793_vm9, %v1766_v10, %v1767_v1  ;;  %v1820_v14 = vsel %vm1793_vm9, %v1765_v25, %v1766_v10  ;;  %v8382_v6 = vpack.c.bf16 %v8051_v9, %v8049_v63  ;;  %v1768_v61 = vrot.slane %v8051_v9, 1  ;;  %v8395_v25 = vld [vmem:[%s11393_s7 + $0x10] sm:$0xff]  ;;  %v8416_v10 = vld [vmem:[%s11393_s7 + $0x18] sm:$0xff] }
  0x7e   : > { %11954 = vst [vmem:[#allocation41_spill] sm:$0xff] %v8334_v59  ;;  %6176 = vmatprep.mubr.msk.bf16.mxu0 %vm11732_vm2, %v8334_v59  ;;  %v8389_v23 = vpack.c.bf16 %v1819_v39, %v1820_v14  ;;  %v6592_v13 = vpack.i.bf16 %v5505_v57, %v5504_v32  ;;  %v1769_v26 = vrot.slane %v8081_v2, 1  ;;  %vm2070_vm7 = vcmp.le.s32.totalorder %v8395_v25, 14  ;;  %v8409_v9 = vld [vmem:[%s11390_s4 + $0x50] sm:$0xff]   ;;  %6206 = vmatprep.subr.bf16.mxu1 %v7085_v15  ;;  %v8516_v63 = vld [vmem:[%s11393_s7 + $0x58] sm:$0xff] }
  0x7f   : > { %11965 = vst [vmem:[#allocation46_spill] sm:$0xff] %v8382_v6  ;;  %v1818_v14 = vsel %vm1793_vm9, %v1767_v1, %v1768_v61  ;;  %vm11666_vm12 = vcmp.le.s32.totalorder %v8416_v10, 14  ;;  %vm11970_vm0 = vcmp.ge.s32.totalorder %v11969_v0, 1  ;;  %v8426_v32 = vsel %vm8345_vm1, 1.0, %v11866_v54  ;;  %v11971_v39 = vld [vmem:[#allocation12_spill] sm:$0xff]  ;;  %6578 = vperm.xlu0 %6435, %v6577_v56   ;;  %6243 = vmatpush3.bf16.msra.mxu0 %v7086_v16  ;;  %v11980_v16 = vld [vmem:[#allocation7_spill] sm:$0xff] }
  0x80   : > { %11966 = vst [vmem:[#allocation49_spill] sm:$0xff] %v8389_v23  ;;  %vm2102_vm10 = vmand %vm11970_vm0, %vm2070_vm7  ;;  %v8431_v1 = vsel %vm8368_vm6, 1.0, %v11866_v54  ;;  %v6587_v50 = vpack.i.bf16 %v5503_v18, %v5502_v19  ;;  %v1817_v57 = vsel %vm1793_vm9, %v1768_v61, %v1769_v26  ;;  %vm11972_vm4 = vcmp.ge.s32.totalorder %v11971_v39, 1  ;;  %v11974_v18 = vld [vmem:[#allocation65_spill] sm:$0xff]  ;;  %6177 = vmatmul.mubr.msk.bf16.gmra.mrb[20].mxu0 %vm11732_vm2, %v8389_v23  ;;  %6593 = vperm.xlu1 %6446, %v6592_v13  }
  0x81   : > { %vm2103_vm0 = vmand %vm11972_vm4, %vm11666_vm12  ;;  %v5530_v0 = vsel %vm2102_vm10, 1.0, %v11866_v54  ;;  %v6597_v8 = vpack.i.bf16 %v8431_v1, %v8426_v32  ;;  %v8442_v11 = vpack.c.bf16 %v1817_v57, %v1818_v14  ;;  %v1770_v19 = vrot.slane %v11974_v18, 1  ;;  %6207 = vmatpush3.bf16.msra.mxu1 %v7085_v15  ;;  %v8462_v14 = vld [vmem:[%s11393_s7 + $0x30] sm:$0xff]  ;;  %v12210_v25 = vld [vmem:[#allocation9_spill] sm:$0xff] }
  0x82   : > { %v5531_v59 = vsel %vm2103_vm0, 1.0, %v11866_v54  ;;  %v1771_v61 = vrot.slane %v8153_v30, 1  ;;  %vm11976_vm1 = vcmp.ge.s32.totalorder %v11975_v58, 1  ;;  %v8457_v56 = vpack.c.bf16 %v11974_v18, %v8081_v2  ;;  %v8468_v58 = vld [vmem:[%s11393_s7 + $0x38] sm:$0xff]  ;;  %6276 = vmatprep.subr.bf16.mxu1 %v8409_v9  ;;  %v8475_v2 = vld [vmem:[%s11390_s4 + $0x60] sm:$0xff]   ;;  %6141 = vmatmul.mubr.msk.bf16.gmra.mrb[20].mxu1 %vm11732_vm2, %v8330_v55 }
  0x83   : > { %11973 = vst [vmem:[#allocation52_spill] sm:$0xff] %v8442_v11  ;;  %vm8451_vm4 = vmand %vm11976_vm1, %vm11616_vm5  ;;  %vm11626_vm6 = vcmp.le.s32.totalorder %v8462_v14, 14  ;;  %vm11625_vm10 = vcmp.le.s32.totalorder %v8468_v58, 14  ;;  %v6602_v15 = vpack.i.bf16 %v5531_v59, %v5530_v0  ;;  %v1816_v1 = vsel %vm1793_vm9, %v1769_v26, %v1770_v19  ;;  %6180 = vmatprep.mubr.msk.bf16.mxu0 %vm11732_vm2, %v8442_v11  ;;  %v11982_v59 = vld [vmem:[#allocation8_spill] sm:$0xff]  ;;  %6588 = vperm.xlu0 %6435, %v6587_v50  }
  0x84   : > { %11979 = vst [vmem:[#allocation53_spill] sm:$0xff] %v8457_v56  ;;  %v1815_v32 = vsel %vm1793_vm9, %v1770_v19, %v1771_v61  ;;  %vm11981_vm0 = vcmp.ge.s32.totalorder %v11980_v16, 1  ;;  %vm11983_vm5 = vcmp.ge.s32.totalorder %v11982_v59, 1  ;;  %v5532_v26 = vsel %vm8402_vm8, 1.0, %v11866_v54  ;;  %6144 = vmatprep.mubr.msk.bf16.mxu1 %vm11732_vm2, %v8382_v6  ;;  %v8510_v16 = vld [vmem:[%s11393_s7 + $0x50] sm:$0xff]  ;;  %v8530_v59 = vld [vmem:[%s11393_s7 + $0x40] sm:$0xff]  ;;  %6312 = vmatprep.subr.bf16.mxu0 %v8475_v2 }
  0x85   : > { %vm2106_vm1 = vmand %vm11981_vm0, %vm11626_vm6  ;;  %v5533_v57 = vsel %vm8451_vm4, 1.0, %v11866_v54  ;;  %v1772_v0 = vrot.slane %v8157_v4, 1  ;;  %v1773_v19 = vrot.slane %v8173_v17, 1  ;;  %11984 = vst [vmem:[#allocation45_spill] sm:$0xff] %v8510_v16  ;;  %vm11630_vm8 = vcmp.le.s32.totalorder %v8516_v63, 14  ;;  %6603 = vperm.xlu1 %6446, %v6602_v15   ;;  %v11990_v15 = vld [vmem:[#allocation26_spill] sm:$0xff] }
  0x86   : > { %vm2107_vm13 = vmand %vm11983_vm5, %vm11625_vm10  ;;  %v5534_v13 = vsel %vm2106_vm1, 1.0, %v11866_v54  ;;  %vm11618_vm5 = vcmp.le.s32.totalorder %v8510_v16, 14  ;;  %v8519_v50 = vpack.c.bf16 %v1815_v32, %v1816_v1  ;;  %vm11627_vm0 = vcmp.le.s32.totalorder %v8530_v59, 14  ;;  %v8536_v32 = vld [vmem:[%s11393_s7 + $0x48] sm:$0xff] }
  0x87   : > { %v5535_v18 = vsel %vm2107_vm13, 1.0, %v11866_v54  ;;  %v1814_v39 = vsel %vm1793_vm9, %v1771_v61, %v1772_v0  ;;  %vm11986_vm13 = vcmp.ge.s32.totalorder %v7354_v27, 1  ;;  %vm11628_vm1 = vcmp.le.s32.totalorder %v8536_v32, 14  ;;  %6598 = vperm.xlu0 %6435, %v6597_v8  }
  0x88   : > { %11985 = vst [vmem:[#allocation11_spill] sm:$0xff] %v8519_v50  ;;  %vm2110_vm4 = vmand %vm11986_vm13, %vm11618_vm5  ;;  %v6612_v61 = vpack.i.bf16 %v5535_v18, %v5534_v13  ;;  %v1813_v27 = vsel %vm1793_vm9, %v1772_v0, %v1773_v19  ;;  %vm11987_vm13 = vcmp.ge.s32.totalorder %v7359_v28, 1  ;;  %v1774_v11 = vrot.slane %v7607_v48, 1  ;;  %v8559_v28 = vld [vmem:[%s11393_s7 + $0x70] sm:$0xff]  ;;  %6181 = vmatmul.mubr.msk.bf16.gmra.mrb[24].mxu0 %vm11732_vm2, %v8519_v50 }
  0x89   : > { %vm2111_vm5 = vmand %vm11987_vm13, %vm11630_vm8  ;;  %v5538_v1 = vsel %vm2110_vm4, 1.0, %v11866_v54  ;;  %v8548_v23 = vpack.c.bf16 %v1813_v27, %v1814_v39  ;;  %vm11989_vm10 = vcmp.ge.s32.totalorder %v7389_v35, 1  ;;  %v1775_v13 = vrot.slane %v11990_v15, 1  ;;  %v8577_v39 = vld [vmem:[%s11393_s7 + $0x78] sm:$0xff] }
  0x8a   : > { %v5539_v16 = vsel %vm2111_vm5, 1.0, %v11866_v54  ;;  %vm2108_vm6 = vmand %vm11989_vm10, %vm11627_vm0  ;;  %vm11629_vm4 = vcmp.le.s32.totalorder %v8559_v28, 14  ;;  %v6607_v0 = vpack.i.bf16 %v5533_v57, %v5532_v26  ;;  %v8564_v18 = vpack.c.bf16 %v8157_v4, %v8153_v30  ;;  %6613 = vperm.xlu1 %6446, %v6612_v61   ;;  %6145 = vmatmul.mubr.msk.bf16.gmra.mrb[24].mxu1 %vm11732_vm2, %v8457_v56  ;;  %v8623_v61 = vld [vmem:[%s11393_s7 + $0x90] sm:$0xff] }
  0x8b   : > { %11988 = vst [vmem:[#allocation12_spill] sm:$0xff] %v8548_v23  ;;  %vm11992_vm5 = vcmp.ge.s32.totalorder %v7394_v36, 1  ;;  %v8572_v35 = vpack.c.bf16 %v7607_v48, %v8173_v17  ;;  %vm11641_vm13 = vcmp.le.s32.totalorder %v8577_v39, 14  ;;  %v5536_v8 = vsel %vm2108_vm6, 1.0, %v11866_v54  ;;  %v8589_v36 = vld [vmem:[%s11393_s7 + $0x60] sm:$0xff]  ;;  %v8595_v48 = vld [vmem:[%s11393_s7 + $0x68] sm:$0xff]  ;;  %6184 = vmatprep.mubr.msk.bf16.mxu0 %vm11732_vm2, %v8548_v23 }
  0x8c   : > { %11991 = vst [vmem:[#allocation65_spill] sm:$0xff] %v8564_v18  ;;  %vm2109_vm10 = vmand %vm11992_vm5, %vm11628_vm1  ;;  %vm11994_vm0 = vcmp.ge.s32.totalorder %v7430_v43, 1  ;;  %vm11631_vm1 = vcmp.le.s32.totalorder %v8589_v36, 14  ;;  %vm11634_vm6 = vcmp.le.s32.totalorder %v8595_v48, 14  ;;  %v6622_v43 = vpack.i.bf16 %v5539_v16, %v5538_v1  ;;  %v12000_v16 = vld [vmem:[#allocation35_spill] sm:$0xff]  ;;  %6608 = vperm.xlu0 %6435, %v6607_v0   ;;  %6148 = vmatprep.mubr.msk.bf16.mxu1 %vm11732_vm2, %v8564_v18  ;;  %v8636_v1 = vld [vmem:[%s11393_s7 + $0x98] sm:$0xff] }
  0x8d   : > { %11993 = vst [vmem:[#allocation2_spill] sm:$0xff] %v8572_v35  ;;  %v5537_v30 = vsel %vm2109_vm10, 1.0, %v11866_v54  ;;  %vm2114_vm5 = vmand %vm11994_vm0, %vm11629_vm4  ;;  %v1811_v4 = vsel %vm1793_vm9, %v1774_v11, %v1775_v13  ;;  %v1812_v17 = vsel %vm1793_vm9, %v1773_v19, %v1774_v11  ;;  %vm11997_vm0 = vcmp.ge.s32.totalorder %v7435_v44, 1  ;;  %v11999_v11 = vld [vmem:[#allocation27_spill] sm:$0xff]  ;;  %v8642_v0 = vld [vmem:[%s11393_s7 + $0x80] sm:$0xff] }
  0x8e   : > { %11995 = vst [vmem:[#allocation7_spill] sm:$0xff] %v8589_v36  ;;  %11996 = vst [vmem:[#allocation8_spill] sm:$0xff] %v8595_v48  ;;  %v5542_v26 = vsel %vm2114_vm5, 1.0, %v11866_v54  ;;  %vm11998_vm4 = vcmp.ge.s32.totalorder %v7473_v52, 1  ;;  %v1776_v19 = vrot.slane %v11999_v11, 1  ;;  %v1777_v44 = vrot.slane %v12000_v16, 1  ;;  %6623 = vperm.xlu1 %6446, %v6622_v43  }
  0x8f   : > { %vm2115_vm10 = vmand %vm11997_vm0, %vm11641_vm13  ;;  %vm11642_vm5 = vcmp.le.s32.totalorder %v8623_v61, 14  ;;  %v6617_v27 = vpack.i.bf16 %v5537_v30, %v5536_v8  ;;  %v8657_v23 = vld [vmem:[%s11393_s7 + $0x88] sm:$0xff]  ;;  %v8660_v50 = vpack.c.bf16 %v1811_v4, %v1812_v17  ;;  %v12007_v43 = vld [vmem:[#allocation36_spill] sm:$0xff] }
  0x90   : > { %v5543_v57 = vsel %vm2115_vm10, 1.0, %v11866_v54  ;;  %vm2112_vm8 = vmand %vm11998_vm4, %vm11631_vm1  ;;  %vm12001_vm4 = vcmp.ge.s32.totalorder %v7478_v53, 1  ;;  %vm11645_vm10 = vcmp.le.s32.totalorder %v8636_v1, 14  ;;  %vm11643_vm1 = vcmp.le.s32.totalorder %v8642_v0, 14  ;;  %v12008_v17 = vld [vmem:[#allocation47_spill] sm:$0xff] }
  0x91   : > { %vm2113_vm0 = vmand %vm12001_vm4, %vm11634_vm6  ;;  %v5540_v52 = vsel %vm2112_vm8, 1.0, %v11866_v54  ;;  %v1809_v53 = vsel %vm1793_vm9, %v1776_v19, %v1777_v44  ;;  %v1810_v30 = vsel %vm1793_vm9, %v1775_v13, %v1776_v19  ;;  %vm12002_vm8 = vcmp.ge.s32.totalorder %v7553_v40, 1  ;;  %12003 = vst [vmem:[#allocation26_spill] sm:$0xff] %v8660_v50  ;;  %6618 = vperm.xlu0 %6435, %v6617_v27   ;;  %v8699_v27 = vld [vmem:[%s11393_s7 + $0xa0] sm:$0xff]  ;;  %6185 = vmatmul.mubr.msk.bf16.gmra.mrb[28].mxu0 %vm11732_vm2, %v8660_v50 }
  0x92   : > { %v5541_v8 = vsel %vm2113_vm0, 1.0, %v11866_v54  ;;  %vm2118_vm4 = vmand %vm12002_vm8, %vm11642_vm5  ;;  %vm11644_vm6 = vcmp.le.s32.totalorder %v8657_v23, 14  ;;  %v6632_v48 = vpack.i.bf16 %v5543_v57, %v5542_v26  ;;  %v8662_v36 = vpack.c.bf16 %v1809_v53, %v1810_v30  ;;  %v8679_v57 = vld [vmem:[%s11393_s7 + $0xb0] sm:$0xff]  ;;  %12013 = vst [vmem:[#allocation83_spill] sm:$0xff] %v8699_v27  ;;  %6149 = vmatmul.mubr.msk.bf16.gmra.mrb[28].mxu1 %vm11732_vm2, %v8572_v35 }
  0x93   : > { %vm12005_vm0 = vcmp.ge.s32.totalorder %v7559_v51, 1  ;;  %v5546_v40 = vsel %vm2118_vm4, 1.0, %v11866_v54  ;;  %vm12006_vm8 = vcmp.ge.s32.totalorder %v7584_v22, 1  ;;  %v1778_v4 = vrot.slane %v12007_v43, 1  ;;  %12009 = vst [vmem:[#allocation35_spill] sm:$0xff] %v8679_v57  ;;  %v8693_v22 = vld [vmem:[%s11393_s7 + $0xb8] sm:$0xff] }
  0x94   : > { %12004 = vst [vmem:[#allocation27_spill] sm:$0xff] %v8662_v36  ;;  %vm2119_vm13 = vmand %vm12005_vm0, %vm11645_vm10  ;;  %v1779_v26 = vrot.slane %v12008_v17, 1  ;;  %vm11646_vm0 = vcmp.le.s32.totalorder %v8679_v57, 14  ;;  %v6627_v51 = vpack.i.bf16 %v5541_v8, %v5540_v52  ;;  %v8684_v19 = vpack.c.bf16 %v11999_v11, %v11990_v15  ;;  %v8715_v52 = vld [vmem:[%s11393_s7 + $0xa8] sm:$0xff]  ;;  %6633 = vperm.xlu1 %6446, %v6632_v48   ;;  %6188 = vmatprep.mubr.msk.bf16.mxu0 %vm11732_vm2, %v8662_v36 }
  0x95   : > { %v5547_v13 = vsel %vm2119_vm13, 1.0, %v11866_v54  ;;  %vm2116_vm5 = vmand %vm12006_vm8, %vm11643_vm1  ;;  %vm12011_vm13 = vcmp.ge.s32.totalorder %v7617_v60, 1  ;;  %12012 = vst [vmem:[#allocation47_spill] sm:$0xff] %v8693_v22  ;;  %vm11654_vm8 = vcmp.le.s32.totalorder %v8693_v22, 14  ;;  %vm11649_vm1 = vcmp.le.s32.totalorder %v8699_v27, 14  ;;  %v12024_v36 = vld [vmem:[#allocation43_spill] sm:$0xff] }
  0x96   : > { %12010 = vst [vmem:[#allocation36_spill] sm:$0xff] %v8684_v19  ;;  %vm2117_vm4 = vmand %vm12011_vm13, %vm11644_vm6  ;;  %v5544_v15 = vsel %vm2116_vm5, 1.0, %v11866_v54  ;;  %v8706_v60 = vpack.c.bf16 %v12007_v43, %v12000_v16  ;;  %vm12015_vm13 = vcmp.ge.s32.totalorder %v7657_v42, 1  ;;  %vm11659_vm10 = vcmp.le.s32.totalorder %v8715_v52, 14  ;;  %6628 = vperm.xlu0 %6435, %v6627_v51   ;;  %6152 = vmatprep.mubr.msk.bf16.mxu1 %vm11732_vm2, %v8684_v19 }
  0x97   : > { %v5545_v11 = vsel %vm2117_vm4, 1.0, %v11866_v54  ;;  %vm2122_vm6 = vmand %vm12015_vm13, %vm11646_vm0  ;;  %12016 = vst [vmem:[#allocation85_spill] sm:$0xff] %v8715_v52  ;;  %v6642_v8 = vpack.i.bf16 %v5547_v13, %v5546_v40  ;;  %v1807_v16 = vsel %vm1793_vm9, %v1778_v4, %v1779_v26  ;;  %v1808_v53 = vsel %vm1793_vm9, %v1777_v44, %v1778_v4  ;;  %v12019_v44 = vld [vmem:[#allocation48_spill] sm:$0xff]  ;;  %v12020_v40 = vld [vmem:[#allocation58_spill] sm:$0xff] }
  0x98   : > { %12014 = vst [vmem:[#allocation84_spill] sm:$0xff] %v8706_v60  ;;  %vm12017_vm5 = vcmp.ge.s32.totalorder %v7676_v29, 1  ;;  %v5550_v42 = vsel %vm2122_vm6, 1.0, %v11866_v54  ;;  %vm12018_vm13 = vcmp.ge.s32.totalorder %v7704_v49, 1  ;;  %v1780_v30 = vrot.slane %v12019_v44, 1  ;;  %v12021_v13 = vld [vmem:[#allocation37_spill] sm:$0xff] }
  0x99   : > { %vm2123_vm4 = vmand %vm12017_vm5, %vm11654_vm8  ;;  %v1781_v29 = vrot.slane %v12020_v40, 1  ;;  %vm11658_vm5 = vcmp.le.s32.totalorder %v12021_v13, 14  ;;  %v6637_v43 = vpack.i.bf16 %v5545_v11, %v5544_v15  ;;  %vm12022_vm6 = vcmp.ge.s32.totalorder %v7709_v47, 1  ;;  %v12023_v49 = vld [vmem:[#allocation38_spill] sm:$0xff]  ;;  %v12026_v47 = vld [vmem:[#allocation44_spill] sm:$0xff]  ;;  %6643 = vperm.xlu1 %6446, %v6642_v8  }
  0x9a   : > { %v5551_v48 = vsel %vm2123_vm4, 1.0, %v11866_v54  ;;  %vm2120_vm0 = vmand %vm12018_vm13, %vm11649_vm1  ;;  %vm11665_vm13 = vcmp.le.s32.totalorder %v12023_v49, 14  ;;  %vm11664_vm1 = vcmp.le.s32.totalorder %v12024_v36, 14  ;;  %v1806_v27 = vsel %vm1793_vm9, %v1779_v26, %v1780_v30  ;;  %6153 = vmatmul.mubr.msk.bf16.gmra.mrb[32].mxu1 %vm11732_vm2, %v8706_v60 }
  0x9b   : > { %vm2121_vm4 = vmand %vm12022_vm6, %vm11659_vm10  ;;  %v5548_v4 = vsel %vm2120_vm0, 1.0, %v11866_v54  ;;  %v1805_v51 = vsel %vm1793_vm9, %v1780_v30, %v1781_v29  ;;  %vm12025_vm8 = vcmp.ge.s32.totalorder %v7763_v33, 1  ;;  %vm11730_vm6 = vcmp.le.s32.totalorder %v12026_v47, 14  ;;  %v12031_v33 = vld [vmem:[#allocation59_spill] sm:$0xff]  ;;  %6638 = vperm.xlu0 %6435, %v6637_v43  }
  0x9c   : > { %v5549_v50 = vsel %vm2121_vm4, 1.0, %v11866_v54  ;;  %vm2126_vm14 = vmand %vm12025_vm8, %vm11658_vm5  ;;  %v8760_v15 = vpack.c.bf16 %v1807_v16, %v1808_v53  ;;  %v6652_v11 = vpack.i.bf16 %v5551_v48, %v5550_v42  ;;  %v8762_v52 = vpack.c.bf16 %v1805_v51, %v1806_v27  ;;  %v12032_v16 = vld [vmem:[#allocation62_spill] sm:$0xff]  ;;  %v12036_v48 = vld [vmem:[#allocation51_spill] sm:$0xff] }
  0x9d   : > { %vm12029_vm0 = vcmp.ge.s32.totalorder %v7768_v31, 1  ;;  %v5554_v26 = vsel %vm2126_vm14, 1.0, %v11866_v54  ;;  %vm12030_vm8 = vcmp.ge.s32.totalorder %v11948_v7, 1  ;;  %v1782_v8 = vrot.slane %v12031_v33, 1  ;;  %v12033_v27 = vld [vmem:[#allocation50_spill] sm:$0xff]  ;;  %v12037_v7 = vld [vmem:[#allocation56_spill] sm:$0xff] }
  0x9e   : > { %12027 = vst [vmem:[#allocation48_spill] sm:$0xff] %v8760_v15  ;;  %12028 = vst [vmem:[#allocation58_spill] sm:$0xff] %v8762_v52  ;;  %v1783_v53 = vrot.slane %v12032_v16, 1  ;;  %vm11733_vm10 = vcmp.le.s32.totalorder %v12033_v27, 14  ;;  %v6647_v42 = vpack.i.bf16 %v5549_v50, %v5548_v4  ;;  %v8779_v31 = vpack.c.bf16 %v12019_v44, %v12008_v17  ;;  %v12039_v50 = vld [vmem:[#allocation57_spill] sm:$0xff]  ;;  %6189 = vmatmul.mubr.msk.bf16.gmra.mrb[32].mxu0 %vm11732_vm2, %v8760_v15  ;;  %v12050_v15 = vld [vmem:[#allocation14_spill] sm:$0xff] }
  0x9f   : > { %vm2127_vm4 = vmand %vm12029_vm0, %vm11665_vm13  ;;  %vm12035_vm14 = vcmp.ge.s32.totalorder %v11950_v46, 1  ;;  %vm11697_vm12 = vcmp.le.s32.totalorder %v12039_v50, 14  ;;  %6653 = vperm.xlu1 %6446, %v6652_v11   ;;  %v1804_v17 = vsel %vm1793_vm9, %v1781_v29, %v1782_v8  ;;  %6192 = vmatprep.mubr.msk.bf16.mxu0 %vm11732_vm2, %v8762_v52  ;;  %v12042_v29 = vld [vmem:[#allocation67_spill] sm:$0xff] }
  0xa0   : > { %v5555_v30 = vsel %vm2127_vm4, 1.0, %v11866_v54  ;;  %vm2124_vm5 = vmand %vm12030_vm8, %vm11664_vm1  ;;  %12034 = vst [vmem:[#allocation59_spill] sm:$0xff] %v8779_v31  ;;  %vm11699_vm4 = vcmp.le.s32.totalorder %v12036_v48, 14  ;;  %vm11698_vm8 = vcmp.le.s32.totalorder %v12037_v7, 14  ;;  %vm12038_vm1 = vcmp.ge.s32.totalorder %v7900_v38, 1  ;;  %v12040_v38 = vld [vmem:[#allocation63_spill] sm:$0xff]  ;;  %6648 = vperm.xlu0 %6435, %v6647_v42   ;;  %6156 = vmatprep.mubr.msk.bf16.mxu1 %vm11732_vm2, %v8779_v31 }
  0xa1   : > { %vm2125_vm0 = vmand %vm12035_vm14, %vm11730_vm6  ;;  %v6662_v51 = vpack.i.bf16 %v5555_v30, %v5554_v26  ;;  %v5552_v22 = vsel %vm2124_vm5, 1.0, %v11866_v54  ;;  %v1803_v46 = vsel %vm1793_vm9, %v1782_v8, %v1783_v53  ;;  %v8806_v44 = vpack.c.bf16 %v12040_v38, %v12032_v16 }
  0xa2   : > { %v5553_v57 = vsel %vm2125_vm0, 1.0, %v11866_v54  ;;  %vm2130_vm13 = vmand %vm12038_vm1, %vm11733_vm10  ;;  %v1784_v21 = vrot.slane %v12040_v38, 1  ;;  %v1785_v11 = vrot.slane %v12042_v29, 1  ;;  %v8824_v30 = vpack.c.bf16 %v12031_v33, %v12020_v40  ;;  %v12046_v33 = vld [vmem:[#allocation68_spill] sm:$0xff]  ;;  %v12048_v38 = vld [vmem:[#allocation13_spill] sm:$0xff] }
  0xa3   : > { %vm2131_vm5 = vmand %vm910_vm15, %vm11699_vm4  ;;  %12041 = vst [vmem:[#allocation62_spill] sm:$0xff] %v8806_v44  ;;  %v5558_v43 = vsel %vm2130_vm13, 1.0, %v11866_v54  ;;  %v6657_v26 = vpack.i.bf16 %v5553_v57, %v5552_v22  ;;  %6663 = vperm.xlu1 %6446, %v6662_v51   ;;  %v8836_v57 = vpack.c.bf16 %v1803_v46, %v1804_v17  ;;  %v8842_v20 = vpack.c.bf16 %v12046_v33, %v12042_v29  ;;  %v12052_v17 = vld [vmem:[#allocation5_spill] sm:$0xff] }
  0xa4   : > { %v5559_v4 = vsel %vm2131_vm5, 1.0, %v11866_v54  ;;  %vm2128_vm1 = vmand %vm907_vm3, %vm11698_vm8  ;;  %12043 = vst [vmem:[#allocation50_spill] sm:$0xff] %v8824_v30  ;;  %v1801_v16 = vsel %vm1793_vm9, %v1784_v21, %v1785_v11  ;;  %v1802_v42 = vsel %vm1793_vm9, %v1783_v53, %v1784_v21  ;;  %vm12051_vm3 = vcmp.ge.s32.totalorder %v12050_v15, 1  ;;  %6157 = vmatmul.mubr.msk.bf16.gmra.mrb[36].mxu1 %vm11732_vm2, %v8824_v30  ;;  %v12062_v30 = vld [vmem:[#allocation4_spill] sm:$0xff] }
  0xa5   : > { %vm2129_vm15 = vmand %vm908_vm11, %vm11697_vm12  ;;  %v5556_v5 = vsel %vm2128_vm1, 1.0, %v11866_v54  ;;  %12044 = vst [vmem:[#allocation51_spill] sm:$0xff] %v8836_v57  ;;  %v6672_v22 = vpack.i.bf16 %v5559_v4, %v5558_v43  ;;  %v8838_v40 = vpack.c.bf16 %v1801_v16, %v1802_v42  ;;  %vm12049_vm11 = vcmp.ge.s32.totalorder %v12048_v38, 1  ;;  %6658 = vperm.xlu0 %6435, %v6657_v26   ;;  %v12054_v4 = vld [vmem:[#allocation6_spill] sm:$0xff]  ;;  %6160 = vmatprep.mubr.msk.bf16.mxu1 %vm11732_vm2, %v8806_v44 }
  0xa6   : > { %v5557_v8 = vsel %vm2129_vm15, 1.0, %v11866_v54  ;;  %12047 = vst [vmem:[#allocation57_spill] sm:$0xff] %v8842_v20  ;;  %v5584_v52 = vsel %vm12049_vm11, 1.0, %v11866_v54  ;;  %v5585_v31 = vsel %vm12051_vm3, 1.0, %v11866_v54  ;;  %v1786_v53 = vrot.slane %v12046_v33, 1  ;;  %6193 = vmatmul.mubr.msk.bf16.gmra.mrb[36].mxu0 %vm11732_vm2, %v8836_v57 }
  0xa7   : > { %12045 = vst [vmem:[#allocation56_spill] sm:$0xff] %v8838_v40  ;;  %v1787_v51 = vrot.slane %v8165_v62, 1  ;;  %v6667_v46 = vpack.i.bf16 %v5557_v8, %v5556_v5  ;;  %vm12053_vm13 = vcmp.ge.s32.totalorder %v12052_v17, 1  ;;  %vm12055_vm14 = vcmp.ge.s32.totalorder %v12054_v4, 1  ;;  %6673 = vperm.xlu1 %6446, %v6672_v22   ;;  %6196 = vmatprep.mubr.msk.bf16.mxu0 %vm11732_vm2, %v8838_v40  ;;  %v12056_v8 = vld [vmem:[#allocation9_spill] sm:$0xff] }
  0xa8   : > { %v5582_v43 = vsel %vm12053_vm13, 1.0, %v11866_v54  ;;  %v5583_v21 = vsel %vm12055_vm14, 1.0, %v11866_v54  ;;  %v6682_v29 = vpack.i.bf16 %v5585_v31, %v5584_v52  ;;  %v1788_v16 = vrot.slane %v8167_v37, 1  ;;  %v12058_v31 = vld [vmem:[#allocation10_spill] sm:$0xff] }
  0xa9   : > { %v1789_v42 = vrot.slane %v8175_v12, 1  ;;  %v1799_v26 = vsel %vm1793_vm9, %v1786_v53, %v1787_v51  ;;  %v1800_v5 = vsel %vm1793_vm9, %v1785_v11, %v1786_v53  ;;  %vm12057_vm0 = vcmp.ge.s32.totalorder %v12056_v8, 1  ;;  %6668 = vperm.xlu0 %6435, %v6667_v46   ;;  %v12060_v11 = vld [vmem:[#allocation3_spill] sm:$0xff] }
  0xaa   : > { %v5588_v52 = vsel %vm12057_vm0, 1.0, %v11866_v54  ;;  %vm12059_vm5 = vcmp.ge.s32.totalorder %v12058_v31, 1  ;;  %v6677_v33 = vpack.i.bf16 %v5583_v21, %v5582_v43  ;;  %v1798_v57 = vsel %vm1793_vm9, %v1787_v51, %v1788_v16  ;;  %v12066_v43 = vld [vmem:[#allocation15_spill] sm:$0xff]  ;;  %v12068_v51 = vld [vmem:[#allocation16_spill] sm:$0xff] }
  0xab   : > { %v5589_v22 = vsel %vm12059_vm5, 1.0, %v11866_v54  ;;  %v1797_v40 = vsel %vm1793_vm9, %v1788_v16, %v1789_v42  ;;  %vm12061_vm1 = vcmp.ge.s32.totalorder %v12060_v11, 1  ;;  %vm12063_vm15 = vcmp.ge.s32.totalorder %v12062_v30, 1  ;;  %6683 = vperm.xlu1 %6446, %v6682_v29  }
  0xac   : > { %v5586_v53 = vsel %vm12061_vm1, 1.0, %v11866_v54  ;;  %v5587_v31 = vsel %vm12063_vm15, 1.0, %v11866_v54  ;;  %v8888_v46 = vpack.c.bf16 %v1799_v26, %v1800_v5  ;;  %v6692_v8 = vpack.i.bf16 %v5589_v22, %v5588_v52  ;;  %v12071_v26 = vld [vmem:[#allocation17_spill] sm:$0xff]  ;;  %6161 = vmatmul.mubr.msk.bf16.gmra.mrb[40].mxu1 %vm11732_vm2, %v8842_v20  ;;  %v12076_v22 = vld [vmem:[#allocation19_spill] sm:$0xff] }
  0xad   : > { %v8890_v44 = vpack.c.bf16 %v1797_v40, %v1798_v57  ;;  %vm12067_vm11 = vcmp.ge.s32.totalorder %v12066_v43, 1  ;;  %vm12069_vm3 = vcmp.ge.s32.totalorder %v12068_v51, 1  ;;  %v1790_v15 = vrot.slane %v7576_v3, 1  ;;  %6678 = vperm.xlu0 %6435, %v6677_v33   ;;  %v12073_v40 = vld [vmem:[#allocation18_spill] sm:$0xff] }
  0xae   : > { %12064 = vst [vmem:[#allocation63_spill] sm:$0xff] %v8888_v46  ;;  %v5592_v21 = vsel %vm12067_vm11, 1.0, %v11866_v54  ;;  %v5593_v16 = vsel %vm12069_vm3, 1.0, %v11866_v54  ;;  %v6687_v38 = vpack.i.bf16 %v5587_v31, %v5586_v53  ;;  %v8901_v29 = vpack.c.bf16 %v8167_v37, %v8165_v62  ;;  %6197 = vmatmul.mubr.msk.bf16.gmra.mrb[40].mxu0 %vm11732_vm2, %v8888_v46  ;;  %v8939_v46 = vpop.permute.xlu0 %6437 }
  0xaf   : > { %12065 = vst [vmem:[#allocation67_spill] sm:$0xff] %v8890_v44  ;;  %vm12072_vm13 = vcmp.ge.s32.totalorder %v12071_v26, 1  ;;  %vm12074_vm14 = vcmp.ge.s32.totalorder %v12073_v40, 1  ;;  %6693 = vperm.xlu1 %6446, %v6692_v8   ;;  %v6702_v52 = vpack.i.bf16 %v5593_v16, %v5592_v21  ;;  %6200 = vmatprep.mubr.msk.bf16.mxu0 %vm11732_vm2, %v8890_v44  ;;  %v12075_v62 = vrot.slane %v7586_v24, 1  ;;  %v12078_v8 = vld [vmem:[#allocation20_spill] sm:$0xff]  ;;  %v8929_v24 = vpop.permute.xlu1 %6448  ;;  %v12081_v16 = vld [vmem:[#allocation21_spill] sm:$0xff] }
  0xb0   : > { %12070 = vst [vmem:[#allocation68_spill] sm:$0xff] %v8901_v29  ;;  %v5590_v57 = vsel %vm12072_vm13, 1.0, %v11866_v54  ;;  %v5591_v5 = vsel %vm12074_vm14, 1.0, %v11866_v54  ;;  %v1796_v31 = vsel %vm1793_vm9, %v1789_v42, %v1790_v15  ;;  %vm12077_vm0 = vcmp.ge.s32.totalorder %v12076_v22, 1  ;;  %6164 = vmatprep.mubr.msk.bf16.mxu1 %vm11732_vm2, %v8901_v29  ;;  %12080 = vst [vmem:[#allocation5_spill] sm:$0xff] %v8929_v24  ;;  %v12090_v24 = vld [vmem:[#allocation24_spill] sm:$0xff] }
  0xb1   : > { %v1795_v37 = vsel %vm1793_vm9, %v1790_v15, %v12075_v62  ;;  %v5596_v33 = vsel %vm12077_vm0, 1.0, %v11866_v54  ;;  %vm12079_vm5 = vcmp.ge.s32.totalorder %v12078_v8, 1  ;;  %6688 = vperm.xlu0 %6435, %v6687_v38   ;;  %v6697_v21 = vpack.i.bf16 %v5591_v5, %v5590_v57  ;;  %v12083_v15 = vld [vmem:[#allocation22_spill] sm:$0xff]  ;;  %12086 = vst [vmem:[#allocation3_spill] sm:$0xff] %v8939_v46  ;;  %v12088_v57 = vld [vmem:[#allocation23_spill] sm:$0xff] }
  0xb2   : > { %v5597_v53 = vsel %vm12079_vm5, 1.0, %v11866_v54  ;;  %vm12082_vm1 = vcmp.ge.s32.totalorder %v12081_v16, 1  ;;  %vm12084_vm9 = vcmp.ge.s32.totalorder %v12083_v15, 1  ;;  %v8937_v62 = vpack.c.bf16 %v1795_v37, %v1796_v31  ;;  %v12094_v31 = vld [vmem:[#allocation28_spill] sm:$0xff]  ;;  %v8985_v46 = vpop.permute.xlu0 %6442 }
  0xb3   : > { %v5594_v45 = vsel %vm12082_vm1, 1.0, %v11866_v54  ;;  %v5595_v42 = vsel %vm12084_vm9, 1.0, %v11866_v54  ;;  %6703 = vperm.xlu1 %6446, %v6702_v52   ;;  %v6712_v44 = vpack.i.bf16 %v5597_v53, %v5596_v33  ;;  %v8943_v38 = vpack.c.bf16 %v7576_v3, %v8175_v12  ;;  %v12092_v52 = vld [vmem:[#allocation25_spill] sm:$0xff]  ;;  %v8959_v12 = vpop.permute.xlu1 %6453  ;;  %v8964_v53 = vld [vmem:[%s11392_s6] sm:$0xff]  ;;  %12103 = vst [vmem:[#allocation16_spill] sm:$0xff] %v8985_v46  ;;  %v7090_v46 = vld [vmem:[%s11390_s4 + $0x68] sm:$0xff]  }
  0xb4   : > { %12085 = vst [vmem:[#allocation6_spill] sm:$0xff] %v8937_v62  ;;  %vm12089_vm15 = vcmp.ge.s32.totalorder %v12088_v57, 1  ;;  %vm12091_vm11 = vcmp.ge.s32.totalorder %v12090_v24, 1  ;;  %v6707_v20 = vpack.i.bf16 %v5595_v42, %v5594_v45  ;;  %vm12093_vm3 = vcmp.ge.s32.totalorder %v12092_v52, 1  ;;  %12096 = vst [vmem:[#allocation15_spill] sm:$0xff] %v8959_v12  ;;  %v12098_v45 = vld [vmem:[#allocation31_spill] sm:$0xff] }
  0xb5   : > { %12087 = vst [vmem:[#allocation4_spill] sm:$0xff] %v8943_v38  ;;  %v5600_v5 = vsel %vm12089_vm15, 1.0, %v11866_v54  ;;  %v5601_v29 = vsel %vm12091_vm11, 1.0, %v11866_v54  ;;  %6698 = vperm.xlu0 %6435, %v6697_v21   ;;  %v5598_v37 = vsel %vm12093_vm3, 1.0, %v11866_v54  ;;  %vm12095_vm13 = vcmp.ge.s32.totalorder %v12094_v31, 1  ;;  %6165 = vmatmul.mubr.msk.bf16.gmra.mrb[44].mxu1 %vm11732_vm2, %v8943_v38  ;;  %v12097_v21 = vld [vmem:[#allocation80_spill] sm:$0xff] }
  0xb6   : > { %v5599_v33 = vsel %vm12095_vm13, 1.0, %v11866_v54  ;;  %6201 = vmatmul.mubr.msk.bf16.gmra.mrb[44].mxu0 %vm11732_vm2, %v8937_v62  ;;  %v6722_v3 = vpack.i.bf16 %v5601_v29, %v5600_v5  ;;  %vm3740_vm14 = vcmp.le.s32.totalorder %v8964_v53, 14  ;;  %vm12099_vm0 = vcmp.ge.s32.totalorder %v12098_v45, 1  ;;  %v12100_v29 = vld [vmem:[#allocation32_spill] sm:$0xff]  ;;  %v8980_v5 = vld [vmem:[%s11392_s6 + $0x8] sm:$0xff]  ;;  %v8990_v62 = vld [vmem:[%s11392_s6 + $0x20] sm:$0xff] }
  0xb7   : > { %6713 = vperm.xlu1 %6446, %v6712_v44   ;;  %6244 = vmatprep.mubr.msk.bf16.mxu0 %vm11732_vm2, %v12097_v21  ;;  %v5604_v44 = vsel %vm12099_vm0, 1.0, %v11866_v54  ;;  %vm12101_vm5 = vcmp.ge.s32.totalorder %v12100_v29, 1  ;;  %vm3741_vm1 = vcmp.le.s32.totalorder %v8980_v5, 14  ;;  %v12102_v12 = vld [vmem:[#allocation39_spill] sm:$0xff]  ;;  %v6717_v21 = vpack.i.bf16 %v5599_v33, %v5598_v37  ;;  %v12104_v38 = vld [vmem:[#allocation33_spill] sm:$0xff]  ;;  %v12106_v45 = vld [vmem:[#allocation34_spill] sm:$0xff] }
  0xb8   : > { %v5605_v42 = vsel %vm12101_vm5, 1.0, %v11866_v54  ;;  %6208 = vmatprep.mubr.msk.bf16.mxu1 %vm11732_vm2, %v12102_v12  ;;  %vm3744_vm9 = vcmp.le.s32.totalorder %v8990_v62, 14  ;;  %vm12105_vm15 = vcmp.ge.s32.totalorder %v12104_v38, 1  ;;  %vm12107_vm11 = vcmp.ge.s32.totalorder %v12106_v45, 1  ;;  %v9002_v37 = vld [vmem:[%s11392_s6 + $0x28] sm:$0xff]  ;;  %v12124_v38 = vld [vmem:[#allocation54_spill] sm:$0xff] }
  0xb9   : > { %6708 = vperm.xlu0 %6435, %v6707_v20   ;;  %v5602_v29 = vsel %vm12105_vm15, 1.0, %v11866_v54  ;;  %v5603_v20 = vsel %vm12107_vm11, 1.0, %v11866_v54  ;;  %vm3745_vm3 = vcmp.le.s32.totalorder %v9002_v37, 14  ;;  %v6732_v33 = vpack.i.bf16 %v5605_v42, %v5604_v44  ;;  %v9260_v5 = vld [vmem:[%s11392_s6 + $0x18] sm:$0xff]  ;;  %v12340_v37 = vld [vmem:[#allocation68_spill] sm:$0xff] }
  0xba   : > { %vm12108_vm13 = vcmp.ge.s32.totalorder %v12052_v17, 1  ;;  %vm12111_vm5 = vcmp.ge.s32.totalorder %v12021_v13, 1  ;;  %vm12112_vm15 = vcmp.ge.s32.totalorder %v12023_v49, 1  ;;  %vm12113_vm11 = vcmp.ge.s32.totalorder %v12054_v4, 1 }
  0xbb   : > { %6723 = vperm.xlu1 %6446, %v6722_v3   ;;  %vm9009_vm0 = vmand %vm3740_vm14, %vm12108_vm13  ;;  %v5608_v12 = vsel %vm12111_vm5, 1.0, %v11866_v54  ;;  %v5609_v45 = vsel %vm12112_vm15, 1.0, %v11866_v54  ;;  %v6727_v17 = vpack.i.bf16 %v5603_v20, %v5602_v29  ;;  %v9023_v3 = vpop.permute.xlu1 %6463  ;;  %vm12115_vm13 = vcmp.ge.s32.totalorder %v12060_v11, 1  ;;  %v9049_v29 = vpop.permute.xlu0 %6458  ;;  %v7089_v20 = vld [vmem:[%s11390_s4 + $0x58] sm:$0xff]  }
  0xbc   : > { %vm3773_vm12 = vmand %vm3741_vm1, %vm12113_vm11  ;;  %12114 = vst [vmem:[#allocation17_spill] sm:$0xff] %v9023_v3  ;;  %vm12118_vm5 = vcmp.ge.s32.totalorder %v12024_v36, 1  ;;  %vm12119_vm15 = vcmp.ge.s32.totalorder %v12026_v47, 1  ;;  %vm12120_vm11 = vcmp.ge.s32.totalorder %v12062_v30, 1  ;;  %v9057_v30 = vsel %vm9009_vm0, 1.0, %v11866_v54 }
  0xbd   : > { %6718 = vperm.xlu0 %6435, %v6717_v21   ;;  %vm9029_vm8 = vmand %vm3744_vm9, %vm12115_vm13  ;;  %v5606_v42 = vsel %vm12118_vm5, 1.0, %v11866_v54  ;;  %v5607_v4 = vsel %vm12119_vm15, 1.0, %v11866_v54  ;;  %v6742_v21 = vpack.i.bf16 %v5609_v45, %v5608_v12  ;;  %12123 = vst [vmem:[#allocation18_spill] sm:$0xff] %v9049_v29  ;;  %v9060_v3 = vsel %vm3773_vm12, 1.0, %v11866_v54  ;;  %6209 = vmatmul.mubr.msk.bf16.vlgmr.msra.gmra.mrb[48].mxu1 %vm11732_vm2, %v12124_v38  ;;  %v12129_v38 = vld [vmem:[#allocation60_spill] sm:$0xff] }
  0xbe   : > { %vm9043_vm4 = vmand %vm3745_vm3, %vm12120_vm11  ;;  %6245 = vmatmul.mubr.msk.bf16.vlgmr.msra.gmra.mrb[48].mxu0 %vm11732_vm2, %v8306_v41  ;;  %vm12125_vm13 = vcmp.ge.s32.totalorder %v12033_v27, 1  ;;  %vm12126_vm5 = vcmp.ge.s32.totalorder %v12036_v48, 1  ;;  %v9079_v29 = vsel %vm9029_vm8, 1.0, %v11866_v54  ;;  %6277 = vmatpush3.bf16.msra.mxu1 %v8409_v9  ;;  %vm12130_vm12 = vcmp.ge.s32.totalorder %v12037_v7, 1 }
  0xbf   : > { %6733 = vperm.xlu1 %6446, %v6732_v33   ;;  %6313 = vmatpush3.bf16.msra.mxu0 %v8475_v2  ;;  %v5612_v12 = vsel %vm12125_vm13, 1.0, %v11866_v54  ;;  %v5613_v45 = vsel %vm12126_vm5, 1.0, %v11866_v54  ;;  %12127 = vst [vmem:[#allocation19_spill] sm:$0xff] %v9079_v29  ;;  %v6737_v2 = vpack.i.bf16 %v5607_v4, %v5606_v42  ;;  %v9085_v41 = vsel %vm9043_vm4, 1.0, %v11866_v54  ;;  %v9102_v42 = vld [vmem:[%s11390_s4 + $0x70] sm:$0xff]   ;;  %v9104_v11 = vpop.permute.xlu1 %6473  ;;  %v9124_v29 = vld [vmem:[%s11390_s4 + $0x80] sm:$0xff]  }
  0xc0   : > { %12128 = vst [vmem:[#allocation20_spill] sm:$0xff] %v9085_v41  ;;  %6212 = vmatprep.mubr.msk.bf16.mxu1 %vm11732_vm2, %v12129_v38  ;;  %6248 = vmatprep.mubr.msk.bf16.mxu0 %vm11732_vm2, %v8330_v55  ;;  %v5610_v44 = vsel %vm12130_vm12, 1.0, %v11866_v54  ;;  %vm12131_vm8 = vcmp.ge.s32.totalorder %v12039_v50, 1  ;;  %12132 = vst [vmem:[#allocation21_spill] sm:$0xff] %v9102_v42  ;;  %v6752_v4 = vpack.i.bf16 %v5613_v45, %v5612_v12  ;;  %v5660_v33 = vsel %vm2070_vm7, 1.0, %v11866_v54  ;;  %v9112_v38 = vpop.permute.xlu0 %6468  ;;  %v12138_v45 = vld [vmem:[#allocation78_spill] sm:$0xff] }
  0xc1   : > { %6728 = vperm.xlu0 %6435, %v6727_v17   ;;  %v5611_v9 = vsel %vm12131_vm8, 1.0, %v11866_v54  ;;  %12133 = vst [vmem:[#allocation22_spill] sm:$0xff] %v9104_v11  ;;  %6278 = vmatprep.subr.bf16.mxu1 %v7089_v20  ;;  %vm12134_vm4 = vcmp.le.s32.totalorder %v8416_v10, 14  ;;  %12135 = vst [vmem:[#allocation23_spill] sm:$0xff] %v9112_v38  ;;  %vm12139_vm15 = vcmp.le.s32.totalorder %v12138_v45, 14  ;;  %vm12142_vm11 = vcmp.le.s32.totalorder %v8462_v14, 14 }
  0xc2   : > { %v5661_v55 = vsel %vm12134_vm4, 1.0, %v11866_v54  ;;  %6314 = vmatprep.subr.bf16.mxu0 %v7090_v46  ;;  %v6747_v17 = vpack.i.bf16 %v5611_v9, %v5610_v44  ;;  %6279 = vmatpush3.bf16.msra.mxu1 %v7089_v20  ;;  %v5659_v11 = vsel %vm12139_vm15, 1.0, %v11866_v54  ;;  %12140 = vst [vmem:[#allocation24_spill] sm:$0xff] %v9124_v29  ;;  %vm12143_vm13 = vcmp.le.s32.totalorder %v8468_v58, 14  ;;  %v12144_v9 = vld [vmem:[#allocation69_spill] sm:$0xff] }
  0xc3   : > { %6743 = vperm.xlu1 %6446, %v6742_v21   ;;  %v12136_v21 = vld [vmem:[#allocation72_spill] sm:$0xff]  ;;  %6315 = vmatpush3.bf16.msra.mxu0 %v7090_v46  ;;  %v6762_v20 = vpack.i.bf16 %v5661_v55, %v5660_v33  ;;  %v5664_v46 = vsel %vm12142_vm11, 1.0, %v11866_v54  ;;  %v5665_v44 = vsel %vm12143_vm13, 1.0, %v11866_v54  ;;  %v9140_v55 = vpop.permute.xlu1 %6483  ;;  %v12146_v33 = vld [vmem:[#allocation77_spill] sm:$0xff]  ;;  %vm12148_vm12 = vcmp.le.s32.totalorder %v8281_v34, 14 }
  0xc4   : > { %vm12137_vm0 = vcmp.le.s32.totalorder %v12136_v21, 14  ;;  %6348 = vmatprep.subr.bf16.mxu1 %v9102_v42  ;;  %12145 = vst [vmem:[#allocation25_spill] sm:$0xff] %v9140_v55  ;;  %vm12147_vm5 = vcmp.le.s32.totalorder %v12146_v33, 14  ;;  %6384 = vmatprep.subr.bf16.mxu0 %v9124_v29  ;;  %vm12152_vm4 = vcmp.le.s32.totalorder %v8516_v63, 14  ;;  %v9160_v55 = vsel %vm3740_vm14, 1.0, %v11866_v54  ;;  %v12160_v29 = vld [vmem:[#allocation71_spill] sm:$0xff] }
  0xc5   : > { %6738 = vperm.xlu0 %6435, %v6737_v2   ;;  %v5658_v12 = vsel %vm12137_vm0, 1.0, %v11866_v54  ;;  %v12141_v2 = vld [vmem:[#allocation64_spill] sm:$0xff]  ;;  %v5662_v38 = vsel %vm12147_vm5, 1.0, %v11866_v54  ;;  %12153 = vst [vmem:[#allocation72_spill] sm:$0xff] %v9160_v55  ;;  %vm12155_vm0 = vcmp.le.s32.totalorder %v8530_v59, 14  ;;  %vm12156_vm15 = vcmp.le.s32.totalorder %v8536_v32, 14 }
  0xc6   : > { %6249 = vmatmul.mubr.msk.bf16.gmra.mrb[52].mxu0 %vm11732_vm2, %v8382_v6  ;;  %6213 = vmatmul.mubr.msk.bf16.gmra.mrb[52].mxu1 %vm11732_vm2, %v12141_v2  ;;  %v6772_v6 = vpack.i.bf16 %v5665_v44, %v5664_v46  ;;  %v9149_v2 = vpop.permute.xlu0 %6478  ;;  %v5666_v46 = vsel %vm12155_vm0, 1.0, %v11866_v54  ;;  %v5667_v44 = vsel %vm12156_vm15, 1.0, %v11866_v54  ;;  %v9187_v42 = vsel %vm3745_vm3, 1.0, %v11866_v54 }
  0xc7   : > { %6753 = vperm.xlu1 %6446, %v6752_v4   ;;  %6252 = vmatprep.mubr.msk.bf16.mxu0 %vm11732_vm2, %v8457_v56  ;;  %v6757_v4 = vpack.i.bf16 %v5659_v11, %v5658_v12  ;;  %v5663_v56 = vsel %vm12148_vm12, 1.0, %v11866_v54  ;;  %12149 = vst [vmem:[#allocation28_spill] sm:$0xff] %v9149_v2  ;;  %v5669_v12 = vsel %vm12152_vm4, 1.0, %v11866_v54  ;;  %12159 = vst [vmem:[#allocation86_spill] sm:$0xff] %v9187_v42  ;;  %vm12161_vm11 = vcmp.le.s32.totalorder %v8559_v28, 14  ;;  %v12163_v2 = vld [vmem:[#allocation74_spill] sm:$0xff] }
  0xc8   : > { %6216 = vmatprep.mubr.msk.bf16.mxu1 %vm11732_vm2, %v12144_v9  ;;  %v6767_v9 = vpack.i.bf16 %v5663_v56, %v5662_v38  ;;  %v9177_v38 = vpop.permute.xlu1 %6493  ;;  %vm12162_vm13 = vcmp.le.s32.totalorder %v8577_v39, 14  ;;  %vm12170_vm4 = vcmp.le.s32.totalorder %v8636_v1, 14  ;;  %vm12171_vm0 = vcmp.le.s32.totalorder %v8642_v0, 14 }
  0xc9   : > { %6748 = vperm.xlu0 %6435, %v6747_v17   ;;  %v12150_v17 = vld [vmem:[#allocation45_spill] sm:$0xff]  ;;  %12157 = vst [vmem:[#allocation77_spill] sm:$0xff] %v9177_v38  ;;  %v6777_v38 = vpack.i.bf16 %v5667_v44, %v5666_v46  ;;  %v5677_v46 = vsel %vm12170_vm4, 1.0, %v11866_v54  ;;  %v5674_v44 = vsel %vm12171_vm0, 1.0, %v11866_v54  ;;  %vm12172_vm15 = vcmp.le.s32.totalorder %v8657_v23, 14 }
  0xca   : > { %vm12151_vm8 = vcmp.le.s32.totalorder %v12150_v17, 14  ;;  %vm12185_vm0 = vcmp.le.s32.totalorder %v12146_v33, 14 }
  0xcb   : > { %6763 = vperm.xlu1 %6446, %v6762_v20   ;;  %v5668_v11 = vsel %vm12151_vm8, 1.0, %v11866_v54  ;;  %v9165_v20 = vsel %vm3741_vm1, 1.0, %v11866_v54  ;;  %vm12169_vm8 = vcmp.le.s32.totalorder %v8623_v61, 14 }
  0xcc   : > { %12154 = vst [vmem:[#allocation78_spill] sm:$0xff] %v9165_v20  ;;  %v6782_v56 = vpack.i.bf16 %v5669_v12, %v5668_v11  ;;  %v5673_v11 = vsel %vm12162_vm13, 1.0, %v11866_v54  ;;  %v12167_v20 = vld [vmem:[#allocation8_spill] sm:$0xff]  ;;  %v5675_v12 = vsel %vm12172_vm15, 1.0, %v11866_v54  ;;  %vm9267_vm15 = vmand %vm3744_vm9, %vm12185_vm0 }
  0xcd   : > { %6758 = vperm.xlu0 %6435, %v6757_v4   ;;  %v9182_v4 = vsel %vm3744_vm9, 1.0, %v11866_v54  ;;  %vm12168_vm12 = vcmp.le.s32.totalorder %v12167_v20, 14  ;;  %v6797_v53 = vpack.i.bf16 %v5675_v12, %v5674_v44  ;;  %v12188_v12 = vld [vmem:[#allocation30_spill] sm:$0xff]  ;;  %vm12193_vm9 = vcmp.le.s32.totalorder %v12021_v13, 14 }
  0xce   : > { %6253 = vmatmul.mubr.msk.bf16.gmra.mrb[56].mxu0 %vm11732_vm2, %v8564_v18  ;;  %12158 = vst [vmem:[#allocation45_spill] sm:$0xff] %v9182_v4  ;;  %6217 = vmatmul.mubr.msk.bf16.gmra.mrb[56].mxu1 %vm11732_vm2, %v12160_v29  ;;  %v9203_v18 = vpop.permute.xlu0 %6488  ;;  %v5671_v29 = vsel %vm12168_vm12, 1.0, %v11866_v54  ;;  %v9236_v4 = vld [vmem:[%s11392_s6 + $0x10] sm:$0xff]  ;;  %vm12177_vm12 = vcmp.le.s32.totalorder %v12138_v45, 14  ;;  %v9284_v62 = vsel %vm12193_vm9, 1.0, %v11866_v54 }
  0xcf   : > { %6773 = vperm.xlu1 %6446, %v6772_v6   ;;  %6256 = vmatprep.mubr.msk.bf16.mxu0 %vm11732_vm2, %v8572_v35  ;;  %v5672_v6 = vsel %vm12161_vm11, 1.0, %v11866_v54  ;;  %12164 = vst [vmem:[#allocation87_spill] sm:$0xff] %v9203_v18  ;;  %v12165_v35 = vld [vmem:[#allocation7_spill] sm:$0xff]  ;;  %vm12174_vm11 = vcmp.le.s32.totalorder %v12136_v21, 14 }
  0xd0   : > { %6220 = vmatprep.mubr.msk.bf16.mxu1 %vm11732_vm2, %v12163_v2  ;;  %vm12166_vm5 = vcmp.le.s32.totalorder %v12165_v35, 14  ;;  %v6792_v41 = vpack.i.bf16 %v5673_v11, %v5672_v6  ;;  %vm9229_vm13 = vmand %vm3740_vm14, %vm12174_vm11  ;;  %v12180_v21 = vld [vmem:[#allocation35_spill] sm:$0xff]  ;;  %v9431_v6 = vld [vmem:[%s11392_s6 + $0x40] sm:$0xff] }
  0xd1   : > { %6768 = vperm.xlu0 %6435, %v6767_v9   ;;  %v5670_v55 = vsel %vm12166_vm5, 1.0, %v11866_v54  ;;  %v5676_v9 = vsel %vm12169_vm8, 1.0, %v11866_v54  ;;  %vm11731_vm5 = vcmp.le.s32.totalorder %v9236_v4, 14  ;;  %vm9243_vm8 = vmand %vm3741_vm1, %vm12177_vm12  ;;  %vm12181_vm14 = vcmp.le.s32.totalorder %v12180_v21, 14 }
  0xd2   : > { %v6787_v18 = vpack.i.bf16 %v5671_v29, %v5670_v55  ;;  %v6802_v11 = vpack.i.bf16 %v5677_v46, %v5676_v9  ;;  %v5680_v55 = vsel %vm12181_vm14, 1.0, %v11866_v54  ;;  %v9255_v45 = vpop.permute.xlu0 %6498  ;;  %vm11734_vm1 = vcmp.le.s32.totalorder %v9260_v5, 14  ;;  %v12189_v46 = vld [vmem:[#allocation83_spill] sm:$0xff] }
  0xd3   : > { %6783 = vperm.xlu1 %6446, %v6782_v56   ;;  %v9223_v56 = vpop.permute.xlu1 %6503  ;;  %12184 = vst [vmem:[#allocation8_spill] sm:$0xff] %v9255_v45  ;;  %vm12190_vm11 = vcmp.le.s32.totalorder %v12189_v46, 14  ;;  %v12191_v45 = vld [vmem:[#allocation85_spill] sm:$0xff]  ;;  %vm12194_vm14 = vcmp.le.s32.totalorder %v12023_v49, 14 }
  0xd4   : > { %12173 = vst [vmem:[#allocation7_spill] sm:$0xff] %v9223_v56  ;;  %v5678_v44 = vsel %vm12190_vm11, 1.0, %v11866_v54  ;;  %vm12192_vm12 = vcmp.le.s32.totalorder %v12191_v45, 14  ;;  %v9289_v56 = vsel %vm12194_vm14, 1.0, %v11866_v54  ;;  %vm12199_vm11 = vcmp.le.s32.totalorder %v12024_v36, 14 }
  0xd5   : > { %6778 = vperm.xlu0 %6435, %v6777_v38   ;;  %v12182_v38 = vld [vmem:[#allocation47_spill] sm:$0xff]  ;;  %v5679_v33 = vsel %vm12192_vm12, 1.0, %v11866_v54  ;;  %v9304_v42 = vsel %vm12199_vm11, 1.0, %v11866_v54  ;;  %v6822_v13 = vpack.i.bf16 %v9289_v56, %v9284_v62  ;;  %v9352_v45 = vsel %vm11733_vm10, 1.0, %v11866_v54  ;;  %v12214_v56 = vld [vmem:[#allocation10_spill] sm:$0xff]  ;;  %v9389_v62 = vld [vmem:[%s11392_s6 + $0x50] sm:$0xff] }
  0xd6   : > { %6257 = vmatmul.mubr.msk.bf16.gmra.mrb[60].mxu0 %vm11732_vm2, %v8684_v19  ;;  %vm12183_vm4 = vcmp.le.s32.totalorder %v12182_v38, 14  ;;  %6221 = vmatmul.mubr.msk.bf16.gmra.mrb[60].mxu1 %vm11732_vm2, %v12188_v12  ;;  %v12198_v19 = vld [vmem:[#allocation42_spill] sm:$0xff]  ;;  %v9309_v12 = vsel %vm11730_vm6, 1.0, %v11866_v54  ;;  %v6807_v36 = vpack.i.bf16 %v5679_v33, %v5678_v44  ;;  %vm12211_vm6 = vcmp.ge.s32.totalorder %v12210_v25, 1  ;;  %v9379_v44 = vpop.permute.xlu0 %6508 }
  0xd7   : > { %6793 = vperm.xlu1 %6446, %v6792_v41   ;;  %v5681_v9 = vsel %vm12183_vm4, 1.0, %v11866_v54  ;;  %6260 = vmatprep.mubr.msk.bf16.mxu0 %vm11732_vm2, %v8706_v60  ;;  %vm12195_vm4 = vcmp.le.s32.totalorder %v8281_v34, 14  ;;  %v12200_v34 = vld [vmem:[#allocation13_spill] sm:$0xff]  ;;  %v9339_v49 = vpop.permute.xlu1 %6513  ;;  %vm12218_vm10 = vcmp.le.s32.totalorder %v8416_v10, 14  ;;  %12219 = vst [vmem:[#allocation47_spill] sm:$0xff] %v9379_v44  ;;  %v12226_v44 = vld [vmem:[#allocation59_spill] sm:$0xff] }
  0xd8   : > { %vm9295_vm0 = vmand %vm3745_vm3, %vm12195_vm4  ;;  %6224 = vmatprep.mubr.msk.bf16.mxu1 %vm11732_vm2, %v12198_v19  ;;  %vm12201_vm12 = vcmp.ge.s32.totalorder %v12200_v34, 1  ;;  %v9328_v19 = vld [vmem:[%s11392_s6 + $0x38] sm:$0xff]  ;;  %v12204_v34 = vld [vmem:[#allocation14_spill] sm:$0xff]  ;;  %v6812_v47 = vpack.i.bf16 %v5681_v9, %v5680_v55  ;;  %12208 = vst [vmem:[#allocation35_spill] sm:$0xff] %v9339_v49 }
  0xd9   : > { %6788 = vperm.xlu0 %6435, %v6787_v18   ;;  %vm9315_vm3 = vmand %vm11731_vm5, %vm12201_vm12  ;;  %v9322_v18 = vld [vmem:[%s11392_s6 + $0x30] sm:$0xff]  ;;  %vm11736_vm14 = vcmp.le.s32.totalorder %v9328_v19, 14  ;;  %vm12205_vm4 = vcmp.ge.s32.totalorder %v12204_v34, 1  ;;  %v9413_v34 = vsel %vm9229_vm13, 1.0, %v11866_v54  ;;  %vm11744_vm13 = vcmp.le.s32.totalorder %v9431_v6, 14  ;;  %v12288_v9 = vld [vmem:[#allocation57_spill] sm:$0xff] }
  0xda   : > { %vm11737_vm9 = vcmp.le.s32.totalorder %v9322_v18, 14  ;;  %vm9335_vm11 = vmand %vm11734_vm1, %vm12205_vm4  ;;  %vm12209_vm4 = vcmp.le.s32.totalorder %v12036_v48, 14  ;;  %12223 = vst [vmem:[#allocation13_spill] sm:$0xff] %v9413_v34  ;;  %v12242_v34 = vld [vmem:[#allocation61_spill] sm:$0xff] }
  0xdb   : > { %6803 = vperm.xlu1 %6446, %v6802_v11   ;;  %vm4738_vm12 = vmand %vm11731_vm5, %vm2070_vm7  ;;  %v9357_v11 = vsel %vm12209_vm4, 1.0, %v11866_v54  ;;  %vm12215_vm5 = vcmp.ge.s32.totalorder %v12214_v56, 1  ;;  %v12348_v60 = vld [vmem:[#allocation37_spill] sm:$0xff] }
  0xdc   : > { %vm9363_vm7 = vmand %vm11737_vm9, %vm12211_vm6  ;;  %vm12220_vm6 = vcmp.le.s32.totalorder %v12037_v7, 14  ;;  %v9393_v10 = vsel %vm4738_vm12, 1.0, %v11866_v54  ;;  %vm12225_vm12 = vcmp.le.s32.totalorder %v8468_v58, 14  ;;  %v6832_v56 = vpack.i.bf16 %v9357_v11, %v9352_v45  ;;  %v12231_v45 = vld [vmem:[#allocation55_spill] sm:$0xff]  ;;  %v12232_v11 = vld [vmem:[#allocation50_spill] sm:$0xff] }
  0xdd   : > { %vm9371_vm2 = vmand %vm11736_vm14, %vm12215_vm5  ;;  %6798 = vperm.xlu0 %6435, %v6797_v53   ;;  %v9384_v33 = vsel %vm12220_vm6, 1.0, %v11866_v54  ;;  %vm11746_vm5 = vcmp.le.s32.totalorder %v9389_v62, 14  ;;  %12221 = vst [vmem:[#allocation83_spill] sm:$0xff] %v9393_v10  ;;  %v9405_v53 = vld [vmem:[%s11392_s6 + $0x58] sm:$0xff]  ;;  %v9523_v10 = vsel %vm9335_vm11, 1.0, %v11866_v54  ;;  %vm12254_vm11 = vcmp.le.s32.totalorder %v8536_v32, 14 }
  0xde   : > { %vm4739_vm4 = vmand %vm11734_vm1, %vm12218_vm10  ;;  %vm12222_vm10 = vcmp.le.s32.totalorder %v8462_v14, 14  ;;  %vm11743_vm6 = vcmp.le.s32.totalorder %v9405_v53, 14  ;;  %v9418_v14 = vsel %vm9243_vm8, 1.0, %v11866_v54  ;;  %vm12228_vm8 = vcmp.le.s32.totalorder %v12150_v17, 14  ;;  %v9462_v17 = vld [vmem:[%s11392_s6 + $0x48] sm:$0xff]  ;;  %v12330_v58 = vld [vmem:[#allocation32_spill] sm:$0xff] }
  0xdf   : > { %v9396_v25 = vsel %vm4739_vm4, 1.0, %v11866_v54  ;;  %vm4742_vm1 = vmand %vm11737_vm9, %vm12222_vm10  ;;  %12224 = vst [vmem:[#allocation14_spill] sm:$0xff] %v9418_v14  ;;  %vm12227_vm10 = vcmask 261120   ;;  %6813 = vperm.xlu1 %6446, %v6812_v47   ;;  %vm12234_vm9 = vcmp.ge.s32.totalorder %v12066_v43, 1  ;;  %v9471_v43 = vsel %vm9267_vm15, 1.0, %v11866_v54  ;;  %v9491_v14 = vpop.permute.xlu1 %6523  ;;  %v9561_v47 = vld [vmem:[%s11392_s6 + $0x60] sm:$0xff] }
  0xe0   : > { %vm4743_vm4 = vmand %vm11736_vm14, %vm12225_vm12  ;;  %6261 = vmatmul.mubr.msk.bf16.gmra.mrb[64].mxu0 %vm12227_vm10, %v12226_v44  ;;  %v9437_v29 = vsel %vm4742_vm1, 1.0, %v11866_v54  ;;  %6225 = vmatmul.mubr.msk.bf16.gmra.mrb[64].mxu1 %vm12227_vm10, %v12231_v45  ;;  %12237 = vst [vmem:[#allocation9_spill] sm:$0xff] %v9471_v43  ;;  %vm12244_vm15 = vcmp.le.s32.totalorder %v12039_v50, 14  ;;  %v9590_v44 = vld [vmem:[%s11392_s6 + $0x68] sm:$0xff]  ;;  %v12267_v43 = vpack.i.bf16 %v9309_v12, %v9304_v42  ;;  %v9626_v42 = vld [vmem:[%s11392_s6 + $0x90] sm:$0xff] }
  0xe1   : > { %vm9443_vm12 = vmand %vm11746_vm5, %vm12228_vm8  ;;  %vm11745_vm8 = vcmp.le.s32.totalorder %v9462_v17, 14  ;;  %v9466_v49 = vsel %vm4743_vm4, 1.0, %v11866_v54  ;;  %6808 = vperm.xlu0 %6435, %v6807_v36   ;;  %v5687_v41 = vsel %vm12244_vm15, 1.0, %v11866_v54  ;;  %12245 = vst [vmem:[#allocation55_spill] sm:$0xff] %v9491_v14  ;;  %v9504_v36 = vld [vmem:[%s11392_s6 + $0x70] sm:$0xff] }
  0xe2   : > { %vm12233_vm14 = vmmov %vm12227_vm10  ;;  %v9542_v2 = vsel %vm9443_vm12, 1.0, %v11866_v54  ;;  %vm11752_vm12 = vcmp.le.s32.totalorder %v9561_v47, 14 }
  0xe3   : > { %6264 = vmatprep.mubr.msk.bf16.mxu0 %vm12233_vm14, %v12232_v11  ;;  %vm9455_vm1 = vmand %vm11746_vm5, %vm12234_vm9  ;;  %v9476_v11 = vsel %vm9295_vm0, 1.0, %v11866_v54  ;;  %vm12239_vm9 = vcmp.le.s32.totalorder %v8516_v63, 14  ;;  %vm12246_vm0 = vcmp.ge.s32.totalorder %v12068_v51, 1  ;;  %v9518_v51 = vsel %vm9315_vm3, 1.0, %v11866_v54  ;;  %12253 = vst [vmem:[#allocation61_spill] sm:$0xff] %v9542_v2  ;;  %6823 = vperm.xlu1 %6446, %v6822_v13  }
  0xe4   : > { %12238 = vst [vmem:[#allocation10_spill] sm:$0xff] %v9476_v11  ;;  %vm9482_vm14 = vmand %vm11743_vm6, %vm12239_vm9  ;;  %vm11750_vm9 = vcmp.le.s32.totalorder %v9504_v36, 14  ;;  %v6827_v11 = vpack.i.bf16 %v5687_v41, %v9384_v33  ;;  %v12275_v33 = vld [vmem:[#allocation62_spill] sm:$0xff]  ;;  %v9648_v41 = vpop.permute.xlu1 %6533  ;;  %v12323_v63 = vpack.i.bf16 %v9060_v3, %v9057_v30  ;;  %v9823_v30 = vld [vmem:[%s11392_s6 + $0xa8] sm:$0xff] }
  0xe5   : > { %vm12243_vm4 = vmmov %vm12227_vm10  ;;  %v9567_v32 = vsel %vm9482_vm14, 1.0, %v11866_v54  ;;  %vm11753_vm14 = vcmp.le.s32.totalorder %v9590_v44, 14  ;;  %6818 = vperm.xlu0 %6435, %v12267_v43   ;;  %v6842_v43 = vpack.i.bf16 %v9523_v10, %v9518_v51  ;;  %12277 = vst [vmem:[#allocation94_spill] sm:$0xff] %v9648_v41  ;;  %v12282_v10 = vmov 0 }
  0xe6   : > { %6228 = vmatprep.mubr.msk.bf16.mxu1 %vm12243_vm4, %v12242_v34  ;;  %vm9497_vm10 = vmand %vm11743_vm6, %vm12246_vm0  ;;  %vm12249_vm4 = vcmp.le.s32.totalorder %v8530_v59, 14  ;;  %vm12250_vm0 = vcmp.ge.s32.totalorder %v12071_v26, 1  ;;  %v9536_v59 = vld [vmem:[%s11392_s6 + $0x78] sm:$0xff]  ;;  %v9548_v26 = vpop.permute.xlu0 %6518 }
  0xe7   : > { %vm4744_vm15 = vmand %vm11744_vm13, %vm12249_vm4  ;;  %vm11751_vm3 = vcmp.le.s32.totalorder %v9536_v59, 14  ;;  %12255 = vst [vmem:[#allocation88_spill] sm:$0xff] %v9548_v26  ;;  %6833 = vperm.xlu1 %6446, %v6832_v56   ;;  %v12356_v26 = vld [vmem:[#allocation20_spill] sm:$0xff] }
  0xe8   : > { %vm9529_vm6 = vmand %vm11744_vm13, %vm12250_vm0  ;;  %vm12256_vm0 = vcmp.ge.s32.totalorder %v12073_v40, 1  ;;  %v9570_v13 = vsel %vm4744_vm15, 1.0, %v11866_v54  ;;  %vm12265_vm15 = vcmp.le.s32.totalorder %v8577_v39, 14 }
  0xe9   : > { %vm4745_vm4 = vmand %vm11745_vm8, %vm12254_vm11  ;;  %12259 = vst [vmem:[#allocation89_spill] sm:$0xff] %v9570_v13  ;;  %vm12261_vm11 = vcmp.le.s32.totalorder %v8559_v28, 14  ;;  %v12279_v28 = vmov 0  ;;  %6828 = vperm.xlu0 %6435, %v6827_v11  }
  0xea   : > { %vm9554_vm13 = vmand %vm11745_vm8, %vm12256_vm0  ;;  %v9573_v40 = vsel %vm4745_vm4, 1.0, %v11866_v54  ;;  %vm12262_vm8 = vcmp.ge.s32.totalorder %v12076_v22, 1  ;;  %vm12268_vm4 = vcmp.ge.s32.totalorder %v12078_v8, 1  ;;  %v9632_v8 = vld [vmem:[%s11392_s6 + $0x98] sm:$0xff] }
  0xeb   : > { %12260 = vst [vmem:[#allocation90_spill] sm:$0xff] %v9573_v40  ;;  %vm4750_vm0 = vmand %vm11750_vm9, %vm12261_vm11  ;;  %6843 = vperm.xlu1 %6446, %v6842_v43   ;;  %v9799_v43 = vpop.permute.xlu1 %6543 }
  0xec   : > { %vm9583_vm5 = vmand %vm11750_vm9, %vm12262_vm8  ;;  %v9602_v22 = vsel %vm4750_vm0, 1.0, %v11866_v54  ;;  %vm12272_vm0 = vcmp.le.s32.totalorder %v12165_v35, 14  ;;  %vm11757_vm9 = vcmp.le.s32.totalorder %v9626_v42, 14  ;;  %v5718_v35 = vsel %vm9363_vm7, 1.0, %v11866_v54  ;;  %12324 = vst [vmem:[#allocation100_spill] sm:$0xff] %v9799_v43  ;;  %v12337_v43 = vld [vmem:[#allocation85_spill] sm:$0xff] }
  0xed   : > { %vm4751_vm8 = vmand %vm11751_vm3, %vm12265_vm15  ;;  %12266 = vst [vmem:[#allocation91_spill] sm:$0xff] %v9602_v22  ;;  %6838 = vperm.xlu0 %6435, %v12323_v63   ;;  %v12343_v63 = vld [vmem:[#allocation33_spill] sm:$0xff] }
  0xee   : > { %vm9612_vm11 = vmand %vm11751_vm3, %vm12268_vm4  ;;  %v9617_v39 = vsel %vm4751_vm8, 1.0, %v11866_v54  ;;  %vm12273_vm4 = vcmp.le.s32.totalorder %v12167_v20, 14  ;;  %vm12276_vm3 = vcmask 261120   ;;  %v5719_v20 = vsel %vm9371_vm2, 1.0, %v11866_v54 }
  0xef   : > { %12271 = vst [vmem:[#allocation92_spill] sm:$0xff] %v9617_v39  ;;  %vm4748_vm15 = vmand %vm11752_vm12, %vm12272_vm0  ;;  %6265 = vmatmul.mubr.msk.bf16.gmra.mrb[68].mxu0 %vm12276_vm3, %v12275_v33  ;;  %vm12281_vm3 = vcmp.ge.s32.totalorder %v12083_v15, 1  ;;  %vm12285_vm2 = vcmp.le.s32.totalorder %v8623_v61, 14  ;;  %v9686_v15 = vld [vmem:[%s11392_s6 + $0x80] sm:$0xff]  ;;  %v9692_v61 = vld [vmem:[%s11392_s6 + $0x88] sm:$0xff]  ;;  %v9706_v33 = vpop.permute.xlu0 %6528  ;;  %v6852_v41 = vpack.i.bf16 %v5719_v20, %v5718_v35  ;;  %v5720_v20 = vsel %vm9529_vm6, 1.0, %v11866_v54  ;;  %v9940_v2 = vpop.permute.xlu1 %6553 }
  0xf0   : > { %vm4749_vm0 = vmand %vm11753_vm14, %vm12273_vm4  ;;  %v9642_v12 = vsel %vm4748_vm15, 1.0, %v11866_v54  ;;  %vm12278_vm15 = vcmp.ge.s32.totalorder %v12081_v16, 1  ;;  %v12286_v16 = vld [vmem:[#allocation66_spill] sm:$0xff]  ;;  %vm3761_vm6 = vcmp.le.s32.totalorder %v9823_v30, 14  ;;  %v12359_v39 = vld [vmem:[#allocation76_spill] sm:$0xff]  ;;  %12369 = vst [vmem:[#allocation20_spill] sm:$0xff] %v9940_v2 }
  0xf1   : > { %12274 = vst [vmem:[#allocation93_spill] sm:$0xff] %v9642_v12  ;;  %vm9660_vm4 = vmand %vm11752_vm12, %vm12278_vm15  ;;  %v9673_v55 = vsel %vm4749_vm0, 1.0, %v11866_v54  ;;  %vm12287_vm15 = vcmask 261120   ;;  %v5722_v12 = vsel %vm9455_vm1, 1.0, %v11866_v54  ;;  %vm12318_vm1 = vcmp.le.s32.totalorder %v12180_v21, 14  ;;  %6853 = vperm.xlu1 %6446, %v6852_v41   ;;  %v12350_v41 = vld [vmem:[#allocation73_spill] sm:$0xff] }
  0xf2   : > { %v12280_v28 = vsel %vm9660_vm4, 4294967295, %v12279_v28  ;;  %vm9668_vm8 = vmand %vm11753_vm14, %vm12281_vm3  ;;  %12284 = vst [vmem:[#allocation95_spill] sm:$0xff] %v9673_v55  ;;  %6229 = vmatmul.mubr.msk.bf16.gmra.mrb[68].mxu1 %vm12287_vm15, %v12286_v16  ;;  %vm12294_vm14 = vcmask 261120   ;;  %vm12296_vm3 = vcmp.ge.s32.totalorder %v12088_v57, 1  ;;  %v9734_v57 = vld [vmem:[%s11392_s6 + $0xb0] sm:$0xff]  ;;  %v12357_v55 = vld [vmem:[#allocation19_spill] sm:$0xff] }
  0xf3   : > { %v12283_v10 = vsel %vm9668_vm8, 4294967295, %v12282_v10  ;;  %vm4754_vm7 = vmand %vm11757_vm9, %vm12285_vm2  ;;  %vm12290_vm2 = vcmp.le.s32.totalorder %v8636_v1, 14  ;;  %vm12299_vm8 = vcmp.ge.s32.totalorder %v12090_v24, 1  ;;  %v12301_v1 = vmov 0  ;;  %v9740_v24 = vld [vmem:[%s11392_s6 + $0xb8] sm:$0xff] }
  0xf4   : > { %vm12289_vm12 = vmmov %vm12287_vm15  ;;  %v9702_v51 = vsel %vm4754_vm7, 1.0, %v11866_v54  ;;  %v12358_v22 = vpack.i.bf16 %v12356_v26, %v12357_v55  ;;  %v12362_v55 = vld [vmem:[#allocation43_spill] sm:$0xff]  ;;  %v9951_v26 = vld [vmem:[%s11392_s6 + $0xe0] sm:$0xff] }
  0xf5   : > { %6268 = vmatprep.mubr.msk.bf16.mxu0 %vm12289_vm12, %v12288_v9  ;;  %vm12291_vm12 = vcmp.le.s32.totalorder %v9632_v8, 14  ;;  %12292 = vst [vmem:[#allocation66_spill] sm:$0xff] %v9702_v51  ;;  %v12293_v9 = vld [vmem:[#allocation70_spill] sm:$0xff]  ;;  %vm9712_vm0 = vmand %vm11757_vm9, %vm12296_vm3  ;;  %vm12310_vm9 = vcmp.le.s32.totalorder %v9686_v15, 14  ;;  %vm12313_vm3 = vcmp.ge.s32.totalorder %v12094_v31, 1  ;;  %v12325_v51 = vld [vmem:[#allocation31_spill] sm:$0xff] }
  0xf6   : > { %vm4755_vm15 = vmand %vm12291_vm12, %vm12290_vm2  ;;  %6232 = vmatprep.mubr.msk.bf16.mxu1 %vm12294_vm14, %v12293_v9  ;;  %12295 = vst [vmem:[#allocation70_spill] sm:$0xff] %v9706_v33  ;;  %vm12304_vm14 = vcmp.le.s32.totalorder %v8642_v0, 14  ;;  %v9784_v31 = vld [vmem:[%s11392_s6 + $0xa0] sm:$0xff]  ;;  %6848 = vperm.xlu0 %6435, %v12358_v22  }
  0xf7   : > { %vm12300_vm2 = vmmov %vm12291_vm12  ;;  %v9725_v11 = vsel %vm4755_vm15, 1.0, %v11866_v54  ;;  %vm12305_vm12 = vcmp.le.s32.totalorder %v9686_v15, 14  ;;  %vm12306_vm15 = vcmp.le.s32.totalorder %v8657_v23, 14 }
  0xf8   : > { %vm9720_vm7 = vmand %vm12300_vm2, %vm12299_vm8  ;;  %12303 = vst [vmem:[#allocation96_spill] sm:$0xff] %v9725_v11  ;;  %vm12307_vm2 = vcmp.le.s32.totalorder %v9692_v61, 14  ;;  %v5726_v11 = vsel %vm9583_vm5, 1.0, %v11866_v54  ;;  %vm12349_vm5 = vcmp.le.s32.totalorder %v12348_v60, 14 }
  0xf9   : > { %v12302_v1 = vsel %vm9720_vm7, 4294967295, %v12301_v1  ;;  %vm4752_vm4 = vmand %vm12305_vm12, %vm12304_vm14  ;;  %vm12309_vm12 = vcmp.ge.s32.totalorder %v12092_v52, 1  ;;  %v5723_v52 = vsel %vm9497_vm10, 1.0, %v11866_v54  ;;  %vm12326_vm10 = vcmp.ge.s32.totalorder %v12325_v51, 1 }
  0xfa   : > { %vm4753_vm14 = vmand %vm12307_vm2, %vm12306_vm15  ;;  %v9750_v33 = vsel %vm4752_vm4, 1.0, %v11866_v54  ;;  %v5721_v51 = vsel %vm9554_vm13, 1.0, %v11866_v54  ;;  %vm12341_vm13 = vcmask 261120  }
  0xfb   : > { %12308 = vst [vmem:[#allocation97_spill] sm:$0xff] %v9750_v33  ;;  %vm9759_vm8 = vmand %vm12310_vm9, %vm12309_vm12  ;;  %v9772_v35 = vsel %vm4753_vm14, 1.0, %v11866_v54  ;;  %vm11771_vm9 = vcmp.le.s32.totalorder %v9784_v31, 14  ;;  %vm12321_vm14 = vcmp.le.s32.totalorder %v9740_v24, 14  ;;  %6269 = vmatmul.mubr.msk.bf16.gmra.mrb[72].mxu0 %vm12341_vm13, %v12340_v37  ;;  %v9853_v33 = vpop.permute.xlu0 %6538  ;;  %v9869_v37 = vld [vmem:[%s11392_s6 + $0xd8] sm:$0xff]  ;;  %6233 = vmatmul.mubr.msk.bf16.gmra.mrb[72].mxu1 %vm12341_vm13, %v12350_v41  ;;  %v6857_v13 = vpack.i.bf16 %v5721_v51, %v5720_v20 }
  0xfc   : > { %vm12314_vm15 = vmmov %vm12307_vm2  ;;  %12317 = vst [vmem:[#allocation98_spill] sm:$0xff] %v9772_v35  ;;  %vm12319_vm2 = vcmp.le.s32.totalorder %v9734_v57, 14  ;;  %v6862_v35 = vpack.i.bf16 %v5723_v52, %v5722_v12  ;;  %v12351_v52 = vld [vmem:[#allocation4_spill] sm:$0xff] }
  0xfd   : > { %vm9767_vm4 = vmand %vm12314_vm15, %vm12313_vm3  ;;  %vm12320_vm3 = vcmp.le.s32.totalorder %v12182_v38, 14  ;;  %12342 = vst [vmem:[#allocation85_spill] sm:$0xff] %v9853_v33  ;;  %v9889_v33 = vld [vmem:[%s11392_s6 + $0xc0] sm:$0xff]  ;;  %6858 = vperm.xlu0 %6435, %v6857_v13   ;;  %v5728_v13 = vsel %vm9759_vm8, 1.0, %v11866_v54 }
  0xfe   : > { %vm4758_vm7 = vmand %vm12319_vm2, %vm12318_vm1  ;;  %6863 = vperm.xlu1 %6446, %v6862_v35  }
  0xff   : > { %vm4759_vm12 = vmand %vm12321_vm14, %vm12320_vm3  ;;  %v9794_v21 = vsel %vm4758_vm7, 1.0, %v11866_v54  ;;  %vm12331_vm7 = vcmp.ge.s32.totalorder %v12330_v58, 1  ;;  %v9839_v58 = vld [vmem:[%s11392_s6 + $0xd0] sm:$0xff] }
 0x100   : > { %12322 = vst [vmem:[#allocation99_spill] sm:$0xff] %v9794_v21  ;;  %vm12327_vm15 = vmmov %vm12319_vm2  ;;  %v9827_v14 = vsel %vm4759_vm12, 1.0, %v11866_v54  ;;  %vm12338_vm12 = vcmp.le.s32.totalorder %v12337_v43, 14  ;;  %v9909_v21 = vld [vmem:[%s11392_s6 + $0xc8] sm:$0xff] }
 0x101   : > { %vm9808_vm1 = vmand %vm12327_vm15, %vm12326_vm10  ;;  %12335 = vst [vmem:[#allocation31_spill] sm:$0xff] %v9827_v14  ;;  %vm11774_vm15 = vcmp.le.s32.totalorder %v9839_v58, 14  ;;  %v12353_v14 = vld [vmem:[#allocation38_spill] sm:$0xff] }
 0x102   : > { %vm12332_vm2 = vmmov %vm12321_vm14  ;;  %vm12336_vm14 = vcmp.le.s32.totalorder %v12189_v46, 14 }
 0x103   : > { %vm9816_vm3 = vmand %vm12332_vm2, %vm12331_vm7  ;;  %vm12344_vm2 = vcmp.ge.s32.totalorder %v12343_v63, 1  ;;  %v5727_v63 = vsel %vm9612_vm11, 1.0, %v11866_v54 }
 0x104   : > { %vm4756_vm10 = vmand %vm11771_vm9, %vm12336_vm14 }
 0x105   : > { %vm4757_vm7 = vmand %vm3761_vm6, %vm12338_vm12  ;;  %v9849_v46 = vsel %vm4756_vm10, 1.0, %v11866_v54  ;;  %vm11772_vm10 = vcmp.le.s32.totalorder %v9869_v37, 14 }
 0x106   : > { %12339 = vst [vmem:[#allocation32_spill] sm:$0xff] %v9849_v46  ;;  %vm9862_vm14 = vmand %vm11771_vm9, %vm12344_vm2  ;;  %v9873_v12 = vsel %vm4757_vm7, 1.0, %v11866_v54  ;;  %vm3764_vm7 = vcmp.le.s32.totalorder %v9889_v33, 14  ;;  %v9915_v46 = vld [vmem:[%s11392_s6 + $0xf0] sm:$0xff]  ;;  %vm12364_vm9 = vnez %v12280_v28  ;;  %v6872_v28 = vpack.i.bf16 %v5727_v63, %v5726_v11 }
 0x107   : > { %12347 = vst [vmem:[#allocation33_spill] sm:$0xff] %v9873_v12  ;;  %vm4762_vm12 = vmand %vm11774_vm15, %vm12349_vm5  ;;  %vm12354_vm5 = vcmp.le.s32.totalorder %v12353_v14, 14  ;;  %v5724_v20 = vsel %vm12364_vm9, 1.0, %v11866_v54  ;;  %v12366_v12 = vld [vmem:[#allocation44_spill] sm:$0xff]  ;;  %v5730_v11 = vsel %vm9712_vm0, 1.0, %v11866_v54  ;;  %v5732_v3 = vsel %vm9862_vm14, 1.0, %v11866_v54 }
 0x108   : > { %vm12352_vm2 = vmmov %vm12341_vm13  ;;  %vm12367_vm15 = vcmp.le.s32.totalorder %v12366_v12, 14  ;;  %6873 = vperm.xlu1 %6446, %v6872_v28   ;;  %vm12395_vm14 = vcmp.ge.s32.totalorder %v12033_v27, 1  ;;  %v12412_v28 = vld [vmem:[#allocation49_spill] sm:$0xff] }
 0x109   : > { %6272 = vmatprep.mubr.msk.bf16.mxu0 %vm12352_vm2, %v12351_v52  ;;  %vm4763_vm13 = vmand %vm11772_vm10, %vm12354_vm5  ;;  %v9899_v52 = vsel %vm4762_vm12, 1.0, %v11866_v54  ;;  %vm3770_vm12 = vcmp.le.s32.totalorder %v9915_v46, 14  ;;  %vm12363_vm5 = vcmp.le.s32.totalorder %v12362_v55, 14  ;;  %vm12365_vm10 = vnez %v12283_v10  ;;  %v9945_v10 = vld [vmem:[%s11392_s6 + $0xf8] sm:$0xff] }
 0x10a   : > { %12355 = vst [vmem:[#allocation37_spill] sm:$0xff] %v9899_v52  ;;  %vm12360_vm11 = vmmov %vm12352_vm2  ;;  %vm11778_vm2 = vcmp.le.s32.totalorder %v9909_v21, 14  ;;  %v9919_v22 = vsel %vm4763_vm13, 1.0, %v11866_v54  ;;  %v5725_v51 = vsel %vm12365_vm10, 1.0, %v11866_v54  ;;  %vm3771_vm9 = vcmp.le.s32.totalorder %v9945_v10, 14 }
 0x10b   : > { %6236 = vmatprep.mubr.msk.bf16.mxu1 %vm12360_vm11, %v12359_v39  ;;  %12361 = vst [vmem:[#allocation73_spill] sm:$0xff] %v9919_v22  ;;  %vm4760_vm11 = vmand %vm3764_vm7, %vm12363_vm5  ;;  %vm12371_vm10 = vcmp.le.s32.totalorder %v12033_v27, 14  ;;  %v9976_v22 = vpop.permute.xlu0 %6548  ;;  %v6867_v56 = vpack.i.bf16 %v5725_v51, %v5724_v20  ;;  %v5729_v20 = vsel %vm9767_vm4, 1.0, %v11866_v54  ;;  %v12382_v51 = vld [vmem:[#allocation29_spill] sm:$0xff]  ;;  %v5796_v33 = vsel %vm3770_vm12, 1.0, %v11866_v54 }
 0x10c   : > { %vm4761_vm13 = vmand %vm11778_vm2, %vm12367_vm15  ;;  %v9938_v40 = vsel %vm4760_vm11, 1.0, %v11866_v54  ;;  %vm3768_vm15 = vcmp.le.s32.totalorder %v9951_v26, 14  ;;  %vm12372_vm11 = vnez %v12302_v1  ;;  %vm12373_vm2 = vcmp.le.s32.totalorder %v12036_v48, 14  ;;  %12375 = vst [vmem:[#allocation43_spill] sm:$0xff] %v9976_v22  ;;  %v9981_v1 = vld [vmem:[%s11392_s6 + $0xe8] sm:$0xff] }
 0x10d   : > { %12368 = vst [vmem:[#allocation38_spill] sm:$0xff] %v9938_v40  ;;  %v9955_v52 = vsel %vm4761_vm13, 1.0, %v11866_v54  ;;  %vm4766_vm5 = vmand %vm3770_vm12, %vm12371_vm10  ;;  %v5731_v35 = vsel %vm12372_vm11, 1.0, %v11866_v54  ;;  %vm3769_vm0 = vcmp.le.s32.totalorder %v9981_v1, 14  ;;  %vm12376_vm10 = vcmp.le.s32.totalorder %v12037_v7, 14  ;;  %v12378_v40 = vld [vmem:[#allocation75_spill] sm:$0xff]  ;;  %6868 = vperm.xlu0 %6435, %v6867_v56  }
 0x10e   : > { %12370 = vst [vmem:[#allocation19_spill] sm:$0xff] %v9955_v52  ;;  %vm4767_vm13 = vmand %vm3771_vm9, %vm12373_vm2  ;;  %v9974_v2 = vsel %vm4766_vm5, 1.0, %v11866_v54  ;;  %vm12377_vm5 = vcmp.le.s32.totalorder %v12039_v50, 14  ;;  %v6882_v0 = vpack.i.bf16 %v5731_v35, %v5730_v11  ;;  %v12380_v52 = vld [vmem:[#allocation34_spill] sm:$0xff]  ;;  %v10031_v11 = vpop.permute.xlu1 %6563  ;;  %v6877_v38 = vpack.i.bf16 %v5729_v20, %v5728_v13 }
 0x10f   : > { %12374 = vst [vmem:[#allocation76_spill] sm:$0xff] %v9974_v2  ;;  %v9985_v63 = vsel %vm4767_vm13, 1.0, %v11866_v54  ;;  %vm4764_vm2 = vmand %vm3768_vm15, %vm12376_vm10  ;;  %vm12379_vm13 = vcmask 261120   ;;  %vm12381_vm8 = vcmp.ge.s32.totalorder %v12380_v52, 1  ;;  %v12384_v2 = vld [vmem:[#allocation54_spill] sm:$0xff]  ;;  %v5735_v52 = vsel %vm9816_vm3, 1.0, %v11866_v54  ;;  %v10047_v35 = vpop.permute.xlu0 %6558 }
 0x110   : > { %vm4765_vm11 = vmand %vm3769_vm0, %vm12377_vm5  ;;  %v10004_v22 = vsel %vm4764_vm2, 1.0, %v11866_v54  ;;  %6273 = vmatmul.mubr.msk.bf16.gmra.mrb[76].mxu0 %vm12379_vm13, %v12378_v40  ;;  %v5734_v40 = vsel %vm9808_vm1, 1.0, %v11866_v54  ;;  %vm12386_vm2 = vcmp.ge.s32.totalorder %v12348_v60, 1  ;;  %vm12390_vm1 = vcmp.ge.s32.totalorder %v12353_v14, 1  ;;  %6883 = vperm.xlu1 %6446, %v6882_v0   ;;  %v12403_v0 = vld [vmem:[#allocation60_spill] sm:$0xff] }
 0x111   : > { %vm3793_vm4 = vmand %vm3761_vm6, %vm12381_vm8  ;;  %v10013_v23 = vsel %vm4765_vm11, 1.0, %v11866_v54  ;;  %v6892_v56 = vpack.i.bf16 %v5735_v52, %v5734_v40  ;;  %6878 = vperm.xlu0 %6435, %v6877_v38   ;;  %v12406_v52 = vld [vmem:[#allocation41_spill] sm:$0xff]  ;;  %v12408_v38 = vld [vmem:[#allocation24_spill] sm:$0xff] }
 0x112   : > { %vm12383_vm10 = vmmov %vm12379_vm13  ;;  %vm12387_vm13 = vcmp.le.s32.totalorder %v9839_v58, 14  ;;  %v5733_v60 = vsel %vm3793_vm4, 1.0, %v11866_v54  ;;  %v10063_v13 = vpop.permute.xlu1 %6573 }
 0x113   : > { %6237 = vmatmul.mubr.msk.bf16.gmra.mrb[76].mxu1 %vm12383_vm10, %v12382_v51  ;;  %vm12385_vm5 = vmmov %vm12383_vm10  ;;  %vm12391_vm10 = vcmp.le.s32.totalorder %v9869_v37, 14  ;;  %12398 = vst [vmem:[#allocation44_spill] sm:$0xff] %v10063_v13  ;;  %v6887_v40 = vpack.i.bf16 %v5733_v60, %v5732_v3  ;;  %v10091_v3 = vpop.permute.xlu0 %6568 }
 0x114   : > { %6316 = vmatprep.mubr.msk.bf16.mxu0 %vm12385_vm5, %v12384_v2  ;;  %vm3798_vm11 = vmand %vm12387_vm13, %vm12386_vm2  ;;  %v12388_v2 = vld [vmem:[#allocation81_spill] sm:$0xff]  ;;  %vm12393_vm13 = vcmp.ge.s32.totalorder %v12366_v12, 1  ;;  %6893 = vperm.xlu1 %6446, %v6892_v56   ;;  %12409 = vst [vmem:[#allocation34_spill] sm:$0xff] %v10091_v3  ;;  %v7094_v56 = vld [vmem:[%s11390_s4 + $0x88] sm:$0xff]  }
 0x115   : > { %vm12389_vm8 = vmmov %vm12385_vm5  ;;  %vm12392_vm5 = vcmp.ge.s32.totalorder %v12362_v55, 1  ;;  %v5738_v14 = vsel %vm3798_vm11, 1.0, %v11866_v54  ;;  %vm12400_vm11 = vcmp.ge.s32.totalorder %v12037_v7, 1  ;;  %v7093_v7 = vld [vmem:[%s11390_s4 + $0x78] sm:$0xff]   ;;  %6888 = vperm.xlu0 %6435, %v6887_v40  }
 0x116   : > { %6280 = vmatprep.mubr.msk.bf16.mxu1 %vm12389_vm8, %v12388_v2  ;;  %vm3799_vm3 = vmand %vm12391_vm10, %vm12390_vm1  ;;  %vm12394_vm8 = vcmp.le.s32.totalorder %v9909_v21, 14  ;;  %vm12399_vm10 = vcmp.ge.s32.totalorder %v12036_v48, 1 }
 0x117   : > { %vm3796_vm2 = vmand %vm3764_vm7, %vm12392_vm5  ;;  %v5739_v43 = vsel %vm3799_vm3, 1.0, %v11866_v54 }
 0x118   : > { %vm3797_vm1 = vmand %vm12394_vm8, %vm12393_vm13  ;;  %v5736_v12 = vsel %vm3796_vm2, 1.0, %v11866_v54  ;;  %vm12404_vm13 = vcmask 261120   ;;  %v6902_v48 = vpack.i.bf16 %v5739_v43, %v5738_v14  ;;  %vm12405_vm8 = vcmp.ge.s32.totalorder %v12039_v50, 1  ;;  %v12410_v14 = vld [vmem:[#allocation21_spill] sm:$0xff] }
 0x119   : > { %vm10059_vm4 = vmand %vm3770_vm12, %vm12395_vm14  ;;  %v5737_v20 = vsel %vm3797_vm1, 1.0, %v11866_v54  ;;  %6317 = vmatmul.mubr.msk.bf16.vlgmr.msra.gmra.mrb[80].mxu0 %vm12404_vm13, %v12403_v0  ;;  %v10101_v0 = vpop.permute.xlu1 %6583 }
 0x11a   : > { %vm3803_vm5 = vmand %vm3771_vm9, %vm12399_vm10  ;;  %6385 = vmatpush3.bf16.msra.mxu0 %v12408_v38  ;;  %v5742_v60 = vsel %vm10059_vm4, 1.0, %v11866_v54  ;;  %v6897_v43 = vpack.i.bf16 %v5737_v20, %v5736_v12  ;;  %12411 = vst [vmem:[#allocation29_spill] sm:$0xff] %v10101_v0  ;;  %v12414_v38 = vld [vmem:[#allocation64_spill] sm:$0xff]  ;;  %6903 = vperm.xlu1 %6446, %v6902_v48   ;;  %vm12417_vm4 = vcmp.le.s32.totalorder %v9236_v4, 14  ;;  %v12420_v48 = vld [vmem:[#allocation69_spill] sm:$0xff] }
 0x11b   : > { %vm10075_vm3 = vmand %vm3768_vm15, %vm12400_vm11  ;;  %v5743_v50 = vsel %vm3803_vm5, 1.0, %v11866_v54  ;;  %v5768_v40 = vsel %vm12417_vm4, 1.0, %v11866_v54  ;;  %vm12418_vm5 = vcmp.le.s32.totalorder %v9260_v5, 14  ;;  %6386 = vmatprep.subr.bf16.mxu0 %v7094_v56  ;;  %vm12435_vm4 = vcmp.le.s32.totalorder %v9431_v6, 14 }
 0x11c   : > { %vm3801_vm2 = vmand %vm3769_vm0, %vm12405_vm8  ;;  %v5740_v55 = vsel %vm10075_vm3, 1.0, %v11866_v54  ;;  %v6912_v13 = vpack.i.bf16 %v5743_v50, %v5742_v60  ;;  %v5769_v12 = vsel %vm12418_vm5, 1.0, %v11866_v54  ;;  %6898 = vperm.xlu0 %6435, %v6897_v43   ;;  %v12422_v50 = vld [vmem:[#allocation52_spill] sm:$0xff]  ;;  %vm12427_vm8 = vcmp.le.s32.totalorder %v9322_v18, 14 }
 0x11d   : > { %vm12407_vm1 = vmmov %vm12404_vm13  ;;  %v5741_v3 = vsel %vm3801_vm2, 1.0, %v11866_v54  ;;  %v10119_v27 = vpop.permute.xlu1 %6593  ;;  %v6922_v60 = vpack.i.bf16 %v5769_v12, %v5768_v40  ;;  %v5772_v5 = vsel %vm12427_vm8, 1.0, %v11866_v54  ;;  %vm12428_vm2 = vcmp.le.s32.totalorder %v9328_v19, 14  ;;  %v12432_v19 = vld [vmem:[#allocation78_spill] sm:$0xff]  ;;  %v12433_v40 = vld [vmem:[#allocation72_spill] sm:$0xff] }
 0x11e   : > { %6281 = vmatmul.mubr.msk.bf16.vlgmr.msra.gmra.mrb[80].mxu1 %vm12407_vm1, %v12406_v52  ;;  %vm12413_vm14 = vmmov %vm12407_vm1  ;;  %v6907_v20 = vpack.i.bf16 %v5741_v3, %v5740_v55  ;;  %12419 = vst [vmem:[#allocation60_spill] sm:$0xff] %v10119_v27  ;;  %6387 = vmatpush3.bf16.msra.mxu0 %v7094_v56  ;;  %v12429_v3 = vld [vmem:[#allocation11_spill] sm:$0xff]  ;;  %v12434_v12 = vpack.i.bf16 %v12432_v19, %v12433_v40  ;;  %vm12436_vm5 = vcmp.le.s32.totalorder %v9462_v17, 14  ;;  %vm12443_vm8 = vcmp.le.s32.totalorder %v9504_v36, 14  ;;  %v12445_v19 = vld [vmem:[#allocation86_spill] sm:$0xff] }
 0x11f   : > { %6349 = vmatpush3.bf16.msra.mxu1 %v12410_v14  ;;  %6284 = vmatprep.mubr.msk.bf16.mxu1 %vm12413_vm14, %v12412_v28  ;;  %vm12415_vm10 = vmmov %vm12407_vm1  ;;  %v10111_v14 = vpop.permute.xlu0 %6578  ;;  %vm12430_vm14 = vcmp.le.s32.totalorder %v9389_v62, 14  ;;  %v12437_v62 = vld [vmem:[#allocation74_spill] sm:$0xff]  ;;  %v5780_v6 = vsel %vm12443_vm8, 1.0, %v11866_v54  ;;  %v12446_v40 = vld [vmem:[#allocation45_spill] sm:$0xff] }
 0x120   : > { %6320 = vmatprep.mubr.msk.bf16.mxu0 %vm12415_vm10, %v12414_v38  ;;  %6350 = vmatprep.subr.bf16.mxu1 %v7093_v7  ;;  %12416 = vst [vmem:[#allocation54_spill] sm:$0xff] %v10111_v14  ;;  %vm12421_vm11 = vmmov %vm12407_vm1  ;;  %v12425_v38 = vld [vmem:[#allocation71_spill] sm:$0xff]  ;;  %v5776_v55 = vsel %vm12430_vm14, 1.0, %v11866_v54  ;;  %vm12431_vm10 = vcmp.le.s32.totalorder %v9405_v53, 14  ;;  %vm12449_vm14 = vcmp.le.s32.totalorder %v9561_v47, 14 }
 0x121   : > { %6321 = vmatmul.mubr.msk.bf16.gmra.mrb[84].mxu0 %vm12421_vm11, %v12420_v48  ;;  %6913 = vperm.xlu1 %6446, %v6912_v13   ;;  %vm12423_vm3 = vmmov %vm12407_vm1  ;;  %v10137_v13 = vpop.permute.xlu1 %6603  ;;  %v5777_v18 = vsel %vm12431_vm10, 1.0, %v11866_v54  ;;  %v5774_v48 = vsel %vm12435_vm4, 1.0, %v11866_v54  ;;  %vm12450_vm10 = vcmp.le.s32.totalorder %v9590_v44, 14  ;;  %vm12451_vm4 = vcmp.le.s32.totalorder %v9626_v42, 14  ;;  %v12524_v27 = vld [vmem:[#allocation91_spill] sm:$0xff] }
 0x122   : > { %vm12426_vm13 = vmmov %vm12407_vm1  ;;  %6908 = vperm.xlu0 %6435, %v6907_v20   ;;  %v6942_v53 = vpack.i.bf16 %v5777_v18, %v5776_v55  ;;  %v12448_v55 = vld [vmem:[#allocation26_spill] sm:$0xff]  ;;  %v5779_v36 = vsel %vm12450_vm10, 1.0, %v11866_v54 }
 0x123   : > { %6351 = vmatpush3.bf16.msra.mxu1 %v7093_v7  ;;  %v10125_v4 = vpop.permute.xlu0 %6588  ;;  %6324 = vmatprep.mubr.msk.bf16.mxu0 %vm12426_vm13, %v12425_v38  ;;  %v5773_v7 = vsel %vm12428_vm2, 1.0, %v11866_v54  ;;  %vm12438_vm11 = vmmov %vm12407_vm1  ;;  %v12439_v38 = vld [vmem:[#allocation12_spill] sm:$0xff]  ;;  %vm12444_vm2 = vcmp.le.s32.totalorder %v9536_v59, 14 }
 0x124   : > { %12424 = vst [vmem:[#allocation41_spill] sm:$0xff] %v10125_v4  ;;  %v6932_v56 = vpack.i.bf16 %v5773_v7, %v5772_v5  ;;  %v12441_v7 = vld [vmem:[#allocation30_spill] sm:$0xff]  ;;  %vm12442_vm13 = vmmov %vm12407_vm1  ;;  %v5781_v17 = vsel %vm12444_vm2, 1.0, %v11866_v54 }
 0x125   : > { %6923 = vperm.xlu1 %6446, %v6922_v60   ;;  %v10150_v20 = vpop.permute.xlu1 %6613  ;;  %v5775_v60 = vsel %vm12436_vm5, 1.0, %v11866_v54  ;;  %v6952_v59 = vpack.i.bf16 %v5781_v17, %v5780_v6  ;;  %vm12452_vm5 = vcmp.le.s32.totalorder %v9632_v8, 14  ;;  %v12455_v6 = vld [vmem:[#allocation42_spill] sm:$0xff]  ;;  %v12457_v17 = vld [vmem:[#allocation27_spill] sm:$0xff]  ;;  %vm12458_vm8 = vmmov %vm12407_vm1 }
 0x126   : > { %6285 = vmatmul.mubr.msk.bf16.gmra.mrb[84].mxu1 %vm12423_vm3, %v12422_v50  ;;  %6918 = vperm.xlu0 %6435, %v12434_v12   ;;  %vm12440_vm3 = vmmov %vm12407_vm1  ;;  %v6937_v18 = vpack.i.bf16 %v5775_v60, %v5774_v48  ;;  %v5785_v48 = vsel %vm12452_vm5, 1.0, %v11866_v54  ;;  %vm12467_vm5 = vcmp.le.s32.totalorder %v9839_v58, 14 }
 0x127   : > { %6288 = vmatprep.mubr.msk.bf16.mxu1 %vm12407_vm1, %v12429_v3  ;;  %v10139_v43 = vpop.permute.xlu0 %6598  ;;  %vm12459_vm2 = vmmov %vm12407_vm1 }
 0x128   : > { %vm12463_vm10 = vmmov %vm12459_vm2  ;;  %v6601_v2 = vunpack.i.h.bf16 %v10139_v43 }
 0x129   : > { %6325 = vmatmul.mubr.msk.bf16.gmra.mrb[88].mxu0 %vm12438_vm11, %v12437_v62  ;;  %6933 = vperm.xlu1 %6446, %v6932_v56   ;;  %v12447_v56 = vpack.i.bf16 %v12445_v19, %v12446_v40  ;;  %v10177_v12 = vpop.permute.xlu1 %6623  ;;  %v5778_v62 = vsel %vm12449_vm14, 1.0, %v11866_v54  ;;  %v5784_v19 = vsel %vm12451_vm4, 1.0, %v11866_v54  ;;  %vm12453_vm11 = vcmp.le.s32.totalorder %v9686_v15, 14  ;;  %v12462_v40 = vld [vmem:[#allocation48_spill] sm:$0xff]  ;;  %vm12483_vm12 = vmmov %vm12459_vm2 }
 0x12a   : > { %6328 = vmatprep.mubr.msk.bf16.mxu0 %vm12442_vm13, %v12441_v7  ;;  %v6947_v60 = vpack.i.bf16 %v5779_v36, %v5778_v62  ;;  %v5782_v44 = vsel %vm12453_vm11, 1.0, %v11866_v54  ;;  %vm12456_vm13 = vmmov %vm12407_vm1  ;;  %v6962_v42 = vpack.i.bf16 %v5785_v48, %v5784_v19  ;;  %vm12461_vm14 = vcmp.le.s32.totalorder %v9740_v24, 14  ;;  %v10227_v36 = vpop.f32.mrb[0].mxu1 }
 0x12b   : > { %v10162_v5 = vpop.permute.xlu0 %6608  ;;  %6928 = vperm.xlu0 %6435, %v12447_v56   ;;  %vm12464_vm4 = vcmp.le.s32.totalorder %v9784_v31, 14  ;;  %v10231_v19 = vpop.f32.mrb[1].mxu1  ;;  %vm12468_vm11 = vcmp.le.s32.totalorder %v9869_v37, 14 }
 0x12c   : > { %12465 = vst [vmem:[#allocation24_spill] sm:$0xff] %v10231_v19  ;;  %v5793_v31 = vsel %vm12468_vm11, 1.0, %v11866_v54  ;;  %v12597_v19 = vld [vmem:[#allocation84_spill] sm:$0xff] }
 0x12d   : > { %6943 = vperm.xlu1 %6446, %v6942_v53   ;;  %v10193_v47 = vpop.permute.xlu1 %6633 }
 0x12e   : > { %6289 = vmatmul.mubr.msk.bf16.gmra.mrb[88].mxu1 %vm12440_vm3, %v12439_v38  ;;  %vm12454_vm3 = vcmp.le.s32.totalorder %v9692_v61, 14  ;;  %v5789_v61 = vsel %vm12461_vm14, 1.0, %v11866_v54 }
 0x12f   : > { %6292 = vmatprep.mubr.msk.bf16.mxu1 %vm12407_vm1, %v12448_v55  ;;  %v10185_v7 = vpop.permute.xlu0 %6618  ;;  %6938 = vperm.xlu0 %6435, %v6937_v18   ;;  %v5783_v53 = vsel %vm12454_vm3, 1.0, %v11866_v54  ;;  %vm12460_vm1 = vcmp.le.s32.totalorder %v9734_v57, 14  ;;  %v10217_v18 = vpop.f32.mrb[0].mxu0  ;;  %v5787_v57 = vsel %vm3761_vm6, 1.0, %v11866_v54  ;;  %vm12471_vm6 = vcmp.le.s32.totalorder %v9909_v21, 14  ;;  %vm12473_vm3 = vmmov %vm12459_vm2 }
 0x130   : > { %v5788_v15 = vsel %vm12460_vm1, 1.0, %v11866_v54  ;;  %v6957_v56 = vpack.i.bf16 %v5783_v53, %v5782_v44  ;;  %v10243_v53 = vpop.f32.mrb[2].mxu1  ;;  %v5791_v58 = vsel %vm12471_vm6, 1.0, %v11866_v54  ;;  %v5797_v21 = vsel %vm3771_vm9, 1.0, %v11866_v54  ;;  %vm12485_vm9 = vmmov %vm12459_vm2 }
 0x131   : > { %6329 = vmatmul.mubr.msk.bf16.gmra.mrb[92].mxu0 %vm12456_vm13, %v12455_v6  ;;  %6953 = vperm.xlu1 %6446, %v6952_v59   ;;  %v10219_v62 = vpop.permute.xlu1 %6643  ;;  %v6972_v24 = vpack.i.bf16 %v5789_v61, %v5788_v15  ;;  %v10229_v59 = vpop.f32.mrb[1].mxu0  ;;  %12469 = vst [vmem:[#allocation49_spill] sm:$0xff] %v10243_v53  ;;  %v5790_v15 = vsel %vm3764_vm7, 1.0, %v11866_v54  ;;  %vm12475_vm13 = vmmov %vm12459_vm2  ;;  %v6992_v46 = vpack.i.bf16 %v5797_v21, %v5796_v33  ;;  %v12494_v21 = vld [vmem:[#allocation14_spill] sm:$0xff] }
 0x132   : > { %6332 = vmatprep.mubr.msk.bf16.mxu0 %vm12459_vm2, %v12231_v45  ;;  %v5786_v45 = vsel %vm12464_vm4, 1.0, %v11866_v54  ;;  %v10241_v30 = vpop.f32.mrb[2].mxu0  ;;  %v10255_v37 = vpop.f32.mrb[3].mxu1  ;;  %vm12479_vm7 = vmmov %vm12459_vm2 }
 0x133   : > { %v10205_v8 = vpop.permute.xlu0 %6628  ;;  %6948 = vperm.xlu0 %6435, %v6947_v60   ;;  %v5792_v60 = vsel %vm12467_vm5, 1.0, %v11866_v54  ;;  %v6967_v44 = vpack.i.bf16 %v5787_v57, %v5786_v45  ;;  %v10245_v6 = vpop.f32.mrb[3].mxu0  ;;  %12472 = vst [vmem:[#allocation69_spill] sm:$0xff] %v10255_v37  ;;  %v6977_v57 = vpack.i.bf16 %v5791_v58, %v5790_v15  ;;  %v12484_v15 = vld [vmem:[#allocation56_spill] sm:$0xff]  ;;  %v12491_v58 = vld [vmem:[#allocation83_spill] sm:$0xff] }
 0x134   : > { %v6982_v61 = vpack.i.bf16 %v5793_v31, %v5792_v60  ;;  %v5794_v60 = vsel %vm3768_vm15, 1.0, %v11866_v54  ;;  %vm12487_vm15 = vmmov %vm12459_vm2  ;;  %v10302_v33 = vpop.f32.mrb[4].mxu0 }
 0x135   : > { %6963 = vperm.xlu1 %6446, %v6962_v42   ;;  %v10247_v42 = vpop.permute.xlu1 %6653 }
 0x136   : > { %6293 = vmatmul.mubr.msk.bf16.gmra.mrb[92].mxu1 %vm12458_vm8, %v12457_v17  ;;  %12470 = vst [vmem:[#allocation64_spill] sm:$0xff] %v10247_v42  ;;  %vm12477_vm8 = vmmov %vm12459_vm2  ;;  %v6600_v42 = vunpack.i.l.bf16 %v10139_v43 }
 0x137   : > { %6296 = vmatprep.mubr.msk.bf16.mxu1 %vm12463_vm10, %v12462_v40  ;;  %v10233_v48 = vpop.permute.xlu0 %6638  ;;  %6958 = vperm.xlu0 %6435, %v6957_v56   ;;  %v12474_v56 = vld [vmem:[#allocation58_spill] sm:$0xff] }
 0x138   : > { %12466 = vst [vmem:[#allocation21_spill] sm:$0xff] %v10233_v48 }
 0x139   : > { %6333 = vmatmul.mubr.msk.bf16.gmra.mrb[96].mxu0 %vm12473_vm3, %v12242_v34  ;;  %6973 = vperm.xlu1 %6446, %v6972_v24   ;;  %v12478_v34 = vld [vmem:[#allocation51_spill] sm:$0xff]  ;;  %v10273_v24 = vpop.permute.xlu1 %6663 }
 0x13a   : > { %6336 = vmatprep.mubr.msk.bf16.mxu0 %vm12477_vm8, %v12286_v16  ;;  %12480 = vst [vmem:[#allocation71_spill] sm:$0xff] %v10273_v24  ;;  %v5795_v16 = vsel %vm3769_vm0, 1.0, %v11866_v54  ;;  %v12488_v54 = vld [vmem:[#allocation63_spill] sm:$0xff]  ;;  %vm12489_vm0 = vmmov %vm12459_vm2 }
 0x13b   : > { %v10261_v45 = vpop.permute.xlu0 %6648  ;;  %6968 = vperm.xlu0 %6435, %v6967_v44   ;;  %v6987_v10 = vpack.i.bf16 %v5795_v16, %v5794_v60  ;;  %v10307_v16 = vpop.f32.mrb[5].mxu0  ;;  %vm12498_vm2 = vmmov %vm12489_vm0 }
 0x13c   : > { %12476 = vst [vmem:[#allocation52_spill] sm:$0xff] %v10261_v45  ;;  %vm12502_vm1 = vmmov %vm12489_vm0 }
 0x13d   : > { %6983 = vperm.xlu1 %6446, %v6982_v61   ;;  %v10283_v44 = vpop.permute.xlu1 %6673  ;;  %v12492_v61 = vpack.i.bf16 %v9396_v25, %v12491_v58  ;;  %v12499_v25 = vpack.i.bf16 %v9466_v49, %v9437_v29  ;;  %vm12504_vm14 = vmmov %vm12489_vm0  ;;  %v12509_v49 = vld [vmem:[#allocation6_spill] sm:$0xff] }
 0x13e   : > { %6297 = vmatmul.mubr.msk.bf16.gmra.mrb[96].mxu1 %vm12475_vm13, %v12474_v56  ;;  %12482 = vst [vmem:[#allocation78_spill] sm:$0xff] %v10283_v44  ;;  %vm12510_vm10 = vmmov %vm12489_vm0  ;;  %v12518_v44 = vld [vmem:[#allocation89_spill] sm:$0xff] }
 0x13f   : > { %6300 = vmatprep.mubr.msk.bf16.mxu1 %vm12479_vm7, %v12478_v34  ;;  %v10281_v31 = vpop.permute.xlu0 %6658  ;;  %6978 = vperm.xlu0 %6435, %v6977_v57   ;;  %v12495_v57 = vld [vmem:[#allocation13_spill] sm:$0xff]  ;;  %vm12522_vm4 = vmmov %vm12489_vm0 }
 0x140   : > { %12481 = vst [vmem:[#allocation11_spill] sm:$0xff] %v10281_v31  ;;  %v12496_v60 = vpack.i.bf16 %v12494_v21, %v12495_v57  ;;  %v12526_v31 = vld [vmem:[#allocation79_spill] sm:$0xff]  ;;  %vm12527_vm5 = vmmov %vm12489_vm0 }
 0x141   : > { %6337 = vmatmul.mubr.msk.bf16.gmra.mrb[100].mxu0 %vm12483_vm12, %v12293_v9  ;;  %6993 = vperm.xlu1 %6446, %v6992_v46   ;;  %v10295_v1 = vpop.permute.xlu1 %6683  ;;  %v10311_v46 = vpop.f32.mrb[6].mxu0  ;;  %vm12529_vm11 = vmmov %vm12489_vm0 }
 0x142   : > { %6340 = vmatprep.mubr.msk.bf16.mxu0 %vm12487_vm15, %v12350_v41  ;;  %12490 = vst [vmem:[#allocation74_spill] sm:$0xff] %v10295_v1  ;;  %v10320_v58 = vpop.f32.mrb[7].mxu0  ;;  %vm12534_vm6 = vmmov %vm12489_vm0 }
 0x143   : > { %v10289_v26 = vpop.permute.xlu0 %6668  ;;  %6988 = vperm.xlu0 %6435, %v6987_v10   ;;  %v10318_v10 = vpop.f32.mrb[4].mxu1  ;;  %vm12545_vm3 = vmmov %vm12489_vm0 }
 0x144   : > { %12486 = vst [vmem:[#allocation72_spill] sm:$0xff] %v10289_v26  ;;  %12500 = vst [vmem:[#allocation86_spill] sm:$0xff] %v10318_v10  ;;  %v10328_v57 = vpop.f32.mrb[5].mxu1  ;;  %v12517_v26 = vld [vmem:[#allocation90_spill] sm:$0xff] }
 0x145   : > { %7003 = vperm.xlu1 %6446, %v12492_v61   ;;  %v10309_v41 = vpop.permute.xlu1 %6693  ;;  %v12501_v61 = vld [vmem:[#allocation67_spill] sm:$0xff]  ;;  %12505 = vst [vmem:[#allocation26_spill] sm:$0xff] %v10328_v57  ;;  %v10335_v29 = vpop.f32.mrb[6].mxu1  ;;  %v12519_v4 = vpack.i.bf16 %v12517_v26, %v12518_v44  ;;  %v12531_v44 = vld [vmem:[#allocation93_spill] sm:$0xff]  ;;  %v12533_v26 = vld [vmem:[#allocation82_spill] sm:$0xff] }
 0x146   : > { %6301 = vmatmul.mubr.msk.bf16.gmra.mrb[100].mxu1 %vm12485_vm9, %v12484_v15  ;;  %12497 = vst [vmem:[#allocation30_spill] sm:$0xff] %v10309_v41  ;;  %12511 = vst [vmem:[#allocation42_spill] sm:$0xff] %v10335_v29 }
 0x147   : > { %6304 = vmatprep.mubr.msk.bf16.mxu1 %vm12489_vm0, %v12488_v54  ;;  %v10300_v9 = vpop.permute.xlu0 %6678  ;;  %6998 = vperm.xlu0 %6435, %v12496_v60   ;;  %v12506_v60 = vld [vmem:[#allocation10_spill] sm:$0xff]  ;;  %vm12551_vm13 = vmmov %vm12489_vm0 }
 0x148   : > { %12493 = vst [vmem:[#allocation12_spill] sm:$0xff] %v10300_v9  ;;  %v10339_v9 = vpop.f32.mrb[7].mxu1  ;;  %vm12553_vm8 = vmmov %vm12489_vm0 }
 0x149   : > { %6341 = vmatmul.mubr.msk.bf16.gmra.mrb[104].mxu0 %vm12498_vm2, %v12359_v39  ;;  %7013 = vperm.xlu1 %6446, %v12499_v25   ;;  %v12507_v39 = vld [vmem:[#allocation9_spill] sm:$0xff]  ;;  %v10337_v25 = vpop.permute.xlu1 %6703  ;;  %12513 = vst [vmem:[#allocation48_spill] sm:$0xff] %v10339_v9  ;;  %vm12559_vm7 = vmmov %vm12489_vm0 }
 0x14a   : > { %6344 = vmatprep.mubr.msk.bf16.mxu0 %vm12504_vm14, %v12382_v51  ;;  %v12508_v41 = vpack.i.bf16 %v12506_v60, %v12507_v39  ;;  %12512 = vst [vmem:[#allocation27_spill] sm:$0xff] %v10337_v25  ;;  %v12521_v60 = vld [vmem:[#allocation39_spill] sm:$0xff]  ;;  %v12523_v39 = vld [vmem:[#allocation92_spill] sm:$0xff]  ;;  %vm12569_vm12 = vmmov %vm12489_vm0 }
 0x14b   : > { %v10324_v21 = vpop.permute.xlu0 %6688  ;;  %v12525_v25 = vpack.i.bf16 %v12523_v39, %v12524_v27  ;;  %v12537_v27 = vld [vmem:[#allocation66_spill] sm:$0xff]  ;;  %vm12573_vm9 = vmmov %vm12489_vm0 }
 0x14c   : > { %12503 = vst [vmem:[#allocation45_spill] sm:$0xff] %v10324_v21  ;;  %7008 = vperm.xlu0 %6435, %v12508_v41   ;;  %v12514_v21 = vld [vmem:[#allocation61_spill] sm:$0xff]  ;;  %vm12574_vm15 = vmmov %vm12489_vm0 }
 0x14d   : > { %v12515_v1 = vpack.i.bf16 %v9567_v32, %v12514_v21  ;;  %v10349_v41 = vpop.permute.xlu1 %6713  ;;  %vm12583_vm2 = vmmov %vm12489_vm0 }
 0x14e   : > { %6305 = vmatmul.mubr.msk.bf16.gmra.mrb[104].mxu1 %vm12502_vm1, %v12501_v61  ;;  %12520 = vst [vmem:[#allocation51_spill] sm:$0xff] %v10349_v41  ;;  %v12540_v41 = vld [vmem:[#allocation98_spill] sm:$0xff]  ;;  %vm12586_vm1 = vmmov %vm12489_vm0 }
 0x14f   : > { %6308 = vmatprep.mubr.msk.bf16.mxu1 %vm12510_vm10, %v12509_v49  ;;  %7023 = vperm.xlu1 %6446, %v12515_v1   ;;  %v10344_v51 = vpop.permute.xlu0 %6698  ;;  %v12530_v1 = vld [vmem:[#allocation95_spill] sm:$0xff]  ;;  %vm12587_vm14 = vmmov %vm12489_vm0 }
 0x150   : > { %12516 = vst [vmem:[#allocation58_spill] sm:$0xff] %v10344_v51  ;;  %7018 = vperm.xlu0 %6435, %v12519_v4   ;;  %v12532_v4 = vpack.i.bf16 %v12530_v1, %v12531_v44  ;;  %v10381_v1 = vpop.f32.mrb[8].mxu1  ;;  %v12546_v44 = vld [vmem:[#allocation31_spill] sm:$0xff]  ;;  %vm12591_vm10 = vmmov %vm12489_vm0 }
 0x151   : > { %6345 = vmatmul.mubr.msk.bf16.gmra.mrb[108].mxu0 %vm12522_vm4, %v12521_v60  ;;  %v10367_v21 = vpop.permute.xlu1 %6723  ;;  %v12536_v60 = vld [vmem:[#allocation96_spill] sm:$0xff]  ;;  %12544 = vst [vmem:[#allocation13_spill] sm:$0xff] %v10381_v1  ;;  %v12566_v1 = vld [vmem:[#allocation19_spill] sm:$0xff]  ;;  %vm12595_vm4 = vmmov %vm12489_vm0 }
 0x152   : > { %6388 = vmatprep.mubr.msk.bf16.mxu0 %vm12529_vm11, %v12406_v52  ;;  %12535 = vst [vmem:[#allocation63_spill] sm:$0xff] %v10367_v21  ;;  %v10377_v52 = vpop.f32.mrb[8].mxu0  ;;  %v12563_v21 = vld [vmem:[#allocation37_spill] sm:$0xff]  ;;  %vm12599_vm11 = vmmov %vm12489_vm0 }
 0x153   : > { %7033 = vperm.xlu1 %6446, %v12525_v25   ;;  %v10358_v32 = vpop.permute.xlu0 %6708  ;;  %v12538_v25 = vpack.i.bf16 %v12536_v60, %v12537_v27  ;;  %v10388_v60 = vpop.f32.mrb[9].mxu0 }
 0x154   : > { %12528 = vst [vmem:[#allocation56_spill] sm:$0xff] %v10358_v32  ;;  %7028 = vperm.xlu0 %6435, %v12532_v4   ;;  %v12541_v32 = vld [vmem:[#allocation97_spill] sm:$0xff]  ;;  %v12547_v4 = vld [vmem:[#allocation99_spill] sm:$0xff]  ;;  %v10390_v27 = vpop.f32.mrb[9].mxu1 }
 0x155   : > { %v12542_v51 = vpack.i.bf16 %v12540_v41, %v12541_v32  ;;  %v10379_v24 = vpop.permute.xlu1 %6733  ;;  %12549 = vst [vmem:[#allocation67_spill] sm:$0xff] %v10390_v27  ;;  %v10396_v41 = vpop.f32.mrb[10].mxu0  ;;  %v12554_v32 = vld [vmem:[#allocation33_spill] sm:$0xff] }
 0x156   : > { %6309 = vmatmul.mubr.msk.bf16.gmra.mrb[108].mxu1 %vm12527_vm5, %v12526_v31  ;;  %12543 = vst [vmem:[#allocation14_spill] sm:$0xff] %v10379_v24  ;;  %vm12598_vm5 = vmmov %vm12489_vm0 }
 0x157   : > { %6352 = vmatprep.mubr.msk.bf16.mxu1 %vm12534_vm6, %v12533_v26  ;;  %7043 = vperm.xlu1 %6446, %v12538_v25   ;;  %v10372_v39 = vpop.permute.xlu0 %6718  ;;  %v12548_v26 = vpack.i.bf16 %v12546_v44, %v12547_v4  ;;  %v12550_v25 = vld [vmem:[#allocation40_spill] sm:$0xff]  ;;  %v10403_v44 = vpop.f32.mrb[10].mxu1  ;;  %vm12602_vm6 = vmmov %vm12489_vm0 }
 0x158   : > { %12539 = vst [vmem:[#allocation83_spill] sm:$0xff] %v10372_v39  ;;  %7038 = vperm.xlu0 %6435, %v12542_v51   ;;  %12557 = vst [vmem:[#allocation9_spill] sm:$0xff] %v10403_v44  ;;  %v10405_v4 = vpop.f32.mrb[11].mxu0  ;;  %v10409_v39 = vpop.f32.mrb[11].mxu1  ;;  %v12594_v44 = vld [vmem:[#allocation88_spill] sm:$0xff] }
 0x159   : > { %6389 = vmatmul.mubr.msk.bf16.vlgmr.msra.gmra.mrb[112].mxu0 %vm12545_vm3, %v12412_v28  ;;  %v12555_v28 = vld [vmem:[#allocation32_spill] sm:$0xff]  ;;  %12560 = vst [vmem:[#allocation6_spill] sm:$0xff] %v10409_v39  ;;  %v12572_v39 = vld [vmem:[#allocation53_spill] sm:$0xff]  ;;  %v6520_v14 = vunpack.i.l.bf16 %v12594_v44  ;;  %vm12605_vm3 = vmmov %vm12489_vm0 }
 0x15a   : > { %6392 = vmatprep.mubr.msk.bf16.mxu0 %vm12553_vm8, %v12422_v50  ;;  %v12556_v24 = vpack.i.bf16 %v12554_v32, %v12555_v28  ;;  %v12567_v32 = vld [vmem:[#allocation38_spill] sm:$0xff]  ;;  %v12570_v28 = vld [vmem:[#allocation76_spill] sm:$0xff]  ;;  %vm12609_vm8 = vmmov %vm12489_vm0 }
 0x15b   : > { %7053 = vperm.xlu1 %6446, %v12548_v26   ;;  %v10394_v51 = vpop.permute.xlu0 %6728  ;;  %v12558_v26 = vld [vmem:[#allocation46_spill] sm:$0xff] }
 0x15c   : > { %12552 = vst [vmem:[#allocation10_spill] sm:$0xff] %v10394_v51  ;;  %7048 = vperm.xlu0 %6435, %v12556_v24   ;;  %v12562_v51 = vld [vmem:[#allocation73_spill] sm:$0xff]  ;;  %v12568_v24 = vpack.i.bf16 %v12566_v1, %v12567_v32 }
 0x15d   : > { %v12564_v27 = vpack.i.bf16 %v12562_v51, %v12563_v21  ;;  %v12577_v1 = vld [vmem:[#allocation65_spill] sm:$0xff]  ;;  %v10439_v51 = vpop.f32.mrb[12].mxu0 }
 0x15e   : > { %6353 = vmatmul.mubr.msk.bf16.vlgmr.msra.gmra.mrb[112].mxu1 %vm12551_vm13, %v12550_v25  ;;  %v10411_v25 = vpop.permute.xlu1 %6743  ;;  %v10443_v32 = vpop.f32.mrb[13].mxu0  ;;  %vm12608_vm13 = vmmov %vm12489_vm0 }
 0x15f   : > { %6356 = vmatprep.mubr.msk.bf16.mxu1 %vm12559_vm7, %v12558_v26  ;;  %12561 = vst [vmem:[#allocation61_spill] sm:$0xff] %v10411_v25  ;;  %7063 = vperm.xlu1 %6446, %v12564_v27   ;;  %v10416_v50 = vpop.permute.xlu0 %6738  ;;  %v12571_v26 = vpack.i.bf16 %v9985_v63, %v12570_v28  ;;  %v12576_v27 = vpack.i.bf16 %v10013_v23, %v10004_v22  ;;  %v10441_v63 = vpop.f32.mrb[12].mxu1  ;;  %v12584_v23 = vld [vmem:[#allocation16_spill] sm:$0xff]  ;;  %vm12612_vm7 = vmmov %vm12489_vm0 }
 0x160   : > { %12565 = vst [vmem:[#allocation90_spill] sm:$0xff] %v10416_v50  ;;  %7058 = vperm.xlu0 %6435, %v12568_v24   ;;  %12579 = vst [vmem:[#allocation92_spill] sm:$0xff] %v10441_v63  ;;  %v12590_v50 = vld [vmem:[#allocation36_spill] sm:$0xff]  ;;  %v6445_v25 = vunpack.i.h.bf16 %v12584_v23 }
 0x161   : > { %6393 = vmatmul.mubr.msk.bf16.gmra.mrb[116].mxu0 %vm12569_vm12, %v12429_v3  ;;  %vm12619_vm12 = vmmov %vm12489_vm0 }
 0x162   : > { %6396 = vmatprep.mubr.msk.bf16.mxu0 %vm12574_vm15, %v12439_v38  ;;  %v10430_v21 = vpop.permute.xlu1 %6753  ;;  %v10447_v38 = vpop.f32.mrb[14].mxu0  ;;  %vm12622_vm15 = vmmov %vm12489_vm0 }
 0x163   : > { %7073 = vperm.xlu1 %6446, %v12571_v26   ;;  %12575 = vst [vmem:[#allocation89_spill] sm:$0xff] %v10430_v21  ;;  %v10437_v3 = vpop.permute.xlu0 %6748  ;;  %v10451_v28 = vpop.f32.mrb[15].mxu0  ;;  %v6444_v26 = vunpack.i.l.bf16 %v12584_v23  ;;  %v6605_v23 = vunpack.i.l.bf16 %v10137_v13 }
 0x164   : > { %7068 = vperm.xlu0 %6435, %v12576_v27   ;;  %12578 = vst [vmem:[#allocation39_spill] sm:$0xff] %v10437_v3  ;;  %v12585_v27 = vld [vmem:[#allocation2_spill] sm:$0xff] }
 0x165   : > { %v1201_v9 = vmul.f32 %v6444_v26, %v10217_v18 }
 0x166   : > { %6357 = vmatmul.mubr.msk.bf16.gmra.mrb[116].mxu1 %vm12573_vm9, %v12572_v39  ;;  %v10445_v39 = vpop.f32.mrb[13].mxu1  ;;  %v10463_v21 = vpop.permute.xlu1 %6763  ;;  %vm12621_vm9 = vmmov %vm12489_vm0 }
 0x167   : > { %6360 = vmatprep.mubr.msk.bf16.mxu1 %vm12489_vm0, %v12577_v1  ;;  %12580 = vst [vmem:[#allocation91_spill] sm:$0xff] %v10445_v39  ;;  %v10449_v24 = vpop.f32.mrb[14].mxu1  ;;  %v12588_v1 = vld [vmem:[#allocation3_spill] sm:$0xff]  ;;  %12589 = vst [vmem:[#allocation93_spill] sm:$0xff] %v10463_v21  ;;  %v6174_v39 = vpop.f32.mrb[16].mxu0  ;;  %v6521_v21 = vunpack.i.h.bf16 %v12594_v44  ;;  %v1202_v44 = vmul.f32 %v6445_v25, %v10241_v30 }
 0x168   : > { %12581 = vst [vmem:[#allocation79_spill] sm:$0xff] %v10449_v24  ;;  %v10453_v22 = vpop.f32.mrb[15].mxu1  ;;  %v6439_v3 = vunpack.i.l.bf16 %v12588_v1  ;;  %v6440_v63 = vunpack.i.h.bf16 %v12588_v1  ;;  %v2358_v18 = vmul.f32 %v6605_v23, %v6174_v39  ;;  %v6615_v23 = vunpack.i.l.bf16 %v10150_v20 }
 0x169   : > { %12582 = vst [vmem:[#allocation95_spill] sm:$0xff] %v10453_v22  ;;  %6397 = vmatmul.mubr.msk.bf16.gmra.mrb[120].mxu0 %vm12583_vm2, %v12448_v55  ;;  %v10468_v22 = vpop.permute.xlu0 %6758  ;;  %v12593_v55 = vld [vmem:[#allocation55_spill] sm:$0xff]  ;;  %vm12628_vm2 = vmmov %vm12489_vm0 }
 0x16a   : > { %6400 = vmatprep.mubr.msk.bf16.mxu0 %vm12587_vm14, %v12457_v17  ;;  %12592 = vst [vmem:[#allocation82_spill] sm:$0xff] %v10468_v22  ;;  %v6525_v24 = vunpack.i.l.bf16 %v12593_v55  ;;  %v1941_v17 = vpop.f32.mrb[17].mxu0  ;;  %v6526_v0 = vunpack.i.h.bf16 %v12593_v55  ;;  %v6606_v22 = vunpack.i.h.bf16 %v10137_v13  ;;  %v1199_v57 = vmul.f32 %v6439_v3, %v10229_v59  ;;  %vm12632_vm14 = vmmov %vm12489_vm0 }
 0x16b   : > { %v6175_v45 = vpop.f32.mrb[18].mxu0  ;;  %v2356_v13 = vmul.f32 %v6600_v42, %v1941_v17 }
 0x16c   : > { %v1944_v55 = vpop.f32.mrb[19].mxu0  ;;  %v2359_v3 = vmul.f32 %v6606_v22, %v6175_v45  ;;  %v10499_v45 = vpop.permute.xlu1 %6773 }
 0x16e   : > { %6361 = vmatmul.mubr.msk.bf16.gmra.mrb[120].mxu1 %vm12586_vm1, %v12585_v27  ;;  %v6138_v27 = vpop.f32.mrb[16].mxu1  ;;  %vm12631_vm1 = vmmov %vm12489_vm0 }
 0x16f   : > { %6364 = vmatprep.mubr.msk.bf16.mxu1 %vm12591_vm10, %v12590_v50  ;;  %v1699_v50 = vmul.f32 %v6525_v24, %v6138_v27  ;;  %v1346_v29 = vpop.f32.mrb[17].mxu1  ;;  %v1200_v27 = vmul.f32 %v6440_v63, %v10245_v6  ;;  %vm12635_vm10 = vmmov %vm12489_vm0 }
 0x170   : > { %v1697_v1 = vmul.f32 %v6520_v14, %v1346_v29  ;;  %v6139_v10 = vpop.f32.mrb[18].mxu1  ;;  %v12596_v14 = vld [vmem:[#allocation15_spill] sm:$0xff] }
 0x171   : > { %v1731_v37 = vadd.f32 %v1699_v50, %v1201_v9  ;;  %v1700_v24 = vmul.f32 %v6526_v0, %v6139_v10  ;;  %v1349_v26 = vpop.f32.mrb[19].mxu1  ;;  %6401 = vmatmul.mubr.msk.bf16.gmra.mrb[124].mxu0 %vm12595_vm4, %v12462_v40  ;;  %v6455_v59 = vunpack.i.l.bf16 %v12596_v14  ;;  %v12600_v0 = vld [vmem:[#allocation5_spill] sm:$0xff]  ;;  %v2357_v9 = vmul.f32 %v6601_v2, %v1944_v55  ;;  %v12601_v10 = vld [vmem:[#allocation59_spill] sm:$0xff]  ;;  %v12604_v2 = vld [vmem:[#allocation70_spill] sm:$0xff] }
 0x172   : > { %v1729_v53 = vadd.f32 %v1697_v1, %v1199_v57  ;;  %v1698_v48 = vmul.f32 %v6521_v21, %v1349_v26  ;;  %6404 = vmatprep.mubr.msk.bf16.mxu0 %vm12599_vm11, %v12474_v56  ;;  %v6450_v30 = vunpack.i.l.bf16 %v12600_v0  ;;  %v6456_v40 = vunpack.i.h.bf16 %v12596_v14  ;;  %v6178_v56 = vpop.f32.mrb[20].mxu0  ;;  %v10504_v21 = vpop.permute.xlu0 %6768  ;;  %vm12643_vm4 = vmmov %vm12489_vm0 }
 0x173   : > { %v10486_v29 = vadd.f32 %v2358_v18, %v1731_v37  ;;  %v1732_v43 = vadd.f32 %v1700_v24, %v1202_v44  ;;  %v6451_v37 = vunpack.i.h.bf16 %v12600_v0  ;;  %v6530_v63 = vunpack.i.l.bf16 %v12604_v2  ;;  %v1957_v55 = vpop.f32.mrb[21].mxu0 }
 0x174   : > { %v10493_v6 = vadd.f32 %v2356_v13, %v1729_v53  ;;  %v1730_v42 = vadd.f32 %v1698_v48, %v1200_v27  ;;  %v6142_v48 = vpop.f32.mrb[20].mxu1  ;;  %v6531_v22 = vunpack.i.h.bf16 %v12604_v2  ;;  %v1205_v17 = vmul.f32 %v6455_v59, %v10302_v33  ;;  %v6179_v13 = vpop.f32.mrb[22].mxu0 }
 0x175   : > { %v10501_v57 = vadd.f32 %v2359_v3, %v1732_v43  ;;  %v1362_v1 = vpop.f32.mrb[21].mxu1  ;;  %v6616_v44 = vunpack.i.h.bf16 %v10150_v20  ;;  %v1203_v18 = vmul.f32 %v6450_v30, %v10307_v16  ;;  %v6610_v26 = vunpack.i.l.bf16 %v10162_v5  ;;  %v12606_v16 = vld [vmem:[#allocation17_spill] sm:$0xff] }
 0x176   : > { %6365 = vmatmul.mubr.msk.bf16.gmra.mrb[124].mxu1 %vm12598_vm5, %v12597_v19  ;;  %v12603_v19 = vld [vmem:[#allocation94_spill] sm:$0xff]  ;;  %v10506_v53 = vadd.f32 %v2357_v9, %v1730_v42  ;;  %v1701_v24 = vmul.f32 %v6530_v63, %v1362_v1  ;;  %v6143_v27 = vpop.f32.mrb[22].mxu1  ;;  %v6611_v14 = vunpack.i.h.bf16 %v10162_v5  ;;  %v1206_v43 = vmul.f32 %v6456_v40, %v10311_v46  ;;  %v1960_v42 = vpop.f32.mrb[23].mxu0  ;;  %v12614_v1 = vld [vmem:[#allocation23_spill] sm:$0xff]  ;;  %vm12646_vm5 = vmmov %vm12489_vm0 }
 0x177   : > { %6368 = vmatprep.mubr.msk.bf16.mxu1 %vm12602_vm6, %v12601_v10  ;;  %v6535_v25 = vunpack.i.l.bf16 %v12603_v19  ;;  %v6536_v39 = vunpack.i.h.bf16 %v12603_v19  ;;  %v2362_v33 = vmul.f32 %v6615_v23, %v6178_v56  ;;  %v1365_v0 = vpop.f32.mrb[23].mxu1  ;;  %v1204_v9 = vmul.f32 %v6451_v37, %v10320_v58  ;;  %v12607_v46 = vld [vmem:[#allocation50_spill] sm:$0xff]  ;;  %v6182_v23 = vpop.f32.mrb[24].mxu0 }
 0x178   : > { %v1733_v10 = vadd.f32 %v1701_v24, %v1203_v18  ;;  %v2360_v20 = vmul.f32 %v6610_v26, %v1957_v55  ;;  %v1702_v19 = vmul.f32 %v6531_v22, %v1365_v0  ;;  %v6465_v30 = vunpack.i.l.bf16 %v12606_v16  ;;  %v12610_v40 = vld [vmem:[#allocation18_spill] sm:$0xff]  ;;  %v10542_v18 = vpop.permute.xlu0 %6778  ;;  %v12617_v26 = vld [vmem:[#allocation100_spill] sm:$0xff] }
 0x179   : > { %v1703_v50 = vmul.f32 %v6535_v25, %v6142_v48  ;;  %v1704_v59 = vmul.f32 %v6536_v39, %v6143_v27  ;;  %6405 = vmatmul.mubr.msk.bf16.gmra.mrb[128].mxu0 %vm12605_vm3, %v12478_v34  ;;  %v2363_v48 = vmul.f32 %v6616_v44, %v6179_v13  ;;  %v6460_v58 = vunpack.i.l.bf16 %v12610_v40  ;;  %v12611_v63 = vld [vmem:[#allocation62_spill] sm:$0xff]  ;;  %v10540_v44 = vpop.permute.xlu1 %6783  ;;  %12616 = vst [vmem:[#allocation66_spill] sm:$0xff] %v10542_v18 }
 0x17a   : > { %6408 = vmatprep.mubr.msk.bf16.mxu0 %vm12609_vm8, %v12484_v15  ;;  %v10529_v37 = vadd.f32 %v2360_v20, %v1733_v10  ;;  %v1734_v56 = vadd.f32 %v1702_v19, %v1204_v9  ;;  %v2361_v2 = vmul.f32 %v6611_v14, %v1960_v42  ;;  %v6466_v34 = vunpack.i.h.bf16 %v12606_v16  ;;  %v12613_v22 = vld [vmem:[#allocation22_spill] sm:$0xff]  ;;  %12615 = vst [vmem:[#allocation96_spill] sm:$0xff] %v10540_v44  ;;  %v6146_v14 = vpop.f32.mrb[24].mxu1 }
 0x17b   : > { %v1735_v3 = vadd.f32 %v1703_v50, %v1205_v17  ;;  %v1736_v5 = vadd.f32 %v1704_v59, %v1206_v43  ;;  %v6461_v39 = vunpack.i.h.bf16 %v12610_v40  ;;  %v6475_v17 = vunpack.i.l.bf16 %v12613_v22  ;;  %v12618_v43 = vld [vmem:[#allocation85_spill] sm:$0xff]  ;;  %v1378_v20 = vpop.f32.mrb[25].mxu1 }
 0x17c   : > { %v6470_v15 = vunpack.i.l.bf16 %v12614_v1  ;;  %v6476_v55 = vunpack.i.h.bf16 %v12613_v22  ;;  %v10544_v24 = vadd.f32 %v2361_v2, %v1734_v56  ;;  %v6545_v27 = vunpack.i.l.bf16 %v12617_v26  ;;  %v6147_v56 = vpop.f32.mrb[26].mxu1 }
 0x17d   : > { %v10522_v25 = vadd.f32 %v2362_v33, %v1735_v3  ;;  %v10536_v50 = vadd.f32 %v2363_v48, %v1736_v5  ;;  %v6471_v13 = vunpack.i.h.bf16 %v12614_v1  ;;  %v6540_v3 = vunpack.i.l.bf16 %v12618_v43  ;;  %v1973_v33 = vpop.f32.mrb[25].mxu0 }
 0x17e   : > { %6369 = vmatmul.mubr.msk.bf16.gmra.mrb[128].mxu1 %vm12608_vm13, %v12607_v46  ;;  %v6546_v59 = vunpack.i.h.bf16 %v12617_v26  ;;  %v6541_v0 = vunpack.i.h.bf16 %v12618_v43  ;;  %v1209_v42 = vmul.f32 %v6465_v30, %v10377_v52  ;;  %v1707_v9 = vmul.f32 %v6545_v27, %v6146_v14  ;;  %v6183_v16 = vpop.f32.mrb[26].mxu0  ;;  %v1381_v27 = vpop.f32.mrb[27].mxu1 }
 0x17f   : > { %6372 = vmatprep.mubr.msk.bf16.mxu1 %vm12612_vm7, %v12611_v63  ;;  %v6625_v10 = vunpack.i.l.bf16 %v10177_v12  ;;  %v6626_v19 = vunpack.i.h.bf16 %v10177_v12  ;;  %v1207_v5 = vmul.f32 %v6460_v58, %v10388_v60  ;;  %v1210_v48 = vmul.f32 %v6466_v34, %v10396_v41  ;;  %v1976_v2 = vpop.f32.mrb[27].mxu0  ;;  %v12620_v41 = vld [vmem:[#allocation57_spill] sm:$0xff] }
 0x180   : > { %v1705_v46 = vmul.f32 %v6540_v3, %v1378_v20  ;;  %v6620_v40 = vunpack.i.l.bf16 %v10185_v7  ;;  %v1208_v63 = vmul.f32 %v6461_v39, %v10405_v4  ;;  %v1739_v26 = vadd.f32 %v1707_v9, %v1209_v42  ;;  %v12623_v39 = vld [vmem:[#allocation20_spill] sm:$0xff]  ;;  %v10573_v42 = vpop.permute.xlu1 %6793  ;;  %v12626_v20 = vld [vmem:[#allocation43_spill] sm:$0xff] }
 0x181   : > { %v2366_v52 = vmul.f32 %v6625_v10, %v6182_v23  ;;  %v1708_v30 = vmul.f32 %v6546_v59, %v6147_v56  ;;  %6409 = vmatmul.mubr.msk.bf16.gmra.mrb[132].mxu0 %vm12619_vm12, %v12488_v54  ;;  %v1706_v43 = vmul.f32 %v6541_v0, %v1381_v27  ;;  %v6621_v60 = vunpack.i.h.bf16 %v10185_v7  ;;  %v12624_v3 = vld [vmem:[#allocation68_spill] sm:$0xff]  ;;  %v6186_v7 = vpop.f32.mrb[28].mxu0  ;;  %12625 = vst [vmem:[#allocation98_spill] sm:$0xff] %v10573_v42 }
 0x182   : > { %v1737_v12 = vadd.f32 %v1705_v46, %v1207_v5  ;;  %v2364_v14 = vmul.f32 %v6620_v40, %v1973_v33  ;;  %6412 = vmatprep.mubr.msk.bf16.mxu0 %vm12622_vm15, %v12501_v61  ;;  %v2367_v34 = vmul.f32 %v6626_v19, %v6183_v16  ;;  %v6555_v23 = vunpack.i.l.bf16 %v12623_v39  ;;  %v6150_v61 = vpop.f32.mrb[28].mxu1 }
 0x183   : > { %v10565_v58 = vadd.f32 %v2366_v52, %v1739_v26  ;;  %v1740_v4 = vadd.f32 %v1708_v30, %v1210_v48  ;;  %v1738_v33 = vadd.f32 %v1706_v43, %v1208_v63  ;;  %v2365_v59 = vmul.f32 %v6621_v60, %v1976_v2  ;;  %v10581_v48 = vpop.permute.xlu0 %6788  ;;  %v1394_v56 = vpop.f32.mrb[29].mxu1 }
 0x184   : > { %v10570_v54 = vadd.f32 %v2364_v14, %v1737_v12  ;;  %v6556_v0 = vunpack.i.h.bf16 %v12623_v39  ;;  %v6635_v10 = vunpack.i.l.bf16 %v10193_v47  ;;  %v6550_v19 = vunpack.i.l.bf16 %v12626_v20  ;;  %12627 = vst [vmem:[#allocation97_spill] sm:$0xff] %v10581_v48  ;;  %v1989_v30 = vpop.f32.mrb[29].mxu0  ;;  %v6151_v27 = vpop.f32.mrb[30].mxu1 }
 0x185   : > { %v10575_v9 = vadd.f32 %v2367_v34, %v1740_v4  ;;  %v6551_v16 = vunpack.i.h.bf16 %v12626_v20  ;;  %v1213_v5 = vmul.f32 %v6475_v17, %v10439_v51  ;;  %v10583_v46 = vadd.f32 %v2365_v59, %v1738_v33  ;;  %v6187_v60 = vpop.f32.mrb[30].mxu0  ;;  %v12634_v59 = vld [vmem:[#allocation75_spill] sm:$0xff]  ;;  %v10614_v20 = vpop.permute.xlu1 %6803 }
 0x186   : > { %6373 = vmatmul.mubr.msk.bf16.gmra.mrb[132].mxu1 %vm12621_vm9, %v12620_v41  ;;  %v1711_v40 = vmul.f32 %v6555_v23, %v6150_v61  ;;  %v6636_v2 = vunpack.i.h.bf16 %v10193_v47  ;;  %v1211_v63 = vmul.f32 %v6470_v15, %v10443_v32  ;;  %v1709_v26 = vmul.f32 %v6550_v19, %v1394_v56  ;;  %v1397_v41 = vpop.f32.mrb[31].mxu1  ;;  %v1992_v34 = vpop.f32.mrb[31].mxu0  ;;  %v12630_v23 = vld [vmem:[#allocation4_spill] sm:$0xff]  ;;  %12636 = vst [vmem:[#allocation31_spill] sm:$0xff] %v10614_v20 }
 0x187   : > { %6376 = vmatprep.mubr.msk.bf16.mxu1 %vm12489_vm0, %v12624_v3  ;;  %v6630_v52 = vunpack.i.l.bf16 %v10205_v8  ;;  %v6631_v12 = vunpack.i.h.bf16 %v10205_v8  ;;  %v1214_v51 = vmul.f32 %v6476_v55, %v10447_v38  ;;  %v2370_v14 = vmul.f32 %v6635_v10, %v6186_v7  ;;  %v12629_v8 = vld [vmem:[#allocation25_spill] sm:$0xff]  ;;  %v6190_v10 = vpop.f32.mrb[32].mxu0  ;;  %v6154_v19 = vpop.f32.mrb[32].mxu1 }
 0x188   : > { %v1743_v17 = vadd.f32 %v1711_v40, %v1213_v5  ;;  %v1712_v43 = vmul.f32 %v6556_v0, %v6151_v27  ;;  %v1212_v47 = vmul.f32 %v6471_v13, %v10451_v28  ;;  %v1741_v32 = vadd.f32 %v1709_v26, %v1211_v63  ;;  %v12633_v28 = vld [vmem:[#allocation28_spill] sm:$0xff] }
 0x189   : > { %v2368_v15 = vmul.f32 %v6630_v52, %v1989_v30  ;;  %v1710_v4 = vmul.f32 %v6551_v16, %v1397_v41  ;;  %6413 = vmatmul.mubr.msk.bf16.gmra.mrb[136].mxu0 %vm12628_vm2, %v12509_v49  ;;  %v6485_v39 = vunpack.i.l.bf16 %v12629_v8  ;;  %v2371_v55 = vmul.f32 %v6636_v2, %v6187_v60  ;;  %v10622_v2 = vpop.permute.xlu0 %6798  ;;  %v1410_v52 = vpop.f32.mrb[33].mxu1  ;;  %v12638_v27 = vld [vmem:[#allocation24_spill] sm:$0xff] }
 0x18a   : > { %v10598_v22 = vadd.f32 %v2370_v14, %v1743_v17  ;;  %v1744_v38 = vadd.f32 %v1712_v43, %v1214_v51  ;;  %6416 = vmatprep.mubr.msk.bf16.mxu0 %vm12632_vm14, %v12526_v31  ;;  %v6480_v1 = vunpack.i.l.bf16 %v12633_v28  ;;  %v2369_v33 = vmul.f32 %v6631_v12, %v1992_v34  ;;  %12637 = vst [vmem:[#allocation99_spill] sm:$0xff] %v10622_v2  ;;  %v12639_v17 = vld [vmem:[#allocation21_spill] sm:$0xff]  ;;  %v2005_v43 = vpop.f32.mrb[33].mxu0  ;;  %v6155_v60 = vpop.f32.mrb[34].mxu1 }
 0x18b   : > { %v10605_v13 = vadd.f32 %v2368_v15, %v1741_v32  ;;  %v1742_v3 = vadd.f32 %v1710_v4, %v1212_v47  ;;  %v6486_v49 = vunpack.i.h.bf16 %v12629_v8  ;;  %v6481_v7 = vunpack.i.h.bf16 %v12633_v28  ;;  %v6191_v15 = vpop.f32.mrb[34].mxu0  ;;  %v1413_v4 = vpop.f32.mrb[35].mxu1  ;;  %v12641_v34 = vld [vmem:[#allocation69_spill] sm:$0xff] }
 0x18c   : > { %v10611_v0 = vadd.f32 %v2371_v55, %v1744_v38  ;;  %v6565_v61 = vunpack.i.l.bf16 %v10031_v11  ;;  %v6560_v16 = vunpack.i.l.bf16 %v10047_v35  ;;  %v6566_v5 = vunpack.i.h.bf16 %v10031_v11  ;;  %v2008_v55 = vpop.f32.mrb[35].mxu0  ;;  %v12644_v28 = vld [vmem:[#allocation77_spill] sm:$0xff] }
 0x18d   : > { %v10616_v31 = vadd.f32 %v2369_v33, %v1742_v3  ;;  %v6561_v40 = vunpack.i.h.bf16 %v10047_v35  ;;  %v1217_v56 = vmul.f32 %v6485_v39, %v10227_v36  ;;  %v6645_v26 = vunpack.i.l.bf16 %v10219_v62  ;;  %v12640_v35 = vld [vmem:[#allocation49_spill] sm:$0xff] }
 0x18e   : > { %6377 = vmatmul.mubr.msk.bf16.gmra.mrb[136].mxu1 %vm12631_vm1, %v12630_v23  ;;  %v1715_v63 = vmul.f32 %v6565_v61, %v6154_v19  ;;  %v6646_v30 = vunpack.i.h.bf16 %v10219_v62  ;;  %v1215_v12 = vmul.f32 %v6480_v1, %v12638_v27  ;;  %v1713_v51 = vmul.f32 %v6560_v16, %v1410_v52  ;;  %v12642_v23 = vld [vmem:[#allocation81_spill] sm:$0xff]  ;;  %v12647_v61 = vld [vmem:[#allocation87_spill] sm:$0xff]  ;;  %v6194_v52 = vpop.f32.mrb[36].mxu0  ;;  %v10646_v27 = vpop.permute.xlu1 %6813 }
 0x18f   : > { %6380 = vmatprep.mubr.msk.bf16.mxu1 %vm12635_vm10, %v12634_v59  ;;  %v6640_v14 = vunpack.i.l.bf16 %v12639_v17  ;;  %v6641_v11 = vunpack.i.h.bf16 %v12639_v17  ;;  %v1218_v41 = vmul.f32 %v6486_v49, %v12640_v35  ;;  %v2374_v47 = vmul.f32 %v6645_v26, %v6190_v10  ;;  %v12645_v49 = vld [vmem:[#allocation80_spill] sm:$0xff]  ;;  %12649 = vst [vmem:[#allocation40_spill] sm:$0xff] %v10646_v27  ;;  %v10654_v35 = vpop.permute.xlu0 %6808 }
 0x190   : > { %v1747_v36 = vadd.f32 %v1715_v63, %v1217_v56  ;;  %v1716_v32 = vmul.f32 %v6566_v5, %v6155_v60  ;;  %v1216_v8 = vmul.f32 %v6481_v7, %v12641_v34  ;;  %v1745_v39 = vadd.f32 %v1713_v51, %v1215_v12  ;;  %v12648_v63 = vld [vmem:[#allocation44_spill] sm:$0xff]  ;;  %v6158_v12 = vpop.f32.mrb[36].mxu1  ;;  %v12650_v51 = vld [vmem:[#allocation34_spill] sm:$0xff]  ;;  %12652 = vst [vmem:[#allocation33_spill] sm:$0xff] %v10654_v35 }
 0x191   : > { %v2372_v62 = vmul.f32 %v6640_v14, %v2005_v43  ;;  %v1714_v38 = vmul.f32 %v6561_v40, %v1413_v4  ;;  %6417 = vmatmul.mubr.msk.bf16.gmra.mrb[140].mxu0 %vm12643_vm4, %v12642_v23  ;;  %v6495_v1 = vunpack.i.l.bf16 %v12644_v28  ;;  %v2375_v59 = vmul.f32 %v6646_v30, %v6191_v15  ;;  %v12651_v60 = vld [vmem:[#allocation86_spill] sm:$0xff] }
 0x192   : > { %v10634_v3 = vadd.f32 %v2374_v47, %v1747_v36  ;;  %v1748_v33 = vadd.f32 %v1716_v32, %v1218_v41  ;;  %v6490_v10 = vunpack.i.l.bf16 %v12647_v61  ;;  %v2373_v16 = vmul.f32 %v6641_v11, %v2008_v55  ;;  %v12653_v36 = vld [vmem:[#allocation64_spill] sm:$0xff]  ;;  %v1426_v32 = vpop.f32.mrb[37].mxu1  ;;  %v12654_v4 = vld [vmem:[#allocation26_spill] sm:$0xff] }
 0x193   : > { %v10639_v19 = vadd.f32 %v2372_v62, %v1745_v39  ;;  %v1746_v7 = vadd.f32 %v1714_v38, %v1216_v8  ;;  %v6496_v5 = vunpack.i.h.bf16 %v12644_v28  ;;  %v6491_v40 = vunpack.i.h.bf16 %v12647_v61  ;;  %v12655_v39 = vld [vmem:[#allocation52_spill] sm:$0xff]  ;;  %v2021_v38 = vpop.f32.mrb[37].mxu0  ;;  %v6159_v55 = vpop.f32.mrb[38].mxu1  ;;  %v12656_v28 = vld [vmem:[#allocation42_spill] sm:$0xff] }
 0x194   : > { %v10643_v56 = vadd.f32 %v2375_v59, %v1748_v33  ;;  %v6575_v26 = vunpack.i.l.bf16 %v12648_v63  ;;  %v6570_v17 = vunpack.i.l.bf16 %v12650_v51  ;;  %v6576_v14 = vunpack.i.h.bf16 %v12648_v63  ;;  %v6195_v61 = vpop.f32.mrb[38].mxu0 }
 0x195   : > { %v10648_v30 = vadd.f32 %v2373_v16, %v1746_v7  ;;  %v6571_v43 = vunpack.i.h.bf16 %v12650_v51  ;;  %v1221_v11 = vmul.f32 %v6495_v1, %v12651_v60  ;;  %v6655_v47 = vunpack.i.l.bf16 %v12653_v36  ;;  %v1429_v7 = vpop.f32.mrb[39].mxu1  ;;  %v12657_v16 = vld [vmem:[#allocation48_spill] sm:$0xff] }
 0x196   : > { %6381 = vmatmul.mubr.msk.bf16.gmra.mrb[140].mxu1 %vm12646_vm5, %v12645_v49  ;;  %v1719_v41 = vmul.f32 %v6575_v26, %v6158_v12  ;;  %v6656_v15 = vunpack.i.h.bf16 %v12653_v36  ;;  %v1219_v34 = vmul.f32 %v6490_v10, %v12654_v4  ;;  %v1717_v8 = vmul.f32 %v6570_v17, %v1426_v32  ;;  %v2024_v10 = vpop.f32.mrb[39].mxu0  ;;  %v12658_v17 = vld [vmem:[#allocation7_spill] sm:$0xff] }
 0x197   : > { %v6650_v62 = vunpack.i.l.bf16 %v12655_v39  ;;  %v6651_v23 = vunpack.i.h.bf16 %v12655_v39  ;;  %v1222_v33 = vmul.f32 %v6496_v5, %v12656_v28  ;;  %v2378_v59 = vmul.f32 %v6655_v47, %v6194_v52  ;;  %v12659_v39 = vld [vmem:[#allocation8_spill] sm:$0xff] }
 0x198   : > { %v1751_v1 = vadd.f32 %v1719_v41, %v1221_v11  ;;  %v1720_v49 = vmul.f32 %v6576_v14, %v6159_v55  ;;  %v1220_v63 = vmul.f32 %v6491_v40, %v12657_v16  ;;  %v1749_v26 = vadd.f32 %v1717_v8, %v1219_v34  ;;  %v6198_v34 = vpop.f32.mrb[40].mxu0  ;;  %v10674_v8 = vpop.permute.xlu1 %6823 }
 0x199   : > { %v2376_v12 = vmul.f32 %v6650_v62, %v2021_v38  ;;  %v1718_v51 = vmul.f32 %v6571_v43, %v1429_v7  ;;  %v6505_v60 = vunpack.i.l.bf16 %v12658_v17  ;;  %v2379_v4 = vmul.f32 %v6656_v15, %v6195_v61  ;;  %v12660_v43 = vld [vmem:[#allocation29_spill] sm:$0xff]  ;;  %12661 = vst [vmem:[#allocation32_spill] sm:$0xff] %v10674_v8  ;;  %v6162_v15 = vpop.f32.mrb[40].mxu1  ;;  %v12662_v38 = vld [vmem:[#allocation54_spill] sm:$0xff]  ;;  %v12665_v61 = vld [vmem:[#allocation71_spill] sm:$0xff] }
 0x19a   : > { %v10664_v36 = vadd.f32 %v2378_v59, %v1751_v1  ;;  %v1752_v32 = vadd.f32 %v1720_v49, %v1222_v33  ;;  %v6500_v35 = vunpack.i.l.bf16 %v12659_v39  ;;  %v2377_v14 = vmul.f32 %v6651_v23, %v2024_v10  ;;  %v12663_v33 = vld [vmem:[#allocation13_spill] sm:$0xff]  ;;  %v10682_v59 = vpop.permute.xlu0 %6818  ;;  %v1442_v16 = vpop.f32.mrb[41].mxu1  ;;  %v12667_v10 = vld [vmem:[#allocation11_spill] sm:$0xff] }
 0x19b   : > { %v10667_v5 = vadd.f32 %v2376_v12, %v1749_v26  ;;  %v1750_v52 = vadd.f32 %v1718_v51, %v1220_v63  ;;  %v6506_v11 = vunpack.i.h.bf16 %v12658_v17  ;;  %v6501_v40 = vunpack.i.h.bf16 %v12659_v39  ;;  %12664 = vst [vmem:[#allocation46_spill] sm:$0xff] %v10682_v59  ;;  %v12666_v26 = vld [vmem:[#allocation67_spill] sm:$0xff] }
 0x19c   : > { %v10671_v41 = vadd.f32 %v2379_v4, %v1752_v32  ;;  %v6585_v47 = vunpack.i.l.bf16 %v12660_v43  ;;  %v6580_v55 = vunpack.i.l.bf16 %v12662_v38  ;;  %v6586_v28 = vunpack.i.h.bf16 %v12660_v43  ;;  %v2037_v32 = vpop.f32.mrb[41].mxu0  ;;  %v6163_v4 = vpop.f32.mrb[42].mxu1 }
 0x19d   : > { %v10676_v62 = vadd.f32 %v2377_v14, %v1750_v52  ;;  %v6581_v23 = vunpack.i.h.bf16 %v12662_v38  ;;  %v1225_v1 = vmul.f32 %v6505_v60, %v12663_v33  ;;  %v6665_v7 = vunpack.i.l.bf16 %v12665_v61  ;;  %v12668_v52 = vld [vmem:[#allocation9_spill] sm:$0xff]  ;;  %v12669_v33 = vld [vmem:[#allocation6_spill] sm:$0xff] }
 0x19e   : > { %v1723_v49 = vmul.f32 %v6585_v47, %v6162_v15  ;;  %v6666_v63 = vunpack.i.h.bf16 %v12665_v61  ;;  %v1223_v12 = vmul.f32 %v6500_v35, %v12666_v26  ;;  %v1721_v51 = vmul.f32 %v6580_v55, %v1442_v16  ;;  %v6199_v47 = vpop.f32.mrb[42].mxu0  ;;  %v1445_v15 = vpop.f32.mrb[43].mxu1  ;;  %v12670_v55 = vld [vmem:[#allocation35_spill] sm:$0xff] }
 0x19f   : > { %v6660_v17 = vunpack.i.l.bf16 %v12667_v10  ;;  %v6661_v39 = vunpack.i.h.bf16 %v12667_v10  ;;  %v1226_v14 = vmul.f32 %v6506_v11, %v12668_v52  ;;  %v2382_v43 = vmul.f32 %v6665_v7, %v6198_v34  ;;  %v2040_v35 = vpop.f32.mrb[43].mxu0  ;;  %v12671_v10 = vld [vmem:[#allocation47_spill] sm:$0xff]  ;;  %v10710_v52 = vpop.permute.xlu0 %6828 }
 0x1a0   : > { %v1755_v60 = vadd.f32 %v1723_v49, %v1225_v1  ;;  %v1724_v38 = vmul.f32 %v6586_v28, %v6163_v4  ;;  %v1224_v59 = vmul.f32 %v6501_v40, %v12669_v33  ;;  %v1753_v8 = vadd.f32 %v1721_v51, %v1223_v12  ;;  %v6202_v12 = vpop.f32.mrb[44].mxu0  ;;  %v10702_v51 = vpop.permute.xlu1 %6833  ;;  %12676 = vst [vmem:[#allocation37_spill] sm:$0xff] %v10710_v52  ;;  %v12679_v33 = vld [vmem:[#allocation72_spill] sm:$0xff] }
 0x1a1   : > { %v2380_v61 = vmul.f32 %v6660_v17, %v2037_v32  ;;  %v1722_v27 = vmul.f32 %v6581_v23, %v1445_v15  ;;  %v6515_v16 = vunpack.i.l.bf16 %v12670_v55  ;;  %v2383_v20 = vmul.f32 %v6666_v63, %v6199_v47  ;;  %v12672_v23 = vld [vmem:[#allocation60_spill] sm:$0xff]  ;;  %12673 = vst [vmem:[#allocation73_spill] sm:$0xff] %v10702_v51  ;;  %v6166_v63 = vpop.f32.mrb[44].mxu1  ;;  %v12674_v32 = vld [vmem:[#allocation41_spill] sm:$0xff] }
 0x1a2   : > { %v10692_v26 = vadd.f32 %v2382_v43, %v1755_v60  ;;  %v1756_v2 = vadd.f32 %v1724_v38, %v1226_v14  ;;  %v6510_v48 = vunpack.i.l.bf16 %v12671_v10  ;;  %v2381_v28 = vmul.f32 %v6661_v39, %v2040_v35  ;;  %v1458_v60 = vpop.f32.mrb[45].mxu1  ;;  %v12678_v38 = vld [vmem:[#allocation91_spill] sm:$0xff]  ;;  %v2053_v35 = vpop.f32.mrb[45].mxu0 }
 0x1a3   : > { %v10695_v11 = vadd.f32 %v2380_v61, %v1753_v8  ;;  %v1754_v34 = vadd.f32 %v1722_v27, %v1224_v59  ;;  %v6516_v1 = vunpack.i.h.bf16 %v12670_v55  ;;  %v6511_v40 = vunpack.i.h.bf16 %v12671_v10  ;;  %v12675_v59 = vld [vmem:[#allocation92_spill] sm:$0xff]  ;;  %v6167_v55 = vpop.f32.mrb[46].mxu1 }
 0x1a4   : > { %v10699_v49 = vadd.f32 %v2383_v20, %v1756_v2  ;;  %v6595_v7 = vunpack.i.l.bf16 %v12672_v23  ;;  %v6590_v4 = vunpack.i.l.bf16 %v12674_v32  ;;  %v6596_v8 = vunpack.i.h.bf16 %v12672_v23  ;;  %v12677_v2 = vld [vmem:[#allocation78_spill] sm:$0xff] }
 0x1a5   : > { %v10704_v17 = vadd.f32 %v2381_v28, %v1754_v34  ;;  %v6591_v27 = vunpack.i.h.bf16 %v12674_v32  ;;  %v1229_v39 = vmul.f32 %v6515_v16, %v12675_v59  ;;  %v6675_v14 = vunpack.i.l.bf16 %v12677_v2  ;;  %v12680_v34 = vld [vmem:[#allocation79_spill] sm:$0xff] }
 0x1a6   : > { %v1727_v20 = vmul.f32 %v6595_v7, %v6166_v63  ;;  %v6676_v43 = vunpack.i.h.bf16 %v12677_v2  ;;  %v1227_v47 = vmul.f32 %v6510_v48, %v12678_v38  ;;  %v1725_v15 = vmul.f32 %v6590_v4, %v1458_v60  ;;  %v6203_v7 = vpop.f32.mrb[46].mxu0  ;;  %v1461_v63 = vpop.f32.mrb[47].mxu1  ;;  %v12681_v59 = vld [vmem:[#allocation95_spill] sm:$0xff] }
 0x1a7   : > { %v6670_v61 = vunpack.i.l.bf16 %v12679_v33  ;;  %v6671_v10 = vunpack.i.h.bf16 %v12679_v33  ;;  %v1230_v28 = vmul.f32 %v6516_v1, %v12680_v34  ;;  %v2386_v23 = vmul.f32 %v6675_v14, %v6202_v12  ;;  %v2056_v48 = vpop.f32.mrb[47].mxu0  ;;  %v12682_v12 = vld [vmem:[#allocation74_spill] sm:$0xff]  ;;  %v6210_v14 = vpop.f32.mrb[48].mxu1 }
 0x1a8   : > { %v1759_v16 = vadd.f32 %v1727_v20, %v1229_v39  ;;  %v1728_v32 = vmul.f32 %v6596_v8, %v6167_v55  ;;  %v1228_v52 = vmul.f32 %v6511_v40, %v12681_v59  ;;  %v1757_v51 = vadd.f32 %v1725_v15, %v1227_v47  ;;  %v6246_v39 = vpop.f32.mrb[48].mxu0  ;;  %v10726_v20 = vpop.permute.xlu1 %6843 }
 0x1a9   : > { %v2384_v2 = vmul.f32 %v6670_v61, %v2053_v35  ;;  %v1726_v42 = vmul.f32 %v6591_v27, %v1461_v63  ;;  %v2387_v38 = vmul.f32 %v6676_v43, %v6203_v7  ;;  %v2385_v44 = vmul.f32 %v6671_v10, %v2056_v48  ;;  %v12683_v27 = vld [vmem:[#allocation12_spill] sm:$0xff]  ;;  %v10731_v15 = vpop.permute.xlu0 %6838  ;;  %v2471_v43 = vpop.f32.mrb[49].mxu1 }
 0x1aa   : > { %v10719_v4 = vadd.f32 %v2386_v23, %v1759_v16  ;;  %v1760_v60 = vadd.f32 %v1728_v32, %v1230_v28  ;;  %v6685_v8 = vunpack.i.l.bf16 %v12682_v12  ;;  %v6680_v47 = vunpack.i.l.bf16 %v12683_v27  ;;  %v6211_v35 = vpop.f32.mrb[50].mxu1 }
 0x1ab   : > { %v10721_v18 = vadd.f32 %v2384_v2, %v1757_v51  ;;  %v1758_v33 = vadd.f32 %v1726_v42, %v1228_v52  ;;  %v6686_v51 = vunpack.i.h.bf16 %v12682_v12  ;;  %v2937_v52 = vpop.f32.mrb[49].mxu0  ;;  %v6681_v55 = vunpack.i.h.bf16 %v12683_v27 }
 0x1ac   : > { %v10723_v1 = vadd.f32 %v2387_v38, %v1760_v60  ;;  %v2824_v61 = vmul.f32 %v6685_v8, %v6210_v14  ;;  %v2822_v42 = vmul.f32 %v6680_v47, %v2471_v43  ;;  %v6247_v28 = vpop.f32.mrb[50].mxu0  ;;  %v12684_v60 = vld [vmem:[#allocation30_spill] sm:$0xff]  ;;  %v12685_v8 = vld [vmem:[#allocation45_spill] sm:$0xff]  ;;  %vm5127_vm11 = vcmask 31744  }
 0x1ad   : > { %v10728_v40 = vadd.f32 %v2385_v44, %v1758_v33  ;;  %v2825_v34 = vmul.f32 %v6686_v51, %v6211_v35  ;;  %v2474_v44 = vpop.f32.mrb[51].mxu1  ;;  %v2940_v32 = vpop.f32.mrb[51].mxu0  ;;  %v6695_v38 = vunpack.i.l.bf16 %v12684_v60  ;;  %v6690_v14 = vunpack.i.l.bf16 %v12685_v8 }
 0x1ae   : > { %v2856_v10 = vadd.f32 %v2824_v61, %v10486_v29  ;;  %v2854_v16 = vadd.f32 %v2822_v42, %v10493_v6  ;;  %v2823_v23 = vmul.f32 %v6681_v55, %v2474_v44  ;;  %v6250_v29 = vpop.f32.mrb[52].mxu0  ;;  %v10746_v33 = vpop.permute.xlu1 %6853  ;;  %v6696_v47 = vunpack.i.h.bf16 %v12684_v60 }
 0x1af   : > { %v2857_v63 = vadd.f32 %v2825_v34, %v10501_v57  ;;  %v6214_v6 = vpop.f32.mrb[52].mxu1  ;;  %v6691_v51 = vunpack.i.h.bf16 %v12685_v8  ;;  %v12687_v8 = vld [vmem:[#allocation58_spill] sm:$0xff]  ;;  %vm5288_vm6 = vcmask 97312  }
 0x1b0   : > { %v10737_v7 = vadd.f32 %v6246_v39, %v2856_v10  ;;  %v10740_v59 = vadd.f32 %v2937_v52, %v2854_v16  ;;  %v2855_v2 = vadd.f32 %v2823_v23, %v10506_v53  ;;  %v10751_v39 = vpop.permute.xlu0 %6848  ;;  %v2828_v27 = vmul.f32 %v6695_v38, %v6214_v6  ;;  %v2487_v57 = vpop.f32.mrb[53].mxu1 }
 0x1b1   : > { %v10743_v48 = vadd.f32 %v6247_v28, %v2857_v63  ;;  %v2826_v61 = vmul.f32 %v6690_v14, %v2487_v57  ;;  %v2953_v53 = vpop.f32.mrb[53].mxu0  ;;  %v6215_v43 = vpop.f32.mrb[54].mxu1  ;;  %v6700_v14 = vunpack.i.l.bf16 %v12687_v8 }
 0x1b2   : > { %v10748_v12 = vadd.f32 %v2940_v32, %v2855_v2  ;;  %v2860_v42 = vadd.f32 %v2828_v27, %v10522_v25  ;;  %v2829_v52 = vmul.f32 %v6696_v47, %v6215_v43  ;;  %v6251_v35 = vpop.f32.mrb[54].mxu0  ;;  %v2490_v55 = vpop.f32.mrb[55].mxu1  ;;  %v12686_v2 = vld [vmem:[#allocation27_spill] sm:$0xff] }
 0x1b3   : > { %v2858_v10 = vadd.f32 %v2826_v61, %v10529_v37  ;;  %v2827_v34 = vmul.f32 %v6691_v51, %v2490_v55  ;;  %v2956_v28 = vpop.f32.mrb[55].mxu0  ;;  %v6705_v60 = vunpack.i.l.bf16 %v12686_v2  ;;  %v10766_v38 = vpop.permute.xlu1 %6863  ;;  %v6706_v57 = vunpack.i.h.bf16 %v12686_v2 }
 0x1b4   : > { %v10757_v44 = vadd.f32 %v6250_v29, %v2860_v42  ;;  %v2861_v16 = vadd.f32 %v2829_v52, %v10536_v50  ;;  %v6254_v25 = vpop.f32.mrb[56].mxu0  ;;  %v6218_v37 = vpop.f32.mrb[56].mxu1 }
 0x1b5   : > { %v10760_v23 = vadd.f32 %v2953_v53, %v2858_v10  ;;  %v2859_v32 = vadd.f32 %v2827_v34, %v10544_v24  ;;  %v10771_v29 = vpop.permute.xlu0 %6858  ;;  %v2832_v27 = vmul.f32 %v6705_v60, %v6218_v37  ;;  %v2503_v50 = vpop.f32.mrb[57].mxu1  ;;  %v6701_v53 = vunpack.i.h.bf16 %v12687_v8  ;;  %v12688_v60 = vld [vmem:[#allocation51_spill] sm:$0xff] }
 0x1b6   : > { %v10763_v63 = vadd.f32 %v6251_v35, %v2861_v16  ;;  %v2830_v47 = vmul.f32 %v6700_v14, %v2503_v50  ;;  %v2969_v24 = vpop.f32.mrb[57].mxu0  ;;  %v6219_v61 = vpop.f32.mrb[58].mxu1  ;;  %v6715_v37 = vunpack.i.l.bf16 %v12688_v60 }
 0x1b7   : > { %v10768_v6 = vadd.f32 %v2956_v28, %v2859_v32  ;;  %v2864_v43 = vadd.f32 %v2832_v27, %v10565_v58  ;;  %v2833_v51 = vmul.f32 %v6706_v57, %v6219_v61  ;;  %v6255_v42 = vpop.f32.mrb[58].mxu0  ;;  %v2506_v52 = vpop.f32.mrb[59].mxu1  ;;  %v12689_v27 = vld [vmem:[#allocation56_spill] sm:$0xff] }
 0x1b8   : > { %v2862_v35 = vadd.f32 %v2830_v47, %v10570_v54  ;;  %v2831_v55 = vmul.f32 %v6701_v53, %v2506_v52  ;;  %v2972_v10 = vpop.f32.mrb[59].mxu0  ;;  %v10786_v8 = vpop.permute.xlu1 %6873  ;;  %v6710_v50 = vunpack.i.l.bf16 %v12689_v27  ;;  %v6716_v47 = vunpack.i.h.bf16 %v12688_v60 }
 0x1b9   : > { %v10777_v34 = vadd.f32 %v6254_v25, %v2864_v43  ;;  %v2865_v28 = vadd.f32 %v2833_v51, %v10575_v9  ;;  %v6258_v58 = vpop.f32.mrb[60].mxu0  ;;  %v6222_v54 = vpop.f32.mrb[60].mxu1  ;;  %v6711_v53 = vunpack.i.h.bf16 %v12689_v27  ;;  %v12690_v27 = vld [vmem:[#allocation63_spill] sm:$0xff] }
 0x1ba   : > { %v10780_v16 = vadd.f32 %v2969_v24, %v2862_v35  ;;  %v2863_v32 = vadd.f32 %v2831_v55, %v10583_v46  ;;  %v10791_v25 = vpop.permute.xlu0 %6868  ;;  %v2836_v57 = vmul.f32 %v6715_v37, %v6222_v54  ;;  %v2519_v9 = vpop.f32.mrb[61].mxu1 }
 0x1bb   : > { %v10783_v2 = vadd.f32 %v6255_v42, %v2865_v28  ;;  %v2834_v24 = vmul.f32 %v6710_v50, %v2519_v9  ;;  %v2985_v46 = vpop.f32.mrb[61].mxu0  ;;  %v6223_v61 = vpop.f32.mrb[62].mxu1  ;;  %v6725_v50 = vunpack.i.l.bf16 %v12690_v27 }
 0x1bc   : > { %v10788_v14 = vadd.f32 %v2972_v10, %v2863_v32  ;;  %v2868_v43 = vadd.f32 %v2836_v57, %v10598_v22  ;;  %v2837_v51 = vmul.f32 %v6716_v47, %v6223_v61  ;;  %v6259_v42 = vpop.f32.mrb[62].mxu0  ;;  %v2522_v52 = vpop.f32.mrb[63].mxu1  ;;  %v12692_v47 = vld [vmem:[#allocation83_spill] sm:$0xff] }
 0x1bd   : > { %v2866_v35 = vadd.f32 %v2834_v24, %v10605_v13  ;;  %v2835_v55 = vmul.f32 %v6711_v53, %v2522_v52  ;;  %v2988_v10 = vpop.f32.mrb[63].mxu0  ;;  %v10806_v57 = vpop.permute.xlu1 %6883  ;;  %v6720_v24 = vunpack.i.l.bf16 %v12692_v47 }
 0x1be   : > { %v10797_v28 = vadd.f32 %v6258_v58, %v2868_v43  ;;  %v2869_v32 = vadd.f32 %v2837_v51, %v10611_v0  ;;  %v6262_v22 = vpop.f32.mrb[64].mxu0  ;;  %v6226_v13 = vpop.f32.mrb[64].mxu1  ;;  %v6721_v51 = vunpack.i.h.bf16 %v12692_v47  ;;  %v12693_v47 = vld [vmem:[#allocation14_spill] sm:$0xff] }
 0x1bf   : > { %v10800_v37 = vadd.f32 %v2985_v46, %v2866_v35  ;;  %v2867_v60 = vadd.f32 %v2835_v55, %v10616_v31  ;;  %v10811_v58 = vpop.permute.xlu0 %6878  ;;  %v2840_v61 = vmul.f32 %v6725_v50, %v6226_v13  ;;  %v2535_v0 = vpop.f32.mrb[65].mxu1  ;;  %v6726_v46 = vunpack.i.h.bf16 %v12690_v27 }
 0x1c0   : > { %v10803_v54 = vadd.f32 %v6259_v42, %v2869_v32  ;;  %v2838_v53 = vmul.f32 %v6720_v24, %v2535_v0  ;;  %v3001_v31 = vpop.f32.mrb[65].mxu0  ;;  %v6227_v43 = vpop.f32.mrb[66].mxu1  ;;  %v6735_v0 = vunpack.i.l.bf16 %v12693_v47 }
 0x1c1   : > { %v10808_v9 = vadd.f32 %v2988_v10, %v2867_v60  ;;  %v2872_v42 = vadd.f32 %v2840_v61, %v10634_v3  ;;  %v2841_v52 = vmul.f32 %v6726_v46, %v6227_v43  ;;  %v6263_v35 = vpop.f32.mrb[66].mxu0  ;;  %v2538_v55 = vpop.f32.mrb[67].mxu1 }
 0x1c2   : > { %v2870_v10 = vadd.f32 %v2838_v53, %v10639_v19  ;;  %v2839_v32 = vmul.f32 %v6721_v51, %v2538_v55  ;;  %v3004_v60 = vpop.f32.mrb[67].mxu0  ;;  %v10826_v61 = vpop.permute.xlu1 %6893  ;;  %v12696_v53 = vld [vmem:[#allocation10_spill] sm:$0xff] }
 0x1c3   : > { %12691 = vst [vmem:[#allocation19_spill] sm:$0xff] %v10808_v9  ;;  %v10817_v9 = vadd.f32 %v6262_v22, %v2872_v42  ;;  %v2873_v50 = vadd.f32 %v2841_v52, %v10643_v56  ;;  %v6266_v3 = vpop.f32.mrb[68].mxu0  ;;  %12694 = vst [vmem:[#allocation38_spill] sm:$0xff] %v10826_v61  ;;  %v6730_v43 = vunpack.i.l.bf16 %v12696_v53  ;;  %v10831_v22 = vpop.permute.xlu0 %6888 }
 0x1c4   : > { %v10820_v13 = vadd.f32 %v3001_v31, %v2870_v10  ;;  %v2871_v27 = vadd.f32 %v2839_v32, %v10648_v30  ;;  %v6736_v31 = vunpack.i.h.bf16 %v12693_v47  ;;  %v3017_v30 = vpop.f32.mrb[69].mxu0 }
 0x1c5   : > { %v10823_v24 = vadd.f32 %v6263_v35, %v2873_v50  ;;  %v6230_v19 = vpop.f32.mrb[68].mxu1  ;;  %v6731_v35 = vunpack.i.h.bf16 %v12696_v53  ;;  %v6267_v32 = vpop.f32.mrb[70].mxu0  ;;  %v12697_v53 = vld [vmem:[#allocation61_spill] sm:$0xff] }
 0x1c6   : > { %v10828_v46 = vadd.f32 %v3004_v60, %v2871_v27  ;;  %v2844_v51 = vmul.f32 %v6735_v0, %v6230_v19  ;;  %v2551_v56 = vpop.f32.mrb[69].mxu1 }
 0x1c7   : > { %v2842_v42 = vmul.f32 %v6730_v43, %v2551_v56  ;;  %v6231_v52 = vpop.f32.mrb[70].mxu1  ;;  %v6745_v56 = vunpack.i.l.bf16 %v12697_v53 }
 0x1c8   : > { %12695 = vst [vmem:[#allocation76_spill] sm:$0xff] %v10828_v46  ;;  %v2876_v55 = vadd.f32 %v2844_v51, %v10664_v36  ;;  %v2845_v10 = vmul.f32 %v6736_v31, %v6231_v52  ;;  %v2554_v60 = vpop.f32.mrb[71].mxu1  ;;  %v3020_v46 = vpop.f32.mrb[71].mxu0 }
 0x1c9   : > { %v2874_v50 = vadd.f32 %v2842_v42, %v10667_v5  ;;  %v2843_v27 = vmul.f32 %v6731_v35, %v2554_v60  ;;  %v10846_v51 = vpop.permute.xlu1 %6903  ;;  %v12700_v42 = vld [vmem:[#allocation90_spill] sm:$0xff] }
 0x1ca   : > { %v10837_v61 = vadd.f32 %v6266_v3, %v2876_v55  ;;  %v2877_v0 = vadd.f32 %v2845_v10, %v10671_v41  ;;  %12698 = vst [vmem:[#allocation53_spill] sm:$0xff] %v10846_v51  ;;  %v6740_v52 = vunpack.i.l.bf16 %v12700_v42  ;;  %v10851_v3 = vpop.permute.xlu0 %6898 }
 0x1cb   : > { %v10840_v19 = vadd.f32 %v3017_v30, %v2874_v50  ;;  %v2875_v47 = vadd.f32 %v2843_v27, %v10676_v62  ;;  %v6746_v30 = vunpack.i.h.bf16 %v12697_v53 }
 0x1cc   : > { %v10843_v43 = vadd.f32 %v6267_v32, %v2877_v0  ;;  %v6741_v32 = vunpack.i.h.bf16 %v12700_v42 }
 0x1cd   : > { %v10848_v31 = vadd.f32 %v3020_v46, %v2875_v47 }
 0x1ce   : > { %v6270_v36 = vpop.f32.mrb[72].mxu0  ;;  %v6234_v5 = vpop.f32.mrb[72].mxu1 }
 0x1cf   : > { %12699 = vst [vmem:[#allocation65_spill] sm:$0xff] %v10848_v31  ;;  %v2848_v35 = vmul.f32 %v6745_v56, %v6234_v5  ;;  %v2567_v41 = vpop.f32.mrb[73].mxu1  ;;  %v3033_v62 = vpop.f32.mrb[73].mxu0 }
 0x1d0   : > { %v2846_v55 = vmul.f32 %v6740_v52, %v2567_v41  ;;  %v6235_v10 = vpop.f32.mrb[74].mxu1  ;;  %v6271_v27 = vpop.f32.mrb[74].mxu0  ;;  %v12701_v52 = vld [vmem:[#allocation89_spill] sm:$0xff] }
 0x1d1   : > { %v2880_v60 = vadd.f32 %v2848_v35, %v10692_v26  ;;  %v2849_v50 = vmul.f32 %v6746_v30, %v6235_v10  ;;  %v2570_v46 = vpop.f32.mrb[75].mxu1  ;;  %v3036_v31 = vpop.f32.mrb[75].mxu0  ;;  %v6755_v41 = vunpack.i.l.bf16 %v12701_v52  ;;  %v12702_v35 = vld [vmem:[#allocation39_spill] sm:$0xff] }
 0x1d2   : > { %v2878_v0 = vadd.f32 %v2846_v55, %v10695_v11  ;;  %v2847_v47 = vmul.f32 %v6741_v32, %v2570_v46  ;;  %v6750_v30 = vunpack.i.l.bf16 %v12702_v35  ;;  %v10867_v10 = vpop.permute.xlu1 %6913  ;;  %v10872_v32 = vpop.permute.xlu0 %6908 }
 0x1d3   : > { %v10857_v51 = vadd.f32 %v6270_v36, %v2880_v60  ;;  %v2881_v56 = vadd.f32 %v2849_v50, %v10699_v49  ;;  %12703 = vst [vmem:[#allocation16_spill] sm:$0xff] %v10867_v10  ;;  %v6756_v36 = vunpack.i.h.bf16 %v12701_v52 }
 0x1d4   : > { %v10860_v5 = vadd.f32 %v3033_v62, %v2878_v0  ;;  %v2879_v53 = vadd.f32 %v2847_v47, %v10704_v17  ;;  %v6751_v17 = vunpack.i.h.bf16 %v12702_v35 }
 0x1d5   : > { %v10864_v42 = vadd.f32 %v6271_v27, %v2881_v56 }
 0x1d6   : > { %v10869_v11 = vadd.f32 %v3036_v31, %v2879_v53 }
 0x1d8   : > { %12704 = vst [vmem:[#allocation2_spill] sm:$0xff] %v10869_v11 }
 0x1e3   : > { %v6274_v26 = vpop.f32.mrb[76].mxu0 }
 0x1e4   : > { %v3049_v50 = vpop.f32.mrb[77].mxu0 }
 0x1e5   : > { %v6275_v47 = vpop.f32.mrb[78].mxu0 }
 0x1e6   : > { %v6238_v55 = vpop.f32.mrb[76].mxu1  ;;  %v3052_v11 = vpop.f32.mrb[79].mxu0 }
 0x1e7   : > { %v2852_v49 = vmul.f32 %v6755_v41, %v6238_v55  ;;  %v2583_v62 = vpop.f32.mrb[77].mxu1  ;;  %v10880_v41 = vpop.permute.xlu1 %6923 }
 0x1e8   : > { %v2850_v60 = vmul.f32 %v6750_v30, %v2583_v62  ;;  %v6239_v27 = vpop.f32.mrb[78].mxu1  ;;  %12706 = vst [vmem:[#allocation36_spill] sm:$0xff] %v10880_v41  ;;  %v12708_v30 = vld [vmem:[#allocation93_spill] sm:$0xff] }
 0x1e9   : > { %v2884_v46 = vadd.f32 %v2852_v49, %v10719_v4  ;;  %v2853_v0 = vmul.f32 %v6756_v36, %v6239_v27  ;;  %v2586_v56 = vpop.f32.mrb[79].mxu1  ;;  %v6765_v62 = vunpack.i.l.bf16 %v12708_v30  ;;  %v10886_v4 = vpop.permute.xlu0 %6918 }
 0x1ea   : > { %v2882_v31 = vadd.f32 %v2850_v60, %v10721_v18  ;;  %v2851_v53 = vmul.f32 %v6751_v17, %v2586_v56  ;;  %12709 = vst [vmem:[#allocation88_spill] sm:$0xff] %v10886_v4  ;;  %v12711_v18 = vld [vmem:[#allocation82_spill] sm:$0xff]  ;;  %v6846_v4 = vunpack.i.h.bf16 %v10726_v20 }
 0x1eb   : > { %v10877_v10 = vadd.f32 %v6274_v26, %v2884_v46  ;;  %v2885_v52 = vadd.f32 %v2853_v0, %v10723_v1  ;;  %v6760_v17 = vunpack.i.l.bf16 %v12711_v18  ;;  %v6766_v1 = vunpack.i.h.bf16 %v12708_v30 }
 0x1ec   : > { %v10882_v55 = vadd.f32 %v3049_v50, %v2882_v31  ;;  %v2883_v35 = vadd.f32 %v2851_v53, %v10728_v40  ;;  %v6318_v49 = vpop.f32.mrb[80].mxu0  ;;  %v6845_v50 = vunpack.i.l.bf16 %v10726_v20  ;;  %v6761_v56 = vunpack.i.h.bf16 %v12711_v18 }
 0x1ed   : > { %12705 = vst [vmem:[#allocation3_spill] sm:$0xff] %v10877_v10  ;;  %v10888_v36 = vadd.f32 %v6275_v47, %v2885_v52  ;;  %v3613_v27 = vpop.f32.mrb[81].mxu0  ;;  %v6840_v31 = vunpack.i.l.bf16 %v10731_v15  ;;  %v6841_v30 = vunpack.i.h.bf16 %v10731_v15  ;;  %v10905_v10 = vpop.permute.xlu1 %6933  ;;  %v6775_v15 = vunpack.i.l.bf16 %v10499_v45 }
 0x1ee   : > { %12707 = vst [vmem:[#allocation55_spill] sm:$0xff] %v10882_v55  ;;  %v10891_v60 = vadd.f32 %v3052_v11, %v2883_v35  ;;  %v6319_v40 = vpop.f32.mrb[82].mxu0  ;;  %v4030_v35 = vmul.f32 %v6845_v50, %v6318_v49 }
 0x1ef   : > { %12710 = vst [vmem:[#allocation15_spill] sm:$0xff] %v10888_v36  ;;  %v3616_v52 = vpop.f32.mrb[83].mxu0 }
 0x1f0   : > { %12712 = vst [vmem:[#allocation84_spill] sm:$0xff] %v10891_v60  ;;  %v4029_v49 = vmul.f32 %v6841_v30, %v3616_v52  ;;  %v6771_v52 = vunpack.i.h.bf16 %v10504_v21 }
 0x1f1   : > { %v6282_v26 = vpop.f32.mrb[80].mxu1 }
 0x1f2   : > { %v3500_v46 = vmul.f32 %v6765_v62, %v6282_v26  ;;  %v3147_v0 = vpop.f32.mrb[81].mxu1  ;;  %v4028_v26 = vmul.f32 %v6840_v31, %v3613_v27  ;;  %v10912_v27 = vpop.permute.xlu0 %6928 }
 0x1f3   : > { %v3498_v47 = vmul.f32 %v6760_v17, %v3147_v0  ;;  %v6283_v53 = vpop.f32.mrb[82].mxu1  ;;  %v4031_v17 = vmul.f32 %v6846_v4, %v6319_v40  ;;  %v6855_v0 = vunpack.i.l.bf16 %v10746_v33 }
 0x1f4   : > { %v3532_v11 = vadd.f32 %v3500_v46, %v10737_v7  ;;  %v3501_v41 = vmul.f32 %v6766_v1, %v6283_v53  ;;  %v3150_v60 = vpop.f32.mrb[83].mxu1  ;;  %v6322_v1 = vpop.f32.mrb[84].mxu0 }
 0x1f5   : > { %v3530_v62 = vadd.f32 %v3498_v47, %v10740_v59  ;;  %v3499_v36 = vmul.f32 %v6761_v56, %v3150_v60  ;;  %v6850_v59 = vunpack.i.l.bf16 %v10751_v39  ;;  %v4034_v46 = vmul.f32 %v6855_v0, %v6322_v1  ;;  %v3629_v40 = vpop.f32.mrb[85].mxu0  ;;  %v12713_v1 = vld [vmem:[#allocation96_spill] sm:$0xff] }
 0x1f6   : > { %v10901_v55 = vadd.f32 %v4030_v35, %v3532_v11  ;;  %v3533_v18 = vadd.f32 %v3501_v41, %v10743_v48  ;;  %v6770_v48 = vunpack.i.l.bf16 %v10504_v21  ;;  %v6856_v41 = vunpack.i.h.bf16 %v10746_v33  ;;  %v6323_v53 = vpop.f32.mrb[86].mxu0 }
 0x1f7   : > { %v10907_v20 = vadd.f32 %v4028_v26, %v3530_v62  ;;  %v3531_v7 = vadd.f32 %v3499_v36, %v10748_v12  ;;  %v6776_v12 = vunpack.i.h.bf16 %v10499_v45  ;;  %v6851_v36 = vunpack.i.h.bf16 %v10751_v39  ;;  %v3632_v62 = vpop.f32.mrb[87].mxu0 }
 0x1f8   : > { %v10914_v60 = vadd.f32 %v4031_v17, %v3533_v18  ;;  %v4032_v47 = vmul.f32 %v6850_v59, %v3629_v40  ;;  %v4035_v30 = vmul.f32 %v6856_v41, %v6323_v53  ;;  %v10936_v41 = vpop.permute.xlu0 %6938 }
 0x1f9   : > { %v10918_v4 = vadd.f32 %v4029_v49, %v3531_v7  ;;  %v6286_v50 = vpop.f32.mrb[84].mxu1  ;;  %v4033_v17 = vmul.f32 %v6851_v36, %v3632_v62  ;;  %v6865_v49 = vunpack.i.l.bf16 %v10766_v38 }
 0x1fa   : > { %v3504_v56 = vmul.f32 %v6775_v15, %v6286_v50  ;;  %v3163_v31 = vpop.f32.mrb[85].mxu1  ;;  %v10929_v15 = vpop.permute.xlu1 %6943 }
 0x1fb   : > { %v3502_v11 = vmul.f32 %v6770_v48, %v3163_v31  ;;  %v6287_v35 = vpop.f32.mrb[86].mxu1  ;;  %v6860_v48 = vunpack.i.l.bf16 %v10771_v29 }
 0x1fc   : > { %v3536_v33 = vadd.f32 %v3504_v56, %v10757_v44  ;;  %v3505_v26 = vmul.f32 %v6776_v12, %v6287_v35  ;;  %v3166_v18 = vpop.f32.mrb[87].mxu1  ;;  %v6785_v44 = vunpack.i.l.bf16 %v12713_v1  ;;  %v6326_v50 = vpop.f32.mrb[88].mxu0 }
 0x1fd   : > { %v3534_v0 = vadd.f32 %v3502_v11, %v10760_v23  ;;  %v3503_v45 = vmul.f32 %v6771_v52, %v3166_v18  ;;  %v4038_v56 = vmul.f32 %v6865_v49, %v6326_v50  ;;  %v3645_v31 = vpop.f32.mrb[89].mxu0 }
 0x1fe   : > { %v10925_v7 = vadd.f32 %v4034_v46, %v3536_v33  ;;  %v3537_v39 = vadd.f32 %v3505_v26, %v10763_v63  ;;  %v12714_v46 = vld [vmem:[#allocation66_spill] sm:$0xff]  ;;  %v6866_v63 = vunpack.i.h.bf16 %v10766_v38  ;;  %v4036_v11 = vmul.f32 %v6860_v48, %v3645_v31  ;;  %v6327_v35 = vpop.f32.mrb[90].mxu0 }
 0x1ff   : > { %v10931_v21 = vadd.f32 %v4032_v47, %v3534_v0  ;;  %v3535_v59 = vadd.f32 %v3503_v45, %v10768_v6  ;;  %v6780_v40 = vunpack.i.l.bf16 %v12714_v46  ;;  %v6786_v6 = vunpack.i.h.bf16 %v12713_v1  ;;  %v3648_v18 = vpop.f32.mrb[91].mxu0 }
 0x200   : > { %v10938_v23 = vadd.f32 %v4035_v30, %v3537_v39  ;;  %v6861_v47 = vunpack.i.h.bf16 %v10771_v29  ;;  %v6781_v30 = vunpack.i.h.bf16 %v12714_v46  ;;  %v4039_v26 = vmul.f32 %v6866_v63, %v6327_v35  ;;  %v12715_v46 = vld [vmem:[#allocation98_spill] sm:$0xff]  ;;  %v10960_v63 = vpop.permute.xlu0 %6948 }
 0x201   : > { %v10942_v12 = vadd.f32 %v4033_v17, %v3535_v59  ;;  %v6290_v36 = vpop.f32.mrb[88].mxu1  ;;  %v6875_v1 = vunpack.i.l.bf16 %v10786_v8 }
 0x202   : > { %v3508_v53 = vmul.f32 %v6785_v44, %v6290_v36  ;;  %v3179_v52 = vpop.f32.mrb[89].mxu1  ;;  %v4037_v45 = vmul.f32 %v6861_v47, %v3648_v18  ;;  %v10953_v44 = vpop.permute.xlu1 %6953 }
 0x203   : > { %v3506_v62 = vmul.f32 %v6780_v40, %v3179_v52  ;;  %v6291_v33 = vpop.f32.mrb[90].mxu1  ;;  %v6870_v40 = vunpack.i.l.bf16 %v10791_v25 }
 0x204   : > { %v3540_v38 = vadd.f32 %v3508_v53, %v10777_v34  ;;  %v3509_v17 = vmul.f32 %v6786_v6, %v6291_v33  ;;  %v3182_v0 = vpop.f32.mrb[91].mxu1  ;;  %v6795_v34 = vunpack.i.l.bf16 %v12715_v46  ;;  %v6330_v36 = vpop.f32.mrb[92].mxu0 }
 0x205   : > { %v3538_v39 = vadd.f32 %v3506_v62, %v10780_v16  ;;  %v3507_v49 = vmul.f32 %v6781_v30, %v3182_v0  ;;  %v4042_v53 = vmul.f32 %v6875_v1, %v6330_v36  ;;  %v3661_v52 = vpop.f32.mrb[93].mxu0  ;;  %v12717_v36 = vld [vmem:[#allocation19_spill] sm:$0xff] }
 0x206   : > { %v10949_v59 = vadd.f32 %v4038_v56, %v3540_v38  ;;  %v3541_v29 = vadd.f32 %v3509_v17, %v10783_v2  ;;  %v12716_v56 = vld [vmem:[#allocation97_spill] sm:$0xff]  ;;  %v6876_v2 = vunpack.i.h.bf16 %v10786_v8  ;;  %v4040_v62 = vmul.f32 %v6870_v40, %v3661_v52  ;;  %v6331_v33 = vpop.f32.mrb[94].mxu0  ;;  %v12719_v52 = vld [vmem:[#allocation99_spill] sm:$0xff] }
 0x207   : > { %v10955_v48 = vadd.f32 %v4036_v11, %v3538_v39  ;;  %v3539_v50 = vadd.f32 %v3507_v49, %v10788_v14  ;;  %v6790_v31 = vunpack.i.l.bf16 %v12716_v56  ;;  %v6796_v14 = vunpack.i.h.bf16 %v12715_v46  ;;  %v3664_v0 = vpop.f32.mrb[95].mxu0 }
 0x208   : > { %v10962_v16 = vadd.f32 %v4039_v26, %v3541_v29  ;;  %v6871_v11 = vunpack.i.h.bf16 %v10791_v25  ;;  %v6791_v26 = vunpack.i.h.bf16 %v12716_v56  ;;  %v4043_v17 = vmul.f32 %v6876_v2, %v6331_v33 }
 0x209   : > { %v10966_v6 = vadd.f32 %v4037_v45, %v3539_v50  ;;  %v6294_v47 = vpop.f32.mrb[92].mxu1  ;;  %v6885_v46 = vunpack.i.l.bf16 %v10806_v57  ;;  %v6880_v2 = vunpack.i.l.bf16 %v10811_v58 }
 0x20a   : > { %v3512_v35 = vmul.f32 %v6795_v34, %v6294_v47  ;;  %v3195_v30 = vpop.f32.mrb[93].mxu1  ;;  %v4041_v49 = vmul.f32 %v6871_v11, %v3664_v0  ;;  %v10977_v34 = vpop.permute.xlu1 %6963 }
 0x20b   : > { %v3510_v18 = vmul.f32 %v6790_v31, %v3195_v30  ;;  %v6295_v38 = vpop.f32.mrb[94].mxu1  ;;  %v12718_v31 = vld [vmem:[#allocation31_spill] sm:$0xff]  ;;  %v10984_v47 = vpop.permute.xlu0 %6958 }
 0x20c   : > { %v3544_v8 = vadd.f32 %v3512_v35, %v10797_v28  ;;  %v3513_v45 = vmul.f32 %v6796_v14, %v6295_v38  ;;  %v3198_v39 = vpop.f32.mrb[95].mxu1  ;;  %v6805_v28 = vunpack.i.l.bf16 %v12718_v31  ;;  %v6800_v14 = vunpack.i.l.bf16 %v12719_v52 }
 0x20d   : > { %v3542_v29 = vadd.f32 %v3510_v18, %v10800_v37  ;;  %v3511_v1 = vmul.f32 %v6791_v26, %v3198_v39  ;;  %v6806_v33 = vunpack.i.h.bf16 %v12718_v31  ;;  %v6881_v26 = vunpack.i.h.bf16 %v10811_v58 }
 0x20e   : > { %v10973_v50 = vadd.f32 %v4042_v53, %v3544_v8  ;;  %v3545_v25 = vadd.f32 %v3513_v45, %v10803_v54  ;;  %v6334_v53 = vpop.f32.mrb[96].mxu0  ;;  %v6886_v54 = vunpack.i.h.bf16 %v10806_v57 }
 0x20f   : > { %v10979_v40 = vadd.f32 %v4040_v62, %v3542_v29  ;;  %v3543_v56 = vadd.f32 %v3511_v1, %v12717_v36  ;;  %v4046_v30 = vmul.f32 %v6885_v46, %v6334_v53  ;;  %v3677_v62 = vpop.f32.mrb[97].mxu0  ;;  %v11001_v53 = vpop.permute.xlu1 %6973 }
 0x210   : > { %v10986_v37 = vadd.f32 %v4043_v17, %v3545_v25  ;;  %v4044_v0 = vmul.f32 %v6880_v2, %v3677_v62  ;;  %v6335_v8 = vpop.f32.mrb[98].mxu0  ;;  %v6801_v17 = vunpack.i.h.bf16 %v12719_v52  ;;  %v6890_v62 = vunpack.i.l.bf16 %v10831_v22 }
 0x211   : > { %v10990_v11 = vadd.f32 %v4041_v49, %v3543_v56  ;;  %v6298_v35 = vpop.f32.mrb[96].mxu1  ;;  %v4047_v29 = vmul.f32 %v6886_v54, %v6335_v8  ;;  %v3680_v1 = vpop.f32.mrb[99].mxu0 }
 0x212   : > { %v3516_v18 = vmul.f32 %v6805_v28, %v6298_v35  ;;  %v3211_v38 = vpop.f32.mrb[97].mxu1  ;;  %v4045_v46 = vmul.f32 %v6881_v26, %v3680_v1  ;;  %v12720_v28 = vld [vmem:[#allocation38_spill] sm:$0xff]  ;;  %v12722_v35 = vld [vmem:[#allocation40_spill] sm:$0xff]  ;;  %v12724_v26 = vld [vmem:[#allocation33_spill] sm:$0xff] }
 0x213   : > { %v3514_v45 = vmul.f32 %v6800_v14, %v3211_v38  ;;  %v6299_v39 = vpop.f32.mrb[98].mxu1  ;;  %v6895_v2 = vunpack.i.l.bf16 %v12720_v28  ;;  %v12721_v14 = vld [vmem:[#allocation76_spill] sm:$0xff] }
 0x214   : > { %v3548_v57 = vadd.f32 %v3516_v18, %v10817_v9  ;;  %v3517_v49 = vmul.f32 %v6806_v33, %v6299_v39  ;;  %v3214_v25 = vpop.f32.mrb[99].mxu1  ;;  %v6815_v9 = vunpack.i.l.bf16 %v12722_v35  ;;  %v11008_v33 = vpop.permute.xlu0 %6968  ;;  %v6810_v18 = vunpack.i.l.bf16 %v12724_v26 }
 0x215   : > { %v3546_v36 = vadd.f32 %v3514_v45, %v10820_v13  ;;  %v3515_v56 = vmul.f32 %v6801_v17, %v3214_v25  ;;  %12723 = vst [vmem:[#allocation5_spill] sm:$0xff] %v11008_v33  ;;  %v6816_v45 = vunpack.i.h.bf16 %v12722_v35  ;;  %v6891_v39 = vunpack.i.h.bf16 %v10831_v22 }
 0x216   : > { %v10997_v31 = vadd.f32 %v4046_v30, %v3548_v57  ;;  %v3549_v58 = vadd.f32 %v3517_v49, %v10823_v24  ;;  %v6338_v30 = vpop.f32.mrb[100].mxu0  ;;  %v6896_v24 = vunpack.i.h.bf16 %v12720_v28 }
 0x217   : > { %v11003_v52 = vadd.f32 %v4044_v0, %v3546_v36  ;;  %v3547_v54 = vadd.f32 %v3515_v56, %v12721_v14  ;;  %v4050_v0 = vmul.f32 %v6895_v2, %v6338_v30  ;;  %v3693_v17 = vpop.f32.mrb[101].mxu0 }
 0x218   : > { %v11010_v13 = vadd.f32 %v4047_v29, %v3549_v58  ;;  %v4048_v49 = vmul.f32 %v6890_v62, %v3693_v17  ;;  %v6339_v25 = vpop.f32.mrb[102].mxu0  ;;  %v6811_v29 = vunpack.i.h.bf16 %v12724_v26  ;;  %v12727_v17 = vld [vmem:[#allocation32_spill] sm:$0xff] }
 0x219   : > { %v11014_v38 = vadd.f32 %v4045_v46, %v3547_v54  ;;  %v6302_v8 = vpop.f32.mrb[100].mxu1  ;;  %v4051_v58 = vmul.f32 %v6896_v24, %v6339_v25  ;;  %v3696_v14 = vpop.f32.mrb[103].mxu0 }
 0x21a   : > { %v3520_v1 = vmul.f32 %v6815_v9, %v6302_v8  ;;  %v3227_v57 = vpop.f32.mrb[101].mxu1  ;;  %v4049_v2 = vmul.f32 %v6891_v39, %v3696_v14  ;;  %v12725_v9 = vld [vmem:[#allocation53_spill] sm:$0xff]  ;;  %v11025_v8 = vpop.permute.xlu1 %6983  ;;  %v6901_v14 = vunpack.i.h.bf16 %v10851_v3 }
 0x21b   : > { %v3518_v36 = vmul.f32 %v6810_v18, %v3227_v57  ;;  %v6303_v56 = vpop.f32.mrb[102].mxu1  ;;  %v6905_v62 = vunpack.i.l.bf16 %v12725_v9  ;;  %v12726_v18 = vld [vmem:[#allocation65_spill] sm:$0xff]  ;;  %v11032_v39 = vpop.permute.xlu0 %6978 }
 0x21c   : > { %v3552_v46 = vadd.f32 %v3520_v1, %v10837_v61  ;;  %v3521_v28 = vmul.f32 %v6816_v45, %v6303_v56  ;;  %v3230_v54 = vpop.f32.mrb[103].mxu1  ;;  %v6825_v61 = vunpack.i.l.bf16 %v12727_v17  ;;  %v6900_v45 = vunpack.i.l.bf16 %v10851_v3  ;;  %12728 = vst [vmem:[#allocation59_spill] sm:$0xff] %v11032_v39  ;;  %v12729_v1 = vld [vmem:[#allocation46_spill] sm:$0xff] }
 0x21d   : > { %v3550_v30 = vadd.f32 %v3518_v36, %v10840_v19  ;;  %v3519_v35 = vmul.f32 %v6811_v29, %v3230_v54  ;;  %v6820_v57 = vunpack.i.l.bf16 %v12729_v1  ;;  %v6826_v56 = vunpack.i.h.bf16 %v12727_v17 }
 0x21e   : > { %v11021_v33 = vadd.f32 %v4050_v0, %v3552_v46  ;;  %v3553_v22 = vadd.f32 %v3521_v28, %v10843_v43  ;;  %v6342_v0 = vpop.f32.mrb[104].mxu0  ;;  %v6906_v43 = vunpack.i.h.bf16 %v12725_v9 }
 0x21f   : > { %v11027_v26 = vadd.f32 %v4048_v49, %v3550_v30  ;;  %v3551_v24 = vadd.f32 %v3519_v35, %v12726_v18  ;;  %v4054_v49 = vmul.f32 %v6905_v62, %v6342_v0  ;;  %v3709_v36 = vpop.f32.mrb[105].mxu0  ;;  %v6821_v30 = vunpack.i.h.bf16 %v12729_v1  ;;  %v11050_v1 = vpop.permute.xlu1 %6993 }
 0x220   : > { %v11034_v19 = vadd.f32 %v4051_v58, %v3553_v22  ;;  %v4052_v54 = vmul.f32 %v6900_v45, %v3709_v36  ;;  %v6343_v58 = vpop.f32.mrb[106].mxu0  ;;  %v12730_v45 = vld [vmem:[#allocation16_spill] sm:$0xff] }
 0x221   : > { %v11038_v25 = vadd.f32 %v4049_v2, %v3551_v24  ;;  %v6306_v29 = vpop.f32.mrb[104].mxu1  ;;  %v4055_v18 = vmul.f32 %v6906_v43, %v6343_v58  ;;  %v3712_v9 = vpop.f32.mrb[107].mxu0  ;;  %v12731_v43 = vld [vmem:[#allocation2_spill] sm:$0xff] }
 0x222   : > { %v3524_v46 = vmul.f32 %v6825_v61, %v6306_v29  ;;  %v3243_v28 = vpop.f32.mrb[105].mxu1  ;;  %v4053_v0 = vmul.f32 %v6901_v14, %v3712_v9  ;;  %v6915_v29 = vunpack.i.l.bf16 %v12730_v45 }
 0x223   : > { %v3522_v35 = vmul.f32 %v6820_v57, %v3243_v28  ;;  %v6307_v22 = vpop.f32.mrb[106].mxu1 }
 0x224   : > { %v3556_v2 = vadd.f32 %v3524_v46, %v10857_v51  ;;  %v3525_v24 = vmul.f32 %v6826_v56, %v6307_v22  ;;  %v3246_v62 = vpop.f32.mrb[107].mxu1  ;;  %v12732_v51 = vld [vmem:[#allocation73_spill] sm:$0xff]  ;;  %v11058_v46 = vpop.permute.xlu0 %6988 }
 0x225   : > { %v3554_v17 = vadd.f32 %v3522_v35, %v10860_v5  ;;  %v3523_v39 = vmul.f32 %v6821_v30, %v3246_v62  ;;  %v6836_v56 = vunpack.i.h.bf16 %v12732_v51  ;;  %v6835_v14 = vunpack.i.l.bf16 %v12732_v51  ;;  %12733 = vst [vmem:[#allocation94_spill] sm:$0xff] %v11058_v46  ;;  %v6346_v28 = vpop.f32.mrb[108].mxu0 }
 0x226   : > { %v11046_v3 = vadd.f32 %v4054_v49, %v3556_v2  ;;  %v3557_v61 = vadd.f32 %v3525_v24, %v10864_v42  ;;  %v6910_v5 = vunpack.i.l.bf16 %v10872_v32  ;;  %v12734_v42 = vld [vmem:[#allocation37_spill] sm:$0xff]  ;;  %v4058_v35 = vmul.f32 %v6915_v29, %v6346_v28  ;;  %v3725_v22 = vpop.f32.mrb[109].mxu0 }
 0x227   : > { %v11052_v57 = vadd.f32 %v4052_v54, %v3554_v17  ;;  %v3555_v36 = vadd.f32 %v3523_v39, %v12731_v43  ;;  %v6830_v54 = vunpack.i.l.bf16 %v12734_v42  ;;  %v6916_v39 = vunpack.i.h.bf16 %v12730_v45  ;;  %v6347_v62 = vpop.f32.mrb[110].mxu0  ;;  %v12735_v43 = vld [vmem:[#allocation3_spill] sm:$0xff] }
 0x228   : > { %v11060_v49 = vadd.f32 %v4055_v18, %v3557_v61  ;;  %v6911_v18 = vunpack.i.h.bf16 %v10872_v32  ;;  %v4056_v24 = vmul.f32 %v6910_v5, %v3725_v22  ;;  %v3728_v29 = vpop.f32.mrb[111].mxu0  ;;  %v5097_v32 = vld [vmem:[%s11065_s17 + $0x10] sm:$0xff] }
 0x229   : > { %v11069_v58 = vadd.f32 %v4053_v0, %v3555_v36  ;;  %v6310_v30 = vpop.f32.mrb[108].mxu1  ;;  %v6831_v0 = vunpack.i.h.bf16 %v12734_v42  ;;  %v4059_v45 = vmul.f32 %v6916_v39, %v6347_v62  ;;  %5130 = vst.msk [vmem:[%s11074_s20 + $0x10] sm:$0xff] %vm5127_vm11, %v5097_v32  ;;  %v12738_v42 = vld [vmem:[#allocation15_spill] sm:$0xff]  ;;  %v5098_v39 = vld [vmem:[%s11065_s17 + $0x18] sm:$0xff] }
 0x22a   : > { %v3528_v9 = vmul.f32 %v6835_v14, %v6310_v30  ;;  %v3259_v2 = vpop.f32.mrb[109].mxu1  ;;  %v4057_v46 = vmul.f32 %v6911_v18, %v3728_v29  ;;  %v12736_v14 = vld [vmem:[#allocation55_spill] sm:$0xff]  ;;  %5131 = vst.msk [vmem:[%s11074_s20 + $0x18] sm:$0xff] %vm5127_vm11, %v5098_v39  ;;  %v12741_v18 = vld [vmem:[#allocation36_spill] sm:$0xff] }
 0x22b   : > { %v3526_v17 = vmul.f32 %v6830_v54, %v3259_v2  ;;  %v6311_v61 = vpop.f32.mrb[110].mxu1  ;;  %v7004_v2 = vpop.permute.xlu1 %7003  ;;  %v6926_v32 = vunpack.i.h.bf16 %v12741_v18 }
 0x22c   : > { %v3560_v36 = vadd.f32 %v3528_v9, %v12735_v43  ;;  %v3529_v51 = vmul.f32 %v6836_v56, %v6311_v61  ;;  %v3262_v28 = vpop.f32.mrb[111].mxu1  ;;  %v12740_v9 = vld [vmem:[#allocation84_spill] sm:$0xff]  ;;  %v6925_v61 = vunpack.i.l.bf16 %v12741_v18  ;;  %v6390_v29 = vpop.f32.mrb[112].mxu0 }
 0x22d   : > { %v3558_v30 = vadd.f32 %v3526_v17, %v12736_v14  ;;  %v3527_v5 = vmul.f32 %v6831_v0, %v3262_v28  ;;  %v6999_v17 = vpop.permute.xlu0 %6998  ;;  %v12743_v43 = vld [vmem:[#allocation88_spill] sm:$0xff]  ;;  %v7005_v14 = vunpack.i.l.bf16 %v7004_v2 }
 0x22e   : > { %v11083_v22 = vadd.f32 %v4058_v35, %v3560_v36  ;;  %v3561_v54 = vadd.f32 %v3529_v51, %v12738_v42  ;;  %v5095_v35 = vld [vmem:[%s11065_s17] sm:$0xff]  ;;  %v6920_v36 = vunpack.i.l.bf16 %v12743_v43  ;;  %v7000_v39 = vunpack.i.l.bf16 %v6999_v17 }
 0x22f   : > { %v11087_v62 = vadd.f32 %v4056_v24, %v3558_v30  ;;  %v3559_v56 = vadd.f32 %v3527_v5, %v12740_v9  ;;  %v4609_v24 = vpop.f32.mrb[113].mxu0  ;;  %5128 = vst.msk [vmem:[%s11074_s20] sm:$0xff] %vm5127_vm11, %v5095_v35  ;;  %v4994_v18 = vmul.f32 %v7005_v14, %v6390_v29  ;;  %v5102_v29 = vld [vmem:[%s11065_s17 + $0x38] sm:$0xff] }
 0x230   : > { %12737 = vst [vmem:[#allocation70_spill] sm:$0xff] %v11083_v22  ;;  %v11093_v0 = vadd.f32 %v4059_v45, %v3561_v54  ;;  %v6391_v42 = vpop.f32.mrb[114].mxu0  ;;  %v5096_v45 = vld [vmem:[%s11065_s17 + $0x8] sm:$0xff]  ;;  %v6921_v54 = vunpack.i.h.bf16 %v12743_v43  ;;  %v11111_v43 = vld [vmem:[%s11391_s5] ss:$0 sm:$0xff]  ;;  %5135 = vst.msk [vmem:[%s11074_s20 + $0x38] sm:$0xff] %vm5127_vm11, %v5102_v29 }
 0x231   : > { %12739 = vst [vmem:[#allocation17_spill] sm:$0xff] %v11087_v62  ;;  %v11097_v51 = vadd.f32 %v4057_v46, %v3559_v56  ;;  %v6354_v28 = vpop.f32.mrb[112].mxu1  ;;  %v4612_v46 = vpop.f32.mrb[115].mxu0  ;;  %5129 = vst.msk [vmem:[%s11074_s20 + $0x8] sm:$0xff] %vm5127_vm11, %v5096_v45  ;;  %v7006_v56 = vunpack.i.h.bf16 %v7004_v2 }
 0x232   : > { %12742 = vst [vmem:[#allocation50_spill] sm:$0xff] %v11093_v0  ;;  %v4496_v30 = vmul.f32 %v6925_v61, %v6354_v28  ;;  %v4143_v5 = vpop.f32.mrb[113].mxu1  ;;  %v5101_v61 = vld [vmem:[%s11065_s17 + $0x30] sm:$0xff]  ;;  %v7001_v28 = vunpack.i.h.bf16 %v6999_v17 }
 0x233   : > { %12744 = vst [vmem:[#allocation18_spill] sm:$0xff] %v11097_v51  ;;  %v4494_v9 = vmul.f32 %v6920_v36, %v4143_v5  ;;  %v6355_v0 = vpop.f32.mrb[114].mxu1  ;;  %v4992_v5 = vmul.f32 %v7000_v39, %v4609_v24  ;;  %5134 = vst.msk [vmem:[%s11074_s20 + $0x30] sm:$0xff] %vm5127_vm11, %v5101_v61  ;;  %v7009_v24 = vpop.permute.xlu0 %7008  ;;  %v5099_v39 = vld [vmem:[%s11065_s17 + $0x20] sm:$0xff]  ;;  %v5100_v61 = vld [vmem:[%s11065_s17 + $0x28] sm:$0xff] }
 0x234   : > { %v4528_v35 = vadd.f32 %v4496_v30, %v10901_v55  ;;  %v4497_v51 = vmul.f32 %v6926_v32, %v6355_v0  ;;  %v4146_v62 = vpop.f32.mrb[115].mxu1  ;;  %v4995_v0 = vmul.f32 %v7006_v56, %v6391_v42  ;;  %v7014_v32 = vpop.permute.xlu1 %7013  ;;  %v4993_v30 = vmul.f32 %v7001_v28, %v4612_v46  ;;  %5132 = vst.msk [vmem:[%s11074_s20 + $0x20] sm:$0xff] %vm5127_vm11, %v5099_v39 }
 0x235   : > { %v4526_v36 = vadd.f32 %v4494_v9, %v10907_v20  ;;  %v4495_v22 = vmul.f32 %v6921_v54, %v4146_v62  ;;  %v6935_v20 = vunpack.i.l.bf16 %v10905_v10  ;;  %v6394_v54 = vpop.f32.mrb[116].mxu0  ;;  %v6931_v28 = vunpack.i.h.bf16 %v10912_v27  ;;  %5133 = vst.msk [vmem:[%s11074_s20 + $0x28] sm:$0xff] %vm5127_vm11, %v5100_v61 }
 0x236   : > { %v5026_v2 = vadd.f32 %v4994_v18, %v4528_v35  ;;  %v4529_v55 = vadd.f32 %v4497_v51, %v10914_v60  ;;  %v6930_v60 = vunpack.i.l.bf16 %v10912_v27  ;;  %v4625_v9 = vpop.f32.mrb[117].mxu0  ;;  %v7011_v27 = vunpack.i.h.bf16 %v7009_v24 }
 0x237   : > { %v5024_v17 = vadd.f32 %v4992_v5, %v4526_v36  ;;  %v4527_v14 = vadd.f32 %v4495_v22, %v10918_v4  ;;  %v6936_v4 = vunpack.i.h.bf16 %v10905_v10  ;;  %v7015_v22 = vunpack.i.l.bf16 %v7014_v32  ;;  %v6395_v18 = vpop.f32.mrb[118].mxu0 }
 0x238   : > { %v5065_v62 = vadd.f32 %v11111_v43, %v5026_v2  ;;  %v5027_v45 = vadd.f32 %v4995_v0, %v4529_v55  ;;  %v7016_v36 = vunpack.i.h.bf16 %v7014_v32  ;;  %v7010_v5 = vunpack.i.l.bf16 %v7009_v24  ;;  %v4628_v0 = vpop.f32.mrb[119].mxu0 }
 0x239   : > { %v5025_v51 = vadd.f32 %v4993_v30, %v4527_v14  ;;  %v6358_v42 = vpop.f32.mrb[116].mxu1  ;;  %v5063_v10 = vadd.f32 %v11111_v43, %v5024_v17  ;;  %v4998_v14 = vmul.f32 %v7015_v22, %v6394_v54 }
 0x23a   : > { %v5066_v46 = vadd.f32 %v11111_v43, %v5027_v45  ;;  %v4500_v56 = vmul.f32 %v6935_v20, %v6358_v42  ;;  %v4159_v35 = vpop.f32.mrb[117].mxu1  ;;  %5196 = vrot.lane.b32.xlu0 %v5065_v62, %s7161_s10  ;;  %v5105_v62 = vld [vmem:[%s11065_s17 + $0x50] sm:$0xff]  ;;  %v4996_v45 = vmul.f32 %v7010_v5, %v4625_v9  ;;  %v4999_v54 = vmul.f32 %v7016_v36, %v6395_v18  ;;  %v5106_v42 = vld [vmem:[%s11065_s17 + $0x58] sm:$0xff] }
 0x23b   : > { %v4498_v2 = vmul.f32 %v6930_v60, %v4159_v35  ;;  %v6359_v55 = vpop.f32.mrb[118].mxu1  ;;  %5138 = vst.msk [vmem:[%s11074_s20 + $0x50] sm:$0xff] %vm5127_vm11, %v5105_v62  ;;  %v5064_v60 = vadd.f32 %v11111_v43, %v5025_v51  ;;  %5139 = vst.msk [vmem:[%s11074_s20 + $0x58] sm:$0xff] %vm5127_vm11, %v5106_v42  ;;  %v6945_v9 = vunpack.i.l.bf16 %v10929_v15  ;;  %v5103_v35 = vld [vmem:[%s11065_s17 + $0x40] sm:$0xff]  ;;  %v6940_v18 = vunpack.i.l.bf16 %v10936_v41 }
 0x23c   : > { %v4532_v29 = vadd.f32 %v4500_v56, %v10925_v7  ;;  %v4501_v30 = vmul.f32 %v6936_v4, %v6359_v55  ;;  %v4162_v20 = vpop.f32.mrb[119].mxu1  ;;  %5198 = vrot.lane.b32.xlu1 %v5066_v46, %s7161_s10  ;;  %v7024_v4 = vpop.permute.xlu1 %7023  ;;  %5136 = vst.msk [vmem:[%s11074_s20 + $0x40] sm:$0xff] %vm5127_vm11, %v5103_v35 }
 0x23d   : > { %v4530_v32 = vadd.f32 %v4498_v2, %v10931_v21  ;;  %v4499_v39 = vmul.f32 %v6931_v28, %v4162_v20  ;;  %v4997_v21 = vmul.f32 %v7011_v27, %v4628_v0  ;;  %v7019_v46 = vpop.permute.xlu0 %7018  ;;  %v7025_v5 = vunpack.i.l.bf16 %v7024_v4 }
 0x23e   : > { %v5030_v17 = vadd.f32 %v4998_v14, %v4532_v29  ;;  %v4533_v7 = vadd.f32 %v4501_v30, %v10938_v23  ;;  %5192 = vrot.lane.b32.xlu0 %v5063_v10, %s7161_s10  ;;  %v6398_v23 = vpop.f32.mrb[120].mxu0  ;;  %v5104_v29 = vld [vmem:[%s11065_s17 + $0x48] sm:$0xff]  ;;  %v6941_v14 = vunpack.i.h.bf16 %v10936_v41  ;;  %v7026_v30 = vunpack.i.h.bf16 %v7024_v4 }
 0x23f   : > { %v5028_v22 = vadd.f32 %v4996_v45, %v4530_v32  ;;  %v4531_v24 = vadd.f32 %v4499_v39, %v10942_v12  ;;  %v4641_v36 = vpop.f32.mrb[121].mxu0  ;;  %v6946_v12 = vunpack.i.h.bf16 %v10929_v15  ;;  %v7020_v20 = vunpack.i.l.bf16 %v7019_v46  ;;  %5137 = vst.msk [vmem:[%s11074_s20 + $0x48] sm:$0xff] %vm5127_vm11, %v5104_v29 }
 0x240   : > { %v5069_v51 = vadd.f32 %v11111_v43, %v5030_v17  ;;  %v5031_v56 = vadd.f32 %v4999_v54, %v4533_v7  ;;  %5194 = vrot.lane.b32.xlu1 %v5064_v60, %s7161_s10  ;;  %v6399_v10 = vpop.f32.mrb[122].mxu0  ;;  %v5002_v39 = vmul.f32 %v7025_v5, %v6398_v23  ;;  %v5109_v7 = vld [vmem:[%s11065_s17 + $0x70] sm:$0xff]  ;;  %v7021_v41 = vunpack.i.h.bf16 %v7019_v46 }
 0x241   : > { %v5029_v61 = vadd.f32 %v4997_v21, %v4531_v24  ;;  %v6362_v28 = vpop.f32.mrb[120].mxu1  ;;  %v4644_v32 = vpop.f32.mrb[123].mxu0  ;;  %v5067_v15 = vadd.f32 %v11111_v43, %v5028_v22  ;;  %v5000_v42 = vmul.f32 %v7020_v20, %v4641_v36  ;;  %5142 = vst.msk [vmem:[%s11074_s20 + $0x70] sm:$0xff] %vm5127_vm11, %v5109_v7  ;;  %v5003_v21 = vmul.f32 %v7026_v30, %v6399_v10  ;;  %v5108_v30 = vld [vmem:[%s11065_s17 + $0x68] sm:$0xff] }
 0x242   : > { %v5070_v2 = vadd.f32 %v11111_v43, %v5031_v56  ;;  %v4504_v55 = vmul.f32 %v6945_v9, %v6362_v28  ;;  %v4175_v0 = vpop.f32.mrb[121].mxu1  ;;  %5204 = vrot.lane.b32.xlu0 %v5069_v51, %s7161_s10  ;;  %v5110_v9 = vld [vmem:[%s11065_s17 + $0x78] sm:$0xff]  ;;  %v7034_v51 = vpop.permute.xlu1 %7033  ;;  %v6955_v23 = vunpack.i.l.bf16 %v10953_v44  ;;  %v5107_v28 = vld [vmem:[%s11065_s17 + $0x60] sm:$0xff]  ;;  %v6950_v36 = vunpack.i.l.bf16 %v10960_v63  ;;  %5141 = vst.msk [vmem:[%s11074_s20 + $0x68] sm:$0xff] %vm5127_vm11, %v5108_v30 }
 0x243   : > { %v4502_v62 = vmul.f32 %v6940_v18, %v4175_v0  ;;  %v6363_v27 = vpop.f32.mrb[122].mxu1  ;;  %v5068_v24 = vadd.f32 %v11111_v43, %v5029_v61  ;;  %5143 = vst.msk [vmem:[%s11074_s20 + $0x78] sm:$0xff] %vm5127_vm11, %v5110_v9  ;;  %v7029_v35 = vpop.permute.xlu0 %7028  ;;  %5140 = vst.msk [vmem:[%s11074_s20 + $0x60] sm:$0xff] %vm5127_vm11, %v5107_v28  ;;  %v6951_v20 = vunpack.i.h.bf16 %v10960_v63 }
 0x244   : > { %v4536_v45 = vadd.f32 %v4504_v55, %v10949_v59  ;;  %v4505_v60 = vmul.f32 %v6946_v12, %v6363_v27  ;;  %v4178_v17 = vpop.f32.mrb[123].mxu1  ;;  %5206 = vrot.lane.b32.xlu1 %v5070_v2, %s7161_s10  ;;  %v7035_v55 = vunpack.i.l.bf16 %v7034_v51  ;;  %v7030_v27 = vunpack.i.l.bf16 %v7029_v35 }
 0x245   : > { %v4534_v54 = vadd.f32 %v4502_v62, %v10955_v48  ;;  %v4503_v4 = vmul.f32 %v6941_v14, %v4178_v17  ;;  %v5001_v48 = vmul.f32 %v7021_v41, %v4644_v32  ;;  %v7036_v62 = vunpack.i.h.bf16 %v7034_v51  ;;  %v5113_v41 = vld [vmem:[%s11065_s17 + $0x90] sm:$0xff] }
 0x246   : > { %v5034_v22 = vadd.f32 %v5002_v39, %v4536_v45  ;;  %v4537_v59 = vadd.f32 %v4505_v60, %v10962_v16  ;;  %5200 = vrot.lane.b32.xlu0 %v5067_v15, %s7161_s10  ;;  %v6402_v16 = vpop.f32.mrb[124].mxu0  ;;  %v7031_v63 = vunpack.i.h.bf16 %v7029_v35  ;;  %5146 = vst.msk [vmem:[%s11074_s20 + $0x90] sm:$0xff] %vm5127_vm11, %v5113_v41  ;;  %v7044_v9 = vpop.permute.xlu1 %7043 }
 0x247   : > { %v5032_v56 = vadd.f32 %v5000_v42, %v4534_v54  ;;  %v4535_v46 = vadd.f32 %v4503_v4, %v10966_v6  ;;  %v4657_v2 = vpop.f32.mrb[125].mxu0  ;;  %v6956_v6 = vunpack.i.h.bf16 %v10953_v44  ;;  %v5006_v60 = vmul.f32 %v7035_v55, %v6402_v16 }
 0x248   : > { %v5073_v18 = vadd.f32 %v11111_v43, %v5034_v22  ;;  %v5035_v61 = vadd.f32 %v5003_v21, %v4537_v59  ;;  %5202 = vrot.lane.b32.xlu1 %v5068_v24, %s7161_s10  ;;  %v6403_v14 = vpop.f32.mrb[126].mxu0  ;;  %v5004_v42 = vmul.f32 %v7030_v27, %v4657_v2  ;;  %v5114_v21 = vld [vmem:[%s11065_s17 + $0x98] sm:$0xff] }
 0x249   : > { %v5033_v12 = vadd.f32 %v5001_v48, %v4535_v46  ;;  %v6366_v5 = vpop.f32.mrb[124].mxu1  ;;  %v4660_v45 = vpop.f32.mrb[127].mxu0  ;;  %v5071_v44 = vadd.f32 %v11111_v43, %v5032_v56  ;;  %v5007_v59 = vmul.f32 %v7036_v62, %v6403_v14  ;;  %5147 = vst.msk [vmem:[%s11074_s20 + $0x98] sm:$0xff] %vm5127_vm11, %v5114_v21  ;;  %v6965_v46 = vunpack.i.l.bf16 %v10977_v34 }
 0x24a   : > { %v5074_v0 = vadd.f32 %v11111_v43, %v5035_v61  ;;  %v4508_v10 = vmul.f32 %v6955_v23, %v6366_v5  ;;  %v4191_v29 = vpop.f32.mrb[125].mxu1  ;;  %5212 = vrot.lane.b32.xlu0 %v5073_v18, %s7161_s10  ;;  %v7039_v48 = vpop.permute.xlu0 %7038  ;;  %v5111_v18 = vld [vmem:[%s11065_s17 + $0x80] sm:$0xff]  ;;  %v6960_v61 = vunpack.i.l.bf16 %v10984_v47 }
 0x24b   : > { %v4506_v32 = vmul.f32 %v6950_v36, %v4191_v29  ;;  %v6367_v15 = vpop.f32.mrb[126].mxu1  ;;  %v5072_v24 = vadd.f32 %v11111_v43, %v5033_v12  ;;  %5144 = vst.msk [vmem:[%s11074_s20 + $0x80] sm:$0xff] %vm5127_vm11, %v5111_v18  ;;  %v7045_v12 = vunpack.i.l.bf16 %v7044_v9  ;;  %v7046_v29 = vunpack.i.h.bf16 %v7044_v9  ;;  %v5115_v9 = vld [vmem:[%s11065_s17 + $0xa0] sm:$0xff] }
 0x24c   : > { %v4540_v39 = vadd.f32 %v4508_v10, %v10973_v50  ;;  %v4509_v17 = vmul.f32 %v6956_v6, %v6367_v15  ;;  %v4194_v7 = vpop.f32.mrb[127].mxu1  ;;  %5214 = vrot.lane.b32.xlu1 %v5074_v0, %s7161_s10  ;;  %v5112_v0 = vld [vmem:[%s11065_s17 + $0x88] sm:$0xff]  ;;  %v6961_v10 = vunpack.i.h.bf16 %v10984_v47  ;;  %v7040_v14 = vunpack.i.l.bf16 %v7039_v48  ;;  %5148 = vst.msk [vmem:[%s11074_s20 + $0xa0] sm:$0xff] %vm5127_vm11, %v5115_v9 }
 0x24d   : > { %v4538_v54 = vadd.f32 %v4506_v32, %v10979_v40  ;;  %v4507_v4 = vmul.f32 %v6951_v20, %v4194_v7  ;;  %v5005_v40 = vmul.f32 %v7031_v63, %v4660_v45  ;;  %5145 = vst.msk [vmem:[%s11074_s20 + $0x88] sm:$0xff] %vm5127_vm11, %v5112_v0  ;;  %v7041_v47 = vunpack.i.h.bf16 %v7039_v48 }
 0x24e   : > { %v5038_v22 = vadd.f32 %v5006_v60, %v4540_v39  ;;  %v4541_v50 = vadd.f32 %v4509_v17, %v10986_v37  ;;  %5208 = vrot.lane.b32.xlu0 %v5071_v44, %s7161_s10  ;;  %v6406_v37 = vpop.f32.mrb[128].mxu0  ;;  %v5117_v44 = vld [vmem:[%s11065_s17 + $0xb0] sm:$0xff] }
 0x24f   : > { %v5036_v51 = vadd.f32 %v5004_v42, %v4538_v54  ;;  %v4539_v56 = vadd.f32 %v4507_v4, %v10990_v11  ;;  %v4673_v36 = vpop.f32.mrb[129].mxu0  ;;  %v6966_v11 = vunpack.i.h.bf16 %v10977_v34  ;;  %v5010_v32 = vmul.f32 %v7045_v12, %v6406_v37  ;;  %5150 = vst.msk [vmem:[%s11074_s20 + $0xb0] sm:$0xff] %vm5127_vm11, %v5117_v44  ;;  %v5118_v54 = vld [vmem:[%s11065_s17 + $0xb8] sm:$0xff]  ;;  %v7054_v42 = vpop.permute.xlu1 %7053 }
 0x250   : > { %v5077_v23 = vadd.f32 %v11111_v43, %v5038_v22  ;;  %v5039_v35 = vadd.f32 %v5007_v59, %v4541_v50  ;;  %5210 = vrot.lane.b32.xlu1 %v5072_v24, %s7161_s10  ;;  %v6407_v55 = vpop.f32.mrb[130].mxu0  ;;  %v5008_v60 = vmul.f32 %v7040_v14, %v4673_v36  ;;  %5151 = vst.msk [vmem:[%s11074_s20 + $0xb8] sm:$0xff] %vm5127_vm11, %v5118_v54  ;;  %v6975_v22 = vunpack.i.l.bf16 %v11001_v53  ;;  %v7049_v50 = vpop.permute.xlu0 %7048 }
 0x251   : > { %v5037_v16 = vadd.f32 %v5005_v40, %v4539_v56  ;;  %v6370_v28 = vpop.f32.mrb[128].mxu1  ;;  %v4676_v62 = vpop.f32.mrb[131].mxu0  ;;  %v5075_v34 = vadd.f32 %v11111_v43, %v5036_v51  ;;  %v5011_v63 = vmul.f32 %v7046_v29, %v6407_v55  ;;  %v12745_v51 = vld [vmem:[#allocation5_spill] sm:$0xff]  ;;  %v7056_v36 = vunpack.i.h.bf16 %v7054_v42  ;;  %v5121_v29 = vld [vmem:[%s11065_s17 + $0xd0] sm:$0xff] }
 0x252   : > { %v5078_v5 = vadd.f32 %v11111_v43, %v5039_v35  ;;  %v4512_v2 = vmul.f32 %v6965_v46, %v6370_v28  ;;  %v4207_v6 = vpop.f32.mrb[129].mxu1  ;;  %5220 = vrot.lane.b32.xlu0 %v5077_v23, %s7161_s10  ;;  %v6970_v56 = vunpack.i.l.bf16 %v12745_v51  ;;  %v7055_v23 = vunpack.i.l.bf16 %v7054_v42  ;;  %5154 = vst.msk [vmem:[%s11074_s20 + $0xd0] sm:$0xff] %vm5127_vm11, %v5121_v29 }
 0x253   : > { %v4510_v30 = vmul.f32 %v6960_v61, %v4207_v6  ;;  %v6371_v20 = vpop.f32.mrb[130].mxu1  ;;  %v5076_v7 = vadd.f32 %v11111_v43, %v5037_v16  ;;  %v5116_v16 = vld [vmem:[%s11065_s17 + $0xa8] sm:$0xff]  ;;  %v6971_v28 = vunpack.i.h.bf16 %v12745_v51  ;;  %v7051_v14 = vunpack.i.h.bf16 %v7049_v50 }
 0x254   : > { %v4544_v27 = vadd.f32 %v4512_v2, %v10997_v31  ;;  %v4513_v15 = vmul.f32 %v6966_v11, %v6371_v20  ;;  %v4210_v45 = vpop.f32.mrb[131].mxu1  ;;  %5222 = vrot.lane.b32.xlu1 %v5078_v5, %s7161_s10  ;;  %v7050_v11 = vunpack.i.l.bf16 %v7049_v50  ;;  %5149 = vst.msk [vmem:[%s11074_s20 + $0xa8] sm:$0xff] %vm5127_vm11, %v5116_v16 }
 0x255   : > { %v4542_v39 = vadd.f32 %v4510_v30, %v11003_v52  ;;  %v4511_v17 = vmul.f32 %v6961_v10, %v4210_v45  ;;  %v5009_v52 = vmul.f32 %v7041_v47, %v4676_v62  ;;  %v7064_v45 = vpop.permute.xlu1 %7063 }
 0x256   : > { %v5042_v41 = vadd.f32 %v5010_v32, %v4544_v27  ;;  %v4545_v31 = vadd.f32 %v4513_v15, %v11010_v13  ;;  %5216 = vrot.lane.b32.xlu0 %v5075_v34, %s7161_s10  ;;  %v6410_v13 = vpop.f32.mrb[132].mxu0  ;;  %v5122_v15 = vld [vmem:[%s11065_s17 + $0xd8] sm:$0xff]  ;;  %v7066_v9 = vunpack.i.h.bf16 %v7064_v45 }
 0x257   : > { %v5040_v4 = vadd.f32 %v5008_v60, %v4542_v39  ;;  %v4543_v24 = vadd.f32 %v4511_v17, %v11014_v38  ;;  %v4689_v48 = vpop.f32.mrb[133].mxu0  ;;  %v6976_v38 = vunpack.i.h.bf16 %v11001_v53  ;;  %v5014_v55 = vmul.f32 %v7055_v23, %v6410_v13  ;;  %5155 = vst.msk [vmem:[%s11074_s20 + $0xd8] sm:$0xff] %vm5127_vm11, %v5122_v15  ;;  %v7059_v60 = vpop.permute.xlu0 %7058 }
 0x258   : > { %v5081_v59 = vadd.f32 %v11111_v43, %v5042_v41  ;;  %v5043_v21 = vadd.f32 %v5011_v63, %v4545_v31  ;;  %5218 = vrot.lane.b32.xlu1 %v5076_v7, %s7161_s10  ;;  %v6411_v61 = vpop.f32.mrb[134].mxu0  ;;  %v5012_v20 = vmul.f32 %v7050_v11, %v4689_v48  ;;  %v6985_v39 = vunpack.i.l.bf16 %v11025_v8  ;;  %v5119_v41 = vld [vmem:[%s11065_s17 + $0xc0] sm:$0xff]  ;;  %v12746_v31 = vld [vmem:[#allocation59_spill] sm:$0xff] }
 0x259   : > { %v5041_v40 = vadd.f32 %v5009_v52, %v4543_v24  ;;  %v6374_v46 = vpop.f32.mrb[132].mxu1  ;;  %v4692_v2 = vpop.f32.mrb[135].mxu0  ;;  %v5079_v53 = vadd.f32 %v11111_v43, %v5040_v4  ;;  %v5015_v32 = vmul.f32 %v7056_v36, %v6411_v61  ;;  %v6980_v63 = vunpack.i.l.bf16 %v12746_v31  ;;  %5152 = vst.msk [vmem:[%s11074_s20 + $0xc0] sm:$0xff] %vm5127_vm11, %v5119_v41  ;;  %v12748_v41 = vld [vmem:[#allocation70_spill] sm:$0xff] }
 0x25a   : > { %v5082_v35 = vadd.f32 %v11111_v43, %v5043_v21  ;;  %v4516_v37 = vmul.f32 %v6975_v22, %v6374_v46  ;;  %v4223_v18 = vpop.f32.mrb[133].mxu1  ;;  %5228 = vrot.lane.b32.xlu0 %v5081_v59, %s7161_s10  ;;  %v7065_v24 = vunpack.i.l.bf16 %v7064_v45  ;;  %v5120_v21 = vld [vmem:[%s11065_s17 + $0xc8] sm:$0xff]  ;;  %v6981_v13 = vunpack.i.h.bf16 %v12746_v31 }
 0x25b   : > { %v4514_v12 = vmul.f32 %v6970_v56, %v4223_v18  ;;  %v6375_v5 = vpop.f32.mrb[134].mxu1  ;;  %v5080_v34 = vadd.f32 %v11111_v43, %v5041_v40  ;;  %v7060_v51 = vunpack.i.l.bf16 %v7059_v60  ;;  %5153 = vst.msk [vmem:[%s11074_s20 + $0xc8] sm:$0xff] %vm5127_vm11, %v5120_v21  ;;  %v12750_v21 = vld [vmem:[#allocation50_spill] sm:$0xff] }
 0x25c   : > { %v4548_v6 = vadd.f32 %v4516_v37, %v11021_v33  ;;  %v4517_v0 = vmul.f32 %v6976_v38, %v6375_v5  ;;  %v4226_v10 = vpop.f32.mrb[135].mxu1  ;;  %5230 = vrot.lane.b32.xlu1 %v5082_v35, %s7161_s10  ;;  %v7061_v37 = vunpack.i.h.bf16 %v7059_v60 }
 0x25d   : > { %v4546_v30 = vadd.f32 %v4514_v12, %v11027_v26  ;;  %v4515_v62 = vmul.f32 %v6971_v28, %v4226_v10  ;;  %v5013_v26 = vmul.f32 %v7051_v14, %v4692_v2  ;;  %v5123_v28 = vld [vmem:[%s11065_s17 + $0xe0] sm:$0xff] }
 0x25e   : > { %v5046_v27 = vadd.f32 %v5014_v55, %v4548_v6  ;;  %v4549_v33 = vadd.f32 %v4517_v0, %v11034_v19  ;;  %5224 = vrot.lane.b32.xlu0 %v5079_v53, %s7161_s10  ;;  %v6414_v19 = vpop.f32.mrb[136].mxu0  ;;  %5156 = vst.msk [vmem:[%s11074_s20 + $0xe0] sm:$0xff] %vm5127_vm11, %v5123_v28  ;;  %v5124_v6 = vld [vmem:[%s11065_s17 + $0xe8] sm:$0xff]  ;;  %v6995_v55 = vunpack.i.l.bf16 %v11050_v1  ;;  %v7069_v0 = vpop.permute.xlu0 %7068  ;;  %v12747_v14 = vld [vmem:[#allocation94_spill] sm:$0xff] }
 0x25f   : > { %v5044_v44 = vadd.f32 %v5012_v20, %v4546_v30  ;;  %v4547_v47 = vadd.f32 %v4515_v62, %v11038_v25  ;;  %v4705_v4 = vpop.f32.mrb[137].mxu0  ;;  %v6986_v25 = vunpack.i.h.bf16 %v11025_v8  ;;  %v5018_v38 = vmul.f32 %v7065_v24, %v6414_v19  ;;  %5157 = vst.msk [vmem:[%s11074_s20 + $0xe8] sm:$0xff] %vm5127_vm11, %v5124_v6  ;;  %v5126_v19 = vld [vmem:[%s11065_s17 + $0xf8] sm:$0xff] }
 0x260   : > { %v5085_v17 = vadd.f32 %v11111_v43, %v5046_v27  ;;  %v5047_v7 = vadd.f32 %v5015_v32, %v4549_v33  ;;  %5226 = vrot.lane.b32.xlu1 %v5080_v34, %s7161_s10  ;;  %v6415_v59 = vpop.f32.mrb[138].mxu0  ;;  %v5016_v61 = vmul.f32 %v7060_v51, %v4705_v4  ;;  %v6990_v30 = vunpack.i.l.bf16 %v12747_v14  ;;  %5159 = vst.msk [vmem:[%s11074_s20 + $0xf8] sm:$0xff] %vm5127_vm11, %v5126_v19 }
 0x261   : > { %v5045_v54 = vadd.f32 %v5013_v26, %v4547_v47  ;;  %v6378_v42 = vpop.f32.mrb[136].mxu1  ;;  %v4708_v46 = vpop.f32.mrb[139].mxu0  ;;  %v5083_v8 = vadd.f32 %v11111_v43, %v5044_v44  ;;  %v5019_v5 = vmul.f32 %v7066_v9, %v6415_v59  ;;  %v6996_v27 = vunpack.i.h.bf16 %v11050_v1 }
 0x262   : > { %v5086_v52 = vadd.f32 %v11111_v43, %v5047_v7  ;;  %v4520_v22 = vmul.f32 %v6985_v39, %v6378_v42  ;;  %v4239_v50 = vpop.f32.mrb[137].mxu1  ;;  %5236 = vrot.lane.b32.xlu0 %v5085_v17, %s7161_s10  ;;  %v6991_v47 = vunpack.i.h.bf16 %v12747_v14  ;;  %v7070_v39 = vunpack.i.l.bf16 %v7069_v0 }
 0x263   : > { %v4518_v56 = vmul.f32 %v6980_v63, %v4239_v50  ;;  %v6379_v40 = vpop.f32.mrb[138].mxu1  ;;  %v5084_v36 = vadd.f32 %v11111_v43, %v5045_v54  ;;  %v7071_v4 = vunpack.i.h.bf16 %v7069_v0 }
 0x264   : > { %v4552_v48 = vadd.f32 %v4520_v22, %v11046_v3  ;;  %v4521_v23 = vmul.f32 %v6986_v25, %v6379_v40  ;;  %v4242_v35 = vpop.f32.mrb[139].mxu1  ;;  %5238 = vrot.lane.b32.xlu1 %v5086_v52, %s7161_s10  ;;  %v7074_v3 = vpop.permute.xlu1 %7073  ;;  %v12749_v25 = vld [vmem:[#allocation17_spill] sm:$0xff] }
 0x265   : > { %v4550_v18 = vadd.f32 %v4518_v56, %v11052_v57  ;;  %v4519_v16 = vmul.f32 %v6981_v13, %v4242_v35  ;;  %v5017_v57 = vmul.f32 %v7061_v37, %v4708_v46  ;;  %v7075_v33 = vunpack.i.l.bf16 %v7074_v3  ;;  %v12751_v56 = vld [vmem:[#allocation18_spill] sm:$0xff] }
 0x266   : > { %v5050_v11 = vadd.f32 %v5018_v38, %v4552_v48  ;;  %v4553_v12 = vadd.f32 %v4521_v23, %v11060_v49  ;;  %5232 = vrot.lane.b32.xlu0 %v5083_v8, %s7161_s10  ;;  %v6418_v49 = vpop.f32.mrb[140].mxu0  ;;  %v7076_v26 = vunpack.i.h.bf16 %v7074_v3 }
 0x267   : > { %v5048_v2 = vadd.f32 %v5016_v61, %v4550_v18  ;;  %v4551_v53 = vadd.f32 %v4519_v16, %v11069_v58  ;;  %v4721_v34 = vpop.f32.mrb[141].mxu0  ;;  %v5125_v58 = vld [vmem:[%s11065_s17 + $0xf0] sm:$0xff]  ;;  %v5022_v63 = vmul.f32 %v7075_v33, %v6418_v49 }
 0x268   : > { %v5089_v10 = vadd.f32 %v11111_v43, %v5050_v11  ;;  %v5051_v29 = vadd.f32 %v5019_v5, %v4553_v12  ;;  %5234 = vrot.lane.b32.xlu1 %v5084_v36, %s7161_s10  ;;  %v6419_v44 = vpop.f32.mrb[142].mxu0  ;;  %5158 = vst.msk [vmem:[%s11074_s20 + $0xf0] sm:$0xff] %vm5127_vm11, %v5125_v58  ;;  %v5020_v52 = vmul.f32 %v7070_v39, %v4721_v34 }
 0x269   : > { %v5049_v20 = vadd.f32 %v5017_v57, %v4551_v53  ;;  %v6382_v62 = vpop.f32.mrb[140].mxu1  ;;  %v4724_v7 = vpop.f32.mrb[143].mxu0  ;;  %v5087_v1 = vadd.f32 %v11111_v43, %v5048_v2  ;;  %v5023_v9 = vmul.f32 %v7076_v26, %v6419_v44 }
 0x26a   : > { %v5090_v32 = vadd.f32 %v11111_v43, %v5051_v29  ;;  %v4524_v15 = vmul.f32 %v6995_v55, %v6382_v62  ;;  %v4255_v45 = vpop.f32.mrb[141].mxu1  ;;  %5244 = vrot.lane.b32.xlu0 %v5089_v10, %s7161_s10  ;;  %v5021_v46 = vmul.f32 %v7071_v4, %v4724_v7 }
 0x26b   : > { %v4522_v60 = vmul.f32 %v6990_v30, %v4255_v45  ;;  %v6383_v17 = vpop.f32.mrb[142].mxu1  ;;  %v5088_v50 = vadd.f32 %v11111_v43, %v5049_v20 }
 0x26c   : > { %v4556_v31 = vadd.f32 %v4524_v15, %v12748_v41  ;;  %v4525_v54 = vmul.f32 %v6996_v27, %v6383_v17  ;;  %v4258_v42 = vpop.f32.mrb[143].mxu1  ;;  %5246 = vrot.lane.b32.xlu1 %v5090_v32, %s7161_s10 }
 0x26d   : > { %v4554_v24 = vadd.f32 %v4522_v60, %v12749_v25  ;;  %v4523_v22 = vmul.f32 %v6991_v47, %v4258_v42 }
 0x26e   : > { %v5054_v59 = vadd.f32 %v5022_v63, %v4556_v31  ;;  %v4557_v13 = vadd.f32 %v4525_v54, %v12750_v21  ;;  %5240 = vrot.lane.b32.xlu0 %v5087_v1, %s7161_s10 }
 0x26f   : > { %v5052_v51 = vadd.f32 %v5020_v52, %v4554_v24  ;;  %v4555_v40 = vadd.f32 %v4523_v22, %v12751_v56 }
 0x270   : > { %v5055_v8 = vadd.f32 %v5023_v9, %v4557_v13  ;;  %5242 = vrot.lane.b32.xlu1 %v5088_v50, %s7161_s10  ;;  %v5093_v35 = vadd.f32 %v11111_v43, %v5054_v59 }
 0x271   : > { %v5091_v48 = vadd.f32 %v11111_v43, %v5052_v51  ;;  %v5053_v38 = vadd.f32 %v5021_v46, %v4555_v40 }
 0x272   : > { %v5094_v37 = vadd.f32 %v11111_v43, %v5055_v8 }
 0x273   : > { %v5092_v23 = vadd.f32 %v11111_v43, %v5053_v38  ;;  %5248 = vrot.lane.b32.xlu0 %v5091_v48, %s7161_s10 }
 0x275   : > { %5250 = vrot.lane.b32.xlu1 %v5092_v23, %s7161_s10 }
 0x277   : > { %5252 = vrot.lane.b32.xlu0 %v5093_v35, %s7161_s10 }
 0x279   : > { %5254 = vrot.lane.b32.xlu1 %v5094_v37, %s7161_s10 }
 0x2ac   : > { %v5197_v18 = vpop.permute.xlu0 %5196 }
 0x2ad   : > { %5291 = vst.msk [vmem:[%s11074_s20 + $0x10] sm:$0xff] %vm5288_vm6, %v5197_v18 }
 0x2ae   : > { %v5199_v61 = vpop.permute.xlu1 %5198 }
 0x2af   : > { %5292 = vst.msk [vmem:[%s11074_s20 + $0x18] sm:$0xff] %vm5288_vm6, %v5199_v61 }
 0x2b0   : > { %v5193_v16 = vpop.permute.xlu0 %5192 }
 0x2b1   : > { %5289 = vst.msk [vmem:[%s11074_s20] sm:$0xff] %vm5288_vm6, %v5193_v16 }
 0x2b2   : > { %v5195_v43 = vpop.permute.xlu1 %5194 }
 0x2b3   : > { %5290 = vst.msk [vmem:[%s11074_s20 + $0x8] sm:$0xff] %vm5288_vm6, %v5195_v43 }
 0x2b4   : > { %v5205_v28 = vpop.permute.xlu0 %5204 }
 0x2b5   : > { %5295 = vst.msk [vmem:[%s11074_s20 + $0x30] sm:$0xff] %vm5288_vm6, %v5205_v28 }
 0x2b6   : > { %v5207_v36 = vpop.permute.xlu1 %5206 }
 0x2b7   : > { %5296 = vst.msk [vmem:[%s11074_s20 + $0x38] sm:$0xff] %vm5288_vm6, %v5207_v36 }
 0x2b8   : > { %v5201_v11 = vpop.permute.xlu0 %5200 }
 0x2b9   : > { %5293 = vst.msk [vmem:[%s11074_s20 + $0x20] sm:$0xff] %vm5288_vm6, %v5201_v11 }
 0x2ba   : > { %v5203_v12 = vpop.permute.xlu1 %5202 }
 0x2bb   : > { %5294 = vst.msk [vmem:[%s11074_s20 + $0x28] sm:$0xff] %vm5288_vm6, %v5203_v12 }
 0x2bc   : > { %v5213_v5 = vpop.permute.xlu0 %5212 }
 0x2bd   : > { %5299 = vst.msk [vmem:[%s11074_s20 + $0x50] sm:$0xff] %vm5288_vm6, %v5213_v5 }
 0x2be   : > { %v5215_v3 = vpop.permute.xlu1 %5214 }
 0x2bf   : > { %5300 = vst.msk [vmem:[%s11074_s20 + $0x58] sm:$0xff] %vm5288_vm6, %v5215_v3 }
 0x2c0   : > { %v5209_v2 = vpop.permute.xlu0 %5208 }
 0x2c1   : > { %5297 = vst.msk [vmem:[%s11074_s20 + $0x40] sm:$0xff] %vm5288_vm6, %v5209_v2 }
 0x2c2   : > { %v5211_v53 = vpop.permute.xlu1 %5210 }
 0x2c3   : > { %5298 = vst.msk [vmem:[%s11074_s20 + $0x48] sm:$0xff] %vm5288_vm6, %v5211_v53 }
 0x2c4   : > { %v5221_v57 = vpop.permute.xlu0 %5220 }
 0x2c5   : > { %5303 = vst.msk [vmem:[%s11074_s20 + $0x70] sm:$0xff] %vm5288_vm6, %v5221_v57 }
 0x2c6   : > { %v5223_v6 = vpop.permute.xlu1 %5222 }
 0x2c7   : > { %5304 = vst.msk [vmem:[%s11074_s20 + $0x78] sm:$0xff] %vm5288_vm6, %v5223_v6 }
 0x2c8   : > { %v5217_v55 = vpop.permute.xlu0 %5216 }
 0x2c9   : > { %5301 = vst.msk [vmem:[%s11074_s20 + $0x60] sm:$0xff] %vm5288_vm6, %v5217_v55 }
 0x2ca   : > { %v5219_v0 = vpop.permute.xlu1 %5218 }
 0x2cb   : > { %5302 = vst.msk [vmem:[%s11074_s20 + $0x68] sm:$0xff] %vm5288_vm6, %v5219_v0 }
 0x2cc   : > { %v5229_v10 = vpop.permute.xlu0 %5228 }
 0x2cd   : > { %5307 = vst.msk [vmem:[%s11074_s20 + $0x90] sm:$0xff] %vm5288_vm6, %v5229_v10 }
 0x2ce   : > { %v5231_v29 = vpop.permute.xlu1 %5230 }
 0x2cf   : > { %5308 = vst.msk [vmem:[%s11074_s20 + $0x98] sm:$0xff] %vm5288_vm6, %v5231_v29 }
 0x2d0   : > { %v5225_v49 = vpop.permute.xlu0 %5224 }
 0x2d1   : > { %5305 = vst.msk [vmem:[%s11074_s20 + $0x80] sm:$0xff] %vm5288_vm6, %v5225_v49 }
 0x2d2   : > { %v5227_v14 = vpop.permute.xlu1 %5226 }
 0x2d3   : > { %5306 = vst.msk [vmem:[%s11074_s20 + $0x88] sm:$0xff] %vm5288_vm6, %v5227_v14 }
 0x2d4   : > { %v5237_v30 = vpop.permute.xlu0 %5236 }
 0x2d5   : > { %5311 = vst.msk [vmem:[%s11074_s20 + $0xb0] sm:$0xff] %vm5288_vm6, %v5237_v30 }
 0x2d6   : > { %v5239_v20 = vpop.permute.xlu1 %5238 }
 0x2d7   : > { %5312 = vst.msk [vmem:[%s11074_s20 + $0xb8] sm:$0xff] %vm5288_vm6, %v5239_v20 }
 0x2d8   : > { %v5233_v62 = vpop.permute.xlu0 %5232 }
 0x2d9   : > { %5309 = vst.msk [vmem:[%s11074_s20 + $0xa0] sm:$0xff] %vm5288_vm6, %v5233_v62 }
 0x2da   : > { %v5235_v34 = vpop.permute.xlu1 %5234 }
 0x2db   : > { %5310 = vst.msk [vmem:[%s11074_s20 + $0xa8] sm:$0xff] %vm5288_vm6, %v5235_v34 }
 0x2dc   : > { %v5245_v58 = vpop.permute.xlu0 %5244 }
 0x2dd   : > { %5315 = vst.msk [vmem:[%s11074_s20 + $0xd0] sm:$0xff] %vm5288_vm6, %v5245_v58 }
 0x2de   : > { %v5247_v27 = vpop.permute.xlu1 %5246 }
 0x2df   : > { %5316 = vst.msk [vmem:[%s11074_s20 + $0xd8] sm:$0xff] %vm5288_vm6, %v5247_v27 }
 0x2e0   : > { %v5241_v33 = vpop.permute.xlu0 %5240 }
 0x2e1   : > { %5313 = vst.msk [vmem:[%s11074_s20 + $0xc0] sm:$0xff] %vm5288_vm6, %v5241_v33 }
 0x2e2   : > { %v5243_v32 = vpop.permute.xlu1 %5242 }
 0x2e3   : > { %5314 = vst.msk [vmem:[%s11074_s20 + $0xc8] sm:$0xff] %vm5288_vm6, %v5243_v32 }
 0x2e5   : > { %v5249_v15 = vpop.permute.xlu0 %5248 }
 0x2e6   : > { %5317 = vst.msk [vmem:[%s11074_s20 + $0xe0] sm:$0xff] %vm5288_vm6, %v5249_v15 }
 0x2e7   : > { %v5251_v45 = vpop.permute.xlu1 %5250 }
 0x2e8   : > { %5318 = vst.msk [vmem:[%s11074_s20 + $0xe8] sm:$0xff] %vm5288_vm6, %v5251_v45 }
 0x2e9   : > { %v5253_v44 = vpop.permute.xlu0 %5252 }
 0x2ea   : > { %5319 = vst.msk [vmem:[%s11074_s20 + $0xf0] sm:$0xff] %vm5288_vm6, %v5253_v44 }
 0x2eb   : > { %v5255_v47 = vpop.permute.xlu1 %5254 }
 0x2ec   : > { %5320 = vst.msk [vmem:[%s11074_s20 + $0xf8] sm:$0xff] %vm5288_vm6, %v5255_v47 }
 0x2ed PF: > { %s18_s27 = sadd.s32 1, %s7157_s27  }
 0x2ee   : > { %p15_p4 = scmp.ge.s32.totalorder %s18_s27, 4  }
 0x2f0   :  { %17 = sbr.rel (!%p15_p4) target bundleno = 1 (0x1), region = 93 }

</bundles_post_ra>
